<compile_context>
chip_gen: v5e
topology: v5e:2x2
jax: 0.10.0
libtpu: 0.0.40
codegen_flags: <defaults>
</compile_context>

<pallas_src>
import numpy as np

import jax
import jax.numpy as jnp
from jax import lax
from jax.experimental import pallas as pl
from jax.experimental.pallas import tpu as pltpu

BN_EPS = 1e-3
LEAKY_SLOPE = 0.2
LANE = 128
VMEM_LIMIT = 32 * 1024 * 1024
TARGET_M = 4096          # output pixels (incl. wrap cols) per grid step
CONCAT_MAX_CIN = 128     # use the single K=9*Cin GEMM when Cin <= this


def _round_up(x, m):
    return (x + m - 1) // m * m


# --------------------------- dense (Linear + ReLU) -------------------------- #
def _dense_kernel(z_ref, w_ref, b_ref, o_ref):
    y = jnp.dot(z_ref[...], w_ref[...], preferred_element_type=jnp.float32)
    o_ref[...] = jnp.maximum(y + b_ref[...], 0.0).astype(o_ref.dtype)


def dense_relu(z_bf16, w_bf16, b_f32):
    """(B, K)bf16 @ (K, Dpad)bf16 + bias, ReLU, bf16 out.  Grid over column tiles."""
    B, K = z_bf16.shape
    Dpad = w_bf16.shape[1]
    tile_n = min(512, Dpad)
    grid = (Dpad // tile_n,)
    return pl.pallas_call(
        _dense_kernel,
        out_shape=jax.ShapeDtypeStruct((B, Dpad), jnp.bfloat16),
        grid=grid,
        in_specs=[
            pl.BlockSpec((B, K), lambda j: (0, 0)),
            pl.BlockSpec((K, tile_n), lambda j: (0, j)),
            pl.BlockSpec((1, tile_n), lambda j: (0, j)),
        ],
        out_specs=pl.BlockSpec((B, tile_n), lambda j: (0, j)),
        compiler_params=pltpu.CompilerParams(
            dimension_semantics=("parallel",),
            vmem_limit_bytes=VMEM_LIMIT,
        ),
    )(z_bf16, w_bf16, b_f32)


# ----------------- fused upsample2x + conv3x3 (+leaky, +BN stats) ----------- #
def _make_conv_kernel(M, Cin, Cpad, WoutP, apply_leaky, want_stats, use_concat):
    """One grid step computes M = TH*WoutP flattened output pixels.

    The 3x3 conv over the (already upsampled + halo'd) input is either
      * one (M, 9*Cin) x (9*Cin, Cpad) GEMM via a VMEM scratch  (Cin <= 128), or
      * nine shifted-slab (M, Cin) x (Cin, Cpad) GEMMs accumulated in f32.
    """

    def kernel(*refs):
        if use_concat:
            scratch_ref = refs[-1]
            refs = refs[:-1]
        x_ref, w_ref, b_ref = refs[0], refs[1], refs[2]
        if want_stats:
            mask_ref = refs[3]
            y_ref, ps_ref, ps2_ref = refs[4], refs[5], refs[6]
        else:
            y_ref = refs[3]

        if use_concat:
            # gather the 9 shifted slabs into (M, 9*Cin) and do ONE deep GEMM
            for k in range(9):
                ky, kx = divmod(k, 3)
                off = ky * WoutP + kx                     # static shift
                scratch_ref[:, k * Cin:(k + 1) * Cin] = x_ref[0, off:off + M, :]
            y = jnp.dot(scratch_ref[...], w_ref[...],
                        preferred_element_type=jnp.float32)
        else:
            y = jnp.zeros((M, Cpad), jnp.float32)
            for k in range(9):
                ky, kx = divmod(k, 3)
                off = ky * WoutP + kx
                y = y + jnp.dot(x_ref[0, off:off + M, :],
                                w_ref[k * Cin:(k + 1) * Cin, :],
                                preferred_element_type=jnp.float32)

        y = y + b_ref[...]                                # bias (already BN-folded)
        if apply_leaky:
            y = jnp.where(y >= 0.0, y, LEAKY_SLOPE * y)

        y_ref[0] = y.astype(y_ref.dtype)                  # bf16 (or f32 last layer)
        if want_stats:
            ym = y * mask_ref[...]                        # mask out wrap columns
            ps_ref[0] = jnp.sum(ym, axis=0, keepdims=True)
            ps2_ref[0] = jnp.sum(ym * y, axis=0, keepdims=True)

    return kernel


def conv_block(xh, w_bf16, b_f32, mask, *, M, Cin, Cpad, WoutP,
               apply_leaky, want_stats, out_dtype):
    G, LIN, _ = xh.shape
    use_concat = Cin <= CONCAT_MAX_CIN
    kernel = _make_conv_kernel(M, Cin, Cpad, WoutP, apply_leaky, want_stats,
                               use_concat)

    in_specs = [
        pl.BlockSpec((1, LIN, Cin), lambda g: (g, 0, 0)),
        pl.BlockSpec((9 * Cin, Cpad), lambda g: (0, 0)),    # VMEM-resident weight
        pl.BlockSpec((1, Cpad), lambda g: (0, 0)),
    ]
    inputs = [xh, w_bf16, b_f32]
    if want_stats:
        in_specs.append(pl.BlockSpec((M, 1), lambda g: (0, 0)))
        inputs.append(mask)
        out_shape = (
            jax.ShapeDtypeStruct((G, M, Cpad), out_dtype),
            jax.ShapeDtypeStruct((G, 1, Cpad), jnp.float32),
            jax.ShapeDtypeStruct((G, 1, Cpad), jnp.float32),
        )
        out_specs = (
            pl.BlockSpec((1, M, Cpad), lambda g: (g, 0, 0)),
            pl.BlockSpec((1, 1, Cpad), lambda g: (g, 0, 0)),
            pl.BlockSpec((1, 1, Cpad), lambda g: (g, 0, 0)),
        )
    else:
        out_shape = jax.ShapeDtypeStruct((G, M, Cpad), out_dtype)
        out_specs = pl.BlockSpec((1, M, Cpad), lambda g: (g, 0, 0))

    scratch_shapes = []
    if use_concat:
        scratch_shapes.append(pltpu.VMEM((M, 9 * Cin), jnp.bfloat16))

    return pl.pallas_call(
        kernel,
        out_shape=out_shape,
        grid=(G,),
        in_specs=in_specs,
        out_specs=out_specs,
        scratch_shapes=scratch_shapes,
        compiler_params=pltpu.CompilerParams(
            dimension_semantics=("parallel",),
            vmem_limit_bytes=VMEM_LIMIT,
        ),
    )(*inputs)


# --------------------------------- XLA glue --------------------------------- #
def _upsample2x(x):  # NHWC nearest, scale 2
    N, H, W, C = x.shape
    x = jnp.broadcast_to(x[:, :, None, :, None, :], (N, H, 2, W, 2, C))
    return x.reshape(N, 2 * H, 2 * W, C)


def _pick_tile_h(Hout, WoutP, target_m=TARGET_M):
    th = 1
    for c in range(1, Hout + 1):
        if Hout % c == 0 and c * WoutP <= target_m:
            th = c
    return th


def _prep_conv_input(x, pad_val, TH, WoutP):
    """(N,Hin,Win,C) bf16 -> halo-tiled flat bf16 (N*T, (TH+2)*WoutP+8, C).

    `pad_val` (C,) f32 is the per-channel value the halo is padded with; it is
    the value that the folded BatchNorm affine maps to zero, so the fold stays
    exact at the image border (pad_val == 0 when there is no preceding BN).
    """
    N, Hin, Win, C = x.shape
    Hout, Wout = 2 * Hin, 2 * Win
    xu = _upsample2x(x)                                        # bf16
    base = jnp.broadcast_to(pad_val.astype(x.dtype).reshape(1, 1, 1, C),
                            (N, Hout + 2, WoutP, C))
    xp = lax.dynamic_update_slice(base, xu, (0, 1, 1, 0))
    T = Hout // TH
    if T > 1:
        tiles = jnp.stack([xp[:, t * TH:t * TH + TH + 2] for t in range(T)],
                          axis=1)
    else:
        tiles = xp[:, None]
    flat = tiles.reshape(N * T, (TH + 2) * WoutP, C)
    flat = jnp.pad(flat, ((0, 0), (0, 8), (0, 0)))             # tail for last slab
    return flat


def _untile_output(y, N, T, TH, Wout, WoutP, Cout):
    """(N*T, TH*WoutP, Cpad) -> (N, Hout, Wout, Cout): drop wrap cols + pad chans."""
    y = y.reshape(N, T, TH, WoutP, y.shape[-1])[:, :, :, :Wout, :Cout]
    return y.reshape(N, T * TH, Wout, Cout)


# -------------------------------- parameters -------------------------------- #
def init_decoder_params(key, nc, ndf, nz, isize):
    out_size = isize // 16
    chans = [ndf * 8, ndf * 4, ndf * 2, ndf, nc]
    keys = iter(jax.random.split(key, 16))
    params = {"meta": dict(nc=nc, ndf=ndf, nz=nz, isize=isize, out_size=out_size)}
    d_out = ndf * 8 * out_size * out_size
    params["dense_w"] = 0.05 * jax.random.normal(next(keys), (nz, d_out), jnp.float32)
    params["dense_b"] = 0.05 * jax.random.normal(next(keys), (d_out,), jnp.float32)
    convs = []
    for i in range(4):
        cin, cout = chans[i], chans[i + 1]
        w = 0.05 * jax.random.normal(next(keys), (3, 3, cin, cout), jnp.float32)
        b = 0.05 * jax.random.normal(next(keys), (cout,), jnp.float32)
        if i < 3:  # last conv has no BatchNorm
            gamma = 1.0 + 0.1 * jax.random.normal(next(keys), (cout,), jnp.float32)
            beta = 0.1 * jax.random.normal(next(keys), (cout,), jnp.float32)
        else:
            gamma = beta = None
        convs.append(dict(w=w, b=b, gamma=gamma, beta=beta))
    params["convs"] = convs
    return params


def prepare_params(params):
    """One-time kernel-friendly transforms: permute dense columns to NHWC order,
    pad output channels (to 128 only when Cout >= 128, else to 8), keep conv
    weights in f32 so the per-forward BN fold can scale them before the bf16 cast."""
    meta = params["meta"]
    ndf, os_ = meta["ndf"], meta["out_size"]
    C8 = ndf * 8
    d_out = C8 * os_ * os_

    # fold .view(B, C, os, os) + NCHW->NHWC transpose into the weight columns
    perm = np.arange(d_out).reshape(C8, os_, os_).transpose(1, 2, 0).reshape(-1)
    dw = params["dense_w"][:, perm]
    db = params["dense_b"][perm]
    tile_n = 512 if d_out >= 512 else _round_up(d_out, LANE)
    d_pad = _round_up(d_out, tile_n)
    dw = jnp.pad(dw, ((0, 0), (0, d_pad - d_out))).astype(jnp.bfloat16)
    db = jnp.pad(db, (0, d_pad - d_out)).reshape(1, d_pad).astype(jnp.float32)

    prep = {"meta": dict(meta, dense_out=d_out, dense_pad=d_pad),
            "dense_w": dw, "dense_b": db, "convs": []}
    for layer in params["convs"]:
        w = layer["w"]                                   # (3,3,Cin,Cout) HWIO f32
        cin, cout = w.shape[2], w.shape[3]
        cpad = _round_up(cout, LANE) if cout >= LANE else _round_up(cout, 8)
        w9 = jnp.pad(w.reshape(9 * cin, cout), ((0, 0), (0, cpad - cout)))
        b = jnp.pad(layer["b"], (0, cpad - cout)).reshape(1, cpad).astype(jnp.float32)
        prep["convs"].append(dict(w=w9.astype(jnp.float32), b=b,
                                  gamma=layer["gamma"], beta=layer["beta"],
                                  cin=cin, cout=cout, cpad=cpad))
    return prep


# ------------------------------- forward passes ------------------------------ #
def decoder_forward(prep, z):
    meta = prep["meta"]
    ndf, os_ = meta["ndf"], meta["out_size"]
    B = z.shape[0]

    # Linear + ReLU (output columns already in NHWC pixel-major order), bf16 out
    h = dense_relu(z.astype(jnp.bfloat16), prep["dense_w"], prep["dense_b"])
    x = h[:, :meta["dense_out"]].reshape(B, os_, os_, ndf * 8)   # bf16 NHWC

    # running BN-fold state (identity before the first conv)
    scale = jnp.ones((ndf * 8,), jnp.float32)
    offset = jnp.zeros((ndf * 8,), jnp.float32)

    n_layers = len(prep["convs"])
    for i, layer in enumerate(prep["convs"]):
        Hin, Win, Cin = x.shape[1], x.shape[2], x.shape[3]
        Hout, Wout = 2 * Hin, 2 * Win
        WoutP = _round_up(Wout + 2, 8)           # sublane-aligned row stride
        TH = _pick_tile_h(Hout, WoutP)
        T = Hout // TH
        M = TH * WoutP
        Cout, Cpad = layer["cout"], layer["cpad"]
        last = (i == n_layers - 1)

        # ---- fold the previous layer's BN affine into THIS conv (exact) ----
        #   x_bn = scale*x_raw + offset  (zero-padded)     is replaced by
        #   x_raw padded with pad_val = -offset/scale, conv weight rows scaled
        #   per input channel, and bias shifted by sum_k w[k]^T @ offset.
        w9 = layer["w"]                                      # (9*Cin, Cpad) f32
        w_eff = (w9.reshape(9, Cin, Cpad) * scale[None, :, None]
                 ).reshape(9 * Cin, Cpad).astype(jnp.bfloat16)
        b_eff = layer["b"] + (offset @ w9.reshape(9, Cin, Cpad).sum(axis=0))[None, :]
        pad_val = jnp.where(scale != 0.0,
                            -offset / jnp.where(scale != 0.0, scale, 1.0), 0.0)

        xh = _prep_conv_input(x, pad_val, TH, WoutP)   # (B*T, LIN, Cin) bf16

        if last:
            y = conv_block(xh, w_eff, b_eff, None, M=M, Cin=Cin, Cpad=Cpad,
                           WoutP=WoutP, apply_leaky=False, want_stats=False,
                           out_dtype=jnp.float32)
            x = _untile_output(y, B, T, TH, Wout, WoutP, Cout)
        else:
            mask = jnp.asarray(
                (np.arange(M) % WoutP < Wout).astype(np.float32).reshape(M, 1))
            y, ps, ps2 = conv_block(xh, w_eff, b_eff, mask, M=M, Cin=Cin,
                                    Cpad=Cpad, WoutP=WoutP, apply_leaky=True,
                                    want_stats=True, out_dtype=jnp.bfloat16)
            # global (training-mode) BatchNorm statistics from per-tile f32 sums
            cnt = float(B * Hout * Wout)
            s1 = jnp.sum(ps, axis=(0, 1))[:Cout]
            s2 = jnp.sum(ps2, axis=(0, 1))[:Cout]
            mean = s1 / cnt
            var = jnp.maximum(s2 / cnt - mean * mean, 0.0)
            scale = layer["gamma"] * lax.rsqrt(var + BN_EPS)
            offset = layer["beta"] - mean * scale
            # raw (pre-BN) bf16 activation; the affine is folded into layer i+1
            x = _untile_output(y, B, T, TH, Wout, WoutP, Cout)

    # final output is f32 with only Cout=nc stored channels (padded to 8)
    return jnp.transpose(x, (0, 3, 1, 2))  # NCHW like the PyTorch module


def decoder_reference(params, z):
    """Pure-JAX reference (bf16 matmul operands, f32 accumulation) for checking."""
    meta = params["meta"]
    ndf, os_ = meta["ndf"], meta["out_size"]
    B = z.shape[0]
    h = jnp.dot(z.astype(jnp.bfloat16), params["dense_w"].astype(jnp.bfloat16),
                preferred_element_type=jnp.float32) + params["dense_b"]
    h = jnp.maximum(h, 0.0)
    x = jnp.transpose(h.reshape(B, ndf * 8, os_, os_), (0, 2, 3, 1))
    for i, layer in enumerate(params["convs"]):
        x = _upsample2x(x)
        y = lax.conv_general_dilated(
            x.astype(jnp.bfloat16), layer["w"].astype(jnp.bfloat16),
            (1, 1), "SAME", dimension_numbers=("NHWC", "HWIO", "NHWC"),
            preferred_element_type=jnp.float32) + layer["b"]
        if i < 3:
            y = jnp.where(y >= 0.0, y, LEAKY_SLOPE * y)
            mean = jnp.mean(y, axis=(0, 1, 2), keepdims=True)
            var = jnp.mean((y - mean) ** 2, axis=(0, 1, 2), keepdims=True)
            y = layer["gamma"] * (y - mean) * lax.rsqrt(var + BN_EPS) + layer["beta"]
        x = y
    return jnp.transpose(x, (0, 3, 1, 2))


if __name__ == "__main__":
    # Tolerance note: activations are stored in bf16 between layers and the BN
    # affine is folded into the next conv's bf16 weights (a mathematically
    # equivalent factorisation), so kernel-vs-reference differences are genuine
    # bf16 rounding noise accumulated over 4 layers; structural bugs produce
    # errors orders of magnitude larger than the 2e-2 bound used here.
    configs = [
        dict(nc=3, ndf=4,  nz=8,  isize=16, B=2),   # tiny; K-concat path only
        dict(nc=3, ndf=16, nz=12, isize=32, B=2),   # wider channels, 32x32 output
        dict(nc=3, ndf=32, nz=8,  isize=16, B=2),   # exercises the Cin>128 path
    ]
    key = jax.random.PRNGKey(0)
    for cfg in configs:
        key, pkey, zkey = jax.random.split(key, 3)
        params = init_decoder_params(pkey, cfg["nc"], cfg["ndf"], cfg["nz"],
                                     cfg["isize"])
        prep = prepare_params(params)
        z = jax.random.normal(zkey, (cfg["B"], cfg["nz"]), jnp.float32)

        fwd = jax.jit(lambda zz, p=prep: decoder_forward(p, zz))
        out = jax.block_until_ready(fwd(z))
        assert out.shape == (cfg["B"], cfg["nc"], cfg["isize"], cfg["isize"]), \
            (cfg, out.shape)

        ref = jax.block_until_ready(decoder_reference(params, z))
        max_err = float(jnp.max(jnp.abs(out - ref)))
        assert jnp.allclose(out, ref, atol=2e-2, rtol=2e-2), \
            f"mismatch for cfg {cfg}: max abs err {max_err}"
    print("KERNEL_OK")
</pallas_src>

<mosaic_0001>
module attributes {stable_mosaic.version = 11 : i64} {
  func.func @_dense_kernel(%arg0: i32, %arg1: memref<2x8xbf16, #tpu.memory_space<vmem>>, %arg2: memref<8x128xbf16, #tpu.memory_space<vmem>>, %arg3: memref<1x128xf32, #tpu.memory_space<vmem>>, %arg4: memref<2x128xbf16, #tpu.memory_space<vmem>>) attributes {dimension_semantics = [#tpu.dimension_semantics<parallel>], iteration_bounds = array<i64: 1>, scalar_prefetch = 0 : i64, scratch_operands = 0 : i64, tpu.core_type = #tpu.core_type<tc>, window_params = [{pipeline_mode = #tpu.pipeline_mode<synchronous>, transform_indices = @transform_0, window_bounds = array<i64: 2, 8>}, {transform_indices = @transform_1, window_bounds = array<i64: 8, 128>}, {transform_indices = @transform_2, window_bounds = array<i64: 1, 128>}, {transform_indices = @transform_3, window_bounds = array<i64: 2, 128>}]} {
    %c0 = arith.constant 0 : index
    %c0_0 = arith.constant 0 : index
    %0 = vector.load %arg1[%c0, %c0_0] : memref<2x8xbf16, #tpu.memory_space<vmem>>, vector<2x8xbf16>
    %c0_1 = arith.constant 0 : index
    %c0_2 = arith.constant 0 : index
    %1 = vector.load %arg2[%c0_1, %c0_2] : memref<8x128xbf16, #tpu.memory_space<vmem>>, vector<8x128xbf16>
    %cst = arith.constant dense<0.000000e+00> : vector<2x128xf32>
    %2 = tpu.matmul %0, %1, %cst {dimension_numbers = #tpu.dot_dimension_numbers<[1], [0], [0], [1], [0, 0, 1, 1], [], []>} : vector<2x8xbf16>, vector<8x128xbf16>, vector<2x128xf32> -> vector<2x128xf32>
    %c0_3 = arith.constant 0 : index
    %c0_4 = arith.constant 0 : index
    %3 = vector.load %arg3[%c0_3, %c0_4] : memref<1x128xf32, #tpu.memory_space<vmem>>, vector<1x128xf32>
    %4 = vector.broadcast %3 : vector<1x128xf32> to vector<2x128xf32>
    %5 = arith.addf %2, %4 : vector<2x128xf32>
    %cst_5 = arith.constant 0.000000e+00 : f32
    %6 = vector.broadcast %cst_5 : f32 to vector<2x128xf32>
    %7 = arith.maximumf %5, %6 : vector<2x128xf32>
    %8 = arith.truncf %7 : vector<2x128xf32> to vector<2x128xbf16>
    %c0_6 = arith.constant 0 : index
    %c0_7 = arith.constant 0 : index
    %9 = vector.load %arg4[%c0_6, %c0_7] : memref<2x128xbf16, #tpu.memory_space<vmem>>, vector<2x128xbf16>
    tpu.vector_store %arg4[%c0_6, %c0_7], %8 {strides = array<i32>} : memref<2x128xbf16, #tpu.memory_space<vmem>>, vector<2x128xbf16>,
    return
  }
  func.func @transform_0(%arg0: i32) -> (i32, i32) {
    %c0_i32 = arith.constant 0 : i32
    %c0_i32_0 = arith.constant 0 : i32
    %c0_i32_1 = arith.constant 0 : i32
    return %c0_i32, %c0_i32_0 : i32, i32
  }
  func.func @transform_1(%arg0: i32) -> (i32, i32) {
    %c0_i32 = arith.constant 0 : i32
    %c0_i32_0 = arith.constant 0 : i32
    return %c0_i32, %arg0 : i32, i32
  }
  func.func @transform_2(%arg0: i32) -> (i32, i32) {
    %c0_i32 = arith.constant 0 : i32
    %c0_i32_0 = arith.constant 0 : i32
    return %c0_i32, %arg0 : i32, i32
  }
  func.func @transform_3(%arg0: i32) -> (i32, i32) {
    %c0_i32 = arith.constant 0 : i32
    %c0_i32_0 = arith.constant 0 : i32
    return %c0_i32, %arg0 : i32, i32
  }
}

module attributes {stable_mosaic.version = 11 : i64} {
  func.func @kernel(%arg0: i32, %arg1: memref<1x40x32xbf16, #tpu.memory_space<vmem>>, %arg2: memref<288x16xbf16, #tpu.memory_space<vmem>>, %arg3: memref<1x16xf32, #tpu.memory_space<vmem>>, %arg4: memref<16x1xf32, #tpu.memory_space<vmem>>, %arg5: memref<1x16x16xbf16, #tpu.memory_space<vmem>>, %arg6: memref<1x1x16xf32, #tpu.memory_space<vmem>>, %arg7: memref<1x1x16xf32, #tpu.memory_space<vmem>>, %arg8: memref<16x288xbf16, #tpu.memory_space<vmem>>) attributes {dimension_semantics = [#tpu.dimension_semantics<parallel>], iteration_bounds = array<i64: 2>, scalar_prefetch = 0 : i64, scratch_operands = 1 : i64, tpu.core_type = #tpu.core_type<tc>, window_params = [{transform_indices = @transform_0, window_bounds = array<i64: 1, 40, 32>}, {pipeline_mode = #tpu.pipeline_mode<synchronous>, transform_indices = @transform_1, window_bounds = array<i64: 288, 16>}, {pipeline_mode = #tpu.pipeline_mode<synchronous>, transform_indices = @transform_2, window_bounds = array<i64: 1, 16>}, {pipeline_mode = #tpu.pipeline_mode<synchronous>, transform_indices = @transform_3, window_bounds = array<i64: 16, 1>}, {transform_indices = @transform_4, window_bounds = array<i64: 1, 16, 16>}, {transform_indices = @transform_5, window_bounds = array<i64: 1, 1, 16>}, {transform_indices = @transform_6, window_bounds = array<i64: 1, 1, 16>}]} {
    %c0 = arith.constant 0 : index
    %c0_0 = arith.constant 0 : index
    %c0_1 = arith.constant 0 : index
    %0 = vector.load %arg1[%c0, %c0_0, %c0_1] : memref<1x40x32xbf16, #tpu.memory_space<vmem>>, vector<1x16x32xbf16>
    %1 = vector.shape_cast %0 : vector<1x16x32xbf16> to vector<16x32xbf16>
    %c0_2 = arith.constant 0 : index
    %c0_3 = arith.constant 0 : index
    %2 = vector.load %arg8[%c0_2, %c0_3] : memref<16x288xbf16, #tpu.memory_space<vmem>>, vector<16x32xbf16>
    tpu.vector_store %arg8[%c0_2, %c0_3], %1 {strides = array<i32>} : memref<16x288xbf16, #tpu.memory_space<vmem>>, vector<16x32xbf16>,
    %c0_4 = arith.constant 0 : index
    %c1 = arith.constant 1 : index
    %c0_5 = arith.constant 0 : index
    %3 = vector.load %arg1[%c0_4, %c1, %c0_5] : memref<1x40x32xbf16, #tpu.memory_space<vmem>>, vector<1x16x32xbf16>
    %4 = vector.shape_cast %3 : vector<1x16x32xbf16> to vector<16x32xbf16>
    %c0_6 = arith.constant 0 : index
    %c32 = arith.constant 32 : index
    %5 = vector.load %arg8[%c0_6, %c32] : memref<16x288xbf16, #tpu.memory_space<vmem>>, vector<16x32xbf16>
    tpu.vector_store %arg8[%c0_6, %c32], %4 {strides = array<i32>} : memref<16x288xbf16, #tpu.memory_space<vmem>>, vector<16x32xbf16>,
    %c0_7 = arith.constant 0 : index
    %c2 = arith.constant 2 : index
    %c0_8 = arith.constant 0 : index
    %6 = vector.load %arg1[%c0_7, %c2, %c0_8] : memref<1x40x32xbf16, #tpu.memory_space<vmem>>, vector<1x16x32xbf16>
    %7 = vector.shape_cast %6 : vector<1x16x32xbf16> to vector<16x32xbf16>
    %c0_9 = arith.constant 0 : index
    %c64 = arith.constant 64 : index
    %8 = vector.load %arg8[%c0_9, %c64] : memref<16x288xbf16, #tpu.memory_space<vmem>>, vector<16x32xbf16>
    tpu.vector_store %arg8[%c0_9, %c64], %7 {strides = array<i32>} : memref<16x288xbf16, #tpu.memory_space<vmem>>, vector<16x32xbf16>,
    %c0_10 = arith.constant 0 : index
    %c8 = arith.constant 8 : index
    %c0_11 = arith.constant 0 : index
    %9 = vector.load %arg1[%c0_10, %c8, %c0_11] : memref<1x40x32xbf16, #tpu.memory_space<vmem>>, vector<1x16x32xbf16>
    %10 = vector.shape_cast %9 : vector<1x16x32xbf16> to vector<16x32xbf16>
    %c0_12 = arith.constant 0 : index
    %c96 = arith.constant 96 : index
    %11 = vector.load %arg8[%c0_12, %c96] : memref<16x288xbf16, #tpu.memory_space<vmem>>, vector<16x32xbf16>
    tpu.vector_store %arg8[%c0_12, %c96], %10 {strides = array<i32>} : memref<16x288xbf16, #tpu.memory_space<vmem>>, vector<16x32xbf16>,
    %c0_13 = arith.constant 0 : index
    %c9 = arith.constant 9 : index
    %c0_14 = arith.constant 0 : index
    %12 = vector.load %arg1[%c0_13, %c9, %c0_14] : memref<1x40x32xbf16, #tpu.memory_space<vmem>>, vector<1x16x32xbf16>
    %13 = vector.shape_cast %12 : vector<1x16x32xbf16> to vector<16x32xbf16>
    %c0_15 = arith.constant 0 : index
    %c128 = arith.constant 128 : index
    %14 = vector.load %arg8[%c0_15, %c128] : memref<16x288xbf16, #tpu.memory_space<vmem>>, vector<16x32xbf16>
    tpu.vector_store %arg8[%c0_15, %c128], %13 {strides = array<i32>} : memref<16x288xbf16, #tpu.memory_space<vmem>>, vector<16x32xbf16>,
    %c0_16 = arith.constant 0 : index
    %c10 = arith.constant 10 : index
    %c0_17 = arith.constant 0 : index
    %15 = vector.load %arg1[%c0_16, %c10, %c0_17] : memref<1x40x32xbf16, #tpu.memory_space<vmem>>, vector<1x16x32xbf16>
    %16 = vector.shape_cast %15 : vector<1x16x32xbf16> to vector<16x32xbf16>
    %c0_18 = arith.constant 0 : index
    %c160 = arith.constant 160 : index
    %17 = vector.load %arg8[%c0_18, %c160] : memref<16x288xbf16, #tpu.memory_space<vmem>>, vector<16x32xbf16>
    tpu.vector_store %arg8[%c0_18, %c160], %16 {strides = array<i32>} : memref<16x288xbf16, #tpu.memory_space<vmem>>, vector<16x32xbf16>,
    %c0_19 = arith.constant 0 : index
    %c16 = arith.constant 16 : index
    %c0_20 = arith.constant 0 : index
    %18 = vector.load %arg1[%c0_19, %c16, %c0_20] : memref<1x40x32xbf16, #tpu.memory_space<vmem>>, vector<1x16x32xbf16>
    %19 = vector.shape_cast %18 : vector<1x16x32xbf16> to vector<16x32xbf16>
    %c0_21 = arith.constant 0 : index
    %c192 = arith.constant 192 : index
    %20 = vector.load %arg8[%c0_21, %c192] : memref<16x288xbf16, #tpu.memory_space<vmem>>, vector<16x32xbf16>
    tpu.vector_store %arg8[%c0_21, %c192], %19 {strides = array<i32>} : memref<16x288xbf16, #tpu.memory_space<vmem>>, vector<16x32xbf16>,
    %c0_22 = arith.constant 0 : index
    %c17 = arith.constant 17 : index
    %c0_23 = arith.constant 0 : index
    %21 = vector.load %arg1[%c0_22, %c17, %c0_23] : memref<1x40x32xbf16, #tpu.memory_space<vmem>>, vector<1x16x32xbf16>
    %22 = vector.shape_cast %21 : vector<1x16x32xbf16> to vector<16x32xbf16>
    %c0_24 = arith.constant 0 : index
    %c224 = arith.constant 224 : index
    %23 = vector.load %arg8[%c0_24, %c224] : memref<16x288xbf16, #tpu.memory_space<vmem>>, vector<16x32xbf16>
    tpu.vector_store %arg8[%c0_24, %c224], %22 {strides = array<i32>} : memref<16x288xbf16, #tpu.memory_space<vmem>>, vector<16x32xbf16>,
    %c0_25 = arith.constant 0 : index
    %c18 = arith.constant 18 : index
    %c0_26 = arith.constant 0 : index
    %24 = vector.load %arg1[%c0_25, %c18, %c0_26] : memref<1x40x32xbf16, #tpu.memory_space<vmem>>, vector<1x16x32xbf16>
    %25 = vector.shape_cast %24 : vector<1x16x32xbf16> to vector<16x32xbf16>
    %c0_27 = arith.constant 0 : index
    %c256 = arith.constant 256 : index
    %26 = vector.load %arg8[%c0_27, %c256] : memref<16x288xbf16, #tpu.memory_space<vmem>>, vector<16x32xbf16>
    tpu.vector_store %arg8[%c0_27, %c256], %25 {strides = array<i32>} : memref<16x288xbf16, #tpu.memory_space<vmem>>, vector<16x32xbf16>,
    %c0_28 = arith.constant 0 : index
    %c0_29 = arith.constant 0 : index
    %27 = vector.load %arg8[%c0_28, %c0_29] : memref<16x288xbf16, #tpu.memory_space<vmem>>, vector<16x288xbf16>
    %c0_30 = arith.constant 0 : index
    %c0_31 = arith.constant 0 : index
    %28 = vector.load %arg2[%c0_30, %c0_31] : memref<288x16xbf16, #tpu.memory_space<vmem>>, vector<288x16xbf16>
    %cst = arith.constant dense<0.000000e+00> : vector<16x16xf32>
    %29 = tpu.matmul %27, %28, %cst {dimension_numbers = #tpu.dot_dimension_numbers<[1], [0], [0], [1], [0, 0, 1, 1], [], []>} : vector<16x288xbf16>, vector<288x16xbf16>, vector<16x16xf32> -> vector<16x16xf32>
    %c0_32 = arith.constant 0 : index
    %c0_33 = arith.constant 0 : index
    %30 = vector.load %arg3[%c0_32, %c0_33] : memref<1x16xf32, #tpu.memory_space<vmem>>, vector<1x16xf32>
    %31 = vector.broadcast %30 : vector<1x16xf32> to vector<16x16xf32>
    %32 = arith.addf %29, %31 : vector<16x16xf32>
    %cst_34 = arith.constant 0.000000e+00 : f32
    %33 = vector.broadcast %cst_34 : f32 to vector<16x16xf32>
    %34 = arith.cmpf oge, %32, %33 : vector<16x16xf32>
    %cst_35 = arith.constant 2.000000e-01 : f32
    %35 = vector.broadcast %cst_35 : f32 to vector<16x16xf32>
    %36 = arith.mulf %35, %32 : vector<16x16xf32>
    %37 = arith.select %34, %32, %36 : vector<16x16xi1>, vector<16x16xf32>
    %38 = arith.truncf %37 : vector<16x16xf32> to vector<16x16xbf16>
    %c0_36 = arith.constant 0 : index
    %c0_37 = arith.constant 0 : index
    %c0_38 = arith.constant 0 : index
    %39 = vector.load %arg5[%c0_36, %c0_37, %c0_38] : memref<1x16x16xbf16, #tpu.memory_space<vmem>>, vector<1x16x16xbf16>
    %40 = vector.shape_cast %39 : vector<1x16x16xbf16> to vector<16x16xbf16>
    %41 = vector.shape_cast %38 : vector<16x16xbf16> to vector<1x16x16xbf16>
    tpu.vector_store %arg5[%c0_36, %c0_37, %c0_38], %41 {strides = array<i32>} : memref<1x16x16xbf16, #tpu.memory_space<vmem>>, vector<1x16x16xbf16>,
    %c0_39 = arith.constant 0 : index
    %c0_40 = arith.constant 0 : index
    %42 = vector.load %arg4[%c0_39, %c0_40] : memref<16x1xf32, #tpu.memory_space<vmem>>, vector<16x1xf32>
    %43 = vector.broadcast %42 : vector<16x1xf32> to vector<16x16xf32>
    %44 = arith.mulf %37, %43 : vector<16x16xf32>
    %cst_41 = arith.constant dense<0.000000e+00> : vector<16xf32>
    %45 = vector.multi_reduction <add>, %44, %cst_41 [0] : vector<16x16xf32> to vector<16xf32>
    %46 = vector.shape_cast %45 : vector<16xf32> to vector<1x16xf32>
    %c0_42 = arith.constant 0 : index
    %c0_43 = arith.constant 0 : index
    %c0_44 = arith.constant 0 : index
    %47 = vector.load %arg6[%c0_42, %c0_43, %c0_44] : memref<1x1x16xf32, #tpu.memory_space<vmem>>, vector<1x1x16xf32>
    %48 = vector.shape_cast %47 : vector<1x1x16xf32> to vector<1x16xf32>
    %49 = vector.shape_cast %46 : vector<1x16xf32> to vector<1x1x16xf32>
    tpu.vector_store %arg6[%c0_42, %c0_43, %c0_44], %49 {strides = array<i32>} : memref<1x1x16xf32, #tpu.memory_space<vmem>>, vector<1x1x16xf32>,
    %50 = arith.mulf %44, %37 : vector<16x16xf32>
    %cst_45 = arith.constant dense<0.000000e+00> : vector<16xf32>
    %51 = vector.multi_reduction <add>, %50, %cst_45 [0] : vector<16x16xf32> to vector<16xf32>
    %52 = vector.shape_cast %51 : vector<16xf32> to vector<1x16xf32>
    %c0_46 = arith.constant 0 : index
    %c0_47 = arith.constant 0 : index
    %c0_48 = arith.constant 0 : index
    %53 = vector.load %arg7[%c0_46, %c0_47, %c0_48] : memref<1x1x16xf32, #tpu.memory_space<vmem>>, vector<1x1x16xf32>
    %54 = vector.shape_cast %53 : vector<1x1x16xf32> to vector<1x16xf32>
    %55 = vector.shape_cast %52 : vector<1x16xf32> to vector<1x1x16xf32>
    tpu.vector_store %arg7[%c0_46, %c0_47, %c0_48], %55 {strides = array<i32>} : memref<1x1x16xf32, #tpu.memory_space<vmem>>, vector<1x1x16xf32>,
    return
  }
  func.func @transform_0(%arg0: i32) -> (i32, i32, i32) {
    %c0_i32 = arith.constant 0 : i32
    %c0_i32_0 = arith.constant 0 : i32
    %c0_i32_1 = arith.constant 0 : i32
    return %arg0, %c0_i32, %c0_i32_0 : i32, i32, i32
  }
  func.func @transform_1(%arg0: i32) -> (i32, i32) {
    %c0_i32 = arith.constant 0 : i32
    %c0_i32_0 = arith.constant 0 : i32
    %c0_i32_1 = arith.constant 0 : i32
    return %c0_i32, %c0_i32_0 : i32, i32
  }
  func.func @transform_2(%arg0: i32) -> (i32, i32) {
    %c0_i32 = arith.constant 0 : i32
    %c0_i32_0 = arith.constant 0 : i32
    %c0_i32_1 = arith.constant 0 : i32
    return %c0_i32, %c0_i32_0 : i32, i32
  }
  func.func @transform_3(%arg0: i32) -> (i32, i32) {
    %c0_i32 = arith.constant 0 : i32
    %c0_i32_0 = arith.constant 0 : i32
    %c0_i32_1 = arith.constant 0 : i32
    return %c0_i32, %c0_i32_0 : i32, i32
  }
  func.func @transform_4(%arg0: i32) -> (i32, i32, i32) {
    %c0_i32 = arith.constant 0 : i32
    %c0_i32_0 = arith.constant 0 : i32
    %c0_i32_1 = arith.constant 0 : i32
    return %arg0, %c0_i32, %c0_i32_0 : i32, i32, i32
  }
  func.func @transform_5(%arg0: i32) -> (i32, i32, i32) {
    %c0_i32 = arith.constant 0 : i32
    %c0_i32_0 = arith.constant 0 : i32
    %c0_i32_1 = arith.constant 0 : i32
    return %arg0, %c0_i32, %c0_i32_0 : i32, i32, i32
  }
  func.func @transform_6(%arg0: i32) -> (i32, i32, i32) {
    %c0_i32 = arith.constant 0 : i32
    %c0_i32_0 = arith.constant 0 : i32
    %c0_i32_1 = arith.constant 0 : i32
    return %arg0, %c0_i32, %c0_i32_0 : i32, i32, i32
  }
}

module attributes {stable_mosaic.version = 11 : i64} {
  func.func @kernel(%arg0: i32, %arg1: memref<1x56x16xbf16, #tpu.memory_space<vmem>>, %arg2: memref<144x8xbf16, #tpu.memory_space<vmem>>, %arg3: memref<1x8xf32, #tpu.memory_space<vmem>>, %arg4: memref<32x1xf32, #tpu.memory_space<vmem>>, %arg5: memref<1x32x8xbf16, #tpu.memory_space<vmem>>, %arg6: memref<1x1x8xf32, #tpu.memory_space<vmem>>, %arg7: memref<1x1x8xf32, #tpu.memory_space<vmem>>, %arg8: memref<32x144xbf16, #tpu.memory_space<vmem>>) attributes {dimension_semantics = [#tpu.dimension_semantics<parallel>], iteration_bounds = array<i64: 2>, scalar_prefetch = 0 : i64, scratch_operands = 1 : i64, tpu.core_type = #tpu.core_type<tc>, window_params = [{transform_indices = @transform_0, window_bounds = array<i64: 1, 56, 16>}, {pipeline_mode = #tpu.pipeline_mode<synchronous>, transform_indices = @transform_1, window_bounds = array<i64: 144, 8>}, {pipeline_mode = #tpu.pipeline_mode<synchronous>, transform_indices = @transform_2, window_bounds = array<i64: 1, 8>}, {pipeline_mode = #tpu.pipeline_mode<synchronous>, transform_indices = @transform_3, window_bounds = array<i64: 32, 1>}, {transform_indices = @transform_4, window_bounds = array<i64: 1, 32, 8>}, {transform_indices = @transform_5, window_bounds = array<i64: 1, 1, 8>}, {transform_indices = @transform_6, window_bounds = array<i64: 1, 1, 8>}]} {
    %c0 = arith.constant 0 : index
    %c0_0 = arith.constant 0 : index
    %c0_1 = arith.constant 0 : index
    %0 = vector.load %arg1[%c0, %c0_0, %c0_1] : memref<1x56x16xbf16, #tpu.memory_space<vmem>>, vector<1x32x16xbf16>
    %1 = vector.shape_cast %0 : vector<1x32x16xbf16> to vector<32x16xbf16>
    %c0_2 = arith.constant 0 : index
    %c0_3 = arith.constant 0 : index
    %2 = vector.load %arg8[%c0_2, %c0_3] : memref<32x144xbf16, #tpu.memory_space<vmem>>, vector<32x16xbf16>
    tpu.vector_store %arg8[%c0_2, %c0_3], %1 {strides = array<i32>} : memref<32x144xbf16, #tpu.memory_space<vmem>>, vector<32x16xbf16>,
    %c0_4 = arith.constant 0 : index
    %c1 = arith.constant 1 : index
    %c0_5 = arith.constant 0 : index
    %3 = vector.load %arg1[%c0_4, %c1, %c0_5] : memref<1x56x16xbf16, #tpu.memory_space<vmem>>, vector<1x32x16xbf16>
    %4 = vector.shape_cast %3 : vector<1x32x16xbf16> to vector<32x16xbf16>
    %c0_6 = arith.constant 0 : index
    %c16 = arith.constant 16 : index
    %5 = vector.load %arg8[%c0_6, %c16] : memref<32x144xbf16, #tpu.memory_space<vmem>>, vector<32x16xbf16>
    tpu.vector_store %arg8[%c0_6, %c16], %4 {strides = array<i32>} : memref<32x144xbf16, #tpu.memory_space<vmem>>, vector<32x16xbf16>,
    %c0_7 = arith.constant 0 : index
    %c2 = arith.constant 2 : index
    %c0_8 = arith.constant 0 : index
    %6 = vector.load %arg1[%c0_7, %c2, %c0_8] : memref<1x56x16xbf16, #tpu.memory_space<vmem>>, vector<1x32x16xbf16>
    %7 = vector.shape_cast %6 : vector<1x32x16xbf16> to vector<32x16xbf16>
    %c0_9 = arith.constant 0 : index
    %c32 = arith.constant 32 : index
    %8 = vector.load %arg8[%c0_9, %c32] : memref<32x144xbf16, #tpu.memory_space<vmem>>, vector<32x16xbf16>
    tpu.vector_store %arg8[%c0_9, %c32], %7 {strides = array<i32>} : memref<32x144xbf16, #tpu.memory_space<vmem>>, vector<32x16xbf16>,
    %c0_10 = arith.constant 0 : index
    %c8 = arith.constant 8 : index
    %c0_11 = arith.constant 0 : index
    %9 = vector.load %arg1[%c0_10, %c8, %c0_11] : memref<1x56x16xbf16, #tpu.memory_space<vmem>>, vector<1x32x16xbf16>
    %10 = vector.shape_cast %9 : vector<1x32x16xbf16> to vector<32x16xbf16>
    %c0_12 = arith.constant 0 : index
    %c48 = arith.constant 48 : index
    %11 = vector.load %arg8[%c0_12, %c48] : memref<32x144xbf16, #tpu.memory_space<vmem>>, vector<32x16xbf16>
    tpu.vector_store %arg8[%c0_12, %c48], %10 {strides = array<i32>} : memref<32x144xbf16, #tpu.memory_space<vmem>>, vector<32x16xbf16>,
    %c0_13 = arith.constant 0 : index
    %c9 = arith.constant 9 : index
    %c0_14 = arith.constant 0 : index
    %12 = vector.load %arg1[%c0_13, %c9, %c0_14] : memref<1x56x16xbf16, #tpu.memory_space<vmem>>, vector<1x32x16xbf16>
    %13 = vector.shape_cast %12 : vector<1x32x16xbf16> to vector<32x16xbf16>
    %c0_15 = arith.constant 0 : index
    %c64 = arith.constant 64 : index
    %14 = vector.load %arg8[%c0_15, %c64] : memref<32x144xbf16, #tpu.memory_space<vmem>>, vector<32x16xbf16>
    tpu.vector_store %arg8[%c0_15, %c64], %13 {strides = array<i32>} : memref<32x144xbf16, #tpu.memory_space<vmem>>, vector<32x16xbf16>,
    %c0_16 = arith.constant 0 : index
    %c10 = arith.constant 10 : index
    %c0_17 = arith.constant 0 : index
    %15 = vector.load %arg1[%c0_16, %c10, %c0_17] : memref<1x56x16xbf16, #tpu.memory_space<vmem>>, vector<1x32x16xbf16>
    %16 = vector.shape_cast %15 : vector<1x32x16xbf16> to vector<32x16xbf16>
    %c0_18 = arith.constant 0 : index
    %c80 = arith.constant 80 : index
    %17 = vector.load %arg8[%c0_18, %c80] : memref<32x144xbf16, #tpu.memory_space<vmem>>, vector<32x16xbf16>
    tpu.vector_store %arg8[%c0_18, %c80], %16 {strides = array<i32>} : memref<32x144xbf16, #tpu.memory_space<vmem>>, vector<32x16xbf16>,
    %c0_19 = arith.constant 0 : index
    %c16_20 = arith.constant 16 : index
    %c0_21 = arith.constant 0 : index
    %18 = vector.load %arg1[%c0_19, %c16_20, %c0_21] : memref<1x56x16xbf16, #tpu.memory_space<vmem>>, vector<1x32x16xbf16>
    %19 = vector.shape_cast %18 : vector<1x32x16xbf16> to vector<32x16xbf16>
    %c0_22 = arith.constant 0 : index
    %c96 = arith.constant 96 : index
    %20 = vector.load %arg8[%c0_22, %c96] : memref<32x144xbf16, #tpu.memory_space<vmem>>, vector<32x16xbf16>
    tpu.vector_store %arg8[%c0_22, %c96], %19 {strides = array<i32>} : memref<32x144xbf16, #tpu.memory_space<vmem>>, vector<32x16xbf16>,
    %c0_23 = arith.constant 0 : index
    %c17 = arith.constant 17 : index
    %c0_24 = arith.constant 0 : index
    %21 = vector.load %arg1[%c0_23, %c17, %c0_24] : memref<1x56x16xbf16, #tpu.memory_space<vmem>>, vector<1x32x16xbf16>
    %22 = vector.shape_cast %21 : vector<1x32x16xbf16> to vector<32x16xbf16>
    %c0_25 = arith.constant 0 : index
    %c112 = arith.constant 112 : index
    %23 = vector.load %arg8[%c0_25, %c112] : memref<32x144xbf16, #tpu.memory_space<vmem>>, vector<32x16xbf16>
    tpu.vector_store %arg8[%c0_25, %c112], %22 {strides = array<i32>} : memref<32x144xbf16, #tpu.memory_space<vmem>>, vector<32x16xbf16>,
    %c0_26 = arith.constant 0 : index
    %c18 = arith.constant 18 : index
    %c0_27 = arith.constant 0 : index
    %24 = vector.load %arg1[%c0_26, %c18, %c0_27] : memref<1x56x16xbf16, #tpu.memory_space<vmem>>, vector<1x32x16xbf16>
    %25 = vector.shape_cast %24 : vector<1x32x16xbf16> to vector<32x16xbf16>
    %c0_28 = arith.constant 0 : index
    %c128 = arith.constant 128 : index
    %26 = vector.load %arg8[%c0_28, %c128] : memref<32x144xbf16, #tpu.memory_space<vmem>>, vector<32x16xbf16>
    tpu.vector_store %arg8[%c0_28, %c128], %25 {strides = array<i32>} : memref<32x144xbf16, #tpu.memory_space<vmem>>, vector<32x16xbf16>,
    %c0_29 = arith.constant 0 : index
    %c0_30 = arith.constant 0 : index
    %27 = vector.load %arg8[%c0_29, %c0_30] : memref<32x144xbf16, #tpu.memory_space<vmem>>, vector<32x144xbf16>
    %c0_31 = arith.constant 0 : index
    %c0_32 = arith.constant 0 : index
    %28 = vector.load %arg2[%c0_31, %c0_32] : memref<144x8xbf16, #tpu.memory_space<vmem>>, vector<144x8xbf16>
    %cst = arith.constant dense<0.000000e+00> : vector<32x8xf32>
    %29 = tpu.matmul %27, %28, %cst {dimension_numbers = #tpu.dot_dimension_numbers<[1], [0], [0], [1], [0, 0, 1, 1], [], []>} : vector<32x144xbf16>, vector<144x8xbf16>, vector<32x8xf32> -> vector<32x8xf32>
    %c0_33 = arith.constant 0 : index
    %c0_34 = arith.constant 0 : index
    %30 = vector.load %arg3[%c0_33, %c0_34] : memref<1x8xf32, #tpu.memory_space<vmem>>, vector<1x8xf32>
    %31 = vector.broadcast %30 : vector<1x8xf32> to vector<32x8xf32>
    %32 = arith.addf %29, %31 : vector<32x8xf32>
    %cst_35 = arith.constant 0.000000e+00 : f32
    %33 = vector.broadcast %cst_35 : f32 to vector<32x8xf32>
    %34 = arith.cmpf oge, %32, %33 : vector<32x8xf32>
    %cst_36 = arith.constant 2.000000e-01 : f32
    %35 = vector.broadcast %cst_36 : f32 to vector<32x8xf32>
    %36 = arith.mulf %35, %32 : vector<32x8xf32>
    %37 = arith.select %34, %32, %36 : vector<32x8xi1>, vector<32x8xf32>
    %38 = arith.truncf %37 : vector<32x8xf32> to vector<32x8xbf16>
    %c0_37 = arith.constant 0 : index
    %c0_38 = arith.constant 0 : index
    %c0_39 = arith.constant 0 : index
    %39 = vector.load %arg5[%c0_37, %c0_38, %c0_39] : memref<1x32x8xbf16, #tpu.memory_space<vmem>>, vector<1x32x8xbf16>
    %40 = vector.shape_cast %39 : vector<1x32x8xbf16> to vector<32x8xbf16>
    %41 = vector.shape_cast %38 : vector<32x8xbf16> to vector<1x32x8xbf16>
    tpu.vector_store %arg5[%c0_37, %c0_38, %c0_39], %41 {strides = array<i32>} : memref<1x32x8xbf16, #tpu.memory_space<vmem>>, vector<1x32x8xbf16>,
    %c0_40 = arith.constant 0 : index
    %c0_41 = arith.constant 0 : index
    %42 = vector.load %arg4[%c0_40, %c0_41] : memref<32x1xf32, #tpu.memory_space<vmem>>, vector<32x1xf32>
    %43 = vector.broadcast %42 : vector<32x1xf32> to vector<32x8xf32>
    %44 = arith.mulf %37, %43 : vector<32x8xf32>
    %cst_42 = arith.constant dense<0.000000e+00> : vector<8xf32>
    %45 = vector.multi_reduction <add>, %44, %cst_42 [0] : vector<32x8xf32> to vector<8xf32>
    %46 = vector.shape_cast %45 : vector<8xf32> to vector<1x8xf32>
    %c0_43 = arith.constant 0 : index
    %c0_44 = arith.constant 0 : index
    %c0_45 = arith.constant 0 : index
    %47 = vector.load %arg6[%c0_43, %c0_44, %c0_45] : memref<1x1x8xf32, #tpu.memory_space<vmem>>, vector<1x1x8xf32>
    %48 = vector.shape_cast %47 : vector<1x1x8xf32> to vector<1x8xf32>
    %49 = vector.shape_cast %46 : vector<1x8xf32> to vector<1x1x8xf32>
    tpu.vector_store %arg6[%c0_43, %c0_44, %c0_45], %49 {strides = array<i32>} : memref<1x1x8xf32, #tpu.memory_space<vmem>>, vector<1x1x8xf32>,
    %50 = arith.mulf %44, %37 : vector<32x8xf32>
    %cst_46 = arith.constant dense<0.000000e+00> : vector<8xf32>
    %51 = vector.multi_reduction <add>, %50, %cst_46 [0] : vector<32x8xf32> to vector<8xf32>
    %52 = vector.shape_cast %51 : vector<8xf32> to vector<1x8xf32>
    %c0_47 = arith.constant 0 : index
    %c0_48 = arith.constant 0 : index
    %c0_49 = arith.constant 0 : index
    %53 = vector.load %arg7[%c0_47, %c0_48, %c0_49] : memref<1x1x8xf32, #tpu.memory_space<vmem>>, vector<1x1x8xf32>
    %54 = vector.shape_cast %53 : vector<1x1x8xf32> to vector<1x8xf32>
    %55 = vector.shape_cast %52 : vector<1x8xf32> to vector<1x1x8xf32>
    tpu.vector_store %arg7[%c0_47, %c0_48, %c0_49], %55 {strides = array<i32>} : memref<1x1x8xf32, #tpu.memory_space<vmem>>, vector<1x1x8xf32>,
    return
  }
  func.func @transform_0(%arg0: i32) -> (i32, i32, i32) {
    %c0_i32 = arith.constant 0 : i32
    %c0_i32_0 = arith.constant 0 : i32
    %c0_i32_1 = arith.constant 0 : i32
    return %arg0, %c0_i32, %c0_i32_0 : i32, i32, i32
  }
  func.func @transform_1(%arg0: i32) -> (i32, i32) {
    %c0_i32 = arith.constant 0 : i32
    %c0_i32_0 = arith.constant 0 : i32
    %c0_i32_1 = arith.constant 0 : i32
    return %c0_i32, %c0_i32_0 : i32, i32
  }
  func.func @transform_2(%arg0: i32) -> (i32, i32) {
    %c0_i32 = arith.constant 0 : i32
    %c0_i32_0 = arith.constant 0 : i32
    %c0_i32_1 = arith.constant 0 : i32
    return %c0_i32, %c0_i32_0 : i32, i32
  }
  func.func @transform_3(%arg0: i32) -> (i32, i32) {
    %c0_i32 = arith.constant 0 : i32
    %c0_i32_0 = arith.constant 0 : i32
    %c0_i32_1 = arith.constant 0 : i32
    return %c0_i32, %c0_i32_0 : i32, i32
  }
  func.func @transform_4(%arg0: i32) -> (i32, i32, i32) {
    %c0_i32 = arith.constant 0 : i32
    %c0_i32_0 = arith.constant 0 : i32
    %c0_i32_1 = arith.constant 0 : i32
    return %arg0, %c0_i32, %c0_i32_0 : i32, i32, i32
  }
  func.func @transform_5(%arg0: i32) -> (i32, i32, i32) {
    %c0_i32 = arith.constant 0 : i32
    %c0_i32_0 = arith.constant 0 : i32
    %c0_i32_1 = arith.constant 0 : i32
    return %arg0, %c0_i32, %c0_i32_0 : i32, i32, i32
  }
  func.func @transform_6(%arg0: i32) -> (i32, i32, i32) {
    %c0_i32 = arith.constant 0 : i32
    %c0_i32_0 = arith.constant 0 : i32
    %c0_i32_1 = arith.constant 0 : i32
    return %arg0, %c0_i32, %c0_i32_0 : i32, i32, i32
  }
}

module attributes {stable_mosaic.version = 11 : i64} {
  func.func @kernel(%arg0: i32, %arg1: memref<1x168x8xbf16, #tpu.memory_space<vmem>>, %arg2: memref<72x8xbf16, #tpu.memory_space<vmem>>, %arg3: memref<1x8xf32, #tpu.memory_space<vmem>>, %arg4: memref<128x1xf32, #tpu.memory_space<vmem>>, %arg5: memref<1x128x8xbf16, #tpu.memory_space<vmem>>, %arg6: memref<1x1x8xf32, #tpu.memory_space<vmem>>, %arg7: memref<1x1x8xf32, #tpu.memory_space<vmem>>, %arg8: memref<128x72xbf16, #tpu.memory_space<vmem>>) attributes {dimension_semantics = [#tpu.dimension_semantics<parallel>], iteration_bounds = array<i64: 2>, scalar_prefetch = 0 : i64, scratch_operands = 1 : i64, tpu.core_type = #tpu.core_type<tc>, window_params = [{transform_indices = @transform_0, window_bounds = array<i64: 1, 168, 8>}, {pipeline_mode = #tpu.pipeline_mode<synchronous>, transform_indices = @transform_1, window_bounds = array<i64: 72, 8>}, {pipeline_mode = #tpu.pipeline_mode<synchronous>, transform_indices = @transform_2, window_bounds = array<i64: 1, 8>}, {pipeline_mode = #tpu.pipeline_mode<synchronous>, transform_indices = @transform_3, window_bounds = array<i64: 128, 1>}, {transform_indices = @transform_4, window_bounds = array<i64: 1, 128, 8>}, {transform_indices = @transform_5, window_bounds = array<i64: 1, 1, 8>}, {transform_indices = @transform_6, window_bounds = array<i64: 1, 1, 8>}]} {
    %c0 = arith.constant 0 : index
    %c0_0 = arith.constant 0 : index
    %c0_1 = arith.constant 0 : index
    %0 = vector.load %arg1[%c0, %c0_0, %c0_1] : memref<1x168x8xbf16, #tpu.memory_space<vmem>>, vector<1x128x8xbf16>
    %1 = vector.shape_cast %0 : vector<1x128x8xbf16> to vector<128x8xbf16>
    %c0_2 = arith.constant 0 : index
    %c0_3 = arith.constant 0 : index
    %2 = vector.load %arg8[%c0_2, %c0_3] : memref<128x72xbf16, #tpu.memory_space<vmem>>, vector<128x8xbf16>
    tpu.vector_store %arg8[%c0_2, %c0_3], %1 {strides = array<i32>} : memref<128x72xbf16, #tpu.memory_space<vmem>>, vector<128x8xbf16>,
    %c0_4 = arith.constant 0 : index
    %c1 = arith.constant 1 : index
    %c0_5 = arith.constant 0 : index
    %3 = vector.load %arg1[%c0_4, %c1, %c0_5] : memref<1x168x8xbf16, #tpu.memory_space<vmem>>, vector<1x128x8xbf16>
    %4 = vector.shape_cast %3 : vector<1x128x8xbf16> to vector<128x8xbf16>
    %c0_6 = arith.constant 0 : index
    %c8 = arith.constant 8 : index
    %5 = vector.load %arg8[%c0_6, %c8] : memref<128x72xbf16, #tpu.memory_space<vmem>>, vector<128x8xbf16>
    tpu.vector_store %arg8[%c0_6, %c8], %4 {strides = array<i32>} : memref<128x72xbf16, #tpu.memory_space<vmem>>, vector<128x8xbf16>,
    %c0_7 = arith.constant 0 : index
    %c2 = arith.constant 2 : index
    %c0_8 = arith.constant 0 : index
    %6 = vector.load %arg1[%c0_7, %c2, %c0_8] : memref<1x168x8xbf16, #tpu.memory_space<vmem>>, vector<1x128x8xbf16>
    %7 = vector.shape_cast %6 : vector<1x128x8xbf16> to vector<128x8xbf16>
    %c0_9 = arith.constant 0 : index
    %c16 = arith.constant 16 : index
    %8 = vector.load %arg8[%c0_9, %c16] : memref<128x72xbf16, #tpu.memory_space<vmem>>, vector<128x8xbf16>
    tpu.vector_store %arg8[%c0_9, %c16], %7 {strides = array<i32>} : memref<128x72xbf16, #tpu.memory_space<vmem>>, vector<128x8xbf16>,
    %c0_10 = arith.constant 0 : index
    %c16_11 = arith.constant 16 : index
    %c0_12 = arith.constant 0 : index
    %9 = vector.load %arg1[%c0_10, %c16_11, %c0_12] : memref<1x168x8xbf16, #tpu.memory_space<vmem>>, vector<1x128x8xbf16>
    %10 = vector.shape_cast %9 : vector<1x128x8xbf16> to vector<128x8xbf16>
    %c0_13 = arith.constant 0 : index
    %c24 = arith.constant 24 : index
    %11 = vector.load %arg8[%c0_13, %c24] : memref<128x72xbf16, #tpu.memory_space<vmem>>, vector<128x8xbf16>
    tpu.vector_store %arg8[%c0_13, %c24], %10 {strides = array<i32>} : memref<128x72xbf16, #tpu.memory_space<vmem>>, vector<128x8xbf16>,
    %c0_14 = arith.constant 0 : index
    %c17 = arith.constant 17 : index
    %c0_15 = arith.constant 0 : index
    %12 = vector.load %arg1[%c0_14, %c17, %c0_15] : memref<1x168x8xbf16, #tpu.memory_space<vmem>>, vector<1x128x8xbf16>
    %13 = vector.shape_cast %12 : vector<1x128x8xbf16> to vector<128x8xbf16>
    %c0_16 = arith.constant 0 : index
    %c32 = arith.constant 32 : index
    %14 = vector.load %arg8[%c0_16, %c32] : memref<128x72xbf16, #tpu.memory_space<vmem>>, vector<128x8xbf16>
    tpu.vector_store %arg8[%c0_16, %c32], %13 {strides = array<i32>} : memref<128x72xbf16, #tpu.memory_space<vmem>>, vector<128x8xbf16>,
    %c0_17 = arith.constant 0 : index
    %c18 = arith.constant 18 : index
    %c0_18 = arith.constant 0 : index
    %15 = vector.load %arg1[%c0_17, %c18, %c0_18] : memref<1x168x8xbf16, #tpu.memory_space<vmem>>, vector<1x128x8xbf16>
    %16 = vector.shape_cast %15 : vector<1x128x8xbf16> to vector<128x8xbf16>
    %c0_19 = arith.constant 0 : index
    %c40 = arith.constant 40 : index
    %17 = vector.load %arg8[%c0_19, %c40] : memref<128x72xbf16, #tpu.memory_space<vmem>>, vector<128x8xbf16>
    tpu.vector_store %arg8[%c0_19, %c40], %16 {strides = array<i32>} : memref<128x72xbf16, #tpu.memory_space<vmem>>, vector<128x8xbf16>,
    %c0_20 = arith.constant 0 : index
    %c32_21 = arith.constant 32 : index
    %c0_22 = arith.constant 0 : index
    %18 = vector.load %arg1[%c0_20, %c32_21, %c0_22] : memref<1x168x8xbf16, #tpu.memory_space<vmem>>, vector<1x128x8xbf16>
    %19 = vector.shape_cast %18 : vector<1x128x8xbf16> to vector<128x8xbf16>
    %c0_23 = arith.constant 0 : index
    %c48 = arith.constant 48 : index
    %20 = vector.load %arg8[%c0_23, %c48] : memref<128x72xbf16, #tpu.memory_space<vmem>>, vector<128x8xbf16>
    tpu.vector_store %arg8[%c0_23, %c48], %19 {strides = array<i32>} : memref<128x72xbf16, #tpu.memory_space<vmem>>, vector<128x8xbf16>,
    %c0_24 = arith.constant 0 : index
    %c33 = arith.constant 33 : index
    %c0_25 = arith.constant 0 : index
    %21 = vector.load %arg1[%c0_24, %c33, %c0_25] : memref<1x168x8xbf16, #tpu.memory_space<vmem>>, vector<1x128x8xbf16>
    %22 = vector.shape_cast %21 : vector<1x128x8xbf16> to vector<128x8xbf16>
    %c0_26 = arith.constant 0 : index
    %c56 = arith.constant 56 : index
    %23 = vector.load %arg8[%c0_26, %c56] : memref<128x72xbf16, #tpu.memory_space<vmem>>, vector<128x8xbf16>
    tpu.vector_store %arg8[%c0_26, %c56], %22 {strides = array<i32>} : memref<128x72xbf16, #tpu.memory_space<vmem>>, vector<128x8xbf16>,
    %c0_27 = arith.constant 0 : index
    %c34 = arith.constant 34 : index
    %c0_28 = arith.constant 0 : index
    %24 = vector.load %arg1[%c0_27, %c34, %c0_28] : memref<1x168x8xbf16, #tpu.memory_space<vmem>>, vector<1x128x8xbf16>
    %25 = vector.shape_cast %24 : vector<1x128x8xbf16> to vector<128x8xbf16>
    %c0_29 = arith.constant 0 : index
    %c64 = arith.constant 64 : index
    %26 = vector.load %arg8[%c0_29, %c64] : memref<128x72xbf16, #tpu.memory_space<vmem>>, vector<128x8xbf16>
    tpu.vector_store %arg8[%c0_29, %c64], %25 {strides = array<i32>} : memref<128x72xbf16, #tpu.memory_space<vmem>>, vector<128x8xbf16>,
    %c0_30 = arith.constant 0 : index
    %c0_31 = arith.constant 0 : index
    %27 = vector.load %arg8[%c0_30, %c0_31] : memref<128x72xbf16, #tpu.memory_space<vmem>>, vector<128x72xbf16>
    %c0_32 = arith.constant 0 : index
    %c0_33 = arith.constant 0 : index
    %28 = vector.load %arg2[%c0_32, %c0_33] : memref<72x8xbf16, #tpu.memory_space<vmem>>, vector<72x8xbf16>
    %cst = arith.constant dense<0.000000e+00> : vector<128x8xf32>
    %29 = tpu.matmul %27, %28, %cst {dimension_numbers = #tpu.dot_dimension_numbers<[1], [0], [0], [1], [0, 0, 1, 1], [], []>} : vector<128x72xbf16>, vector<72x8xbf16>, vector<128x8xf32> -> vector<128x8xf32>
    %c0_34 = arith.constant 0 : index
    %c0_35 = arith.constant 0 : index
    %30 = vector.load %arg3[%c0_34, %c0_35] : memref<1x8xf32, #tpu.memory_space<vmem>>, vector<1x8xf32>
    %31 = vector.broadcast %30 : vector<1x8xf32> to vector<128x8xf32>
    %32 = arith.addf %29, %31 : vector<128x8xf32>
    %cst_36 = arith.constant 0.000000e+00 : f32
    %33 = vector.broadcast %cst_36 : f32 to vector<128x8xf32>
    %34 = arith.cmpf oge, %32, %33 : vector<128x8xf32>
    %cst_37 = arith.constant 2.000000e-01 : f32
    %35 = vector.broadcast %cst_37 : f32 to vector<128x8xf32>
    %36 = arith.mulf %35, %32 : vector<128x8xf32>
    %37 = arith.select %34, %32, %36 : vector<128x8xi1>, vector<128x8xf32>
    %38 = arith.truncf %37 : vector<128x8xf32> to vector<128x8xbf16>
    %c0_38 = arith.constant 0 : index
    %c0_39 = arith.constant 0 : index
    %c0_40 = arith.constant 0 : index
    %39 = vector.load %arg5[%c0_38, %c0_39, %c0_40] : memref<1x128x8xbf16, #tpu.memory_space<vmem>>, vector<1x128x8xbf16>
    %40 = vector.shape_cast %39 : vector<1x128x8xbf16> to vector<128x8xbf16>
    %41 = vector.shape_cast %38 : vector<128x8xbf16> to vector<1x128x8xbf16>
    tpu.vector_store %arg5[%c0_38, %c0_39, %c0_40], %41 {strides = array<i32>} : memref<1x128x8xbf16, #tpu.memory_space<vmem>>, vector<1x128x8xbf16>,
    %c0_41 = arith.constant 0 : index
    %c0_42 = arith.constant 0 : index
    %42 = vector.load %arg4[%c0_41, %c0_42] : memref<128x1xf32, #tpu.memory_space<vmem>>, vector<128x1xf32>
    %43 = vector.broadcast %42 : vector<128x1xf32> to vector<128x8xf32>
    %44 = arith.mulf %37, %43 : vector<128x8xf32>
    %cst_43 = arith.constant dense<0.000000e+00> : vector<8xf32>
    %45 = vector.multi_reduction <add>, %44, %cst_43 [0] : vector<128x8xf32> to vector<8xf32>
    %46 = vector.shape_cast %45 : vector<8xf32> to vector<1x8xf32>
    %c0_44 = arith.constant 0 : index
    %c0_45 = arith.constant 0 : index
    %c0_46 = arith.constant 0 : index
    %47 = vector.load %arg6[%c0_44, %c0_45, %c0_46] : memref<1x1x8xf32, #tpu.memory_space<vmem>>, vector<1x1x8xf32>
    %48 = vector.shape_cast %47 : vector<1x1x8xf32> to vector<1x8xf32>
    %49 = vector.shape_cast %46 : vector<1x8xf32> to vector<1x1x8xf32>
    tpu.vector_store %arg6[%c0_44, %c0_45, %c0_46], %49 {strides = array<i32>} : memref<1x1x8xf32, #tpu.memory_space<vmem>>, vector<1x1x8xf32>,
    %50 = arith.mulf %44, %37 : vector<128x8xf32>
    %cst_47 = arith.constant dense<0.000000e+00> : vector<8xf32>
    %51 = vector.multi_reduction <add>, %50, %cst_47 [0] : vector<128x8xf32> to vector<8xf32>
    %52 = vector.shape_cast %51 : vector<8xf32> to vector<1x8xf32>
    %c0_48 = arith.constant 0 : index
    %c0_49 = arith.constant 0 : index
    %c0_50 = arith.constant 0 : index
    %53 = vector.load %arg7[%c0_48, %c0_49, %c0_50] : memref<1x1x8xf32, #tpu.memory_space<vmem>>, vector<1x1x8xf32>
    %54 = vector.shape_cast %53 : vector<1x1x8xf32> to vector<1x8xf32>
    %55 = vector.shape_cast %52 : vector<1x8xf32> to vector<1x1x8xf32>
    tpu.vector_store %arg7[%c0_48, %c0_49, %c0_50], %55 {strides = array<i32>} : memref<1x1x8xf32, #tpu.memory_space<vmem>>, vector<1x1x8xf32>,
    return
  }
  func.func @transform_0(%arg0: i32) -> (i32, i32, i32) {
    %c0_i32 = arith.constant 0 : i32
    %c0_i32_0 = arith.constant 0 : i32
    %c0_i32_1 = arith.constant 0 : i32
    return %arg0, %c0_i32, %c0_i32_0 : i32, i32, i32
  }
  func.func @transform_1(%arg0: i32) -> (i32, i32) {
    %c0_i32 = arith.constant 0 : i32
    %c0_i32_0 = arith.constant 0 : i32
    %c0_i32_1 = arith.constant 0 : i32
    return %c0_i32, %c0_i32_0 : i32, i32
  }
  func.func @transform_2(%arg0: i32) -> (i32, i32) {
    %c0_i32 = arith.constant 0 : i32
    %c0_i32_0 = arith.constant 0 : i32
    %c0_i32_1 = arith.constant 0 : i32
    return %c0_i32, %c0_i32_0 : i32, i32
  }
  func.func @transform_3(%arg0: i32) -> (i32, i32) {
    %c0_i32 = arith.constant 0 : i32
    %c0_i32_0 = arith.constant 0 : i32
    %c0_i32_1 = arith.constant 0 : i32
    return %c0_i32, %c0_i32_0 : i32, i32
  }
  func.func @transform_4(%arg0: i32) -> (i32, i32, i32) {
    %c0_i32 = arith.constant 0 : i32
    %c0_i32_0 = arith.constant 0 : i32
    %c0_i32_1 = arith.constant 0 : i32
    return %arg0, %c0_i32, %c0_i32_0 : i32, i32, i32
  }
  func.func @transform_5(%arg0: i32) -> (i32, i32, i32) {
    %c0_i32 = arith.constant 0 : i32
    %c0_i32_0 = arith.constant 0 : i32
    %c0_i32_1 = arith.constant 0 : i32
    return %arg0, %c0_i32, %c0_i32_0 : i32, i32, i32
  }
  func.func @transform_6(%arg0: i32) -> (i32, i32, i32) {
    %c0_i32 = arith.constant 0 : i32
    %c0_i32_0 = arith.constant 0 : i32
    %c0_i32_1 = arith.constant 0 : i32
    return %arg0, %c0_i32, %c0_i32_0 : i32, i32, i32
  }
}

module attributes {stable_mosaic.version = 11 : i64} {
  func.func @kernel(%arg0: i32, %arg1: memref<1x440x4xbf16, #tpu.memory_space<vmem>>, %arg2: memref<36x8xbf16, #tpu.memory_space<vmem>>, %arg3: memref<1x8xf32, #tpu.memory_space<vmem>>, %arg4: memref<1x384x8xf32, #tpu.memory_space<vmem>>, %arg5: memref<384x36xbf16, #tpu.memory_space<vmem>>) attributes {dimension_semantics = [#tpu.dimension_semantics<parallel>], iteration_bounds = array<i64: 2>, scalar_prefetch = 0 : i64, scratch_operands = 1 : i64, tpu.core_type = #tpu.core_type<tc>, window_params = [{transform_indices = @transform_0, window_bounds = array<i64: 1, 440, 4>}, {pipeline_mode = #tpu.pipeline_mode<synchronous>, transform_indices = @transform_1, window_bounds = array<i64: 36, 8>}, {pipeline_mode = #tpu.pipeline_mode<synchronous>, transform_indices = @transform_2, window_bounds = array<i64: 1, 8>}, {transform_indices = @transform_3, window_bounds = array<i64: 1, 384, 8>}]} {
    %c0 = arith.constant 0 : index
    %c0_0 = arith.constant 0 : index
    %c0_1 = arith.constant 0 : index
    %0 = vector.load %arg1[%c0, %c0_0, %c0_1] : memref<1x440x4xbf16, #tpu.memory_space<vmem>>, vector<1x384x4xbf16>
    %1 = vector.shape_cast %0 : vector<1x384x4xbf16> to vector<384x4xbf16>
    %c0_2 = arith.constant 0 : index
    %c0_3 = arith.constant 0 : index
    %2 = vector.load %arg5[%c0_2, %c0_3] : memref<384x36xbf16, #tpu.memory_space<vmem>>, vector<384x4xbf16>
    tpu.vector_store %arg5[%c0_2, %c0_3], %1 {strides = array<i32>} : memref<384x36xbf16, #tpu.memory_space<vmem>>, vector<384x4xbf16>,
    %c0_4 = arith.constant 0 : index
    %c1 = arith.constant 1 : index
    %c0_5 = arith.constant 0 : index
    %3 = vector.load %arg1[%c0_4, %c1, %c0_5] : memref<1x440x4xbf16, #tpu.memory_space<vmem>>, vector<1x384x4xbf16>
    %4 = vector.shape_cast %3 : vector<1x384x4xbf16> to vector<384x4xbf16>
    %c0_6 = arith.constant 0 : index
    %c4 = arith.constant 4 : index
    %5 = vector.load %arg5[%c0_6, %c4] : memref<384x36xbf16, #tpu.memory_space<vmem>>, vector<384x4xbf16>
    tpu.vector_store %arg5[%c0_6, %c4], %4 {strides = array<i32>} : memref<384x36xbf16, #tpu.memory_space<vmem>>, vector<384x4xbf16>,
    %c0_7 = arith.constant 0 : index
    %c2 = arith.constant 2 : index
    %c0_8 = arith.constant 0 : index
    %6 = vector.load %arg1[%c0_7, %c2, %c0_8] : memref<1x440x4xbf16, #tpu.memory_space<vmem>>, vector<1x384x4xbf16>
    %7 = vector.shape_cast %6 : vector<1x384x4xbf16> to vector<384x4xbf16>
    %c0_9 = arith.constant 0 : index
    %c8 = arith.constant 8 : index
    %8 = vector.load %arg5[%c0_9, %c8] : memref<384x36xbf16, #tpu.memory_space<vmem>>, vector<384x4xbf16>
    tpu.vector_store %arg5[%c0_9, %c8], %7 {strides = array<i32>} : memref<384x36xbf16, #tpu.memory_space<vmem>>, vector<384x4xbf16>,
    %c0_10 = arith.constant 0 : index
    %c24 = arith.constant 24 : index
    %c0_11 = arith.constant 0 : index
    %9 = vector.load %arg1[%c0_10, %c24, %c0_11] : memref<1x440x4xbf16, #tpu.memory_space<vmem>>, vector<1x384x4xbf16>
    %10 = vector.shape_cast %9 : vector<1x384x4xbf16> to vector<384x4xbf16>
    %c0_12 = arith.constant 0 : index
    %c12 = arith.constant 12 : index
    %11 = vector.load %arg5[%c0_12, %c12] : memref<384x36xbf16, #tpu.memory_space<vmem>>, vector<384x4xbf16>
    tpu.vector_store %arg5[%c0_12, %c12], %10 {strides = array<i32>} : memref<384x36xbf16, #tpu.memory_space<vmem>>, vector<384x4xbf16>,
    %c0_13 = arith.constant 0 : index
    %c25 = arith.constant 25 : index
    %c0_14 = arith.constant 0 : index
    %12 = vector.load %arg1[%c0_13, %c25, %c0_14] : memref<1x440x4xbf16, #tpu.memory_space<vmem>>, vector<1x384x4xbf16>
    %13 = vector.shape_cast %12 : vector<1x384x4xbf16> to vector<384x4xbf16>
    %c0_15 = arith.constant 0 : index
    %c16 = arith.constant 16 : index
    %14 = vector.load %arg5[%c0_15, %c16] : memref<384x36xbf16, #tpu.memory_space<vmem>>, vector<384x4xbf16>
    tpu.vector_store %arg5[%c0_15, %c16], %13 {strides = array<i32>} : memref<384x36xbf16, #tpu.memory_space<vmem>>, vector<384x4xbf16>,
    %c0_16 = arith.constant 0 : index
    %c26 = arith.constant 26 : index
    %c0_17 = arith.constant 0 : index
    %15 = vector.load %arg1[%c0_16, %c26, %c0_17] : memref<1x440x4xbf16, #tpu.memory_space<vmem>>, vector<1x384x4xbf16>
    %16 = vector.shape_cast %15 : vector<1x384x4xbf16> to vector<384x4xbf16>
    %c0_18 = arith.constant 0 : index
    %c20 = arith.constant 20 : index
    %17 = vector.load %arg5[%c0_18, %c20] : memref<384x36xbf16, #tpu.memory_space<vmem>>, vector<384x4xbf16>
    tpu.vector_store %arg5[%c0_18, %c20], %16 {strides = array<i32>} : memref<384x36xbf16, #tpu.memory_space<vmem>>, vector<384x4xbf16>,
    %c0_19 = arith.constant 0 : index
    %c48 = arith.constant 48 : index
    %c0_20 = arith.constant 0 : index
    %18 = vector.load %arg1[%c0_19, %c48, %c0_20] : memref<1x440x4xbf16, #tpu.memory_space<vmem>>, vector<1x384x4xbf16>
    %19 = vector.shape_cast %18 : vector<1x384x4xbf16> to vector<384x4xbf16>
    %c0_21 = arith.constant 0 : index
    %c24_22 = arith.constant 24 : index
    %20 = vector.load %arg5[%c0_21, %c24_22] : memref<384x36xbf16, #tpu.memory_space<vmem>>, vector<384x4xbf16>
    tpu.vector_store %arg5[%c0_21, %c24_22], %19 {strides = array<i32>} : memref<384x36xbf16, #tpu.memory_space<vmem>>, vector<384x4xbf16>,
    %c0_23 = arith.constant 0 : index
    %c49 = arith.constant 49 : index
    %c0_24 = arith.constant 0 : index
    %21 = vector.load %arg1[%c0_23, %c49, %c0_24] : memref<1x440x4xbf16, #tpu.memory_space<vmem>>, vector<1x384x4xbf16>
    %22 = vector.shape_cast %21 : vector<1x384x4xbf16> to vector<384x4xbf16>
    %c0_25 = arith.constant 0 : index
    %c28 = arith.constant 28 : index
    %23 = vector.load %arg5[%c0_25, %c28] : memref<384x36xbf16, #tpu.memory_space<vmem>>, vector<384x4xbf16>
    tpu.vector_store %arg5[%c0_25, %c28], %22 {strides = array<i32>} : memref<384x36xbf16, #tpu.memory_space<vmem>>, vector<384x4xbf16>,
    %c0_26 = arith.constant 0 : index
    %c50 = arith.constant 50 : index
    %c0_27 = arith.constant 0 : index
    %24 = vector.load %arg1[%c0_26, %c50, %c0_27] : memref<1x440x4xbf16, #tpu.memory_space<vmem>>, vector<1x384x4xbf16>
    %25 = vector.shape_cast %24 : vector<1x384x4xbf16> to vector<384x4xbf16>
    %c0_28 = arith.constant 0 : index
    %c32 = arith.constant 32 : index
    %26 = vector.load %arg5[%c0_28, %c32] : memref<384x36xbf16, #tpu.memory_space<vmem>>, vector<384x4xbf16>
    tpu.vector_store %arg5[%c0_28, %c32], %25 {strides = array<i32>} : memref<384x36xbf16, #tpu.memory_space<vmem>>, vector<384x4xbf16>,
    %c0_29 = arith.constant 0 : index
    %c0_30 = arith.constant 0 : index
    %27 = vector.load %arg5[%c0_29, %c0_30] : memref<384x36xbf16, #tpu.memory_space<vmem>>, vector<384x36xbf16>
    %c0_31 = arith.constant 0 : index
    %c0_32 = arith.constant 0 : index
    %28 = vector.load %arg2[%c0_31, %c0_32] : memref<36x8xbf16, #tpu.memory_space<vmem>>, vector<36x8xbf16>
    %cst = arith.constant dense<0.000000e+00> : vector<384x8xf32>
    %29 = tpu.matmul %27, %28, %cst {dimension_numbers = #tpu.dot_dimension_numbers<[1], [0], [0], [1], [0, 0, 1, 1], [], []>} : vector<384x36xbf16>, vector<36x8xbf16>, vector<384x8xf32> -> vector<384x8xf32>
    %c0_33 = arith.constant 0 : index
    %c0_34 = arith.constant 0 : index
    %30 = vector.load %arg3[%c0_33, %c0_34] : memref<1x8xf32, #tpu.memory_space<vmem>>, vector<1x8xf32>
    %31 = vector.broadcast %30 : vector<1x8xf32> to vector<384x8xf32>
    %32 = arith.addf %29, %31 : vector<384x8xf32>
    %c0_35 = arith.constant 0 : index
    %c0_36 = arith.constant 0 : index
    %c0_37 = arith.constant 0 : index
    %33 = vector.load %arg4[%c0_35, %c0_36, %c0_37] : memref<1x384x8xf32, #tpu.memory_space<vmem>>, vector<1x384x8xf32>
    %34 = vector.shape_cast %33 : vector<1x384x8xf32> to vector<384x8xf32>
    %35 = vector.shape_cast %32 : vector<384x8xf32> to vector<1x384x8xf32>
    tpu.vector_store %arg4[%c0_35, %c0_36, %c0_37], %35 {strides = array<i32>} : memref<1x384x8xf32, #tpu.memory_space<vmem>>, vector<1x384x8xf32>,
    return
  }
  func.func @transform_0(%arg0: i32) -> (i32, i32, i32) {
    %c0_i32 = arith.constant 0 : i32
    %c0_i32_0 = arith.constant 0 : i32
    %c0_i32_1 = arith.constant 0 : i32
    return %arg0, %c0_i32, %c0_i32_0 : i32, i32, i32
  }
  func.func @transform_1(%arg0: i32) -> (i32, i32) {
    %c0_i32 = arith.constant 0 : i32
    %c0_i32_0 = arith.constant 0 : i32
    %c0_i32_1 = arith.constant 0 : i32
    return %c0_i32, %c0_i32_0 : i32, i32
  }
  func.func @transform_2(%arg0: i32) -> (i32, i32) {
    %c0_i32 = arith.constant 0 : i32
    %c0_i32_0 = arith.constant 0 : i32
    %c0_i32_1 = arith.constant 0 : i32
    return %c0_i32, %c0_i32_0 : i32, i32
  }
  func.func @transform_3(%arg0: i32) -> (i32, i32, i32) {
    %c0_i32 = arith.constant 0 : i32
    %c0_i32_0 = arith.constant 0 : i32
    %c0_i32_1 = arith.constant 0 : i32
    return %arg0, %c0_i32, %c0_i32_0 : i32, i32, i32
  }
}

</mosaic_0001>

<bundles_post_ra>
// kernel: _lambda_.5
= control target key start
LH: loop header
LB: loop body
LE: loop exit
PB: predicated region body
PF: predicated region fallthrough
CT: control target
= control target key end

     0   :  { %vm25_vm0 = vcmask 1043456   ;;  %vm21_vm1 = vcmask 64512   ;;  %s83_s1 = inlined_call_operand.vmem [shape: bf16[8,128], index: 1, kind: input, shape index: {}]   ;;  %s84_s0 = inlined_call_operand.vmem [shape: bf16[2,8], index: 0, kind: input, shape index: {}]   ;;  %s85_s2 = inlined_call_operand.vmem [shape: f32[1,128], index: 2, kind: input, shape index: {}]   ;;  %s86_s3 = inlined_call_operand.vmem [shape: bf16[2,128], index: 3, kind: output, shape index: {}]  }
   0x1   :  { %v16_v0 = vld [vmem:[%s83_s1] sm:$0xf] }
   0x2   :  { %v27_v1 = vsel %vm25_vm0, %v16_v0, 0  ;;  %v15_v2 = vld [vmem:[%s84_s0] sm:$0x1] }
   0x3   :  { %36 = vmatpush.bf16.msra.mxu0 %v27_v1  ;;  %v50_v3 = vld [vmem:[%s85_s2] ss:$0 sm:$0xff] }
   0x6   :  { %49 = vmatmul.msk.bf16.vlgmr.msra.gmra.mxu0 %vm21_vm1, %v15_v2 }
  0x83   :  { %v38_v4 = vpop.f32.mrf.mxu0 }
  0x84   :  { %v39_v5 = vadd.f32 %v50_v3, %v38_v4 }
  0x86   :  { %v42_v6 = vmax.f32 %v39_v5, 0.0 }
  0x88   :  { %v43_v7 = vpack.c.bf16 %v42_v6, %v42_v6 }
  0x8a   :  { %44 = vst [vmem:[%s86_s3] sm:$0x1] %v43_v7 }
  0x8b   :  { %v40_v8 = vpop.f32.mrf.mxu0 }

// kernel: _lambda_.6
= control target key start
LH: loop header
LB: loop body
LE: loop exit
PB: predicated region body
PF: predicated region fallthrough
CT: control target
= control target key end

     0   :  { %12 = vsyncpa [#allocation4], 0  ;;  %s1099_s21 = smov 0   ;;  %s1234_s0 = inlined_call_operand.vmem [shape: bf16[2,40,32], index: 0, kind: input, shape index: {}]   ;;  %s1235_s1 = inlined_call_operand.hbm [shape: bf16[288,16], index: 1, kind: input, shape index: {}]   ;;  %s1236_s2 = inlined_call_operand.vmem [shape: f32[1,16], index: 2, kind: input, shape index: {}]   ;;  %s1237_s3 = inlined_call_operand.vmem [shape: f32[16,1], index: 3, kind: input, shape index: {}]   ;;  %s1238_s4 = inlined_call_operand.vmem [shape: bf16[2,16,16], index: 4, kind: output, shape index: {0}]   ;;  %s1239_s5 = inlined_call_operand.vmem [shape: f32[2,1,16], index: 5, kind: output, shape index: {1}]   ;;  %s1240_s6 = inlined_call_operand.vmem [shape: f32[2,1,16], index: 6, kind: output, shape index: {2}]  }
   0x1 LB: > { %s201_s24 = sshll.u32 %s1235_s1, 4  ;;  %s864_s25 = sadd.s32 4294967295, %s1055_s21   ;;  %s1055_s21 = sphi %s1099_s21, %s18_s21   ;;  %s202_s24 = int_to_ptr.hbm [resolvable:$true] %s201_s24 }
   0x2   : > { %p866_p0 = scmp.ge.s32.totalorder %s1055_s21, 1  ;;  %p190_p1 = scmp.lt.s32.totalorder %s1055_s21, 3 }
   0x3   : > { %p995_p2 = scmp.eq.s32.totalorder %s864_s25, 0  ;;  %s1057_s26 = smov [#allocation3]  }
   0x4   : > { %p191_p3 = pnand %p866_p0, %p190_p1  ;;  %s203_s27 = sshll.u32 %s1057_s26, 4  ;;  %s204_s27 = int_to_ptr.vmem [resolvable:$true] %s203_s27 }
   0x5   : > { %s1058_s28 = smov 64   ;;  %s1059_s29 = smov 4  }
   0x6   : > { %p991_p4 = pneg %p191_p3  ;;  %233 = sbr.rel (%p191_p3) target bundleno = 335 (0x14f), region = 36 }
   0x8   : > { %p992_p5 = pnand %p995_p2, %p991_p4 }
   0xa   : > { %994 = dma.hbm_to_vmem [thread:$0]  (!%p992_p5), %s202_s24, 2304, %s204_s27, [#allocation4], %s1058_s28, %s1058_s28, %s1059_s29  }
   0xb   : > { %1050 = dma.done.wait (%p995_p2), [#allocation4], 2304  }
   0xc   : > { %1052 = vsyncadd (%p995_p2), [#allocation4], 4294964992  ;;  %p270_p6 = scmp.lt.s32.totalorder %s864_s25, 1  ;;  %vm337_vm0 = vcmask 1042432   ;;  %vm338_vm1 = vcmask 1046532   ;;  %v975_v10 = vld [vmem:[#allocation3 + $0x38] sm:$0xff] }
   0xd   : > { %vm1118_vm2 = vmor %vm337_vm0, %vm338_vm1  ;;  %s1060_s10 = smov 32   ;;  %656 = vmatpush.bf16.msra.mxu0 %v975_v10  ;;  %s1061_s11 = smov 64   ;;  %vm295_vm3 = vsmask.f32 3328  ;;  %vm296_vm4 = vsmask.f32 7440 }
   0xe   : > { %s1246_s25 = smov (!%p270_p6, %s864_s25), 1  ;;  %s1062_s12 = smov 96   ;;  %vm1150_vm5 = vmor %vm295_vm3, %vm296_vm4  ;;  %vm289_vm6 = vcmask 257024   ;;  %vm652_vm7 = vcmask 261120   ;;  %v978_v38 = vld [vmem:[#allocation3 + $0x50] sm:$0xff]  ;;  %vm328_vm8 = vcmask 519424  }
   0xf   : > { %s986_s30 = smul.u32 20, %s1246_s25  ;;  %vm353_vm9 = vcmask 781824   ;;  %vm366_vm10 = vcmask 1044224   ;;  %s964_s19 = sshll.u32 %s1246_s25, 3  ;;  %vm706_vm12 = vcmask 125952   ;;  %vm723_vm14 = vcmask 130048  }
  0x10   : > { %s279_s23 = scalar_lea.vmem %s1238_s4, %s964_s19  ;;  %s282_s27 = scalar_lea.vmem %s1239_s5, %s1246_s25  ;;  %vm733_vm15 = vcmask 122880  }
  0x11   : > { %s1116_s9 = scalar_lea.vmem %s1234_s0, %s986_s30  ;;  %s285_s30 = scalar_lea.vmem %s1240_s6, %s1246_s25 }
  0x12   : > { %v400_v1 = vld [vmem:[%s1116_s9 + $0x4] sm:$0xe]  ;;  %v1124_v2 = vld [vmem:[%s1116_s9 + $0x8] sm:$0xf]  ;;  %v469_v6 = vld [vmem:[%s1116_s9 + $0xc] sm:$0xf] }
  0x13   : > { %v875_v3 = vrot.slane %v400_v1, 9  ;;  %v408_v4 = vrot.slane %v1124_v2, 5  ;;  %v468_v5 = vld [vmem:[%s1116_s9 + $0x8] sm:$0xe]  ;;  %v470_v7 = vld [vmem:[%s1116_s9 + $0x10] sm:$0x1] }
  0x14   : > { %v476_v8 = vrot.slane %v469_v6, 5  ;;  %v331_v9 = vld [vmem:[%s1116_s9] sm:$0xe]  ;;  %v332_v12 = vld [vmem:[%s1116_s9 + $0x4] sm:$0xf]  ;;  %v876_v18 = vrot.slane %v468_v5, 9 }
  0x15   : > { %v409_v11 = vsel %vm1118_vm2, %v875_v3, %v408_v4  ;;  %v874_v13 = vrot.slane %v331_v9, 9  ;;  %v292_v14 = vld [vmem:[%s1116_s9] sm:$0xf]  ;;  %v342_v15 = vrot.slane %v332_v12, 5  ;;  %v293_v16 = vld [vmem:[%s1116_s9 + $0x4] sm:$0xf] }
  0x16   : > { %413 = vrot.lane.b32.xlu0 %v409_v11, %s1060_s10  ;;  %v299_v17 = vshrl.u32 %v292_v14, 16  ;;  %v302_v19 = vshll.u32 %v292_v14, 16  ;;  %v308_v20 = vshll.u32 %v293_v16, 16  ;;  %v312_v21 = vshrl.u32 %v293_v16, 16  ;;  %v333_v22 = vld [vmem:[%s1116_s9 + $0x8] sm:$0x1] }
  0x17   : > { %v478_v23 = vrot.slane %v476_v8, 4  ;;  %v479_v24 = vrot.slane %v470_v7, 5  ;;  %v343_v25 = vsel %vm1118_vm2, %v874_v13, %v342_v15  ;;  %v344_v29 = vrot.slane %v342_v15, 4  ;;  %v294_v31 = vld [vmem:[%s1116_s9 + $0x8] sm:$0x1] }
  0x18   : > { %v301_v26 = vrot.slane %v299_v17, 4  ;;  %347 = vrot.lane.b32.xlu1 %v343_v25, %s1061_s11  ;;  %v304_v27 = vrot.slane %v302_v19, 5  ;;  %v314_v28 = vrot.slane %v312_v21, 4  ;;  %v345_v30 = vrot.slane %v333_v22, 5  ;;  %v356_v32 = vld [vmem:[%s1116_s9 + $0x4] sm:$0xf] }
  0x19   : > { %v477_v33 = vsel %vm1118_vm2, %v876_v18, %v476_v8  ;;  %v310_v35 = vrot.slane %v308_v20, 5  ;;  %360 = vrot.lane.b32.xlu2 %v356_v32, %s1062_s12  ;;  %v433_v36 = vld [vmem:[%s1116_s9 + $0x8] sm:$0xf]  ;;  %v480_v37 = vsel %vm1118_vm2, %v478_v23, %v479_v24  ;;  %v318_v41 = vshll.u32 %v294_v31, 16  ;;  %v402_v43 = vld [vmem:[%s1116_s9 + $0xc] sm:$0x1] }
  0x1a   : > { %v305_v34 = vor.u32 %v304_v27, %v301_v26  ;;  %v346_v42 = vsel %vm1118_vm2, %v344_v29, %v345_v30  ;;  %v437_v44 = vshrl.u32 %v433_v36, 16  ;;  %v440_v45 = vshll.u32 %v433_v36, 16  ;;  %483 = vst.msk [vmem:[#allocation2 + $0x8] sm:$0xf] %vm289_vm6, %v477_v33  ;;  %v434_v47 = vld [vmem:[%s1116_s9 + $0xc] sm:$0xf] }
  0x1b   : > { %v315_v40 = vor.u32 %v314_v28, %v310_v35  ;;  %484 = vst.msk [vmem:[#allocation2 + $0x14] sm:$0xf] %vm289_vm6, %v480_v37  ;;  %v450_v48 = vshrl.u32 %v434_v47, 16  ;;  %v357_v49 = vld [vmem:[%s1116_s9 + $0x8] sm:$0xf]  ;;  %v320_v51 = vrot.slane %v318_v41, 5 }
  0x1c   : > { %v306_v39 = vrot.slane %v305_v34, 4  ;;  %v410_v52 = vrot.slane %v408_v4, 4  ;;  %v411_v53 = vrot.slane %v402_v43, 5  ;;  %v439_v54 = vrot.slane %v437_v44, 4  ;;  %v435_v59 = vld [vmem:[%s1116_s9 + $0x10] sm:$0x1] }
  0x1d   : > { %v316_v50 = vrot.slane %v315_v40, 4  ;;  %v442_v55 = vrot.slane %v440_v45, 5  ;;  %v446_v56 = vshll.u32 %v434_v47, 16  ;;  %v452_v57 = vrot.slane %v450_v48, 4  ;;  %v421_v63 = vld [vmem:[%s1116_s9 + $0x8] sm:$0xf] }
  0x1e   : > { %v311_v46 = vsel %vm1150_vm5, %v306_v39, %v310_v35  ;;  %v412_v60 = vsel %vm1118_vm2, %v410_v52, %v411_v53  ;;  %v456_v2 = vshll.u32 %v435_v59, 16  ;;  %v422_v6 = vld [vmem:[%s1116_s9 + $0xc] sm:$0xf]  ;;  %v369_v8 = vld [vmem:[%s1116_s9 + $0x4] sm:$0xf]  ;;  %v983_v20 = vld [vmem:[#allocation3 + $0x78] sm:$0xff] }
  0x1f   : > { %322 = vrot.lane.b32.xlu0 %v311_v46, %s1060_s10  ;;  %v321_v58 = vsel %vm1150_vm5, %v316_v50, %v320_v51  ;;  %v443_v61 = vor.u32 %v442_v55, %v439_v54  ;;  %v448_v62 = vrot.slane %v446_v56, 5  ;;  %v373_v9 = vshrl.u32 %v369_v8, 16  ;;  %v370_v13 = vld [vmem:[%s1116_s9 + $0x8] sm:$0xf]  ;;  %v973_v21 = vld [vmem:[#allocation3 + $0x28] sm:$0xff]  ;;  %670 = vmatpush.bf16.msra.mxu1 %v983_v20  ;;  %v972_v25 = vld [vmem:[#allocation3 + $0x20] sm:$0xff] }
  0x20   : > { %349 = vrot.lane.b32.xlu1 %v346_v42, %s1061_s11  ;;  %v458_v5 = vrot.slane %v456_v2, 5  ;;  %v376_v10 = vshll.u32 %v369_v8, 16  ;;  %v382_v15 = vshll.u32 %v370_v13, 16  ;;  %v974_v19 = vld [vmem:[#allocation3 + $0x30] sm:$0xff]  ;;  %v386_v22 = vshrl.u32 %v370_v13, 16  ;;  %v981_v26 = vld [vmem:[#allocation3 + $0x68] sm:$0xff] }
  0x21   : > { %362 = vrot.lane.b32.xlu2 %v357_v49, %s1062_s12  ;;  %v453_v1 = vor.u32 %v452_v57, %v448_v62  ;;  %v444_v3 = vrot.slane %v443_v61, 4  ;;  %v375_v11 = vrot.slane %v373_v9, 4  ;;  %657 = vmatpush.bf16.msra.mxu0 %v974_v19  ;;  %v287_v23 = vld [vmem:[%s1116_s9] sm:$0xf]  ;;  %v982_v24 = vld [vmem:[#allocation3 + $0x70] sm:$0xff]  ;;  %v971_v27 = vld [vmem:[#allocation3 + $0x18] sm:$0xff] }
  0x22   : > { %v378_v12 = vrot.slane %v376_v10, 5  ;;  %v384_v17 = vrot.slane %v382_v15, 5  ;;  %290 = vst.msk [vmem:[#allocation2] sm:$0xf] %vm289_vm6, %v287_v23  ;;  %v388_v28 = vrot.slane %v386_v22, 4  ;;  %v980_v36 = vld [vmem:[#allocation3 + $0x60] sm:$0xff] }
  0x23   : > { %v454_v4 = vrot.slane %v453_v1, 4  ;;  %v449_v0 = vsel %vm1150_vm5, %v444_v3, %v448_v62  ;;  %671 = vmatpush.bf16.msra.mxu1 %v982_v24  ;;  %v371_v30 = vld [vmem:[%s1116_s9 + $0xc] sm:$0x1]  ;;  %v288_v35 = vld [vmem:[%s1116_s9 + $0x4] sm:$0xf]  ;;  %v979_v42 = vld [vmem:[#allocation3 + $0x58] sm:$0xff] }
  0x24   : > { %v379_v14 = vor.u32 %v378_v12, %v375_v11  ;;  %v389_v31 = vor.u32 %v388_v28, %v384_v17  ;;  %v392_v32 = vshll.u32 %v371_v30, 16  ;;  %v985_v37 = vld [vmem:[#allocation3 + $0x88] sm:$0xff]  ;;  %291 = vst.msk [vmem:[#allocation2 + $0xc] sm:$0xf] %vm289_vm6, %v288_v35  ;;  %v970_v40 = vld [vmem:[#allocation3 + $0x10] sm:$0xff]  ;;  %v984_v43 = vld [vmem:[#allocation3 + $0x80] sm:$0xff] }
  0x25   : > { %v459_v7 = vsel %vm1150_vm5, %v454_v4, %v458_v5  ;;  %658 = vmatpush.bf16.msra.mxu0 %v973_v21  ;;  %690 = vmatpush.bf16.msra.mxu2 %v985_v37  ;;  %v969_v44 = vld [vmem:[#allocation3 + $0x8] sm:$0xff]  ;;  %v887_v45 = vld [vmem:[#allocation2 + $0x8] sm:$0xf]  ;;  %v967_v46 = vld [vmem:[#allocation2 + $0x10] sm:$0xf0]  ;;  %v1063_v56 = vmov 0  }
  0x26   : > { %v380_v16 = vrot.slane %v379_v14, 4  ;;  %v390_v33 = vrot.slane %v389_v31, 4  ;;  %v394_v34 = vrot.slane %v392_v32, 5  ;;  %v888_v47 = vor.u32 %v967_v46, %v887_v45  ;;  %v968_v48 = vld [vmem:[#allocation3] sm:$0xff]  ;;  %v977_v49 = vld [vmem:[#allocation3 + $0x48] sm:$0xff]  ;;  %v710_v55 = vld [vmem:[%s1237_s3 + $0x8] sm:$0xff]  ;;  %1012 = vset.pattern.permute.xlu0 %v1063_v56  ;;  %1013 = vset.pattern.permute.xlu1 %v1063_v56 }
  0x27   : > { %324 = vrot.lane.b32.xlu0 %v321_v58, %s1060_s10  ;;  %672 = vmatpush.bf16.msra.mxu1 %v981_v26  ;;  %v976_v52 = vld [vmem:[#allocation3 + $0x40] sm:$0xff]  ;;  %v709_v54 = vld [vmem:[%s1237_s3] sm:$0xff] }
  0x28   : > { %415 = vrot.lane.b32.xlu1 %v412_v60, %s1060_s10  ;;  %v385_v18 = vsel %vm1150_vm5, %v380_v16, %v384_v17  ;;  %v395_v39 = vsel %vm1150_vm5, %v390_v33, %v394_v34 }
  0x29   : > { %425 = vrot.lane.b32.xlu2 %v421_v63, %s1061_s11  ;;  %398 = vst.msk [vmem:[#allocation2 + $0x4] sm:$0xf] %vm289_vm6, %v385_v18  ;;  %659 = vmatpush.bf16.msra.mxu0 %v972_v25 }
  0x2a   : > { %399 = vst.msk [vmem:[#allocation2 + $0x10] sm:$0xf] %vm289_vm6, %v395_v39  ;;  %691 = vmatpush.bf16.msra.mxu2 %v984_v43 }
  0x2b   : > { %673 = vmatpush.bf16.msra.mxu1 %v980_v36 }
  0x2d   : > { %660 = vmatpush.bf16.msra.mxu0 %v971_v27  ;;  %961 = vmatmul.msk.bf16.vlgmr.msra.gmra.mxu2 %vm652_vm7, %v888_v47 }
  0x2f   : > { %427 = vrot.lane.b32.xlu0 %v422_v6, %s1061_s11  ;;  %674 = vmatpush.bf16.msra.mxu1 %v979_v42 }
  0x30   : > { %460 = vrot.lane.b32.xlu1 %v449_v0, %s1062_s12 }
  0x31   : > { %462 = vrot.lane.b32.xlu2 %v459_v7, %s1062_s12  ;;  %661 = vmatpush.bf16.msra.mxu0 %v970_v40  ;;  %v1014_v7 = vld [vmem:[%s1236_s2] ss:$0 sm:$0xff] }
  0x33   : > { %675 = vmatpush.bf16.msra.mxu1 %v978_v38 }
  0x35   : > { %662 = vmatpush.bf16.msra.mxu0 %v969_v44 }
  0x37   : > { %676 = vmatpush.bf16.msra.mxu1 %v977_v49  ;;  %713 = vperm.xlu0 %1012, %v709_v54  }
  0x38   : > { %718 = vperm.xlu1 %1013, %v710_v55  }
  0x39   : > { %663 = vmatpush.bf16.msra.mxu0 %v968_v48 }
  0x3b   : > { %677 = vmatpush.bf16.msra.mxu1 %v976_v52 }
  0x73   : > { %v361_v29 = vpop.permute.xlu2 %360 }
  0x7b   : > { %v363_v41 = vpop.permute.xlu2 %362 }
  0x83   : > { %v426_v50 = vpop.permute.xlu2 %425 }
  0x88   : > { %v414_v51 = vpop.permute.xlu0 %413 }
  0x89   : > { %419 = vst.msk [vmem:[#allocation2 + $0x4] sm:$0xf] %vm328_vm8, %v414_v51 }
  0x8a   : > { %431 = vst.msk [vmem:[#allocation2 + $0x4] sm:$0xf] %vm353_vm9, %v426_v50  ;;  %v348_v53 = vpop.permute.xlu1 %347 }
  0x8b   : > { %v463_v61 = vpop.permute.xlu2 %462 }
  0x91   : > { %v323_v57 = vpop.permute.xlu0 %322 }
  0x92   : > { %329 = vst.msk [vmem:[#allocation2] sm:$0xf] %vm328_vm8, %v323_v57  ;;  %v350_v58 = vpop.permute.xlu1 %349 }
  0x93   : > { %354 = vst.msk [vmem:[#allocation2] sm:$0xf] %vm353_vm9, %v348_v53 }
  0x94   : > { %367 = vst.msk [vmem:[#allocation2] sm:$0xf] %vm366_vm10, %v361_v29 }
  0x99   : > { %v325_v59 = vpop.permute.xlu0 %324 }
  0x9a   : > { %330 = vst.msk [vmem:[#allocation2 + $0xc] sm:$0xf] %vm328_vm8, %v325_v59  ;;  %v416_v60 = vpop.permute.xlu1 %415 }
  0x9b   : > { %355 = vst.msk [vmem:[#allocation2 + $0xc] sm:$0xf] %vm353_vm9, %v350_v58  ;;  %v879_v1 = vld [vmem:[#allocation2] sm:$0xf] }
  0x9c   : > { %420 = vst.msk [vmem:[#allocation2 + $0x10] sm:$0xf] %vm328_vm8, %v416_v60 }
  0x9d   : > { %368 = vst.msk [vmem:[#allocation2 + $0xc] sm:$0xf] %vm366_vm10, %v363_v41 }
  0xa1   : > { %v428_v62 = vpop.permute.xlu0 %427 }
  0xa2   : > { %432 = vst.msk [vmem:[#allocation2 + $0x10] sm:$0xf] %vm353_vm9, %v428_v62  ;;  %v461_v63 = vpop.permute.xlu1 %460 }
  0xa3   : > { %467 = vst.msk [vmem:[#allocation2 + $0x10] sm:$0xf] %vm366_vm10, %v463_v61 }
  0xa4   : > { %466 = vst.msk [vmem:[#allocation2 + $0x4] sm:$0xf] %vm366_vm10, %v461_v63  ;;  %v966_v2 = vld [vmem:[#allocation2 + $0x8] sm:$0xf0] }
  0xa5   : > { %v880_v3 = vor.u32 %v966_v2, %v879_v1 }
  0xa7   : > { %664 = vmatmul.bf16.vlgmr.msra.gmra.mxu0 %v880_v3 }
  0xa9   : > { %v714_v19 = vpop.permute.xlu0 %713 }
  0xaa   : > { %v881_v4 = vld [vmem:[#allocation2 + $0xc] sm:$0xf0]  ;;  %v719_v25 = vpop.permute.xlu1 %718 }
  0xab   : > { %v965_v5 = vld [vmem:[#allocation2 + $0x4] sm:$0xf] }
  0xac   : > { %v884_v6 = vor.u32 %v965_v5, %v881_v4 }
  0xae   : > { %678 = vmatmul.bf16.vlgmr.msra.gmra.mxu1 %v884_v6 }
  0xb0   : > { %v693_v9 = vpop.f32.mrf.mxu2 }
  0xb8   : > { %v695_v21 = vpop.f32.mrf.mxu2 }
 0x124   : > { %v665_v0 = vpop.f32.mrf.mxu0 }
 0x125   : > { %v666_v8 = vadd.f32 %v1014_v7, %v665_v0 }
 0x12b   : > { %v679_v10 = vpop.f32.mrf.mxu1 }
 0x12c   : > { %v680_v11 = vadd.f32 %v679_v10, %v666_v8  ;;  %v667_v13 = vpop.f32.mrf.mxu0 }
 0x12d   : > { %v668_v15 = vadd.f32 %v1014_v7, %v667_v13 }
 0x12e   : > { %v694_v12 = vadd.f32 %v693_v9, %v680_v11 }
 0x130   : > { %v700_v14 = vmul.f32 0.2, %v694_v12  ;;  %vm698_vm11 = vcmp.ge.f32.partialorder %v694_v12, 0.0 }
 0x132   : > { %v702_v16 = vsel %vm698_vm11, %v694_v12, %v700_v14 }
 0x133   : > { %v704_v17 = vpack.c.bf16 %v702_v16, %v702_v16  ;;  %v681_v18 = vpop.f32.mrf.mxu1  ;;  %v721_v23 = vmul.f32 %v714_v19, %v702_v16 }
 0x134   : > { %v682_v20 = vadd.f32 %v681_v18, %v668_v15 }
 0x135   : > { %707 = vst.msk [vmem:[%s279_s23] sm:$0xf] %vm706_vm12, %v704_v17  ;;  %v735_v27 = vmul.f32 %v721_v23, %v702_v16  ;;  %v724_v30 = vsel %vm723_vm14, %v721_v23, 0.0 }
 0x136   : > { %v696_v22 = vadd.f32 %v695_v21, %v682_v20 }
 0x137   : > { %v737_v34 = vsel %vm723_vm14, %v735_v27, 0.0 }
 0x138   : > { %v701_v24 = vmul.f32 0.2, %v696_v22  ;;  %vm699_vm13 = vcmp.ge.f32.partialorder %v696_v22, 0.0 }
 0x13a   : > { %v703_v26 = vsel %vm699_vm13, %v696_v22, %v701_v24 }
 0x13b   : > { %v705_v28 = vpack.c.bf16 %v703_v26, %v703_v26  ;;  %v722_v29 = vmul.f32 %v719_v25, %v703_v26 }
 0x13d   : > { %708 = vst.msk [vmem:[%s279_s23 + $0x4] sm:$0xf] %vm706_vm12, %v705_v28  ;;  %v725_v31 = vsel %vm723_vm14, %v722_v29, 0.0  ;;  %v736_v32 = vmul.f32 %v722_v29, %v703_v26 }
 0x13e   : > { %v726_v33 = vadd.f32 %v725_v31, %v724_v30 }
 0x13f   : > { %v738_v35 = vsel %vm723_vm14, %v736_v32, 0.0 }
 0x140   : > { %v727_v36 = vrot.slane %v726_v33, 4  ;;  %v739_v37 = vadd.f32 %v738_v35, %v737_v34 }
 0x142   : > { %v728_v39 = vadd.f32 %v727_v36, %v726_v33  ;;  %v740_v40 = vrot.slane %v739_v37, 4 }
 0x144   : > { %v729_v41 = vrot.slane %v728_v39, 2  ;;  %v741_v42 = vadd.f32 %v740_v40, %v739_v37 }
 0x146   : > { %v730_v43 = vadd.f32 %v729_v41, %v728_v39  ;;  %v742_v44 = vrot.slane %v741_v42, 2 }
 0x148   : > { %v731_v45 = vrot.slane %v730_v43, 1  ;;  %v743_v46 = vadd.f32 %v742_v44, %v741_v42 }
 0x14a   : > { %v732_v47 = vadd.f32 %v731_v45, %v730_v43  ;;  %v744_v38 = vrot.slane %v743_v46, 1 }
 0x14c   : > { %734 = vst.msk [vmem:[%s282_s27] sm:$0x1] %vm733_vm15, %v732_v47  ;;  %v745_v48 = vadd.f32 %v744_v38, %v743_v46 }
 0x14e   : > { %746 = vst.msk [vmem:[%s285_s30] sm:$0x1] %vm733_vm15, %v745_v48 }
 0x14f PF: > { %s18_s21 = sadd.s32 1, %s1055_s21  }
 0x150   : > { %p15_p7 = scmp.ge.s32.totalorder %s18_s21, 4  }
 0x152   :  { %17 = sbr.rel (!%p15_p7) target bundleno = 1 (0x1), region = 95 }
 0x157   :  { %792 = vsyncpa [#allocation4], 1 }
 0x158   :  { %794 = vsyncpa [#allocation4 + $0x1], 1 }

// kernel: _lambda_.7
= control target key start
LH: loop header
LB: loop body
LE: loop exit
PB: predicated region body
PF: predicated region fallthrough
CT: control target
= control target key end

     0   :  { %s1136_s21 = smov 0   ;;  %s1404_s0 = inlined_call_operand.vmem [shape: bf16[2,56,16], index: 0, kind: input, shape index: {}]   ;;  %s1405_s1 = inlined_call_operand.vmem [shape: bf16[144,8], index: 1, kind: input, shape index: {}]   ;;  %s1406_s2 = inlined_call_operand.vmem [shape: f32[1,8], index: 2, kind: input, shape index: {}]   ;;  %s1407_s3 = inlined_call_operand.vmem [shape: f32[32,1], index: 3, kind: input, shape index: {}]   ;;  %s1408_s4 = inlined_call_operand.vmem [shape: bf16[2,32,8], index: 4, kind: output, shape index: {0}]   ;;  %s1409_s5 = inlined_call_operand.vmem [shape: f32[2,1,8], index: 5, kind: output, shape index: {1}]   ;;  %s1410_s6 = inlined_call_operand.vmem [shape: f32[2,1,8], index: 6, kind: output, shape index: {2}]  }
   0x1 LB: > { %s975_s22 = sadd.s32 4294967295, %s1091_s21   ;;  %p979_p0 = scmp.ge.s32.totalorder %s1091_s21, 1  ;;  %s1091_s21 = sphi %s1136_s21, %s17_s21  }
   0x2   : > { %p217_p1 = scmp.lt.s32.totalorder %s1091_s21, 3 }
   0x4   : > { %p218_p2 = pnand %p979_p0, %p217_p1 }
   0x5   : > { %p253_p3 = scmp.lt.s32.totalorder (!%p218_p2), %s975_s22, 1  ;;  %s1093_s27 = smov (!%p218_p2), 48  }
   0x6   : > { %221 = sbr.rel (%p218_p2) target bundleno = 380 (0x17c), region = 36  ;;  %s1094_s28 = smov (!%p218_p2), 32  }
   0x7   : > { %s1095_s29 = smov (!%p218_p2), 16   ;;  %s1096_s30 = smov (!%p218_p2), 64  }
   0x8   : > { %s1097_s7 = smov (!%p218_p2), 80   ;;  %s1098_s8 = smov (!%p218_p2), 96  }
   0x9   : > { %s1099_s9 = smov (!%p218_p2), 112  }
   0xb   : > { %s1416_s22 = smov (!%p253_p3, %s975_s22), 1  ;;  %vm358_vm0 = vcmask 1042432   ;;  %vm359_vm1 = vcmask 1046532   ;;  %vm284_vm2 = vsmask.f32 3328  ;;  %vm274_vm6 = vcmask 125952  }
   0xc   : > { %s1064_s23 = smul.u32 28, %s1416_s22  ;;  %vm1161_vm3 = vmor %vm358_vm0, %vm359_vm1  ;;  %vm285_vm4 = vsmask.f32 7440  ;;  %vm343_vm7 = vcmask 257152   ;;  %vm386_vm8 = vcmask 388352   ;;  %vm411_vm9 = vcmask 519552   ;;  %s265_s24 = scalar_lea.vmem %s1409_s5, %s1416_s22 }
   0xd   : > { %vm1179_vm5 = vmor %vm284_vm2, %vm285_vm4  ;;  %vm477_vm10 = vcmask 650752   ;;  %vm517_vm11 = vcmask 781952   ;;  %vm742_vm12 = vcmask 130048   ;;  %vm542_vm13 = vcmask 913152   ;;  %s1042_s16 = sshll.u32 %s1416_s22, 4 }
   0xe   : > { %s1150_s26 = scalar_lea.vmem %s1404_s0, %s1064_s23  ;;  %vm608_vm14 = vcmask 1044352   ;;  %s1375_s19 = scalar_lea.vmem %s1408_s4, %s1042_s16  ;;  %vm803_vm0 = vcmask 60416   ;;  %vm836_vm4 = vcmask 64512  }
   0xf   : > { %v393_v0 = vld [vmem:[%s1150_s26 + $0xc] sm:$0xf]  ;;  %v1154_v1 = vld [vmem:[%s1150_s26 + $0x8] sm:$0xf]  ;;  %v352_v12 = vld [vmem:[%s1150_s26 + $0x10] sm:$0x1] }
  0x10   : > { %v351_v2 = vld [vmem:[%s1150_s26 + $0xc] sm:$0xf]  ;;  %403 = vrot.lane.b32.xlu0 %v393_v0, %s1093_s27  ;;  %v366_v3 = vrot.slane %v1154_v1, 5  ;;  %v281_v5 = vld [vmem:[%s1150_s26 + $0x8] sm:$0xf]  ;;  %v372_v17 = vrot.slane %v352_v12, 5 }
  0x11   : > { %v369_v4 = vrot.slane %v351_v2, 5  ;;  %v282_v6 = vld [vmem:[%s1150_s26 + $0xc] sm:$0xf]  ;;  %v307_v8 = vshll.u32 %v281_v5, 16  ;;  %v311_v9 = vshrl.u32 %v281_v5, 16 }
  0x12   : > { %v317_v10 = vshll.u32 %v282_v6, 16  ;;  %v321_v11 = vshrl.u32 %v282_v6, 16  ;;  %v368_v13 = vrot.slane %v366_v3, 4  ;;  %v283_v20 = vld [vmem:[%s1150_s26 + $0x10] sm:$0x1] }
  0x13   : > { %v371_v14 = vrot.slane %v369_v4, 4  ;;  %v1168_v15 = vrot.slane %v307_v8, 5  ;;  %v313_v16 = vrot.slane %v311_v9, 4  ;;  %v348_v21 = vld [vmem:[%s1150_s26] sm:$0xe]  ;;  %v327_v32 = vshll.u32 %v283_v20, 16 }
  0x14   : > { %v323_v18 = vrot.slane %v321_v11, 4  ;;  %v370_v19 = vsel %vm1161_vm3, %v368_v13, %v369_v4  ;;  %v349_v22 = vld [vmem:[%s1150_s26 + $0x4] sm:$0xf]  ;;  %v319_v24 = vrot.slane %v317_v10, 5  ;;  %v983_v25 = vrot.slane %v348_v21, 9 }
  0x15   : > { %378 = vrot.lane.b32.xlu1 %v370_v19, %s1094_s28  ;;  %v314_v23 = vor.u32 %v313_v16, %v1168_v15  ;;  %v363_v26 = vrot.slane %v349_v22, 5  ;;  %v418_v28 = vld [vmem:[%s1150_s26 + $0xc] sm:$0xf]  ;;  %v279_v29 = vld [vmem:[%s1150_s26] sm:$0xf]  ;;  %v373_v36 = vsel %vm1161_vm3, %v371_v14, %v372_v17  ;;  %v329_v44 = vrot.slane %v327_v32, 5 }
  0x16   : > { %v324_v31 = vor.u32 %v323_v18, %v319_v24  ;;  %v280_v34 = vld [vmem:[%s1150_s26 + $0x4] sm:$0xf]  ;;  %v441_v37 = vshll.u32 %v418_v28, 16  ;;  %v288_v38 = vshrl.u32 %v279_v29, 16  ;;  %v445_v39 = vshrl.u32 %v418_v28, 16 }
  0x17   : > { %v315_v30 = vrot.slane %v314_v23, 4  ;;  %v364_v33 = vsel %vm1161_vm3, %v983_v25, %v363_v26  ;;  %v291_v40 = vshll.u32 %v279_v29, 16  ;;  %v297_v41 = vshll.u32 %v280_v34, 16  ;;  %v419_v53 = vld [vmem:[%s1150_s26 + $0x10] sm:$0xf] }
  0x18   : > { %374 = vrot.lane.b32.xlu2 %v364_v33, %s1094_s28  ;;  %v301_v42 = vshrl.u32 %v280_v34, 16  ;;  %v325_v43 = vrot.slane %v324_v31, 4  ;;  %v290_v45 = vrot.slane %v288_v38, 4  ;;  %v1195_v47 = vrot.slane %v441_v37, 5  ;;  %v394_v57 = vld [vmem:[%s1150_s26 + $0x10] sm:$0xf] }
  0x19   : > { %v320_v35 = vsel %vm1179_vm5, %v315_v30, %v319_v24  ;;  %v293_v46 = vrot.slane %v291_v40, 5  ;;  %v447_v48 = vrot.slane %v445_v39, 4  ;;  %v299_v50 = vrot.slane %v297_v41, 5  ;;  %v420_v0 = vld [vmem:[%s1150_s26 + $0x14] sm:$0x1] }
  0x1a   : > { %335 = vrot.lane.b32.xlu0 %v320_v35, %s1095_s29  ;;  %v303_v51 = vrot.slane %v301_v42, 4  ;;  %v330_v52 = vsel %vm1179_vm5, %v325_v43, %v329_v44  ;;  %v455_v54 = vshrl.u32 %v419_v53, 16  ;;  %v451_v59 = vshll.u32 %v419_v53, 16  ;;  %v416_v6 = vld [vmem:[%s1150_s26 + $0x4] sm:$0xf] }
  0x1b   : > { %v294_v49 = vor.u32 %v293_v46, %v290_v45  ;;  %v448_v58 = vor.u32 %v447_v48, %v1195_v47  ;;  %v365_v61 = vrot.slane %v363_v26, 4  ;;  %v461_v10 = vshll.u32 %v420_v0, 16  ;;  %v417_v19 = vld [vmem:[%s1150_s26 + $0x8] sm:$0xf]  ;;  %v484_v20 = vld [vmem:[%s1150_s26 + $0xc] sm:$0xf] }
  0x1c   : > { %v304_v56 = vor.u32 %v303_v51, %v299_v50  ;;  %v457_v63 = vrot.slane %v455_v54, 4  ;;  %v453_v4 = vrot.slane %v451_v59, 5  ;;  %v422_v1 = vshrl.u32 %v416_v6, 16  ;;  %v486_v21 = vld [vmem:[%s1150_s26 + $0x14] sm:$0x1] }
  0x1d   : > { %380 = vrot.lane.b32.xlu1 %v373_v36, %s1094_s28  ;;  %v295_v55 = vrot.slane %v294_v49, 4  ;;  %v449_v2 = vrot.slane %v448_v58, 4  ;;  %v367_v5 = vsel %vm1161_vm3, %v365_v61, %v366_v3  ;;  %v425_v12 = vshll.u32 %v416_v6, 16  ;;  %v485_v3 = vld [vmem:[%s1150_s26 + $0x10] sm:$0xf] }
  0x1e   : > { %v305_v62 = vrot.slane %v304_v56, 4  ;;  %v458_v9 = vor.u32 %v457_v63, %v453_v4  ;;  %v463_v14 = vrot.slane %v461_v10, 5  ;;  %v424_v16 = vrot.slane %v422_v1, 4  ;;  %v392_v24 = vld [vmem:[%s1150_s26 + $0x8] sm:$0xf] }
  0x1f   : > { %v300_v60 = vsel %vm1179_vm5, %v295_v55, %v299_v50  ;;  %v454_v11 = vsel %vm1179_vm5, %v449_v2, %v453_v4  ;;  %v427_v17 = vrot.slane %v425_v12, 5  ;;  %v500_v18 = vrot.slane %v485_v3, 5  ;;  %v549_v36 = vld [vmem:[%s1150_s26 + $0x10] sm:$0xf]  ;;  %v483_v42 = vld [vmem:[%s1150_s26 + $0x8] sm:$0xf] }
  0x20   : > { %331 = vrot.lane.b32.xlu2 %v300_v60, %s1095_s29  ;;  %v310_v8 = vsel %vm1179_vm5, %v305_v62, %v1168_v15  ;;  %v459_v13 = vrot.slane %v458_v9, 4  ;;  %v391_v15 = vld [vmem:[%s1150_s26 + $0x4] sm:$0xf]  ;;  %v435_v22 = vshrl.u32 %v417_v19, 16  ;;  %v431_v26 = vshll.u32 %v417_v19, 16 }
  0x21   : > { %v428_v25 = vor.u32 %v427_v17, %v424_v16  ;;  %v497_v28 = vrot.slane %v484_v20, 5  ;;  %v502_v29 = vrot.slane %v500_v18, 4  ;;  %v503_v30 = vrot.slane %v486_v21, 5  ;;  %v524_v46 = vld [vmem:[%s1150_s26 + $0x10] sm:$0xf] }
  0x22   : > { %337 = vrot.lane.b32.xlu0 %v330_v52, %s1095_s29  ;;  %v464_v23 = vsel %vm1179_vm5, %v459_v13, %v463_v14  ;;  %v437_v32 = vrot.slane %v435_v22, 4  ;;  %v433_v34 = vrot.slane %v431_v26, 5  ;;  %v572_v40 = vshll.u32 %v549_v36, 16  ;;  %v550_v49 = vld [vmem:[%s1150_s26 + $0x14] sm:$0xf] }
  0x23   : > { %v499_v31 = vrot.slane %v497_v28, 4  ;;  %v429_v33 = vrot.slane %v428_v25, 4  ;;  %v504_v35 = vsel %vm1161_vm3, %v502_v29, %v503_v30  ;;  %v576_v41 = vshrl.u32 %v549_v36, 16  ;;  %v482_v52 = vld [vmem:[%s1150_s26 + $0x4] sm:$0xe] }
  0x24   : > { %v438_v38 = vor.u32 %v437_v32, %v433_v34  ;;  %v574_v44 = vrot.slane %v572_v40, 5  ;;  %v494_v48 = vrot.slane %v483_v42, 5  ;;  %v586_v50 = vshrl.u32 %v550_v49, 16  ;;  %v525_v53 = vld [vmem:[%s1150_s26 + $0x14] sm:$0xf]  ;;  %v1051_v42 = vld [vmem:[%s1405_s1 + $0x20] sm:$0xff] }
  0x25   : > { %405 = vrot.lane.b32.xlu1 %v394_v57, %s1093_s27  ;;  %v501_v37 = vsel %vm1161_vm3, %v499_v31, %v500_v18  ;;  %v434_v39 = vsel %vm1179_vm5, %v429_v33, %v433_v34  ;;  %v578_v45 = vrot.slane %v576_v41, 4  ;;  %v582_v55 = vshll.u32 %v550_v49, 16  ;;  %v548_v57 = vld [vmem:[%s1150_s26 + $0xc] sm:$0xf]  ;;  %v551_v59 = vld [vmem:[%s1150_s26 + $0x18] sm:$0x1] }
  0x26   : > { %v439_v43 = vrot.slane %v438_v38, 4  ;;  %v496_v56 = vrot.slane %v494_v48, 4  ;;  %v984_v58 = vrot.slane %v482_v52, 9  ;;  %v588_v60 = vrot.slane %v586_v50, 4  ;;  %v547_v61 = vld [vmem:[%s1150_s26 + $0x8] sm:$0xf] }
  0x27   : > { %v579_v54 = vor.u32 %v578_v45, %v574_v44  ;;  %v584_v63 = vrot.slane %v582_v55, 5  ;;  %v562_v0 = vshll.u32 %v548_v57, 16  ;;  %v566_v2 = vshrl.u32 %v548_v57, 16  ;;  %v523_v19 = vld [vmem:[%s1150_s26 + $0xc] sm:$0xf]  ;;  %v1054_v33 = vld [vmem:[%s1405_s1 + $0x38] sm:$0xff] }
  0x28   : > { %333 = vrot.lane.b32.xlu2 %v310_v8, %s1095_s29  ;;  %v444_v51 = vsel %vm1179_vm5, %v439_v43, %v1195_v47  ;;  %v498_v47 = vsel %vm1161_vm3, %v496_v56, %v497_v28  ;;  %v592_v4 = vshll.u32 %v551_v59, 16  ;;  %v553_v8 = vshrl.u32 %v547_v61, 16  ;;  %v272_v25 = vld [vmem:[%s1150_s26 + $0x8] sm:$0xf]  ;;  %v273_v28 = vld [vmem:[%s1150_s26 + $0xc] sm:$0xf]  ;;  %1056 = vmatpush.bf16.msra.mxu2 %v1054_v33 }
  0x29   : > { %v580_v62 = vrot.slane %v579_v54, 4  ;;  %v589_v6 = vor.u32 %v588_v60, %v584_v63  ;;  %v556_v9 = vshll.u32 %v547_v61, 16  ;;  %v568_v1 = vrot.slane %v566_v2, 4  ;;  %277 = vst.msk [vmem:[#allocation2 + $0x10] sm:$0xf] %vm274_vm6, %v272_v25  ;;  %749 = vmatpush.bf16.msra.mxu0 %v1054_v33  ;;  %v1052_v38 = vld [vmem:[%s1405_s1 + $0x28] sm:$0xff] }
  0x2a   : > { %376 = vrot.lane.b32.xlu0 %v367_v5, %s1094_s28  ;;  %v495_v5 = vsel %vm1161_vm3, %v984_v58, %v494_v48  ;;  %v594_v3 = vrot.slane %v592_v4, 5  ;;  %v555_v13 = vrot.slane %v553_v8, 4  ;;  %278 = vst.msk [vmem:[#allocation2 + $0x18] sm:$0xf] %vm274_vm6, %v273_v28  ;;  %v271_v29 = vld [vmem:[%s1150_s26 + $0x4] sm:$0xf]  ;;  %s268_s28 = scalar_lea.vmem %s1410_s6, %s1416_s22 }
  0x2b   : > { %v585_v10 = vsel %vm1179_vm5, %v580_v62, %v584_v63  ;;  %v590_v12 = vrot.slane %v589_v6, 4  ;;  %v558_v14 = vrot.slane %v556_v9, 5  ;;  %276 = vst.msk [vmem:[#allocation2 + $0x8] sm:$0xf] %vm274_vm6, %v271_v29  ;;  %v613_v43 = vld [vmem:[%s1150_s26 + $0x8] sm:$0xe] }
  0x2c   : > { %v985_v45 = vrot.slane %v613_v43, 9  ;;  %v1049_v55 = vld [vmem:[%s1405_s1 + $0x10] sm:$0xff]  ;;  %v1055_v56 = vld [vmem:[%s1405_s1 + $0x40] sm:$0xff]  ;;  %v1048_v58 = vld [vmem:[%s1405_s1 + $0x8] sm:$0xff] }
  0x2d   : > { %469 = vrot.lane.b32.xlu1 %v454_v11, %s1096_s30  ;;  %v564_v11 = vrot.slane %v562_v0, 5  ;;  %v595_v17 = vsel %vm1179_vm5, %v590_v12, %v594_v3  ;;  %v559_v18 = vor.u32 %v558_v14, %v555_v13  ;;  %775 = vmatpush.bf16.msra.mxu1 %v1055_v56  ;;  %v616_v63 = vld [vmem:[%s1150_s26 + $0x14] sm:$0xf]  ;;  %v1047_v2 = vld [vmem:[%s1405_s1] sm:$0xff]  ;;  %v617_v4 = vld [vmem:[%s1150_s26 + $0x18] sm:$0x1] }
  0x2e   : > { %v631_v0 = vrot.slane %v616_v63, 5  ;;  %v634_v8 = vrot.slane %v617_v4, 5 }
  0x2f   : > { %v569_v16 = vor.u32 %v568_v1, %v564_v11  ;;  %v560_v21 = vrot.slane %v559_v18, 4  ;;  %v808_v18 = vld [vmem:[%s1407_s3] sm:$0xff] }
  0x30   : > { %471 = vrot.lane.b32.xlu2 %v464_v23, %s1096_s30  ;;  %v633_v6 = vrot.slane %v631_v0, 4 }
  0x31   : > { %v570_v20 = vrot.slane %v569_v16, 4  ;;  %v565_v23 = vsel %vm1179_vm5, %v560_v21, %v564_v11  ;;  %v809_v21 = vld [vmem:[%s1407_s3 + $0x8] sm:$0xff] }
  0x32   : > { %399 = vrot.lane.b32.xlu0 %v391_v15, %s1093_s27  ;;  %v522_v15 = vld [vmem:[%s1150_s26 + $0x8] sm:$0xf]  ;;  %v635_v11 = vsel %vm1161_vm3, %v633_v6, %v634_v8 }
  0x33   : > { %v575_v22 = vsel %vm1179_vm5, %v570_v20, %v574_v44  ;;  %v615_v44 = vld [vmem:[%s1150_s26 + $0x10] sm:$0xf]  ;;  %643 = vst.msk [vmem:[#allocation2 + $0x1c] sm:$0xf] %vm274_vm6, %v635_v11  ;;  %v1100_v20 = vmov 0   ;;  %vm850_vm5 = vcmask 57344  }
  0x34   : > { %v628_v49 = vrot.slane %v615_v44, 5  ;;  %1083 = vset.pattern.permute.xlu0 %v1100_v20  ;;  %1081 = vset.pattern.permute.xlu1 %v1100_v20 }
  0x35   : > { %401 = vrot.lane.b32.xlu1 %v392_v24, %s1093_s27  ;;  %v270_v24 = vld [vmem:[%s1150_s26] sm:$0xf]  ;;  %1082 = vset.pattern.permute.xlu2 %v1100_v20 }
  0x36   : > { %275 = vst.msk [vmem:[#allocation2] sm:$0xf] %vm274_vm6, %v270_v24 }
  0x38   : > { %509 = vrot.lane.b32.xlu2 %v501_v37, %s1097_s7 }
  0x3a   : > { %511 = vrot.lane.b32.xlu0 %v504_v35, %s1097_s7  ;;  %v1053_v35 = vld [vmem:[%s1405_s1 + $0x30] sm:$0xff]  ;;  %v998_v7 = vld [vmem:[#allocation2 + $0x18] sm:$0xf0] }
  0x3b   : > { %1057 = vmatpush.bf16.msra.mxu2 %v1053_v35  ;;  %750 = vmatpush.bf16.msra.mxu0 %v1053_v35 }
  0x3d   : > { %465 = vrot.lane.b32.xlu1 %v434_v39, %s1096_s30  ;;  %v614_v39 = vld [vmem:[%s1150_s26 + $0xc] sm:$0xf] }
  0x3e   : > { %v625_v41 = vrot.slane %v614_v39, 5 }
  0x3f   : > { %1058 = vmatpush.bf16.msra.mxu2 %v1052_v38  ;;  %751 = vmatpush.bf16.msra.mxu0 %v1052_v38 }
  0x40   : > { %467 = vrot.lane.b32.xlu2 %v444_v51, %s1096_s30  ;;  %v1050_v51 = vld [vmem:[%s1405_s1 + $0x18] sm:$0xff]  ;;  %v626_v52 = vsel %vm1161_vm3, %v985_v45, %v625_v41 }
  0x41   : > { %640 = vst.msk [vmem:[#allocation2 + $0x4] sm:$0xf] %vm274_vm6, %v626_v52 }
  0x42   : > { %534 = vrot.lane.b32.xlu0 %v524_v46, %s1098_s8  ;;  %v627_v46 = vrot.slane %v625_v41, 4 }
  0x43   : > { %1059 = vmatpush.bf16.msra.mxu2 %v1051_v42  ;;  %752 = vmatpush.bf16.msra.mxu0 %v1051_v42 }
  0x45   : > { %536 = vrot.lane.b32.xlu1 %v525_v53, %s1098_s8  ;;  %v629_v53 = vsel %vm1161_vm3, %v627_v46, %v628_v49 }
  0x46   : > { %641 = vst.msk [vmem:[#allocation2 + $0xc] sm:$0xf] %vm274_vm6, %v629_v53 }
  0x47   : > { %1060 = vmatpush.bf16.msra.mxu2 %v1050_v51  ;;  %753 = vmatpush.bf16.msra.mxu0 %v1050_v51 }
  0x48   : > { %505 = vrot.lane.b32.xlu2 %v495_v5, %s1097_s7  ;;  %v1043_v59 = vld [vmem:[#allocation2 + $0x4] sm:$0xf]  ;;  %v630_v5 = vrot.slane %v628_v49, 4 }
  0x4a   : > { %507 = vrot.lane.b32.xlu0 %v498_v47, %s1097_s7 }
  0x4b   : > { %1061 = vmatpush.bf16.msra.mxu2 %v1049_v55  ;;  %754 = vmatpush.bf16.msra.mxu0 %v1049_v55 }
  0x4d   : > { %600 = vrot.lane.b32.xlu1 %v585_v10, %s1099_s9  ;;  %v990_v61 = vld [vmem:[#allocation2 + $0x8] sm:$0xf0]  ;;  %v632_v10 = vsel %vm1161_vm3, %v630_v5, %v631_v0 }
  0x4e   : > { %v993_v62 = vor.u32 %v1043_v59, %v990_v61  ;;  %642 = vst.msk [vmem:[#allocation2 + $0x14] sm:$0xf] %vm274_vm6, %v632_v10 }
  0x4f   : > { %1062 = vmatpush.bf16.msra.mxu2 %v1048_v58  ;;  %755 = vmatpush.bf16.msra.mxu0 %v1048_v58 }
  0x50   : > { %602 = vrot.lane.b32.xlu2 %v595_v17, %s1099_s9  ;;  %1038 = vmatmul.msk.bf16.vlgmr.msra.gmra.mxu1 %vm742_vm12, %v993_v62 }
  0x52   : > { %530 = vrot.lane.b32.xlu0 %v522_v15, %s1098_s8 }
  0x53   : > { %1063 = vmatpush.bf16.msra.mxu2 %v1047_v2  ;;  %756 = vmatpush.bf16.msra.mxu0 %v1047_v2 }
  0x55   : > { %532 = vrot.lane.b32.xlu1 %v523_v19, %s1098_s8  ;;  %v1045_v13 = vld [vmem:[#allocation2 + $0x14] sm:$0xf] }
  0x56   : > { %v1001_v14 = vor.u32 %v1045_v13, %v998_v7  ;;  %v810_v19 = vld [vmem:[%s1407_s3 + $0x10] sm:$0xff] }
  0x58   : > { %596 = vrot.lane.b32.xlu2 %v565_v23, %s1099_s9  ;;  %v811_v23 = vld [vmem:[%s1407_s3 + $0x18] sm:$0xff] }
  0x5a   : > { %598 = vrot.lane.b32.xlu0 %v575_v22, %s1099_s9 }
  0x5d   : > { %814 = vperm.xlu1 %1081, %v808_v18  }
  0x60   : > { %1039 = vmatmul.msk.bf16.gmra.mxu1 %vm742_vm12, %v1001_v14  ;;  %819 = vperm.xlu2 %1082, %v809_v21  }
  0x62   : > { %824 = vperm.xlu0 %1083, %v810_v19  }
  0x65   : > { %829 = vperm.xlu1 %1081, %v811_v23  }
  0x72   : > { %v375_v26 = vpop.permute.xlu2 %374 }
  0x7a   : > { %v332_v27 = vpop.permute.xlu2 %331 }
  0x7b   : > { %344 = vst.msk [vmem:[#allocation2] sm:$0xf] %vm343_vm7, %v332_v27 }
  0x7c   : > { %387 = vst.msk [vmem:[#allocation2] sm:$0xf] %vm386_vm8, %v375_v26 }
  0x82   : > { %v404_v30 = vpop.permute.xlu0 %403  ;;  %v334_v31 = vpop.permute.xlu2 %333 }
  0x83   : > { %345 = vst.msk [vmem:[#allocation2 + $0x8] sm:$0xf] %vm343_vm7, %v334_v31 }
  0x87   : > { %v379_v32 = vpop.permute.xlu1 %378 }
  0x8a   : > { %v472_v36 = vpop.permute.xlu2 %471 }
  0x8c   : > { %v336_v34 = vpop.permute.xlu0 %335 }
  0x8d   : > { %346 = vst.msk [vmem:[#allocation2 + $0x10] sm:$0xf] %vm343_vm7, %v336_v34 }
  0x8e   : > { %389 = vst.msk [vmem:[#allocation2 + $0x10] sm:$0xf] %vm386_vm8, %v379_v32 }
  0x8f   : > { %v381_v37 = vpop.permute.xlu1 %380  ;;  %414 = vst.msk [vmem:[#allocation2 + $0x10] sm:$0xf] %vm411_vm9, %v404_v30 }
  0x92   : > { %v510_v50 = vpop.permute.xlu2 %509 }
  0x94   : > { %v338_v40 = vpop.permute.xlu0 %337 }
  0x95   : > { %347 = vst.msk [vmem:[#allocation2 + $0x18] sm:$0xf] %vm343_vm7, %v338_v40 }
  0x96   : > { %390 = vst.msk [vmem:[#allocation2 + $0x18] sm:$0xf] %vm386_vm8, %v381_v37  ;;  %v1084_v37 = vld [vmem:[%s1406_s2] ss:$0 sm:$0xff] }
  0x97   : > { %v406_v48 = vpop.permute.xlu1 %405 }
  0x98   : > { %415 = vst.msk [vmem:[#allocation2 + $0x18] sm:$0xf] %vm411_vm9, %v406_v48 }
  0x99   : > { %481 = vst.msk [vmem:[#allocation2 + $0x18] sm:$0xf] %vm477_vm10, %v472_v36 }
  0x9a   : > { %v468_v60 = vpop.permute.xlu2 %467 }
  0x9c   : > { %v377_v54 = vpop.permute.xlu0 %376 }
  0x9d   : > { %388 = vst.msk [vmem:[#allocation2 + $0x8] sm:$0xf] %vm386_vm8, %v377_v54 }
  0x9f   : > { %v470_v57 = vpop.permute.xlu1 %469 }
  0xa0   : > { %480 = vst.msk [vmem:[#allocation2 + $0x10] sm:$0xf] %vm477_vm10, %v470_v57 }
  0xa1   : > { %520 = vst.msk [vmem:[#allocation2 + $0x10] sm:$0xf] %vm517_vm11, %v510_v50 }
  0xa2   : > { %v506_v12 = vpop.permute.xlu2 %505 }
  0xa4   : > { %v400_v47 = vpop.permute.xlu0 %399 }
  0xa5   : > { %412 = vst.msk [vmem:[#allocation2] sm:$0xf] %vm411_vm9, %v400_v47 }
  0xa7   : > { %v402_v9 = vpop.permute.xlu1 %401 }
  0xa8   : > { %413 = vst.msk [vmem:[#allocation2 + $0x8] sm:$0xf] %vm411_vm9, %v402_v9 }
  0xa9   : > { %479 = vst.msk [vmem:[#allocation2 + $0x8] sm:$0xf] %vm477_vm10, %v468_v60 }
  0xaa   : > { %v603_v16 = vpop.permute.xlu2 %602 }
  0xac   : > { %v512_v1 = vpop.permute.xlu0 %511 }
  0xad   : > { %521 = vst.msk [vmem:[#allocation2 + $0x18] sm:$0xf] %vm517_vm11, %v512_v1 }
  0xaf   : > { %v466_v3 = vpop.permute.xlu1 %465 }
  0xb0   : > { %478 = vst.msk [vmem:[#allocation2] sm:$0xf] %vm477_vm10, %v466_v3 }
  0xb1   : > { %518 = vst.msk [vmem:[#allocation2] sm:$0xf] %vm517_vm11, %v506_v12 }
  0xb2   : > { %v597_v25 = vpop.permute.xlu2 %596 }
  0xb4   : > { %v535_v15 = vpop.permute.xlu0 %534 }
  0xb5   : > { %545 = vst.msk [vmem:[#allocation2 + $0x10] sm:$0xf] %vm542_vm13, %v535_v15 }
  0xb7   : > { %v537_v17 = vpop.permute.xlu1 %536 }
  0xb8   : > { %546 = vst.msk [vmem:[#allocation2 + $0x18] sm:$0xf] %vm542_vm13, %v537_v17 }
  0xb9   : > { %612 = vst.msk [vmem:[#allocation2 + $0x18] sm:$0xf] %vm608_vm14, %v603_v16 }
  0xba   : > { %v820_v4 = vpop.permute.xlu2 %819 }
  0xbc   : > { %v508_v22 = vpop.permute.xlu0 %507 }
  0xbd   : > { %519 = vst.msk [vmem:[#allocation2 + $0x8] sm:$0xf] %vm517_vm11, %v508_v22 }
  0xbf   : > { %v601_v24 = vpop.permute.xlu1 %600 }
  0xc0   : > { %611 = vst.msk [vmem:[#allocation2 + $0x10] sm:$0xf] %vm608_vm14, %v601_v24  ;;  %v1046_v28 = vld [vmem:[#allocation2 + $0x14] sm:$0xf0] }
  0xc4   : > { %v531_v26 = vpop.permute.xlu0 %530 }
  0xc5   : > { %543 = vst.msk [vmem:[#allocation2] sm:$0xf] %vm542_vm13, %v531_v26 }
  0xc6   : > { %609 = vst.msk [vmem:[#allocation2] sm:$0xf] %vm608_vm14, %v597_v25 }
  0xc7   : > { %v533_v29 = vpop.permute.xlu1 %532  ;;  %v996_v27 = vld [vmem:[#allocation2 + $0x10] sm:$0xf] }
  0xc8   : > { %544 = vst.msk [vmem:[#allocation2 + $0x8] sm:$0xf] %vm542_vm13, %v533_v29  ;;  %v997_v30 = vor.u32 %v1046_v28, %v996_v27 }
  0xca   : > { %762 = vmatmul.bf16.vlgmr.msra.gmra.mxu2 %v997_v30 }
  0xcc   : > { %v599_v31 = vpop.permute.xlu0 %598 }
  0xcd   : > { %610 = vst.msk [vmem:[#allocation2 + $0x8] sm:$0xf] %vm608_vm14, %v599_v31  ;;  %v988_v32 = vld [vmem:[#allocation2] sm:$0xf]  ;;  %v777_v35 = vpop.f32.mrf.mxu1 }
  0xcf   : > { %v815_v52 = vpop.permute.xlu1 %814 }
  0xd4   : > { %v1044_v33 = vld [vmem:[#allocation2 + $0x4] sm:$0xf0]  ;;  %v825_v62 = vpop.permute.xlu0 %824 }
  0xd5   : > { %v989_v34 = vor.u32 %v1044_v33, %v988_v32  ;;  %v779_v36 = vpop.f32.mrf.mxu1 }
  0xd7   : > { %757 = vmatmul.bf16.vlgmr.msra.gmra.mxu0 %v989_v34  ;;  %v830_v2 = vpop.permute.xlu1 %829 }
  0xdd   : > { %v782_v38 = vpop.f32.mrf.mxu1 }
  0xe5   : > { %v784_v49 = vpop.f32.mrf.mxu1 }
 0x14d   : > { %v763_v39 = vpop.f32.mrf.mxu2 }
 0x14e   : > { %v764_v40 = vadd.f32 %v1084_v37, %v763_v39 }
 0x150   : > { %v783_v41 = vadd.f32 %v782_v38, %v764_v40 }
 0x152   : > { %v793_v42 = vmul.f32 0.2, %v783_v41  ;;  %vm789_vm15 = vcmp.ge.f32.partialorder %v783_v41, 0.0 }
 0x154   : > { %v758_v43 = vpop.f32.mrf.mxu0  ;;  %v797_v44 = vsel %vm789_vm15, %v783_v41, %v793_v42 }
 0x155   : > { %v759_v45 = vadd.f32 %v1084_v37, %v758_v43  ;;  %v801_v46 = vpack.c.bf16 %v797_v44, %v797_v44  ;;  %v765_v48 = vpop.f32.mrf.mxu2  ;;  %v834_v5 = vmul.f32 %v825_v62, %v797_v44 }
 0x156   : > { %v766_v50 = vadd.f32 %v1084_v37, %v765_v48 }
 0x157   : > { %v778_v51 = vadd.f32 %v777_v35, %v759_v45  ;;  %806 = vst.msk [vmem:[%s1375_s19 + $0x8] sm:$0xf] %vm803_vm0, %v801_v46  ;;  %v854_v12 = vmul.f32 %v834_v5, %v797_v44  ;;  %v840_v15 = vsel %vm836_vm4, %v834_v5, 0.0 }
 0x158   : > { %v785_v53 = vadd.f32 %v784_v49, %v766_v50 }
 0x159   : > { %v791_v54 = vmul.f32 0.2, %v778_v51  ;;  %vm787_vm1 = vcmp.ge.f32.partialorder %v778_v51, 0.0  ;;  %v859_v20 = vsel %vm836_vm4, %v854_v12, 0.0 }
 0x15a   : > { %v794_v55 = vmul.f32 0.2, %v785_v53  ;;  %vm790_vm2 = vcmp.ge.f32.partialorder %v785_v53, 0.0 }
 0x15b   : > { %v795_v56 = vsel %vm787_vm1, %v778_v51, %v791_v54 }
 0x15c   : > { %v799_v57 = vpack.c.bf16 %v795_v56, %v795_v56  ;;  %v760_v58 = vpop.f32.mrf.mxu0  ;;  %v798_v59 = vsel %vm790_vm2, %v785_v53, %v794_v55  ;;  %v832_v47 = vmul.f32 %v815_v52, %v795_v56 }
 0x15d   : > { %v761_v60 = vadd.f32 %v1084_v37, %v760_v58  ;;  %v802_v61 = vpack.c.bf16 %v798_v59, %v798_v59  ;;  %v835_v9 = vmul.f32 %v830_v2, %v798_v59 }
 0x15e   : > { %804 = vst.msk [vmem:[%s1375_s19] sm:$0xf] %vm803_vm0, %v799_v57  ;;  %v852_v8 = vmul.f32 %v832_v47, %v795_v56  ;;  %v837_v1 = vsel %vm836_vm4, %v832_v47, 0.0 }
 0x15f   : > { %v780_v63 = vadd.f32 %v779_v36, %v761_v60  ;;  %807 = vst.msk [vmem:[%s1375_s19 + $0xc] sm:$0xf] %vm803_vm0, %v802_v61  ;;  %v855_v16 = vmul.f32 %v835_v9, %v798_v59  ;;  %v842_v21 = vsel %vm836_vm4, %v835_v9, 0.0 }
 0x160   : > { %v856_v14 = vsel %vm836_vm4, %v852_v8, 0.0 }
 0x161   : > { %v792_v0 = vmul.f32 0.2, %v780_v63  ;;  %vm788_vm3 = vcmp.ge.f32.partialorder %v780_v63, 0.0  ;;  %v861_v24 = vsel %vm836_vm4, %v855_v16, 0.0 }
 0x163   : > { %v796_v6 = vsel %vm788_vm3, %v780_v63, %v792_v0 }
 0x164   : > { %v800_v10 = vpack.c.bf16 %v796_v6, %v796_v6  ;;  %v833_v11 = vmul.f32 %v820_v4, %v796_v6 }
 0x166   : > { %805 = vst.msk [vmem:[%s1375_s19 + $0x4] sm:$0xf] %vm803_vm0, %v800_v10  ;;  %v838_v3 = vsel %vm836_vm4, %v833_v11, 0.0  ;;  %v853_v13 = vmul.f32 %v833_v11, %v796_v6 }
 0x167   : > { %v839_v7 = vadd.f32 %v838_v3, %v837_v1 }
 0x168   : > { %v857_v17 = vsel %vm836_vm4, %v853_v13, 0.0 }
 0x169   : > { %v841_v18 = vadd.f32 %v840_v15, %v839_v7  ;;  %v858_v19 = vadd.f32 %v857_v17, %v856_v14 }
 0x16b   : > { %v843_v22 = vadd.f32 %v842_v21, %v841_v18  ;;  %v860_v23 = vadd.f32 %v859_v20, %v858_v19 }
 0x16d   : > { %v844_v25 = vrot.slane %v843_v22, 4  ;;  %v862_v26 = vadd.f32 %v861_v24, %v860_v23 }
 0x16f   : > { %v845_v28 = vadd.f32 %v844_v25, %v843_v22  ;;  %v863_v29 = vrot.slane %v862_v26, 4 }
 0x171   : > { %v846_v27 = vrot.slane %v845_v28, 2  ;;  %v864_v30 = vadd.f32 %v863_v29, %v862_v26 }
 0x173   : > { %v847_v31 = vadd.f32 %v846_v27, %v845_v28  ;;  %v865_v32 = vrot.slane %v864_v30, 2 }
 0x175   : > { %v848_v33 = vrot.slane %v847_v31, 1  ;;  %v866_v34 = vadd.f32 %v865_v32, %v864_v30 }
 0x177   : > { %v849_v35 = vadd.f32 %v848_v33, %v847_v31  ;;  %v867_v36 = vrot.slane %v866_v34, 1 }
 0x179   : > { %851 = vst.msk [vmem:[%s265_s24] sm:$0x1] %vm850_vm5, %v849_v35  ;;  %v868_v37 = vadd.f32 %v867_v36, %v866_v34 }
 0x17b   : > { %869 = vst.msk [vmem:[%s268_s28] sm:$0x1] %vm850_vm5, %v868_v37 }
 0x17c PF: > { %s17_s21 = sadd.s32 1, %s1091_s21  }
 0x17d   : > { %p14_p4 = scmp.ge.s32.totalorder %s17_s21, 4  }
 0x17f   :  { %16 = sbr.rel (!%p14_p4) target bundleno = 1 (0x1), region = 90 }

// kernel: _lambda_.8
= control target key start
LH: loop header
LB: loop body
LE: loop exit
PB: predicated region body
PF: predicated region fallthrough
CT: control target
= control target key end

     0   :  { %s2421_s21 = smov 0   ;;  %s3409_s0 = inlined_call_operand.vmem [shape: bf16[2,168,8], index: 0, kind: input, shape index: {}]   ;;  %s3410_s1 = inlined_call_operand.vmem [shape: bf16[72,8], index: 1, kind: input, shape index: {}]   ;;  %s3411_s2 = inlined_call_operand.vmem [shape: f32[1,8], index: 2, kind: input, shape index: {}]   ;;  %s3412_s3 = inlined_call_operand.vmem [shape: f32[128,1], index: 3, kind: input, shape index: {}]   ;;  %s3413_s4 = inlined_call_operand.vmem [shape: bf16[2,128,8], index: 4, kind: output, shape index: {0}]   ;;  %s3414_s5 = inlined_call_operand.vmem [shape: f32[2,1,8], index: 5, kind: output, shape index: {1}]   ;;  %s3415_s6 = inlined_call_operand.vmem [shape: f32[2,1,8], index: 6, kind: output, shape index: {2}]  }
   0x1 LB: > { %s2250_s22 = sadd.s32 4294967295, %s2375_s21   ;;  %p2254_p0 = scmp.ge.s32.totalorder %s2375_s21, 1  ;;  %s2375_s21 = sphi %s2421_s21, %s17_s21  }
   0x2   : > { %p217_p1 = scmp.lt.s32.totalorder %s2375_s21, 3 }
   0x4   : > { %p218_p2 = pnand %p2254_p0, %p217_p1 }
   0x5   : > { %p253_p3 = scmp.lt.s32.totalorder (!%p218_p2), %s2250_s22, 1  ;;  %s2377_s27 = smov (!%p218_p2), 8  }
   0x6   : > { %221 = sbr.rel (%p218_p2) target bundleno = 650 (0x28a), region = 36  ;;  %s2378_s28 = smov (!%p218_p2), 16  }
   0x7   : > { %s2379_s29 = smov (!%p218_p2), 24   ;;  %s2380_s30 = smov (!%p218_p2), 32  }
   0x8   : > { %s2381_s7 = smov (!%p218_p2), 40   ;;  %s2382_s8 = smov (!%p218_p2), 56  }
   0x9   : > { %s2383_s9 = smov (!%p218_p2), 48   ;;  %s2384_s10 = smov (!%p218_p2), 64  }
   0xb   : > { %s3421_s22 = smov (!%p253_p3, %s2250_s22), 1  ;;  %vm320_vm0 = vsmask.f32 3328  ;;  %vm321_vm1 = vsmask.f32 7440  ;;  %vm586_vm3 = vcmask 1042432  }
   0xc   : > { %s2347_s23 = smul.u32 84, %s3421_s22  ;;  %vm2445_vm2 = vmor %vm320_vm0, %vm321_vm1  ;;  %vm587_vm4 = vcmask 1046532   ;;  %vm286_vm6 = vcmask 60416   ;;  %vm535_vm7 = vcmask 126016   ;;  %vm686_vm8 = vcmask 191616   ;;  %v1940_v24 = vld [vmem:[%s3412_s3 + $0x8] sm:$0xff]  ;;  %s265_s17 = scalar_lea.vmem %s3414_s5, %s3421_s22 }
   0xd   : > { %vm2509_vm5 = vmor %vm586_vm3, %vm587_vm4  ;;  %vm783_vm9 = vcmask 257216   ;;  %vm1029_vm10 = vcmask 322816   ;;  %vm1177_vm11 = vcmask 388416   ;;  %vm1806_vm12 = vcmask 1043456   ;;  %s2319_s11 = sshll.u32 %s3421_s22, 6  ;;  %s268_s20 = scalar_lea.vmem %s3415_s6, %s3421_s22 }
   0xe   : > { %s2435_s26 = scalar_lea.vmem %s3409_s0, %s2347_s23  ;;  %vm1274_vm13 = vcmask 454016   ;;  %vm1520_vm14 = vcmask 519616   ;;  %vm1668_vm15 = vcmask 585216   ;;  %vm1781_vm0 = vcmask 588800   ;;  %s3293_s14 = scalar_lea.vmem %s3413_s4, %s2319_s11 }
   0xf   : > { %v305_v0 = vld [vmem:[%s2435_s26 + $0x8] sm:$0xf]  ;;  %v306_v1 = vld [vmem:[%s2435_s26 + $0xc] sm:$0xf]  ;;  %v303_v2 = vld [vmem:[%s2435_s26] sm:$0xf] }
  0x10   : > { %v343_v3 = vshll.u32 %v305_v0, 16  ;;  %v347_v4 = vshrl.u32 %v305_v0, 16  ;;  %v353_v5 = vshll.u32 %v306_v1, 16  ;;  %v357_v6 = vshrl.u32 %v306_v1, 16  ;;  %v304_v7 = vld [vmem:[%s2435_s26 + $0x4] sm:$0xf] }
  0x11   : > { %v324_v8 = vshrl.u32 %v303_v2, 16  ;;  %v327_v9 = vshll.u32 %v303_v2, 16  ;;  %v333_v10 = vshll.u32 %v304_v7, 16  ;;  %v337_v11 = vshrl.u32 %v304_v7, 16  ;;  %v307_v12 = vld [vmem:[%s2435_s26 + $0x10] sm:$0xf] }
  0x12   : > { %v345_v13 = vrot.slane %v343_v3, 5  ;;  %v349_v14 = vrot.slane %v347_v4, 4  ;;  %v359_v15 = vrot.slane %v357_v6, 4  ;;  %v310_v16 = vld [vmem:[%s2435_s26 + $0x1c] sm:$0xf]  ;;  %v355_v17 = vrot.slane %v353_v5, 5 }
  0x13   : > { %v326_v18 = vrot.slane %v324_v8, 4  ;;  %v329_v19 = vrot.slane %v327_v9, 5  ;;  %v339_v20 = vrot.slane %v337_v11, 4  ;;  %v335_v22 = vrot.slane %v333_v10, 5  ;;  %v309_v29 = vld [vmem:[%s2435_s26 + $0x18] sm:$0xf] }
  0x14   : > { %v350_v21 = vor.u32 %v349_v14, %v345_v13  ;;  %v393_v23 = vshll.u32 %v310_v16, 16  ;;  %v360_v26 = vor.u32 %v359_v15, %v355_v17  ;;  %v363_v27 = vshll.u32 %v307_v12, 16  ;;  %v311_v40 = vld [vmem:[%s2435_s26 + $0x20] sm:$0xf]  ;;  %v313_v42 = vld [vmem:[%s2435_s26 + $0x28] sm:$0xf] }
  0x15   : > { %v330_v25 = vor.u32 %v329_v19, %v326_v18  ;;  %v397_v28 = vshrl.u32 %v310_v16, 16  ;;  %v340_v32 = vor.u32 %v339_v20, %v335_v22  ;;  %v383_v36 = vshll.u32 %v309_v29, 16  ;;  %v312_v43 = vld [vmem:[%s2435_s26 + $0x24] sm:$0xf]  ;;  %v308_v47 = vld [vmem:[%s2435_s26 + $0x14] sm:$0xf] }
  0x16   : > { %v351_v30 = vrot.slane %v350_v21, 4  ;;  %v2452_v34 = vrot.slane %v393_v23, 5  ;;  %v361_v38 = vrot.slane %v360_v26, 4  ;;  %v365_v39 = vrot.slane %v363_v27, 5  ;;  %v314_v0 = vld [vmem:[%s2435_s26 + $0x2c] sm:$0xf] }
  0x17   : > { %v331_v31 = vrot.slane %v330_v25, 4  ;;  %v399_v35 = vrot.slane %v397_v28, 4  ;;  %v387_v41 = vshrl.u32 %v309_v29, 16  ;;  %v341_v44 = vrot.slane %v340_v32, 4  ;;  %v316_v7 = vld [vmem:[%s2435_s26 + $0x34] sm:$0xf] }
  0x18   : > { %v356_v33 = vsel %vm2445_vm2, %v351_v30, %v355_v17  ;;  %v2461_v45 = vrot.slane %v383_v36, 5  ;;  %v403_v49 = vshll.u32 %v311_v40, 16  ;;  %v366_v50 = vsel %vm2445_vm2, %v361_v38, %v365_v39  ;;  %v315_v10 = vld [vmem:[%s2435_s26 + $0x30] sm:$0xf] }
  0x19   : > { %491 = vrot.lane.b32.xlu1 %v356_v33, %s2377_s27  ;;  %v336_v37 = vsel %vm2445_vm2, %v331_v31, %v335_v22  ;;  %v389_v46 = vrot.slane %v387_v41, 4  ;;  %v400_v48 = vor.u32 %v399_v35, %v2452_v34  ;;  %v423_v51 = vshll.u32 %v313_v42, 16  ;;  %v317_v35 = vld [vmem:[%s2435_s26 + $0x38] sm:$0xf] }
  0x1a   : > { %487 = vrot.lane.b32.xlu0 %v336_v37, %s2377_s27  ;;  %v427_v52 = vshrl.u32 %v313_v42, 16  ;;  %v367_v53 = vshrl.u32 %v307_v12, 16  ;;  %v413_v54 = vshll.u32 %v312_v43, 16  ;;  %v417_v55 = vshrl.u32 %v312_v43, 16  ;;  %v318_v37 = vld [vmem:[%s2435_s26 + $0x3c] sm:$0xf] }
  0x1b   : > { %v373_v56 = vshll.u32 %v308_v47, 16  ;;  %v377_v57 = vshrl.u32 %v308_v47, 16  ;;  %v346_v58 = vsel %vm2445_vm2, %v341_v44, %v345_v13  ;;  %v390_v59 = vor.u32 %v389_v46, %v2461_v45 }
  0x1c   : > { %v369_v60 = vrot.slane %v367_v53, 4  ;;  %v401_v61 = vrot.slane %v400_v48, 4  ;;  %v405_v62 = vrot.slane %v403_v49, 5  ;;  %v425_v1 = vrot.slane %v423_v51, 5  ;;  %v319_v51 = vld [vmem:[%s2435_s26 + $0x40] sm:$0x1] }
  0x1d   : > { %v379_v63 = vrot.slane %v377_v57, 4  ;;  %v429_v2 = vrot.slane %v427_v52, 4  ;;  %v375_v4 = vrot.slane %v373_v56, 5  ;;  %v415_v5 = vrot.slane %v413_v54, 5 }
  0x1e   : > { %v370_v3 = vor.u32 %v369_v60, %v365_v39  ;;  %v419_v6 = vrot.slane %v417_v55, 4  ;;  %v391_v8 = vrot.slane %v390_v59, 4  ;;  %v407_v11 = vshrl.u32 %v311_v40, 16  ;;  %v552_v59 = vld [vmem:[%s2435_s26] sm:$0xe] }
  0x1f   : > { %v433_v12 = vshll.u32 %v314_v0, 16  ;;  %v380_v13 = vor.u32 %v379_v63, %v375_v4  ;;  %v406_v14 = vsel %vm2445_vm2, %v401_v61, %v405_v62  ;;  %v430_v15 = vor.u32 %v429_v2, %v425_v1  ;;  %v553_v60 = vld [vmem:[%s2435_s26 + $0x4] sm:$0xf]  ;;  %v1941_v2 = vld [vmem:[%s3412_s3 + $0x10] sm:$0xff] }
  0x20   : > { %v371_v9 = vrot.slane %v370_v3, 4  ;;  %v453_v17 = vshll.u32 %v316_v7, 16  ;;  %v420_v18 = vor.u32 %v419_v6, %v415_v5  ;;  %v457_v19 = vshrl.u32 %v316_v7, 16 }
  0x21   : > { %493 = vrot.lane.b32.xlu1 %v366_v50, %s2377_s27  ;;  %v443_v20 = vshll.u32 %v315_v10, 16  ;;  %v447_v21 = vshrl.u32 %v315_v10, 16  ;;  %v396_v22 = vsel %vm2445_vm2, %v391_v8, %v2452_v34  ;;  %v381_v23 = vrot.slane %v380_v13, 4  ;;  %v554_v8 = vld [vmem:[%s2435_s26 + $0x8] sm:$0xf] }
  0x22   : > { %489 = vrot.lane.b32.xlu0 %v346_v58, %s2377_s27  ;;  %v376_v16 = vsel %vm2445_vm2, %v371_v9, %v375_v4  ;;  %v409_v25 = vrot.slane %v407_v11, 4  ;;  %v431_v26 = vrot.slane %v430_v15, 4  ;;  %v435_v27 = vrot.slane %v433_v12, 5  ;;  %v556_v12 = vld [vmem:[%s2435_s26 + $0x10] sm:$0xf] }
  0x23   : > { %495 = vrot.lane.b32.xlu2 %v376_v16, %s2377_s27  ;;  %v455_v28 = vrot.slane %v453_v17, 5  ;;  %v421_v29 = vrot.slane %v420_v18, 4  ;;  %v459_v30 = vrot.slane %v457_v19, 4  ;;  %v445_v31 = vrot.slane %v443_v20, 5  ;;  %v558_v18 = vld [vmem:[%s2435_s26 + $0x18] sm:$0xf] }
  0x24   : > { %v449_v32 = vrot.slane %v447_v21, 4  ;;  %v437_v33 = vshrl.u32 %v314_v0, 16  ;;  %v386_v34 = vsel %vm2445_vm2, %v381_v23, %v2461_v45  ;;  %v410_v36 = vor.u32 %v409_v25, %v405_v62  ;;  %v557_v20 = vld [vmem:[%s2435_s26 + $0x14] sm:$0xf]  ;;  %v559_v25 = vld [vmem:[%s2435_s26 + $0x1c] sm:$0xf] }
  0x25   : > { %v436_v38 = vsel %vm2445_vm2, %v431_v26, %v435_v27  ;;  %v426_v39 = vsel %vm2445_vm2, %v421_v29, %v425_v1  ;;  %v460_v40 = vor.u32 %v459_v30, %v455_v28  ;;  %v463_v41 = vshll.u32 %v317_v35, 16 }
  0x26   : > { %v450_v42 = vor.u32 %v449_v32, %v445_v31  ;;  %v473_v43 = vshll.u32 %v318_v37, 16  ;;  %v477_v44 = vshrl.u32 %v318_v37, 16  ;;  %v411_v46 = vrot.slane %v410_v36, 4  ;;  %v562_v37 = vld [vmem:[%s2435_s26 + $0x28] sm:$0xf] }
  0x27   : > { %v439_v47 = vrot.slane %v437_v33, 4  ;;  %v461_v45 = vrot.slane %v460_v40, 4  ;;  %v465_v48 = vrot.slane %v463_v41, 5  ;;  %v467_v49 = vshrl.u32 %v317_v35, 16  ;;  %v560_v33 = vld [vmem:[%s2435_s26 + $0x20] sm:$0xf] }
  0x28   : > { %v451_v50 = vrot.slane %v450_v42, 4  ;;  %v475_v52 = vrot.slane %v473_v43, 5  ;;  %v479_v53 = vrot.slane %v477_v44, 4  ;;  %v416_v54 = vsel %vm2445_vm2, %v411_v46, %v415_v5  ;;  %v555_v5 = vld [vmem:[%s2435_s26 + $0xc] sm:$0xf] }
  0x29   : > { %501 = vrot.lane.b32.xlu1 %v406_v14, %s2377_s27  ;;  %v440_v55 = vor.u32 %v439_v47, %v435_v27  ;;  %v466_v56 = vsel %vm2445_vm2, %v461_v45, %v465_v48  ;;  %v483_v57 = vshll.u32 %v319_v51, 16  ;;  %v469_v63 = vrot.slane %v467_v49, 4  ;;  %v564_v43 = vld [vmem:[%s2435_s26 + $0x30] sm:$0xf]  ;;  %v563_v46 = vld [vmem:[%s2435_s26 + $0x2c] sm:$0xf] }
  0x2a   : > { %499 = vrot.lane.b32.xlu0 %v396_v22, %s2377_s27  ;;  %v456_v58 = vsel %vm2445_vm2, %v451_v50, %v455_v28  ;;  %v480_v61 = vor.u32 %v479_v53, %v475_v52  ;;  %v2258_v0 = vrot.slane %v552_v59, 9  ;;  %v591_v1 = vrot.slane %v553_v60, 5  ;;  %v565_v49 = vld [vmem:[%s2435_s26 + $0x34] sm:$0xf] }
  0x2b   : > { %497 = vrot.lane.b32.xlu2 %v386_v34, %s2377_s27  ;;  %v441_v62 = vrot.slane %v440_v55, 4  ;;  %v485_v4 = vrot.slane %v483_v57, 5  ;;  %v470_v7 = vor.u32 %v469_v63, %v465_v48  ;;  %v597_v10 = vrot.slane %v555_v5, 5  ;;  %v567_v55 = vld [vmem:[%s2435_s26 + $0x3c] sm:$0xf] }
  0x2c   : > { %v481_v3 = vrot.slane %v480_v61, 4  ;;  %v592_v9 = vsel %vm2509_vm5, %v2258_v0, %v591_v1  ;;  %v594_v13 = vrot.slane %v554_v8, 5  ;;  %v600_v16 = vrot.slane %v556_v12, 5  ;;  %v566_v57 = vld [vmem:[%s2435_s26 + $0x38] sm:$0xf] }
  0x2d   : > { %v446_v6 = vsel %vm2445_vm2, %v441_v62, %v445_v31  ;;  %v471_v14 = vrot.slane %v470_v7, 4  ;;  %v599_v15 = vrot.slane %v597_v10, 4  ;;  %v606_v22 = vrot.slane %v558_v18, 5  ;;  %v561_v31 = vld [vmem:[%s2435_s26 + $0x24] sm:$0xf] }
  0x2e   : > { %v486_v11 = vsel %vm2445_vm2, %v481_v3, %v485_v4  ;;  %v596_v17 = vrot.slane %v594_v13, 4  ;;  %v603_v26 = vrot.slane %v557_v20, 5  ;;  %v593_v27 = vrot.slane %v591_v1, 4  ;;  %v568_v61 = vld [vmem:[%s2435_s26 + $0x40] sm:$0x1] }
  0x2f   : > { %v476_v19 = vsel %vm2445_vm2, %v471_v14, %v475_v52  ;;  %v601_v21 = vsel %vm2509_vm5, %v599_v15, %v600_v16  ;;  %v608_v28 = vrot.slane %v606_v22, 4  ;;  %v609_v29 = vrot.slane %v559_v25, 5  ;;  %v705_v12 = vld [vmem:[%s2435_s26 + $0x10] sm:$0xf]  ;;  %v703_v14 = vld [vmem:[%s2435_s26 + $0x8] sm:$0xf] }
  0x30   : > { %v598_v23 = vsel %vm2509_vm5, %v596_v17, %v597_v10  ;;  %v605_v30 = vrot.slane %v603_v26, 4  ;;  %v595_v32 = vsel %vm2509_vm5, %v593_v27, %v594_v13  ;;  %v615_v34 = vrot.slane %v561_v31, 5  ;;  %v270_v10 = vld [vmem:[%s2435_s26] sm:$0xf]  ;;  %v704_v13 = vld [vmem:[%s2435_s26 + $0xc] sm:$0xf] }
  0x31   : > { %507 = vrot.lane.b32.xlu1 %v436_v38, %s2377_s27  ;;  %v610_v35 = vsel %vm2509_vm5, %v608_v28, %v609_v29  ;;  %v612_v38 = vrot.slane %v560_v33, 5  ;;  %v618_v41 = vrot.slane %v562_v37, 5  ;;  %v624_v45 = vrot.slane %v564_v43, 5  ;;  %287 = vst.msk [vmem:[#allocation2] sm:$0xf] %vm286_vm6, %v270_v10 }
  0x32   : > { %505 = vrot.lane.b32.xlu0 %v426_v39, %s2377_s27  ;;  %v607_v36 = vsel %vm2509_vm5, %v605_v30, %v606_v22  ;;  %v602_v39 = vrot.slane %v600_v16, 4  ;;  %v617_v40 = vrot.slane %v615_v34, 4  ;;  %v621_v50 = vrot.slane %v563_v46, 5  ;;  %v273_v15 = vld [vmem:[%s2435_s26 + $0xc] sm:$0xf] }
  0x33   : > { %503 = vrot.lane.b32.xlu2 %v416_v54, %s2377_s27  ;;  %v614_v42 = vrot.slane %v612_v38, 4  ;;  %v611_v51 = vrot.slane %v609_v29, 4  ;;  %v626_v52 = vrot.slane %v624_v45, 4  ;;  %v627_v53 = vrot.slane %v565_v49, 5  ;;  %v271_v16 = vld [vmem:[%s2435_s26 + $0x4] sm:$0xf] }
  0x34   : > { %v604_v44 = vsel %vm2509_vm5, %v602_v39, %v603_v26  ;;  %v619_v47 = vsel %vm2509_vm5, %v617_v40, %v618_v41  ;;  %v623_v54 = vrot.slane %v621_v50, 4  ;;  %v633_v59 = vrot.slane %v567_v55, 5  ;;  %290 = vst.msk [vmem:[#allocation2 + $0xc] sm:$0xf] %vm286_vm6, %v273_v15  ;;  %v275_v17 = vld [vmem:[%s2435_s26 + $0x14] sm:$0xf] }
  0x35   : > { %v616_v48 = vsel %vm2509_vm5, %v614_v42, %v615_v34  ;;  %v630_v62 = vrot.slane %v566_v57, 5  ;;  %v620_v63 = vrot.slane %v618_v41, 4  ;;  %v636_v1 = vrot.slane %v568_v61, 5  ;;  %288 = vst.msk [vmem:[#allocation2 + $0x4] sm:$0xf] %vm286_vm6, %v271_v16 }
  0x36   : > { %v625_v60 = vsel %vm2509_vm5, %v623_v54, %v624_v45  ;;  %v635_v0 = vrot.slane %v633_v59, 4  ;;  %v629_v7 = vrot.slane %v627_v53, 4  ;;  %v708_v18 = vld [vmem:[%s2435_s26 + $0x1c] sm:$0xf]  ;;  %292 = vst.msk [vmem:[#allocation2 + $0x14] sm:$0xf] %vm286_vm6, %v275_v17 }
  0x37   : > { %v632_v3 = vrot.slane %v630_v62, 4  ;;  %v622_v4 = vsel %vm2509_vm5, %v620_v63, %v621_v50  ;;  %v706_v20 = vld [vmem:[%s2435_s26 + $0x14] sm:$0xf]  ;;  %v276_v22 = vld [vmem:[%s2435_s26 + $0x18] sm:$0xf]  ;;  %vm2051_vm3 = vcmask 64512  }
  0x38   : > { %v637_v5 = vsel %vm2509_vm5, %v635_v0, %v636_v1  ;;  %v631_v8 = vsel %vm2509_vm5, %v629_v7, %v630_v62  ;;  %293 = vst.msk [vmem:[#allocation2 + $0x18] sm:$0xf] %vm286_vm6, %v276_v22  ;;  %v711_v25 = vld [vmem:[%s2435_s26 + $0x28] sm:$0xf]  ;;  %v710_v26 = vld [vmem:[%s2435_s26 + $0x24] sm:$0xf] }
  0x39   : > { %513 = vrot.lane.b32.xlu1 %v466_v56, %s2377_s27  ;;  %v613_v56 = vsel %vm2509_vm5, %v611_v51, %v612_v38  ;;  %v801_v28 = vld [vmem:[%s2435_s26 + $0xc] sm:$0xf]  ;;  %v800_v29 = vld [vmem:[%s2435_s26 + $0x8] sm:$0xf]  ;;  %v709_v30 = vld [vmem:[%s2435_s26 + $0x20] sm:$0xf] }
  0x3a   : > { %511 = vrot.lane.b32.xlu0 %v456_v58, %s2377_s27  ;;  %v628_v58 = vsel %vm2509_vm5, %v626_v52, %v627_v53  ;;  %v280_v31 = vld [vmem:[%s2435_s26 + $0x28] sm:$0xf]  ;;  %v827_v33 = vshll.u32 %v801_v28, 16  ;;  %v281_v34 = vld [vmem:[%s2435_s26 + $0x2c] sm:$0xf]  ;;  %v818_v37 = vshrl.u32 %v800_v29, 16 }
  0x3b   : > { %509 = vrot.lane.b32.xlu2 %v446_v6, %s2377_s27  ;;  %v634_v6 = vsel %vm2509_vm5, %v632_v3, %v633_v59  ;;  %297 = vst.msk [vmem:[#allocation2 + $0x28] sm:$0xf] %vm286_vm6, %v280_v31  ;;  %v821_v38 = vshll.u32 %v800_v29, 16  ;;  %v713_v39 = vld [vmem:[%s2435_s26 + $0x30] sm:$0xf] }
  0x3c   : > { %298 = vst.msk [vmem:[#allocation2 + $0x2c] sm:$0xf] %vm286_vm6, %v281_v34  ;;  %v2634_v41 = vrot.slane %v827_v33, 5  ;;  %v802_v43 = vld [vmem:[%s2435_s26 + $0x10] sm:$0xf] }
  0x3d   : > { %v823_v46 = vrot.slane %v821_v38, 5  ;;  %v712_v45 = vld [vmem:[%s2435_s26 + $0x2c] sm:$0xf]  ;;  %v283_v49 = vld [vmem:[%s2435_s26 + $0x34] sm:$0xf]  ;;  %v841_v1 = vshrl.u32 %v802_v43, 16 }
  0x3e   : > { %v803_v51 = vld [vmem:[%s2435_s26 + $0x14] sm:$0xf]  ;;  %v282_v52 = vld [vmem:[%s2435_s26 + $0x30] sm:$0xf]  ;;  %v717_v53 = vld [vmem:[%s2435_s26 + $0x40] sm:$0xf] }
  0x3f   : > { %v284_v55 = vld [vmem:[%s2435_s26 + $0x38] sm:$0xf]  ;;  %300 = vst.msk [vmem:[#allocation2 + $0x34] sm:$0xf] %vm286_vm6, %v283_v49  ;;  %v847_v61 = vshll.u32 %v803_v51, 16  ;;  %v851_v62 = vshrl.u32 %v803_v51, 16 }
  0x40   : > { %299 = vst.msk [vmem:[#allocation2 + $0x30] sm:$0xf] %vm286_vm6, %v282_v52  ;;  %v807_v3 = vld [vmem:[%s2435_s26 + $0x24] sm:$0xf]  ;;  %v806_v17 = vld [vmem:[%s2435_s26 + $0x20] sm:$0xf] }
  0x41   : > { %638 = vrot.lane.b32.xlu1 %v592_v9, %s2378_s28  ;;  %v272_v9 = vld [vmem:[%s2435_s26 + $0x8] sm:$0xf]  ;;  %301 = vst.msk [vmem:[#allocation2 + $0x38] sm:$0xf] %vm286_vm6, %v284_v55  ;;  %v2660_v10 = vrot.slane %v847_v61, 5  ;;  %v887_v15 = vshll.u32 %v807_v3, 16 }
  0x42   : > { %517 = vrot.lane.b32.xlu0 %v486_v11, %s2377_s27  ;;  %289 = vst.msk [vmem:[#allocation2 + $0x8] sm:$0xf] %vm286_vm6, %v272_v9  ;;  %v274_v11 = vld [vmem:[%s2435_s26 + $0x10] sm:$0xf]  ;;  %v891_v16 = vshrl.u32 %v807_v3, 16 }
  0x43   : > { %515 = vrot.lane.b32.xlu2 %v476_v19, %s2377_s27  ;;  %291 = vst.msk [vmem:[#allocation2 + $0x10] sm:$0xf] %vm286_vm6, %v274_v11  ;;  %v707_v19 = vld [vmem:[%s2435_s26 + $0x18] sm:$0xf]  ;;  %v853_v11 = vrot.slane %v851_v62, 4 }
  0x44   : > { %v893_v29 = vrot.slane %v891_v16, 4  ;;  %v808_v31 = vld [vmem:[%s2435_s26 + $0x28] sm:$0xf]  ;;  %v809_v34 = vld [vmem:[%s2435_s26 + $0x2c] sm:$0xf] }
  0x45   : > { %v854_v22 = vor.u32 %v853_v11, %v2660_v10  ;;  %v811_v61 = vld [vmem:[%s2435_s26 + $0x34] sm:$0xf]  ;;  %v813_v3 = vld [vmem:[%s2435_s26 + $0x3c] sm:$0xf] }
  0x49   : > { %644 = vrot.lane.b32.xlu1 %v601_v21, %s2378_s28  ;;  %v277_v21 = vld [vmem:[%s2435_s26 + $0x1c] sm:$0xf] }
  0x4a   : > { %642 = vrot.lane.b32.xlu0 %v598_v23, %s2378_s28  ;;  %294 = vst.msk [vmem:[#allocation2 + $0x1c] sm:$0xf] %vm286_vm6, %v277_v21  ;;  %v278_v23 = vld [vmem:[%s2435_s26 + $0x20] sm:$0xf] }
  0x4b   : > { %640 = vrot.lane.b32.xlu2 %v595_v32, %s2378_s28  ;;  %295 = vst.msk [vmem:[#allocation2 + $0x20] sm:$0xf] %vm286_vm6, %v278_v23  ;;  %v279_v32 = vld [vmem:[%s2435_s26 + $0x24] sm:$0xf]  ;;  %v877_v23 = vshll.u32 %v806_v17, 16 }
  0x4c   : > { %296 = vst.msk [vmem:[#allocation2 + $0x24] sm:$0xf] %vm286_vm6, %v279_v32 }
  0x4d   : > { %v2684_v38 = vrot.slane %v877_v23, 5 }
  0x51   : > { %650 = vrot.lane.b32.xlu1 %v610_v35, %s2378_s28  ;;  %v831_v35 = vshrl.u32 %v801_v28, 16  ;;  %v2676_v28 = vrot.slane %v887_v15, 5 }
  0x52   : > { %648 = vrot.lane.b32.xlu0 %v607_v36, %s2378_s28  ;;  %v714_v36 = vld [vmem:[%s2435_s26 + $0x34] sm:$0xf] }
  0x53   : > { %646 = vrot.lane.b32.xlu2 %v604_v44, %s2378_s28  ;;  %v833_v42 = vrot.slane %v831_v35, 4  ;;  %v820_v44 = vrot.slane %v818_v37, 4  ;;  %v810_v35 = vld [vmem:[%s2435_s26 + $0x30] sm:$0xf]  ;;  %v855_v37 = vrot.slane %v854_v22, 4 }
  0x55   : > { %v834_v54 = vor.u32 %v833_v42, %v2634_v41  ;;  %v824_v57 = vor.u32 %v823_v46, %v820_v44  ;;  %v897_v44 = vshll.u32 %v808_v31, 16  ;;  %v917_v46 = vshll.u32 %v810_v35, 16 }
  0x57   : > { %v835_v0 = vrot.slane %v834_v54, 4  ;;  %v899_v55 = vrot.slane %v897_v44, 5 }
  0x59   : > { %656 = vrot.lane.b32.xlu1 %v619_v47, %s2378_s28 }
  0x5a   : > { %654 = vrot.lane.b32.xlu0 %v616_v48, %s2378_s28  ;;  %v804_v48 = vld [vmem:[%s2435_s26 + $0x18] sm:$0xf] }
  0x5b   : > { %652 = vrot.lane.b32.xlu2 %v613_v56, %s2378_s28  ;;  %v837_v56 = vshll.u32 %v802_v43, 16  ;;  %v861_v59 = vshrl.u32 %v804_v48, 16  ;;  %v894_v43 = vor.u32 %v893_v29, %v2676_v28  ;;  %v814_v29 = vld [vmem:[%s2435_s26 + $0x40] sm:$0xf] }
  0x5d   : > { %v895_v54 = vrot.slane %v894_v43, 4 }
  0x61   : > { %662 = vrot.lane.b32.xlu1 %v628_v58, %s2378_s28  ;;  %v857_v58 = vshll.u32 %v804_v48, 16  ;;  %v911_v48 = vshrl.u32 %v809_v34, 16 }
  0x62   : > { %660 = vrot.lane.b32.xlu0 %v625_v60, %s2378_s28  ;;  %v716_v60 = vld [vmem:[%s2435_s26 + $0x3c] sm:$0xf] }
  0x63   : > { %658 = vrot.lane.b32.xlu2 %v622_v4, %s2378_s28  ;;  %v839_v4 = vrot.slane %v837_v56, 5  ;;  %v2658_v7 = vrot.slane %v857_v58, 5 }
  0x69   : > { %668 = vrot.lane.b32.xlu1 %v637_v5, %s2378_s28  ;;  %v825_v5 = vrot.slane %v824_v57, 4  ;;  %v919_v57 = vrot.slane %v917_v46, 5 }
  0x6a   : > { %666 = vrot.lane.b32.xlu0 %v634_v6, %s2378_s28  ;;  %v805_v6 = vld [vmem:[%s2435_s26 + $0x1c] sm:$0xf] }
  0x6b   : > { %664 = vrot.lane.b32.xlu2 %v631_v8, %s2378_s28  ;;  %v863_v8 = vrot.slane %v861_v59, 4  ;;  %v867_v21 = vshll.u32 %v805_v6, 16 }
  0x6d   : > { %v869_v33 = vrot.slane %v867_v21, 5 }
  0x71   : > { %739 = vrot.lane.b32.xlu1 %v705_v12, %s2379_s29  ;;  %v715_v12 = vld [vmem:[%s2435_s26 + $0x38] sm:$0xf] }
  0x72   : > { %737 = vrot.lane.b32.xlu0 %v704_v13, %s2379_s29  ;;  %v285_v13 = vld [vmem:[%s2435_s26 + $0x3c] sm:$0xf] }
  0x73   : > { %735 = vrot.lane.b32.xlu2 %v703_v14, %s2379_s29  ;;  %302 = vst.msk [vmem:[#allocation2 + $0x3c] sm:$0xf] %vm286_vm6, %v285_v13  ;;  %v951_v13 = vshrl.u32 %v813_v3, 16 }
  0x75   : > { %v953_v23 = vrot.slane %v951_v13, 4 }
  0x79   : > { %745 = vrot.lane.b32.xlu1 %v708_v18, %s2379_s29  ;;  %v840_v18 = vsel %vm2445_vm2, %v835_v0, %v839_v4 }
  0x7a   : > { %743 = vrot.lane.b32.xlu0 %v707_v19, %s2379_s29  ;;  %v830_v19 = vsel %vm2445_vm2, %v825_v5, %v2634_v41 }
  0x7b   : > { %741 = vrot.lane.b32.xlu2 %v706_v20, %s2379_s29  ;;  %v864_v20 = vor.u32 %v863_v8, %v2658_v7 }
  0x7d   : > { %v496_v27 = vpop.permute.xlu2 %495  ;;  %v865_v32 = vrot.slane %v864_v20, 4 }
  0x7e   : > { %540 = vst.msk [vmem:[#allocation2 + $0x10] sm:$0xf] %vm535_vm7, %v496_v27 }
  0x7f   : > { %v870_v49 = vsel %vm2445_vm2, %v865_v32, %v869_v33 }
  0x81   : > { %751 = vrot.lane.b32.xlu1 %v711_v25, %s2379_s29  ;;  %v881_v25 = vshrl.u32 %v806_v17, 16 }
  0x82   : > { %749 = vrot.lane.b32.xlu0 %v710_v26, %s2379_s29  ;;  %v843_v26 = vrot.slane %v841_v1, 4 }
  0x83   : > { %747 = vrot.lane.b32.xlu2 %v709_v30, %s2379_s29  ;;  %v871_v30 = vshrl.u32 %v805_v6, 16 }
  0x84   : > { %v844_v41 = vor.u32 %v843_v26, %v839_v4  ;;  %v812_v4 = vld [vmem:[%s2435_s26 + $0x38] sm:$0xf] }
  0x85   : > { %v498_v40 = vpop.permute.xlu2 %497 }
  0x86   : > { %541 = vst.msk [vmem:[#allocation2 + $0x14] sm:$0xf] %vm535_vm7, %v498_v40  ;;  %v718_v40 = vld [vmem:[%s2435_s26 + $0x44] sm:$0xf]  ;;  %v845_v52 = vrot.slane %v844_v41, 4 }
  0x88   : > { %v850_v1 = vsel %vm2445_vm2, %v845_v52, %v2660_v10  ;;  %v937_v10 = vshll.u32 %v812_v4, 16 }
  0x89   : > { %757 = vrot.lane.b32.xlu1 %v714_v36, %s2379_s29 }
  0x8a   : > { %755 = vrot.lane.b32.xlu0 %v713_v39, %s2379_s29  ;;  %v883_v39 = vrot.slane %v881_v25, 4  ;;  %v2720_v25 = vrot.slane %v937_v10, 5 }
  0x8b   : > { %v492_v47 = vpop.permute.xlu1 %491  ;;  %753 = vrot.lane.b32.xlu2 %v712_v45, %s2379_s29  ;;  %v907_v45 = vshll.u32 %v809_v34, 16 }
  0x8c   : > { %538 = vst.msk [vmem:[#allocation2 + $0x8] sm:$0xf] %vm535_vm7, %v492_v47  ;;  %v488_v50 = vpop.permute.xlu0 %487  ;;  %v921_v47 = vshrl.u32 %v810_v35, 16  ;;  %v884_v51 = vor.u32 %v883_v39, %v2684_v38 }
  0x8d   : > { %536 = vst.msk [vmem:[#allocation2] sm:$0xf] %vm535_vm7, %v488_v50  ;;  %v504_v63 = vpop.permute.xlu2 %503  ;;  %v860_v50 = vsel %vm2445_vm2, %v855_v37, %v2658_v7  ;;  %v2699_v59 = vrot.slane %v907_v45, 5  ;;  %v900_v7 = vsel %vm2445_vm2, %v895_v54, %v899_v55  ;;  %v957_v37 = vshll.u32 %v814_v29, 16  ;;  %v816_v54 = vld [vmem:[%s2435_s26 + $0x48] sm:$0x1] }
  0x8e   : > { %544 = vst.msk [vmem:[#allocation2 + $0x20] sm:$0xf] %vm535_vm7, %v504_v63  ;;  %v923_v58 = vrot.slane %v921_v47, 4  ;;  %v901_v63 = vshrl.u32 %v808_v31, 16  ;;  %v885_v0 = vrot.slane %v884_v51, 4  ;;  %v961_v47 = vshrl.u32 %v814_v29, 16 }
  0x8f   : > { %v959_v46 = vrot.slane %v957_v37, 5 }
  0x90   : > { %v924_v8 = vor.u32 %v923_v58, %v919_v57  ;;  %v890_v15 = vsel %vm2445_vm2, %v885_v0, %v2676_v28  ;;  %v903_v17 = vrot.slane %v901_v63, 4  ;;  %v931_v28 = vshrl.u32 %v811_v61, 16  ;;  %v1047_v58 = vld [vmem:[%s2435_s26 + $0xc] sm:$0xf] }
  0x91   : > { %763 = vrot.lane.b32.xlu1 %v717_v53, %s2379_s29  ;;  %v873_v53 = vrot.slane %v871_v30, 4 }
  0x92   : > { %761 = vrot.lane.b32.xlu0 %v716_v60, %s2379_s29  ;;  %v913_v60 = vrot.slane %v911_v48, 4  ;;  %v904_v31 = vor.u32 %v903_v17, %v899_v55 }
  0x93   : > { %v494_v9 = vpop.permute.xlu1 %493  ;;  %759 = vrot.lane.b32.xlu2 %v715_v12, %s2379_s29  ;;  %v874_v5 = vor.u32 %v873_v53, %v869_v33  ;;  %v947_v12 = vshll.u32 %v813_v3, 16  ;;  %v815_v33 = vld [vmem:[%s2435_s26 + $0x44] sm:$0xf] }
  0x94   : > { %539 = vst.msk [vmem:[#allocation2 + $0xc] sm:$0xf] %vm535_vm7, %v494_v9  ;;  %v490_v14 = vpop.permute.xlu0 %489  ;;  %v927_v9 = vshll.u32 %v811_v61, 16  ;;  %v914_v11 = vor.u32 %v913_v60, %v2699_v59  ;;  %v905_v41 = vrot.slane %v904_v31, 4 }
  0x95   : > { %537 = vst.msk [vmem:[#allocation2 + $0x4] sm:$0xf] %vm535_vm7, %v490_v14  ;;  %v510_v27 = vpop.permute.xlu2 %509  ;;  %v941_v14 = vshrl.u32 %v812_v4, 16  ;;  %v875_v16 = vrot.slane %v874_v5, 4  ;;  %v949_v22 = vrot.slane %v947_v12, 5 }
  0x96   : > { %547 = vst.msk [vmem:[#allocation2 + $0x2c] sm:$0xf] %vm535_vm7, %v510_v27  ;;  %v929_v20 = vrot.slane %v927_v9, 5  ;;  %v915_v21 = vrot.slane %v914_v11, 4  ;;  %v910_v51 = vsel %vm2445_vm2, %v905_v41, %v2699_v59  ;;  %v977_v59 = vshll.u32 %v816_v54, 16 }
  0x97   : > { %v943_v26 = vrot.slane %v941_v14, 4  ;;  %v880_v30 = vsel %vm2445_vm2, %v875_v16, %v2684_v38  ;;  %v967_v38 = vshll.u32 %v815_v33, 16  ;;  %v1048_v11 = vld [vmem:[%s2435_s26 + $0x10] sm:$0xf]  ;;  %v1050_v14 = vld [vmem:[%s2435_s26 + $0x18] sm:$0xf] }
  0x98   : > { %v920_v34 = vsel %vm2445_vm2, %v915_v21, %v919_v57  ;;  %v1046_v57 = vld [vmem:[%s2435_s26 + $0x8] sm:$0xe]  ;;  %v979_v5 = vrot.slane %v977_v59, 5 }
  0x99   : > { %983 = vrot.lane.b32.xlu1 %v840_v18, %s2380_s30  ;;  %v944_v39 = vor.u32 %v943_v26, %v2720_v25  ;;  %v2259_v0 = vrot.slane %v1046_v57, 9  ;;  %v1051_v26 = vld [vmem:[%s2435_s26 + $0x1c] sm:$0xf]  ;;  %v1054_v41 = vld [vmem:[%s2435_s26 + $0x28] sm:$0xf] }
  0x9a   : > { %981 = vrot.lane.b32.xlu0 %v830_v19, %s2380_s30  ;;  %v925_v19 = vrot.slane %v924_v8, 4  ;;  %v1094_v31 = vrot.slane %v1051_v26, 5  ;;  %v1057_v57 = vld [vmem:[%s2435_s26 + $0x34] sm:$0xf]  ;;  %v1295_v26 = vld [vmem:[%s2435_s26 + $0x20] sm:$0xf] }
  0x9b   : > { %v502_v36 = vpop.permute.xlu1 %501  ;;  %765 = vrot.lane.b32.xlu2 %v718_v40, %s2379_s29  ;;  %v971_v40 = vshrl.u32 %v815_v33, 16  ;;  %v945_v45 = vrot.slane %v944_v39, 4  ;;  %v1055_v39 = vld [vmem:[%s2435_s26 + $0x2c] sm:$0xf] }
  0x9c   : > { %543 = vst.msk [vmem:[#allocation2 + $0x1c] sm:$0xf] %vm535_vm7, %v502_v36  ;;  %v500_v42 = vpop.permute.xlu0 %499  ;;  %v930_v35 = vsel %vm2445_vm2, %v925_v19, %v929_v20  ;;  %v954_v36 = vor.u32 %v953_v23, %v949_v22  ;;  %v1091_v19 = vrot.slane %v1050_v14, 5  ;;  %v1096_v37 = vrot.slane %v1094_v31, 4 }
  0x9d   : > { %542 = vst.msk [vmem:[#allocation2 + $0x18] sm:$0xf] %vm535_vm7, %v500_v42  ;;  %v516_v56 = vpop.permute.xlu2 %515  ;;  %v933_v42 = vrot.slane %v931_v28, 4 }
  0x9e   : > { %550 = vst.msk [vmem:[#allocation2 + $0x38] sm:$0xf] %vm535_vm7, %v516_v56  ;;  %v955_v44 = vrot.slane %v954_v36, 4  ;;  %v950_v56 = vsel %vm2445_vm2, %v945_v45, %v949_v22  ;;  %v1052_v22 = vld [vmem:[%s2435_s26 + $0x20] sm:$0xf]  ;;  %v1093_v45 = vrot.slane %v1091_v19, 4 }
  0x9f   : > { %v934_v52 = vor.u32 %v933_v42, %v929_v20  ;;  %v1097_v28 = vrot.slane %v1052_v22, 5 }
  0xa0   : > { %v960_v55 = vsel %vm2445_vm2, %v955_v44, %v959_v46  ;;  %v1095_v54 = vsel %vm2509_vm5, %v1093_v45, %v1094_v31  ;;  %v1352_v31 = vshrl.u32 %v1295_v26, 16 }
  0xa1   : > { %989 = vrot.lane.b32.xlu1 %v870_v49, %s2380_s30  ;;  %v969_v49 = vrot.slane %v967_v38, 5  ;;  %v935_v61 = vrot.slane %v934_v52, 4  ;;  %v1098_v44 = vsel %vm2509_vm5, %v1096_v37, %v1097_v28  ;;  %v2849_v37 = vld [vmem:[%s2435_s26 + $0x18] sm:$0xf] }
  0xa2   : > { %987 = vrot.lane.b32.xlu0 %v860_v50, %s2380_s30  ;;  %v973_v50 = vrot.slane %v971_v40, 4  ;;  %v1328_v45 = vshll.u32 %v2849_v37, 16 }
  0xa3   : > { %v508_v62 = vpop.permute.xlu1 %507  ;;  %985 = vrot.lane.b32.xlu2 %v850_v1, %s2380_s30  ;;  %v1082_v1 = vrot.slane %v1047_v58, 5 }
  0xa4   : > { %546 = vst.msk [vmem:[#allocation2 + $0x28] sm:$0xf] %vm535_vm7, %v508_v62  ;;  %v506_v6 = vpop.permute.xlu0 %505  ;;  %v974_v60 = vor.u32 %v973_v50, %v969_v49  ;;  %v963_v62 = vrot.slane %v961_v47, 4  ;;  %v1103_v47 = vrot.slane %v1054_v41, 5  ;;  %v1354_v41 = vrot.slane %v1352_v31, 4 }
  0xa5   : > { %545 = vst.msk [vmem:[#allocation2 + $0x24] sm:$0xf] %vm535_vm7, %v506_v6  ;;  %v641_v18 = vpop.permute.xlu2 %640  ;;  %v1049_v6 = vld [vmem:[%s2435_s26 + $0x14] sm:$0xf]  ;;  %v1083_v12 = vsel %vm2509_vm5, %v2259_v0, %v1082_v1  ;;  %v1112_v0 = vrot.slane %v1057_v57, 5 }
  0xa6   : > { %688 = vst.msk [vmem:[#allocation2 + $0x4] sm:$0xf] %vm686_vm8, %v641_v18  ;;  %v975_v4 = vrot.slane %v974_v60, 4  ;;  %v964_v8 = vor.u32 %v963_v62, %v959_v46  ;;  %v1088_v13 = vrot.slane %v1049_v6, 5  ;;  %v1056_v46 = vld [vmem:[%s2435_s26 + $0x30] sm:$0xf] }
  0xa7   : > { %v1109_v50 = vrot.slane %v1056_v46, 5  ;;  %v1105_v52 = vrot.slane %v1103_v47, 4  ;;  %v1194_v46 = vld [vmem:[%s2435_s26 + $0x10] sm:$0xf] }
  0xa8   : > { %v980_v10 = vsel %vm2445_vm2, %v975_v4, %v979_v5  ;;  %v965_v16 = vrot.slane %v964_v8, 4  ;;  %v1090_v18 = vrot.slane %v1088_v13, 4 }
  0xa9   : > { %995 = vrot.lane.b32.xlu1 %v900_v7, %s2380_s30  ;;  %v940_v7 = vsel %vm2445_vm2, %v935_v61, %v2720_v25 }
  0xaa   : > { %993 = vrot.lane.b32.xlu0 %v890_v15, %s2380_s30  ;;  %v1085_v15 = vrot.slane %v1048_v11, 5  ;;  %v970_v23 = vsel %vm2445_vm2, %v965_v16, %v969_v49  ;;  %v1292_v11 = vld [vmem:[%s2435_s26 + $0x14] sm:$0xf] }
  0xab   : > { %v514_v27 = vpop.permute.xlu1 %513  ;;  %991 = vrot.lane.b32.xlu2 %v880_v30, %s2380_s30  ;;  %v1053_v30 = vld [vmem:[%s2435_s26 + $0x24] sm:$0xf]  ;;  %v1322_v22 = vshrl.u32 %v1292_v11, 16 }
  0xac   : > { %549 = vst.msk [vmem:[#allocation2 + $0x34] sm:$0xf] %vm535_vm7, %v514_v27  ;;  %v512_v32 = vpop.permute.xlu0 %511  ;;  %v1087_v21 = vrot.slane %v1085_v15, 4  ;;  %v1092_v27 = vsel %vm2509_vm5, %v1090_v18, %v1091_v19 }
  0xad   : > { %548 = vst.msk [vmem:[#allocation2 + $0x30] sm:$0xf] %vm535_vm7, %v512_v32  ;;  %v647_v43 = vpop.permute.xlu2 %646  ;;  %v1084_v32 = vrot.slane %v1082_v1, 4 }
  0xae   : > { %691 = vst.msk [vmem:[#allocation2 + $0x10] sm:$0xf] %vm686_vm8, %v647_v43  ;;  %v1089_v29 = vsel %vm2509_vm5, %v1087_v21, %v1088_v13  ;;  %v1106_v43 = vrot.slane %v1055_v39, 5 }
  0xaf   : > { %v1086_v38 = vsel %vm2509_vm5, %v1084_v32, %v1085_v15  ;;  %v1318_v15 = vshll.u32 %v1292_v11, 16  ;;  %v1195_v32 = vld [vmem:[%s2435_s26 + $0x14] sm:$0xf] }
  0xb0   : > { %v1108_v49 = vrot.slane %v1106_v43, 4  ;;  %v1107_v62 = vsel %vm2509_vm5, %v1105_v52, %v1106_v43 }
  0xb1   : > { %1001 = vrot.lane.b32.xlu1 %v930_v35, %s2380_s30  ;;  %v1099_v35 = vrot.slane %v1097_v28, 4 }
  0xb2   : > { %999 = vrot.lane.b32.xlu0 %v920_v34, %s2380_s30  ;;  %v1100_v34 = vrot.slane %v1053_v30, 5  ;;  %v1110_v58 = vsel %vm2509_vm5, %v1108_v49, %v1109_v50  ;;  %v1348_v30 = vshll.u32 %v1295_v26, 16  ;;  %v2906_v26 = vld [vmem:[%s2435_s26 + $0x28] sm:$0xf] }
  0xb3   : > { %v639_v48 = vpop.permute.xlu1 %638  ;;  %997 = vrot.lane.b32.xlu2 %v910_v51, %s2380_s30 }
  0xb4   : > { %687 = vst.msk [vmem:[#allocation2] sm:$0xf] %vm686_vm8, %v639_v48  ;;  %v518_v53 = vpop.permute.xlu0 %517  ;;  %v1101_v42 = vsel %vm2509_vm5, %v1099_v35, %v1100_v34  ;;  %v1102_v1 = vrot.slane %v1100_v34, 4  ;;  %v1324_v35 = vrot.slane %v1322_v22, 4  ;;  %v1537_v34 = vld [vmem:[%s2435_s26 + $0x10] sm:$0xe] }
  0xb5   : > { %551 = vst.msk [vmem:[#allocation2 + $0x3c] sm:$0xf] %vm535_vm7, %v518_v53  ;;  %v653_v63 = vpop.permute.xlu2 %652  ;;  %v1058_v53 = vld [vmem:[%s2435_s26 + $0x38] sm:$0xf]  ;;  %v2260_v43 = vrot.slane %v1537_v34, 9  ;;  %v1588_v34 = vrot.slane %v2906_v26, 5 }
  0xb6   : > { %694 = vst.msk [vmem:[#allocation2 + $0x1c] sm:$0xf] %vm686_vm8, %v653_v63  ;;  %v1115_v60 = vrot.slane %v1058_v53, 5  ;;  %v2813_v63 = vld [vmem:[%s2435_s26 + $0x3c] sm:$0xf]  ;;  %v2329_v26 = vld [vmem:[%s3410_s1 + $0x8] sm:$0xff] }
  0xb7   : > { %v1118_v5 = vrot.slane %v2813_v63, 5 }
  0xb8   : > { %v1117_v4 = vrot.slane %v1115_v60, 4 }
  0xb9   : > { %1007 = vrot.lane.b32.xlu1 %v960_v55, %s2380_s30  ;;  %v1291_v55 = vld [vmem:[%s2435_s26 + $0x10] sm:$0xf] }
  0xba   : > { %1005 = vrot.lane.b32.xlu0 %v950_v56, %s2380_s30  ;;  %v1309_v59 = vshrl.u32 %v1291_v55, 16  ;;  %v1312_v61 = vshll.u32 %v1291_v55, 16 }
  0xbb   : > { %v645_v3 = vpop.permute.xlu1 %644  ;;  %1003 = vrot.lane.b32.xlu2 %v940_v7, %s2380_s30 }
  0xbc   : > { %690 = vst.msk [vmem:[#allocation2 + $0xc] sm:$0xf] %vm686_vm8, %v645_v3  ;;  %v643_v9 = vpop.permute.xlu0 %642  ;;  %v1311_v6 = vrot.slane %v1309_v59, 4  ;;  %v1314_v7 = vrot.slane %v1312_v61, 5  ;;  %v1299_v61 = vld [vmem:[%s2435_s26 + $0x30] sm:$0xf] }
  0xbd   : > { %689 = vst.msk [vmem:[#allocation2 + $0x8] sm:$0xf] %vm686_vm8, %v643_v9  ;;  %v659_v17 = vpop.permute.xlu2 %658  ;;  %v1114_v9 = vrot.slane %v1112_v0, 4 }
  0xbe   : > { %697 = vst.msk [vmem:[#allocation2 + $0x28] sm:$0xf] %vm686_vm8, %v659_v17  ;;  %v1315_v14 = vor.u32 %v1314_v7, %v1311_v6  ;;  %v1111_v17 = vrot.slane %v1109_v50, 4 }
  0xbf   : > { %v1116_v16 = vsel %vm2509_vm5, %v1114_v9, %v1115_v60 }
  0xc0   : > { %v1316_v19 = vrot.slane %v1315_v14, 4 }
  0xc1   : > { %1129 = vrot.lane.b32.xlu1 %v1083_v12, %s2381_s7  ;;  %v1104_v12 = vsel %vm2509_vm5, %v1102_v1, %v1103_v47  ;;  %v1388_v1 = vshll.u32 %v1299_v61, 16 }
  0xc2   : > { %1011 = vrot.lane.b32.xlu0 %v980_v10, %s2380_s30  ;;  %v1119_v10 = vsel %vm2509_vm5, %v1117_v4, %v1118_v5  ;;  %v1199_v4 = vld [vmem:[%s2435_s26 + $0x24] sm:$0xf] }
  0xc3   : > { %v651_v20 = vpop.permute.xlu1 %650  ;;  %1009 = vrot.lane.b32.xlu2 %v970_v23, %s2380_s30  ;;  %v1538_v23 = vld [vmem:[%s2435_s26 + $0x14] sm:$0xf]  ;;  %v2891_v9 = vrot.slane %v1388_v1, 5 }
  0xc4   : > { %693 = vst.msk [vmem:[#allocation2 + $0x18] sm:$0xf] %vm686_vm8, %v651_v20  ;;  %v649_v25 = vpop.permute.xlu0 %648  ;;  %v1320_v20 = vrot.slane %v1318_v15, 5 }
  0xc5   : > { %692 = vst.msk [vmem:[#allocation2 + $0x14] sm:$0xf] %vm686_vm8, %v649_v25  ;;  %v665_v33 = vpop.permute.xlu2 %664  ;;  %v1113_v25 = vsel %vm2509_vm5, %v1111_v17, %v1112_v0  ;;  %v1542_v17 = vld [vmem:[%s2435_s26 + $0x24] sm:$0xf] }
  0xc6   : > { %700 = vst.msk [vmem:[#allocation2 + $0x34] sm:$0xf] %vm686_vm8, %v665_v33  ;;  %v1321_v28 = vsel %vm2445_vm2, %v1316_v19, %v1320_v20  ;;  %v2845_v33 = vld [vmem:[%s2435_s26 + $0x18] sm:$0xf]  ;;  %v1325_v47 = vor.u32 %v1324_v35, %v1320_v20  ;;  %v1585_v22 = vrot.slane %v1542_v17, 5 }
  0xc8   : > { %v1326_v53 = vrot.slane %v1325_v47, 4  ;;  %v1587_v35 = vrot.slane %v1585_v22, 4 }
  0xc9   : > { %1135 = vrot.lane.b32.xlu1 %v1092_v27, %s2381_s7 }
  0xca   : > { %1133 = vrot.lane.b32.xlu0 %v1089_v29, %s2381_s7  ;;  %v1573_v29 = vrot.slane %v1538_v23, 5  ;;  %v1589_v47 = vsel %vm2509_vm5, %v1587_v35, %v1588_v34  ;;  %v1206_v35 = vld [vmem:[%s2435_s26 + $0x40] sm:$0xf] }
  0xcb   : > { %v657_v36 = vpop.permute.xlu1 %656  ;;  %1131 = vrot.lane.b32.xlu2 %v1086_v38, %s2381_s7  ;;  %v1576_v38 = vrot.slane %v2845_v33, 5 }
  0xcc   : > { %696 = vst.msk [vmem:[#allocation2 + $0x24] sm:$0xf] %vm686_vm8, %v657_v36  ;;  %v655_v40 = vpop.permute.xlu0 %654  ;;  %v1575_v39 = vrot.slane %v1573_v29, 4  ;;  %v1574_v52 = vsel %vm2509_vm5, %v2260_v43, %v1573_v29  ;;  %v2922_v43 = vld [vmem:[%s2435_s26 + $0x30] sm:$0xf] }
  0xcd   : > { %695 = vst.msk [vmem:[#allocation2 + $0x20] sm:$0xf] %vm686_vm8, %v655_v40  ;;  %v736_v48 = vpop.permute.xlu2 %735  ;;  %v2855_v40 = vrot.slane %v1348_v30, 5 }
  0xce   : > { %784 = vst.msk [vmem:[#allocation2] sm:$0xf] %vm783_vm9, %v736_v48  ;;  %v1577_v49 = vsel %vm2509_vm5, %v1575_v39, %v1576_v38 }
  0xcf   : > { %v1355_v50 = vor.u32 %v1354_v41, %v2855_v40 }
  0xd1   : > { %1141 = vrot.lane.b32.xlu1 %v1101_v42, %s2381_s7 }
  0xd2   : > { %1139 = vrot.lane.b32.xlu0 %v1098_v44, %s2381_s7  ;;  %v1296_v44 = vld [vmem:[%s2435_s26 + $0x24] sm:$0xf] }
  0xd3   : > { %v663_v51 = vpop.permute.xlu1 %662  ;;  %1137 = vrot.lane.b32.xlu2 %v1095_v54, %s2381_s7  ;;  %v2870_v54 = vrot.slane %v1328_v45, 5  ;;  %v1362_v60 = vshrl.u32 %v1296_v44, 16  ;;  %v2933_v45 = vld [vmem:[%s2435_s26 + $0x38] sm:$0xf] }
  0xd4   : > { %699 = vst.msk [vmem:[#allocation2 + $0x30] sm:$0xf] %vm686_vm8, %v663_v51  ;;  %v661_v56 = vpop.permute.xlu0 %660  ;;  %v1358_v51 = vshll.u32 %v1296_v44, 16 }
  0xd5   : > { %698 = vst.msk [vmem:[#allocation2 + $0x2c] sm:$0xf] %vm686_vm8, %v661_v56  ;;  %v742_v3 = vpop.permute.xlu2 %741  ;;  %v1356_v56 = vrot.slane %v1355_v50, 4  ;;  %v1331_v59 = vsel %vm2445_vm2, %v1326_v53, %v2870_v54  ;;  %v1364_v6 = vrot.slane %v1362_v60, 4  ;;  %v1294_v60 = vld [vmem:[%s2435_s26 + $0x1c] sm:$0xf] }
  0xd6   : > { %787 = vst.msk [vmem:[#allocation2 + $0xc] sm:$0xf] %vm783_vm9, %v742_v3  ;;  %v1360_v57 = vrot.slane %v1358_v51, 5  ;;  %v1392_v3 = vshrl.u32 %v1299_v61, 16  ;;  %v1338_v1 = vshll.u32 %v1294_v60, 16 }
  0xd8   : > { %v1361_v0 = vsel %vm2445_vm2, %v1356_v56, %v1360_v57  ;;  %v1394_v11 = vrot.slane %v1392_v3, 4  ;;  %v1365_v14 = vor.u32 %v1364_v6, %v1360_v57  ;;  %v1342_v3 = vshrl.u32 %v1294_v60, 16  ;;  %v2961_v6 = vld [vmem:[%s2435_s26 + $0x40] sm:$0xf] }
  0xd9   : > { %1147 = vrot.lane.b32.xlu1 %v1110_v58, %s2381_s7 }
  0xda   : > { %1145 = vrot.lane.b32.xlu0 %v1107_v62, %s2381_s7  ;;  %v1395_v19 = vor.u32 %v1394_v11, %v2891_v9  ;;  %v1366_v23 = vrot.slane %v1365_v14, 4  ;;  %v1340_v14 = vrot.slane %v1338_v1, 5 }
  0xdb   : > { %v669_v8 = vpop.permute.xlu1 %668  ;;  %1143 = vrot.lane.b32.xlu2 %v1104_v12, %s2381_s7 }
  0xdc   : > { %702 = vst.msk [vmem:[#allocation2 + $0x3c] sm:$0xf] %vm686_vm8, %v669_v8  ;;  %v667_v13 = vpop.permute.xlu0 %666  ;;  %v2886_v8 = vld [vmem:[%s2435_s26 + $0x28] sm:$0xf]  ;;  %v1396_v29 = vrot.slane %v1395_v19, 4 }
  0xdd   : > { %701 = vst.msk [vmem:[#allocation2 + $0x38] sm:$0xf] %vm686_vm8, %v667_v13  ;;  %v748_v18 = vpop.permute.xlu2 %747  ;;  %v1300_v13 = vld [vmem:[%s2435_s26 + $0x34] sm:$0xf]  ;;  %v1368_v15 = vshll.u32 %v2886_v8, 16 }
  0xde   : > { %790 = vst.msk [vmem:[#allocation2 + $0x18] sm:$0xf] %vm783_vm9, %v748_v18  ;;  %v1203_v18 = vld [vmem:[%s2435_s26 + $0x34] sm:$0xf]  ;;  %v1398_v20 = vshll.u32 %v1300_v13, 16  ;;  %v1402_v31 = vshrl.u32 %v1300_v13, 16 }
  0xdf   : > { %v1120_v13 = vrot.slane %v1118_v5, 4 }
  0xe0   : > { %v1400_v30 = vrot.slane %v1398_v20, 5  ;;  %v1404_v50 = vrot.slane %v1402_v31, 4 }
  0xe1   : > { %1153 = vrot.lane.b32.xlu1 %v1119_v10, %s2381_s7  ;;  %v1198_v10 = vld [vmem:[%s2435_s26 + $0x20] sm:$0xf] }
  0xe2   : > { %1151 = vrot.lane.b32.xlu0 %v1116_v16, %s2381_s7  ;;  %v1401_v44 = vsel %vm2445_vm2, %v1396_v29, %v1400_v30  ;;  %v1196_v29 = vld [vmem:[%s2435_s26 + $0x18] sm:$0xf] }
  0xe3   : > { %v740_v21 = vpop.permute.xlu1 %739  ;;  %1149 = vrot.lane.b32.xlu2 %v1113_v25, %s2381_s7  ;;  %v2903_v25 = vrot.slane %v1368_v15, 5  ;;  %v1344_v15 = vrot.slane %v1342_v3, 4 }
  0xe4   : > { %786 = vst.msk [vmem:[#allocation2 + $0x8] sm:$0xf] %vm783_vm9, %v740_v21  ;;  %v738_v27 = vpop.permute.xlu0 %737  ;;  %v1202_v21 = vld [vmem:[%s2435_s26 + $0x30] sm:$0xf] }
  0xe5   : > { %785 = vst.msk [vmem:[#allocation2 + $0x4] sm:$0xf] %vm783_vm9, %v738_v27  ;;  %v754_v36 = vpop.permute.xlu2 %753  ;;  %v1371_v39 = vsel %vm2445_vm2, %v1366_v23, %v2903_v25  ;;  %v1345_v5 = vor.u32 %v1344_v15, %v1340_v14 }
  0xe6   : > { %793 = vst.msk [vmem:[#allocation2 + $0x24] sm:$0xf] %vm783_vm9, %v754_v36  ;;  %v1546_v36 = vld [vmem:[%s2435_s26 + $0x34] sm:$0xf] }
  0xe9   : > { %1472 = vrot.lane.b32.xlu1 %v1321_v28, %s2382_s8  ;;  %v2909_v28 = vld [vmem:[%s2435_s26 + $0x20] sm:$0xf] }
  0xea   : > { %1228 = vrot.lane.b32.xlu0 %v1195_v32, %s2383_s9  ;;  %v1582_v41 = vrot.slane %v2909_v28, 5 }
  0xeb   : > { %v746_v42 = vpop.permute.xlu1 %745  ;;  %1226 = vrot.lane.b32.xlu2 %v1194_v46, %s2383_s9  ;;  %v1597_v46 = vrot.slane %v1546_v36, 5 }
  0xec   : > { %789 = vst.msk [vmem:[#allocation2 + $0x14] sm:$0xf] %vm783_vm9, %v746_v42  ;;  %v744_v48 = vpop.permute.xlu0 %743 }
  0xed   : > { %788 = vst.msk [vmem:[#allocation2 + $0x10] sm:$0xf] %vm783_vm9, %v744_v48  ;;  %v760_v55 = vpop.permute.xlu2 %759  ;;  %v1594_v48 = vrot.slane %v2922_v43, 5  ;;  %v1599_v53 = vrot.slane %v1597_v46, 4  ;;  %v2328_v43 = vld [vmem:[%s3410_s1] sm:$0xff] }
  0xee   : > { %796 = vst.msk [vmem:[#allocation2 + $0x30] sm:$0xf] %vm783_vm9, %v760_v55  ;;  %v1600_v55 = vrot.slane %v2933_v45, 5 }
  0xef   : > { %v1596_v57 = vrot.slane %v1594_v48, 4 }
  0xf1   : > { %1622 = vrot.lane.b32.xlu1 %v1577_v49, %s2384_s10  ;;  %v1584_v49 = vrot.slane %v1582_v41, 4 }
  0xf2   : > { %1620 = vrot.lane.b32.xlu0 %v1574_v52, %s2384_s10  ;;  %v2939_v52 = vld [vmem:[%s2435_s26 + $0x38] sm:$0xf] }
  0xf3   : > { %v752_v58 = vpop.permute.xlu1 %751  ;;  %1474 = vrot.lane.b32.xlu2 %v1331_v59, %s2382_s8  ;;  %v1405_v59 = vor.u32 %v1404_v50, %v1400_v30  ;;  %v1408_v61 = vshll.u32 %v2939_v52, 16  ;;  %v1304_v30 = vld [vmem:[%s2435_s26 + $0x44] sm:$0xf]  ;;  %v1578_v50 = vrot.slane %v1576_v38, 4 }
  0xf4   : > { %792 = vst.msk [vmem:[#allocation2 + $0x20] sm:$0xf] %vm783_vm9, %v752_v58  ;;  %v750_v62 = vpop.permute.xlu0 %749  ;;  %v1586_v58 = vsel %vm2509_vm5, %v1584_v49, %v1585_v22  ;;  %v1346_v22 = vrot.slane %v1345_v5, 4 }
  0xf5   : > { %791 = vst.msk [vmem:[#allocation2 + $0x1c] sm:$0xf] %vm783_vm9, %v750_v62  ;;  %v766_v7 = vpop.permute.xlu2 %765  ;;  %v2963_v11 = vrot.slane %v1408_v61, 5  ;;  %v3010_v61 = vld [vmem:[%s2435_s26 + $0x48] sm:$0xf] }
  0xf6   : > { %799 = vst.msk [vmem:[#allocation2 + $0x3c] sm:$0xf] %vm783_vm9, %v766_v7  ;;  %v1406_v7 = vrot.slane %v1405_v59, 4  ;;  %v1448_v3 = vshll.u32 %v3010_v61, 16  ;;  %v1452_v45 = vshrl.u32 %v3010_v61, 16 }
  0xf8   : > { %v3030_v15 = vrot.slane %v1448_v3, 5 }
  0xf9   : > { %1480 = vrot.lane.b32.xlu1 %v1361_v0, %s2382_s8  ;;  %v1601_v0 = vsel %vm2509_vm5, %v1599_v53, %v1600_v55 }
  0xfa   : > { %1236 = vrot.lane.b32.xlu0 %v1199_v4, %s2383_s9  ;;  %v1598_v4 = vsel %vm2509_vm5, %v1596_v57, %v1597_v46 }
  0xfb   : > { %v758_v12 = vpop.permute.xlu1 %757  ;;  %1234 = vrot.lane.b32.xlu2 %v1198_v10, %s2383_s9  ;;  %v1121_v10 = vrot.slane %v2961_v6, 5 }
  0xfc   : > { %795 = vst.msk [vmem:[#allocation2 + $0x2c] sm:$0xf] %vm783_vm9, %v758_v12  ;;  %v756_v16 = vpop.permute.xlu0 %755 }
  0xfd   : > { %794 = vst.msk [vmem:[#allocation2 + $0x28] sm:$0xf] %vm783_vm9, %v756_v16  ;;  %v986_v27 = vpop.permute.xlu2 %985  ;;  %v1332_v16 = vshrl.u32 %v2849_v37, 16  ;;  %v1122_v63 = vsel %vm2509_vm5, %v1120_v13, %v1121_v10  ;;  %v1197_v37 = vld [vmem:[%s2435_s26 + $0x1c] sm:$0xf] }
  0xfe   : > { %1032 = vst.msk [vmem:[#allocation2 + $0x8] sm:$0xf] %vm1029_vm10, %v986_v27  ;;  %v1540_v27 = vld [vmem:[%s2435_s26 + $0x1c] sm:$0xf] }
  0xff   : > { %v1334_v20 = vrot.slane %v1332_v16, 4  ;;  %v1579_v36 = vrot.slane %v1540_v27, 5  ;;  %v1207_v16 = vld [vmem:[%s2435_s26 + $0x44] sm:$0xf] }
 0x101   : > { %1244 = vrot.lane.b32.xlu1 %v1203_v18, %s2383_s9  ;;  %v1411_v18 = vsel %vm2445_vm2, %v1406_v7, %v2963_v11  ;;  %v1335_v31 = vor.u32 %v1334_v20, %v2870_v54  ;;  %v1303_v54 = vld [vmem:[%s2435_s26 + $0x40] sm:$0xf]  ;;  %v1581_v49 = vrot.slane %v1579_v36, 4  ;;  %v1580_v38 = vsel %vm2509_vm5, %v1578_v50, %v1579_v36  ;;  %v1201_v36 = vld [vmem:[%s2435_s26 + $0x2c] sm:$0xf] }
 0x102   : > { %1242 = vrot.lane.b32.xlu0 %v1202_v21, %s2383_s9  ;;  %v1432_v60 = vshrl.u32 %v1303_v54, 16 }
 0x103   : > { %v764_v32 = vpop.permute.xlu1 %763  ;;  %1482 = vrot.lane.b32.xlu2 %v1371_v39, %s2382_s8  ;;  %v1438_v39 = vshll.u32 %v1304_v30, 16  ;;  %v1336_v46 = vrot.slane %v1335_v31, 4  ;;  %v1583_v33 = vsel %vm2509_vm5, %v1581_v49, %v1582_v41 }
 0x104   : > { %798 = vst.msk [vmem:[#allocation2 + $0x38] sm:$0xf] %vm783_vm9, %v764_v32  ;;  %v762_v42 = vpop.permute.xlu0 %761  ;;  %v1434_v7 = vrot.slane %v1432_v60, 4 }
 0x105   : > { %797 = vst.msk [vmem:[#allocation2 + $0x34] sm:$0xf] %vm783_vm9, %v762_v42  ;;  %v992_v51 = vpop.permute.xlu2 %991  ;;  %v1351_v42 = vsel %vm2445_vm2, %v1346_v22, %v2855_v40  ;;  %v1341_v57 = vsel %vm2445_vm2, %v1336_v46, %v1340_v14 }
 0x106   : > { %1035 = vst.msk [vmem:[#allocation2 + $0x14] sm:$0xf] %vm1029_vm10, %v992_v51  ;;  %v1440_v51 = vrot.slane %v1438_v39, 5 }
 0x109   : > { %1488 = vrot.lane.b32.xlu1 %v1401_v44, %s2382_s8  ;;  %v1442_v44 = vshrl.u32 %v1304_v30, 16 }
 0x10a   : > { %1630 = vrot.lane.b32.xlu0 %v1589_v47, %s2384_s10 }
 0x10b   : > { %v984_v56 = vpop.permute.xlu1 %983  ;;  %1628 = vrot.lane.b32.xlu2 %v1586_v58, %s2384_s10  ;;  %v1444_v40 = vrot.slane %v1442_v44, 4  ;;  %v1428_v58 = vshll.u32 %v1303_v54, 16 }
 0x10c   : > { %1031 = vst.msk [vmem:[#allocation2 + $0x4] sm:$0xf] %vm1029_vm10, %v984_v56  ;;  %v982_v62 = vpop.permute.xlu0 %981  ;;  %v3004_v56 = vld [vmem:[%s2435_s26 + $0x40] sm:$0xf] }
 0x10d   : > { %1030 = vst.msk [vmem:[#allocation2] sm:$0xf] %vm1029_vm10, %v982_v62  ;;  %v998_v12 = vpop.permute.xlu2 %997  ;;  %v1606_v62 = vrot.slane %v3004_v56, 5  ;;  %v1445_v1 = vor.u32 %v1444_v40, %v1440_v51  ;;  %v1544_v40 = vld [vmem:[%s2435_s26 + $0x2c] sm:$0xf] }
 0x10e   : > { %1038 = vst.msk [vmem:[#allocation2 + $0x20] sm:$0xf] %vm1029_vm10, %v998_v12 }
 0x10f   : > { %v1608_v41 = vrot.slane %v1606_v62, 4  ;;  %v1446_v14 = vrot.slane %v1445_v1, 4  ;;  %v1591_v1 = vrot.slane %v1544_v40, 5 }
 0x111   : > { %1638 = vrot.lane.b32.xlu1 %v1601_v0, %s2384_s10  ;;  %v1550_v0 = vld [vmem:[%s2435_s26 + $0x44] sm:$0xf]  ;;  %v1451_v20 = vsel %vm2445_vm2, %v1446_v14, %v3030_v15 }
 0x112   : > { %1636 = vrot.lane.b32.xlu0 %v1598_v4, %s2384_s10  ;;  %v3023_v4 = vrot.slane %v1428_v58, 5  ;;  %v1609_v12 = vrot.slane %v1550_v0, 5  ;;  %v1204_v0 = vld [vmem:[%s2435_s26 + $0x38] sm:$0xf] }
 0x113   : > { %v990_v17 = vpop.permute.xlu1 %989  ;;  %1490 = vrot.lane.b32.xlu2 %v1411_v18, %s2382_s8 }
 0x114   : > { %1034 = vst.msk [vmem:[#allocation2 + $0x10] sm:$0xf] %vm1029_vm10, %v990_v17  ;;  %v988_v19 = vpop.permute.xlu0 %987  ;;  %v1298_v17 = vld [vmem:[%s2435_s26 + $0x2c] sm:$0xf]  ;;  %v1435_v18 = vor.u32 %v1434_v7, %v3023_v4  ;;  %v1611_v44 = vrot.slane %v1609_v12, 4 }
 0x115   : > { %1033 = vst.msk [vmem:[#allocation2 + $0xc] sm:$0xf] %vm1029_vm10, %v988_v19  ;;  %v1004_v21 = vpop.permute.xlu2 %1003  ;;  %v1378_v5 = vshll.u32 %v1298_v17, 16 }
 0x116   : > { %1041 = vst.msk [vmem:[#allocation2 + $0x2c] sm:$0xf] %vm1029_vm10, %v1004_v21  ;;  %v1436_v21 = vrot.slane %v1435_v18, 4 }
 0x118   : > { %v1441_v31 = vsel %vm2445_vm2, %v1436_v21, %v1440_v51 }
 0x119   : > { %1155 = vrot.lane.b32.xlu1 %v1122_v63, %s2381_s7  ;;  %v1610_v63 = vsel %vm2509_vm5, %v1608_v41, %v1609_v12  ;;  %v2330_v12 = vld [vmem:[%s3410_s1 + $0x10] sm:$0xff] }
 0x11a   : > { %1232 = vrot.lane.b32.xlu0 %v1197_v37, %s2383_s9  ;;  %v1382_v37 = vshrl.u32 %v1298_v17, 16 }
 0x11b   : > { %v996_v23 = vpop.permute.xlu1 %995  ;;  %1230 = vrot.lane.b32.xlu2 %v1196_v29, %s2383_s9  ;;  %v1372_v29 = vshrl.u32 %v2886_v8, 16  ;;  %v1709_v8 = vld [vmem:[%s3410_s1 + $0x20] sm:$0xf] }
 0x11c   : > { %1037 = vst.msk [vmem:[#allocation2 + $0x1c] sm:$0xf] %vm1029_vm10, %v996_v23  ;;  %v994_v32 = vpop.permute.xlu0 %993  ;;  %v3046_v23 = vrot.slane %v1378_v5, 5  ;;  %v1384_v27 = vrot.slane %v1382_v37, 4  ;;  %v1771_v54 = vunpack.c.l.b16 %v1709_v8  ;;  %v1548_v5 = vld [vmem:[%s2435_s26 + $0x3c] sm:$0xf] }
 0x11d   : > { %1036 = vst.msk [vmem:[#allocation2 + $0x18] sm:$0xf] %vm1029_vm10, %v994_v32  ;;  %v1010_v47 = vpop.permute.xlu2 %1009 }
 0x11e   : > { %1044 = vst.msk [vmem:[#allocation2 + $0x38] sm:$0xf] %vm1029_vm10, %v1010_v47  ;;  %v1385_v39 = vor.u32 %v1384_v27, %v3046_v23  ;;  %v1374_v47 = vrot.slane %v1372_v29, 4  ;;  %v1776_v50 = vpack.c.b16 %v1771_v54, %v1771_v54  ;;  %v1061_v29 = vld [vmem:[%s2435_s26 + $0x44] sm:$0xf] }
 0x120   : > { %v1375_v58 = vor.u32 %v1374_v47, %v2903_v25  ;;  %v1808_v60 = vsel %vm1806_vm12, %v1776_v50, 0  ;;  %v1454_v47 = vrot.slane %v1452_v45, 4  ;;  %v1306_v50 = vld [vmem:[%s2435_s26 + $0x4c] sm:$0xf] }
 0x121   : > { %1250 = vrot.lane.b32.xlu1 %v1206_v35, %s2383_s9  ;;  %v3053_v35 = vld [vmem:[%s2435_s26 + $0x48] sm:$0xf]  ;;  %1813 = vmatpush.bf16.msra.mxu0 %v1808_v60 }
 0x122   : > { %1478 = vrot.lane.b32.xlu0 %v1351_v42, %s2382_s8  ;;  %v1200_v42 = vld [vmem:[%s2435_s26 + $0x28] sm:$0xf]  ;;  %v1612_v46 = vrot.slane %v3053_v35, 5  ;;  %2332 = vmatpush.bf16.msra.mxu1 %v1808_v60  ;;  %v1455_v40 = vor.u32 %v1454_v47, %v3030_v15 }
 0x123   : > { %v1002_v53 = vpop.permute.xlu1 %1001  ;;  %1476 = vrot.lane.b32.xlu2 %v1341_v57, %s2382_s8  ;;  %2333 = vmatpush.bf16.msra.mxu2 %v1808_v60 }
 0x124   : > { %1040 = vst.msk [vmem:[#allocation2 + $0x28] sm:$0xf] %vm1029_vm10, %v1002_v53  ;;  %v1000_v59 = vpop.permute.xlu0 %999  ;;  %v1386_v53 = vrot.slane %v1385_v39, 4  ;;  %v1613_v57 = vsel %vm2509_vm5, %v1611_v44, %v1612_v46  ;;  %2334 = vmatpush.bf16.msra.mxu3 %v1808_v60  ;;  %v1062_v39 = vld [vmem:[%s2435_s26 + $0x48] sm:$0x1]  ;;  %v1456_v60 = vrot.slane %v1455_v40, 4 }
 0x125   : > { %1039 = vst.msk [vmem:[#allocation2 + $0x24] sm:$0xf] %vm1029_vm10, %v1000_v59  ;;  %v1132_v28 = vpop.permute.xlu2 %1131  ;;  %v1127_v44 = vrot.slane %v1062_v39, 5  ;;  %v1947_v40 = vld [vmem:[%s3412_s3 + $0x40] sm:$0xff] }
 0x126   : > { %1179 = vst.msk [vmem:[#allocation2 + $0x4] sm:$0xf] %vm1177_vm11, %v1132_v28  ;;  %v1391_v25 = vsel %vm2445_vm2, %v1386_v53, %v2891_v9  ;;  %v1376_v28 = vrot.slane %v1375_v58, 4  ;;  %v1593_v9 = vrot.slane %v1591_v1, 4 }
 0x129   : > { %1626 = vrot.lane.b32.xlu1 %v1583_v33, %s2384_s10  ;;  %v1302_v33 = vld [vmem:[%s2435_s26 + $0x3c] sm:$0xf] }
 0x12a   : > { %1624 = vrot.lane.b32.xlu0 %v1580_v38, %s2384_s10  ;;  %v2331_v38 = vld [vmem:[%s3410_s1 + $0x18] sm:$0xff]  ;;  %v1418_v3 = vshll.u32 %v1302_v33, 16  ;;  %v1422_v7 = vshrl.u32 %v1302_v33, 16  ;;  %v1462_v33 = vshrl.u32 %v1306_v50, 16 }
 0x12b   : > { %v1008_v13 = vpop.permute.xlu1 %1007  ;;  %1252 = vrot.lane.b32.xlu2 %v1207_v16, %s2383_s9  ;;  %1814 = vmatpush.bf16.msra.mxu0 %v2331_v38  ;;  %v1590_v16 = vrot.slane %v1588_v34, 4  ;;  %v1595_v34 = vsel %vm2509_vm5, %v1593_v9, %v1594_v48  ;;  %v1602_v48 = vrot.slane %v1600_v55, 4 }
 0x12c   : > { %1043 = vst.msk [vmem:[#allocation2 + $0x34] sm:$0xf] %vm1029_vm10, %v1008_v13  ;;  %v1006_v19 = vpop.permute.xlu0 %1005  ;;  %2335 = vmatpush.bf16.msra.mxu1 %v2331_v38  ;;  %2336 = vmatpush.bf16.msra.mxu2 %v2331_v38  ;;  %v1412_v13 = vshrl.u32 %v2939_v52, 16  ;;  %v3093_v17 = vrot.slane %v1418_v3, 5  ;;  %v1424_v18 = vrot.slane %v1422_v7, 4  ;;  %v1464_v56 = vrot.slane %v1462_v33, 4 }
 0x12d   : > { %1042 = vst.msk [vmem:[#allocation2 + $0x30] sm:$0xf] %vm1029_vm10, %v1006_v19  ;;  %v1138_v22 = vpop.permute.xlu2 %1137  ;;  %2337 = vmatpush.bf16.msra.mxu3 %v2331_v38  ;;  %v1381_v19 = vsel %vm2445_vm2, %v1376_v28, %v3046_v23  ;;  %v1592_v52 = vsel %vm2509_vm5, %v1590_v16, %v1591_v1  ;;  %v1552_v38 = vld [vmem:[%s2435_s26 + $0x4c] sm:$0xf]  ;;  %v1553_v28 = vld [vmem:[%s2435_s26 + $0x50] sm:$0x1] }
 0x12e   : > { %1182 = vst.msk [vmem:[#allocation2 + $0x10] sm:$0xf] %vm1177_vm11, %v1138_v22  ;;  %v1425_v37 = vor.u32 %v1424_v18, %v3093_v17  ;;  %v1603_v22 = vrot.slane %v1548_v5, 5  ;;  %v1615_v3 = vrot.slane %v1552_v38, 5  ;;  %v1209_v7 = vld [vmem:[%s2435_s26 + $0x4c] sm:$0xf] }
 0x12f   : > { %1815 = vmatpush.bf16.msra.mxu0 %v2330_v12  ;;  %v1208_v16 = vld [vmem:[%s2435_s26 + $0x48] sm:$0xf]  ;;  %v1951_v33 = vld [vmem:[%s3412_s3 + $0x60] sm:$0xff] }
 0x130   : > { %2338 = vmatpush.bf16.msra.mxu1 %v2330_v12  ;;  %2339 = vmatpush.bf16.msra.mxu2 %v2330_v12  ;;  %v1426_v27 = vrot.slane %v1425_v37, 4  ;;  %v1604_v55 = vsel %vm2509_vm5, %v1602_v48, %v1603_v22 }
 0x131   : > { %1644 = vrot.lane.b32.xlu1 %v1610_v63, %s2384_s10  ;;  %2340 = vmatpush.bf16.msra.mxu3 %v2330_v12  ;;  %v1307_v12 = vld [vmem:[%s2435_s26 + $0x50] sm:$0x1] }
 0x132   : > { %1498 = vrot.lane.b32.xlu0 %v1451_v20, %s2382_s8  ;;  %v1414_v20 = vrot.slane %v1412_v13, 4  ;;  %v1618_v13 = vrot.slane %v1553_v28, 5  ;;  %v1468_v18 = vshll.u32 %v1307_v12, 16 }
 0x133   : > { %v1130_v30 = vpop.permute.xlu1 %1129  ;;  %1496 = vrot.lane.b32.xlu2 %v1441_v31, %s2382_s8  ;;  %1816 = vmatpush.bf16.msra.mxu0 %v2329_v26 }
 0x134   : > { %1178 = vst.msk [vmem:[#allocation2] sm:$0xf] %vm1177_vm11, %v1130_v30  ;;  %v1012_v32 = vpop.permute.xlu0 %1011  ;;  %2341 = vmatpush.bf16.msra.mxu1 %v2329_v26  ;;  %2342 = vmatpush.bf16.msra.mxu2 %v2329_v26  ;;  %v1205_v30 = vld [vmem:[%s2435_s26 + $0x3c] sm:$0xf]  ;;  %v1415_v31 = vor.u32 %v1414_v20, %v2963_v11  ;;  %v1431_v11 = vsel %vm2445_vm2, %v1426_v27, %v3023_v4  ;;  %v1943_v27 = vld [vmem:[%s3412_s3 + $0x20] sm:$0xff] }
 0x135   : > { %1045 = vst.msk [vmem:[#allocation2 + $0x3c] sm:$0xf] %vm1029_vm10, %v1012_v32  ;;  %v1144_v49 = vpop.permute.xlu2 %1143  ;;  %2343 = vmatpush.bf16.msra.mxu3 %v2329_v26 }
 0x136   : > { %1185 = vst.msk [vmem:[#allocation2 + $0x1c] sm:$0xf] %vm1177_vm11, %v1144_v49  ;;  %v1416_v8 = vrot.slane %v1415_v31, 4  ;;  %v1123_v49 = vrot.slane %v1121_v10, 4  ;;  %v1605_v10 = vrot.slane %v1603_v22, 4 }
 0x137   : > { %1817 = vmatpush.bf16.msra.mxu0 %v2328_v43 }
 0x138   : > { %2344 = vmatpush.bf16.msra.mxu1 %v2328_v43  ;;  %2345 = vmatpush.bf16.msra.mxu2 %v2328_v43 }
 0x139   : > { %1240 = vrot.lane.b32.xlu1 %v1201_v36, %s2383_s9  ;;  %v1124_v36 = vrot.slane %v1061_v29, 5  ;;  %2346 = vmatpush.bf16.msra.mxu3 %v2328_v43 }
 0x13a   : > { %1238 = vrot.lane.b32.xlu0 %v1200_v42, %s2383_s9 }
 0x13b   : > { %v1136_v51 = vpop.permute.xlu1 %1135  ;;  %1646 = vrot.lane.b32.xlu2 %v1613_v57, %s2384_s10  ;;  %v1126_v61 = vrot.slane %v1124_v36, 4  ;;  %v1458_v57 = vshll.u32 %v1306_v50, 16  ;;  %v1125_v6 = vsel %vm2509_vm5, %v1123_v49, %v1124_v36  ;;  %v1944_v50 = vld [vmem:[%s3412_s3 + $0x28] sm:$0xff] }
 0x13c   : > { %1181 = vst.msk [vmem:[#allocation2 + $0xc] sm:$0xf] %vm1177_vm11, %v1136_v51  ;;  %v1134_v59 = vpop.permute.xlu0 %1133  ;;  %v1421_v51 = vsel %vm2445_vm2, %v1416_v8, %v3093_v17 }
 0x13d   : > { %1180 = vst.msk [vmem:[#allocation2 + $0x8] sm:$0xf] %vm1177_vm11, %v1134_v59  ;;  %v1150_v41 = vpop.permute.xlu2 %1149  ;;  %v1128_v53 = vsel %vm2509_vm5, %v1126_v61, %v1127_v44  ;;  %v1460_v59 = vrot.slane %v1458_v57, 5  ;;  %v1948_v61 = vld [vmem:[%s3412_s3 + $0x48] sm:$0xff] }
 0x13e   : > { %1188 = vst.msk [vmem:[#allocation2 + $0x28] sm:$0xf] %vm1177_vm11, %v1150_v41 }
 0x13f   : > { %v1465_v17 = vor.u32 %v1464_v56, %v1460_v59 }
 0x141   : > { %1246 = vrot.lane.b32.xlu1 %v1204_v0, %s2383_s9  ;;  %v1607_v0 = vsel %vm2509_vm5, %v1605_v10, %v1606_v62  ;;  %v1617_v62 = vrot.slane %v1615_v3, 4 }
 0x142   : > { %1486 = vrot.lane.b32.xlu0 %v1391_v25, %s2382_s8  ;;  %v1461_v25 = vsel %vm2445_vm2, %v1456_v60, %v1460_v59 }
 0x143   : > { %v1142_v14 = vpop.permute.xlu1 %1141  ;;  %1484 = vrot.lane.b32.xlu2 %v1381_v19, %s2382_s8  ;;  %v1619_v26 = vsel %vm2509_vm5, %v1617_v62, %v1618_v13  ;;  %v1954_v62 = vld [vmem:[%s3412_s3 + $0x78] sm:$0xff] }
 0x144   : > { %1184 = vst.msk [vmem:[#allocation2 + $0x18] sm:$0xf] %vm1177_vm11, %v1142_v14  ;;  %v1140_v63 = vpop.permute.xlu0 %1139  ;;  %v1614_v14 = vrot.slane %v1612_v46, 4  ;;  %v1466_v46 = vrot.slane %v1465_v17, 4  ;;  %v1950_v17 = vld [vmem:[%s3412_s3 + $0x58] sm:$0xff] }
 0x145   : > { %1183 = vst.msk [vmem:[#allocation2 + $0x14] sm:$0xf] %vm1177_vm11, %v1140_v63  ;;  %v1227_v21 = vpop.permute.xlu2 %1226  ;;  %v2385_v63 = vmov 0  }
 0x146   : > { %1275 = vst.msk [vmem:[#allocation2] sm:$0xf] %vm1274_vm13, %v1227_v21  ;;  %2366 = vset.pattern.permute.xlu0 %v2385_v63  ;;  %2367 = vset.pattern.permute.xlu1 %v2385_v63  ;;  %v1616_v35 = vsel %vm2509_vm5, %v1614_v14, %v1615_v3 }
 0x147   : > { %2365 = vset.pattern.permute.xlu2 %v2385_v63 }
 0x149   : > { %1634 = vrot.lane.b32.xlu1 %v1595_v34, %s2384_s10  ;;  %v1470_v34 = vrot.slane %v1468_v18, 5 }
 0x14a   : > { %1632 = vrot.lane.b32.xlu0 %v1592_v52, %s2384_s10 }
 0x14b   : > { %v1148_v23 = vpop.permute.xlu1 %1147  ;;  %1248 = vrot.lane.b32.xlu2 %v1205_v30, %s2383_s9  ;;  %v1471_v37 = vsel %vm2445_vm2, %v1466_v46, %v1470_v34 }
 0x14c   : > { %1187 = vst.msk [vmem:[#allocation2 + $0x24] sm:$0xf] %vm1177_vm11, %v1148_v23  ;;  %v1146_v32 = vpop.permute.xlu0 %1145  ;;  %v1939_v23 = vld [vmem:[%s3412_s3] sm:$0xff] }
 0x14d   : > { %1186 = vst.msk [vmem:[#allocation2 + $0x20] sm:$0xf] %vm1177_vm11, %v1146_v32  ;;  %v1475_v42 = vpop.permute.xlu2 %1474 }
 0x151   : > { %1640 = vrot.lane.b32.xlu1 %v1604_v55, %s2384_s10  ;;  %v1945_v55 = vld [vmem:[%s3412_s3 + $0x30] sm:$0xff] }
 0x152   : > { %1494 = vrot.lane.b32.xlu0 %v1431_v11, %s2382_s8 }
 0x153   : > { %v1154_v54 = vpop.permute.xlu1 %1153  ;;  %1492 = vrot.lane.b32.xlu2 %v1421_v51, %s2382_s8 }
 0x154   : > { %1190 = vst.msk [vmem:[#allocation2 + $0x30] sm:$0xf] %vm1177_vm11, %v1154_v54  ;;  %v1152_v4 = vpop.permute.xlu0 %1151 }
 0x155   : > { %1189 = vst.msk [vmem:[#allocation2 + $0x2c] sm:$0xf] %vm1177_vm11, %v1152_v4  ;;  %v1235_v58 = vpop.permute.xlu2 %1234 }
 0x156   : > { %1279 = vst.msk [vmem:[#allocation2 + $0x10] sm:$0xf] %vm1274_vm13, %v1235_v58 }
 0x159   : > { %1159 = vrot.lane.b32.xlu1 %v1128_v53, %s2381_s7 }
 0x15a   : > { %1157 = vrot.lane.b32.xlu0 %v1125_v6, %s2381_s7  ;;  %v1946_v6 = vld [vmem:[%s3412_s3 + $0x38] sm:$0xff] }
 0x15b   : > { %v1473_v15 = vpop.permute.xlu1 %1472  ;;  %1642 = vrot.lane.b32.xlu2 %v1607_v0, %s2384_s10 }
 0x15c   : > { %1521 = vst.msk [vmem:[#allocation2] sm:$0xf] %vm1520_vm14, %v1473_v15  ;;  %v1229_v1 = vpop.permute.xlu0 %1228  ;;  %v1949_v15 = vld [vmem:[%s3412_s3 + $0x50] sm:$0xff] }
 0x15d   : > { %1276 = vst.msk [vmem:[#allocation2 + $0x4] sm:$0xf] %vm1274_vm13, %v1229_v1  ;;  %v1483_v41 = vpop.permute.xlu2 %1482 }
 0x15e   : > { %1522 = vst.msk [vmem:[#allocation2 + $0x4] sm:$0xf] %vm1520_vm14, %v1475_v42  ;;  %v1942_v42 = vld [vmem:[%s3412_s3 + $0x18] sm:$0xff] }
 0x161   : > { %1500 = vrot.lane.b32.xlu1 %v1461_v25, %s2382_s8  ;;  %v1952_v25 = vld [vmem:[%s3412_s3 + $0x68] sm:$0xff] }
 0x162   : > { %1256 = vrot.lane.b32.xlu0 %v1209_v7, %s2383_s9 }
 0x163   : > { %v1623_v9 = vpop.permute.xlu1 %1622  ;;  %1254 = vrot.lane.b32.xlu2 %v1208_v16, %s2383_s9 }
 0x164   : > { %1670 = vst.msk [vmem:[#allocation2 + $0x4] sm:$0xf] %vm1668_vm15, %v1623_v9  ;;  %v1621_v19 = vpop.permute.xlu0 %1620 }
 0x165   : > { %1669 = vst.msk [vmem:[#allocation2] sm:$0xf] %vm1668_vm15, %v1621_v19  ;;  %v1629_v52 = vpop.permute.xlu2 %1628 }
 0x169   : > { %1650 = vrot.lane.b32.xlu1 %v1619_v26, %s2384_s10 }
 0x16a   : > { %1648 = vrot.lane.b32.xlu0 %v1616_v35, %s2384_s10  ;;  %v1953_v35 = vld [vmem:[%s3412_s3 + $0x70] sm:$0xff] }
 0x16b   : > { %v1481_v5 = vpop.permute.xlu1 %1480  ;;  %1502 = vrot.lane.b32.xlu2 %v1471_v37, %s2382_s8 }
 0x16c   : > { %1525 = vst.msk [vmem:[#allocation2 + $0x10] sm:$0xf] %vm1520_vm14, %v1481_v5  ;;  %v1237_v20 = vpop.permute.xlu0 %1236  ;;  %v2320_v21 = vld [vmem:[#allocation2] sm:$0xff] }
 0x16d   : > { %1280 = vst.msk [vmem:[#allocation2 + $0x14] sm:$0xf] %vm1274_vm13, %v1237_v20  ;;  %2309 = vmatmul.msk.bf16.vlgmr.msra.gmra.mxu0 %vm1781_vm0, %v2320_v21  ;;  %v1491_v43 = vpop.permute.xlu2 %1490  ;;  %v3286_v21 = vld [vmem:[%s3411_s2] ss:$0 sm:$0xff] }
 0x16e   : > { %1526 = vst.msk [vmem:[#allocation2 + $0x14] sm:$0xf] %vm1520_vm14, %v1483_v41 }
 0x16f   : > { %1673 = vst.msk [vmem:[#allocation2 + $0x10] sm:$0xf] %vm1668_vm15, %v1629_v52 }
 0x171   : > { %1967 = vperm.xlu1 %2367, %v1941_v2  }
 0x172   : > { %1962 = vperm.xlu0 %2366, %v1940_v24  }
 0x173   : > { %v1245_v48 = vpop.permute.xlu1 %1244  ;;  %1957 = vperm.xlu2 %2365, %v1939_v23  }
 0x174   : > { %1284 = vst.msk [vmem:[#allocation2 + $0x24] sm:$0xf] %vm1274_vm13, %v1245_v48  ;;  %v1243_v22 = vpop.permute.xlu0 %1242 }
 0x175   : > { %1283 = vst.msk [vmem:[#allocation2 + $0x20] sm:$0xf] %vm1274_vm13, %v1243_v22  ;;  %v1231_v29 = vpop.permute.xlu2 %1230 }
 0x176   : > { %1530 = vst.msk [vmem:[#allocation2 + $0x24] sm:$0xf] %vm1520_vm14, %v1491_v43 }
 0x177   : > { %1277 = vst.msk [vmem:[#allocation2 + $0x8] sm:$0xf] %vm1274_vm13, %v1231_v29 }
 0x179   : > { %1977 = vperm.xlu1 %2367, %v1943_v27  }
 0x17a   : > { %1987 = vperm.xlu0 %2366, %v1945_v55  }
 0x17b   : > { %v1489_v30 = vpop.permute.xlu1 %1488  ;;  %1972 = vperm.xlu2 %2365, %v1942_v42  }
 0x17c   : > { %1529 = vst.msk [vmem:[#allocation2 + $0x20] sm:$0xf] %vm1520_vm14, %v1489_v30  ;;  %v1631_v31 = vpop.permute.xlu0 %1630 }
 0x17d   : > { %1674 = vst.msk [vmem:[#allocation2 + $0x14] sm:$0xf] %vm1668_vm15, %v1631_v31  ;;  %v1477_v32 = vpop.permute.xlu2 %1476 }
 0x17e   : > { %1523 = vst.msk [vmem:[#allocation2 + $0x8] sm:$0xf] %vm1520_vm14, %v1477_v32 }
 0x181   : > { %1992 = vperm.xlu1 %2367, %v1946_v6  }
 0x182   : > { %2002 = vperm.xlu0 %2366, %v1948_v61  }
 0x183   : > { %v1639_v45 = vpop.permute.xlu1 %1638  ;;  %1982 = vperm.xlu2 %2365, %v1944_v50  }
 0x184   : > { %1678 = vst.msk [vmem:[#allocation2 + $0x24] sm:$0xf] %vm1668_vm15, %v1639_v45  ;;  %v1637_v36 = vpop.permute.xlu0 %1636  ;;  %v2322_v11 = vld [vmem:[#allocation2 + $0x10] sm:$0xff] }
 0x185   : > { %1677 = vst.msk [vmem:[#allocation2 + $0x20] sm:$0xf] %vm1668_vm15, %v1637_v36  ;;  %2311 = vmatmul.msk.bf16.vlgmr.msra.gmra.mxu1 %vm1781_vm0, %v2322_v11  ;;  %v1253_v39 = vpop.permute.xlu2 %1252 }
 0x189   : > { %2007 = vperm.xlu1 %2367, %v1949_v15  }
 0x18a   : > { %2017 = vperm.xlu0 %2366, %v1951_v33  }
 0x18b   : > { %v1156_v8 = vpop.permute.xlu1 %1155  ;;  %1997 = vperm.xlu2 %2365, %v1947_v40  }
 0x18c   : > { %1191 = vst.msk [vmem:[#allocation2 + $0x34] sm:$0xf] %vm1177_vm11, %v1156_v8  ;;  %v1233_v44 = vpop.permute.xlu0 %1232  ;;  %v2324_v47 = vld [vmem:[#allocation2 + $0x20] sm:$0xff] }
 0x18d   : > { %1278 = vst.msk [vmem:[#allocation2 + $0xc] sm:$0xf] %vm1274_vm13, %v1233_v44  ;;  %2313 = vmatmul.msk.bf16.vlgmr.msra.gmra.mxu2 %vm1781_vm0, %v2324_v47  ;;  %v1497_v54 = vpop.permute.xlu2 %1496 }
 0x18e   : > { %1288 = vst.msk [vmem:[#allocation2 + $0x34] sm:$0xf] %vm1274_vm13, %v1253_v39 }
 0x191   : > { %2022 = vperm.xlu1 %2367, %v1952_v25  }
 0x192   : > { %2032 = vperm.xlu0 %2366, %v1954_v62  }
 0x193   : > { %v1251_v49 = vpop.permute.xlu1 %1250  ;;  %2012 = vperm.xlu2 %2365, %v1950_v17  }
 0x194   : > { %1287 = vst.msk [vmem:[#allocation2 + $0x30] sm:$0xf] %vm1274_vm13, %v1251_v49  ;;  %v1479_v51 = vpop.permute.xlu0 %1478 }
 0x195   : > { %1524 = vst.msk [vmem:[#allocation2 + $0xc] sm:$0xf] %vm1520_vm14, %v1479_v51  ;;  %v1647_v4 = vpop.permute.xlu2 %1646 }
 0x196   : > { %1533 = vst.msk [vmem:[#allocation2 + $0x30] sm:$0xf] %vm1520_vm14, %v1497_v54 }
 0x19b   : > { %v1627_v53 = vpop.permute.xlu1 %1626  ;;  %2027 = vperm.xlu2 %2365, %v1953_v35  }
 0x19c   : > { %1672 = vst.msk [vmem:[#allocation2 + $0xc] sm:$0xf] %vm1668_vm15, %v1627_v53  ;;  %v1625_v57 = vpop.permute.xlu0 %1624 }
 0x19d   : > { %1671 = vst.msk [vmem:[#allocation2 + $0x8] sm:$0xf] %vm1668_vm15, %v1625_v57  ;;  %v1485_v10 = vpop.permute.xlu2 %1484 }
 0x1a3   : > { %v1645_v58 = vpop.permute.xlu1 %1644 }
 0x1a4   : > { %1681 = vst.msk [vmem:[#allocation2 + $0x30] sm:$0xf] %vm1668_vm15, %v1645_v58  ;;  %v1499_v60 = vpop.permute.xlu0 %1498  ;;  %v2321_v59 = vld [vmem:[#allocation2 + $0x8] sm:$0xff] }
 0x1a5   : > { %1534 = vst.msk [vmem:[#allocation2 + $0x34] sm:$0xf] %vm1520_vm14, %v1499_v60  ;;  %2310 = vmatmul.msk.bf16.gmra.mxu0 %vm1781_vm0, %v2321_v59  ;;  %v1249_v38 = vpop.permute.xlu2 %1248 }
 0x1a6   : > { %1682 = vst.msk [vmem:[#allocation2 + $0x34] sm:$0xf] %vm1668_vm15, %v1647_v4 }
 0x1a7   : > { %1286 = vst.msk [vmem:[#allocation2 + $0x2c] sm:$0xf] %vm1274_vm13, %v1249_v38 }
 0x1ab   : > { %v1241_v0 = vpop.permute.xlu1 %1240 }
 0x1ac   : > { %1282 = vst.msk [vmem:[#allocation2 + $0x1c] sm:$0xf] %vm1274_vm13, %v1241_v0  ;;  %v1239_v1 = vpop.permute.xlu0 %1238 }
 0x1ad   : > { %1281 = vst.msk [vmem:[#allocation2 + $0x18] sm:$0xf] %vm1274_vm13, %v1239_v1  ;;  %v2326_v3 = vld [vmem:[#allocation2 + $0x30] sm:$0xff]  ;;  %v1493_v56 = vpop.permute.xlu2 %1492 }
 0x1ae   : > { %1527 = vst.msk [vmem:[#allocation2 + $0x18] sm:$0xf] %vm1520_vm14, %v1485_v10  ;;  %2315 = vmatmul.msk.bf16.vlgmr.msra.gmra.mxu3 %vm1781_vm0, %v2326_v3 }
 0x1b3   : > { %v1247_v7 = vpop.permute.xlu1 %1246 }
 0x1b4   : > { %1285 = vst.msk [vmem:[#allocation2 + $0x28] sm:$0xf] %vm1274_vm13, %v1247_v7  ;;  %v1487_v28 = vpop.permute.xlu0 %1486 }
 0x1b5   : > { %1528 = vst.msk [vmem:[#allocation2 + $0x1c] sm:$0xf] %vm1520_vm14, %v1487_v28  ;;  %v1643_v13 = vpop.permute.xlu2 %1642 }
 0x1b6   : > { %1531 = vst.msk [vmem:[#allocation2 + $0x28] sm:$0xf] %vm1520_vm14, %v1493_v56 }
 0x1bb   : > { %v1635_v41 = vpop.permute.xlu1 %1634 }
 0x1bc   : > { %1676 = vst.msk [vmem:[#allocation2 + $0x1c] sm:$0xf] %vm1668_vm15, %v1635_v41  ;;  %v1633_v12 = vpop.permute.xlu0 %1632 }
 0x1bd   : > { %1675 = vst.msk [vmem:[#allocation2 + $0x18] sm:$0xf] %vm1668_vm15, %v1633_v12  ;;  %v1255_v18 = vpop.permute.xlu2 %1254 }
 0x1c3   : > { %v1641_v9 = vpop.permute.xlu1 %1640 }
 0x1c4   : > { %1679 = vst.msk [vmem:[#allocation2 + $0x28] sm:$0xf] %vm1668_vm15, %v1641_v9  ;;  %v1495_v14 = vpop.permute.xlu0 %1494  ;;  %v2323_v16 = vld [vmem:[#allocation2 + $0x18] sm:$0xff] }
 0x1c5   : > { %1532 = vst.msk [vmem:[#allocation2 + $0x2c] sm:$0xf] %vm1520_vm14, %v1495_v14  ;;  %2312 = vmatmul.msk.bf16.gmra.mxu1 %vm1781_vm0, %v2323_v16  ;;  %v1503_v34 = vpop.permute.xlu2 %1502 }
 0x1c6   : > { %1680 = vst.msk [vmem:[#allocation2 + $0x2c] sm:$0xf] %vm1668_vm15, %v1643_v13 }
 0x1cb   : > { %v1160_v19 = vpop.permute.xlu1 %1159 }
 0x1cc   : > { %1193 = vst.msk [vmem:[#allocation2 + $0x3c] sm:$0xf] %vm1177_vm11, %v1160_v19  ;;  %v1158_v63 = vpop.permute.xlu0 %1157 }
 0x1cd   : > { %1192 = vst.msk [vmem:[#allocation2 + $0x38] sm:$0xf] %vm1177_vm11, %v1158_v63  ;;  %v2325_v26 = vld [vmem:[#allocation2 + $0x28] sm:$0xff]  ;;  %v1958_v23 = vpop.permute.xlu2 %1957 }
 0x1ce   : > { %1289 = vst.msk [vmem:[#allocation2 + $0x38] sm:$0xf] %vm1274_vm13, %v1255_v18  ;;  %2314 = vmatmul.msk.bf16.gmra.mxu2 %vm1781_vm0, %v2325_v26 }
 0x1d3   : > { %v1501_v46 = vpop.permute.xlu1 %1500 }
 0x1d4   : > { %1535 = vst.msk [vmem:[#allocation2 + $0x38] sm:$0xf] %vm1520_vm14, %v1501_v46  ;;  %v1257_v52 = vpop.permute.xlu0 %1256 }
 0x1d5   : > { %1290 = vst.msk [vmem:[#allocation2 + $0x3c] sm:$0xf] %vm1274_vm13, %v1257_v52  ;;  %v1973_v12 = vpop.permute.xlu2 %1972 }
 0x1d6   : > { %1536 = vst.msk [vmem:[#allocation2 + $0x3c] sm:$0xf] %vm1520_vm14, %v1503_v34 }
 0x1db   : > { %v1651_v5 = vpop.permute.xlu1 %1650 }
 0x1dc   : > { %1684 = vst.msk [vmem:[#allocation2 + $0x3c] sm:$0xf] %vm1668_vm15, %v1651_v5  ;;  %v1649_v37 = vpop.permute.xlu0 %1648 }
 0x1dd   : > { %1683 = vst.msk [vmem:[#allocation2 + $0x38] sm:$0xf] %vm1668_vm15, %v1649_v37  ;;  %v1983_v46 = vpop.permute.xlu2 %1982 }
 0x1e3   : > { %v1968_v28 = vpop.permute.xlu1 %1967 }
 0x1e4   : > { %v2327_v20 = vld [vmem:[#allocation2 + $0x38] sm:$0xff]  ;;  %v1963_v32 = vpop.permute.xlu0 %1962 }
 0x1e5   : > { %2316 = vmatmul.msk.bf16.gmra.mxu3 %vm1781_vm0, %v2327_v20 }
 0x1ea   : > { %v1819_v2 = vpop.f32.mrf.mxu0 }
 0x1eb   : > { %v1820_v24 = vadd.f32 %v3286_v21, %v1819_v2  ;;  %v1978_v17 = vpop.permute.xlu1 %1977 }
 0x1ed   : > { %v1875_v43 = vmul.f32 0.2, %v1820_v24  ;;  %vm1859_vm1 = vcmp.ge.f32.partialorder %v1820_v24, 0.0 }
 0x1ef   : > { %v1891_v48 = vsel %vm1859_vm1, %v1820_v24, %v1875_v43 }
 0x1f0   : > { %v1907_v22 = vpack.c.bf16 %v1891_v48, %v1891_v48  ;;  %v2035_v30 = vmul.f32 %v1958_v23, %v1891_v48 }
 0x1f2   : > { %1923 = vst.msk [vmem:[%s3293_s14] sm:$0xf] %vm286_vm6, %v1907_v22  ;;  %v1821_v27 = vpop.f32.mrf.mxu0  ;;  %v2091_v55 = vmul.f32 %v2035_v30, %v1891_v48  ;;  %v2052_v39 = vsel %vm2051_vm3, %v2035_v30, 0.0 }
 0x1f3   : > { %v1822_v29 = vadd.f32 %v3286_v21, %v1821_v27 }
 0x1f4   : > { %v2107_v44 = vsel %vm2051_vm3, %v2091_v55, 0.0 }
 0x1f5   : > { %v1876_v31 = vmul.f32 0.2, %v1822_v29  ;;  %vm1860_vm2 = vcmp.ge.f32.partialorder %v1822_v29, 0.0 }
 0x1f7   : > { %v1892_v45 = vsel %vm1860_vm2, %v1822_v29, %v1876_v31 }
 0x1f8   : > { %v1908_v36 = vpack.c.bf16 %v1892_v45, %v1892_v45  ;;  %v2036_v11 = vmul.f32 %v1963_v32, %v1892_v45 }
 0x1fa   : > { %1924 = vst.msk [vmem:[%s3293_s14 + $0x4] sm:$0xf] %vm286_vm6, %v1908_v36  ;;  %v2053_v8 = vsel %vm2051_vm3, %v2036_v11, 0.0  ;;  %v2092_v42 = vmul.f32 %v2036_v11, %v1892_v45 }
 0x1fb   : > { %v2054_v61 = vadd.f32 %v2053_v8, %v2052_v39 }
 0x1fc   : > { %v2108_v47 = vsel %vm2051_vm3, %v2092_v42, 0.0 }
 0x1fd   : > { %v2109_v54 = vadd.f32 %v2108_v47, %v2107_v44 }
 0x202   : > { %v1829_v49 = vpop.f32.mrf.mxu1 }
 0x203   : > { %v1830_v50 = vadd.f32 %v3286_v21, %v1829_v49 }
 0x205   : > { %v1879_v51 = vmul.f32 0.2, %v1830_v50  ;;  %vm1863_vm4 = vcmp.ge.f32.partialorder %v1830_v50, 0.0 }
 0x207   : > { %v1895_v4 = vsel %vm1863_vm4, %v1830_v50, %v1879_v51 }
 0x208   : > { %v1911_v53 = vpack.c.bf16 %v1895_v4, %v1895_v4  ;;  %v2039_v26 = vmul.f32 %v1978_v17, %v1895_v4 }
 0x20a   : > { %1927 = vst.msk [vmem:[%s3293_s14 + $0x10] sm:$0xf] %vm286_vm6, %v1911_v53  ;;  %v1831_v40 = vpop.f32.mrf.mxu1  ;;  %v2095_v43 = vmul.f32 %v2039_v26, %v1895_v4  ;;  %v2059_v27 = vsel %vm2051_vm3, %v2039_v26, 0.0 }
 0x20b   : > { %v1832_v57 = vadd.f32 %v3286_v21, %v1831_v40 }
 0x20c   : > { %v2114_v11 = vsel %vm2051_vm3, %v2095_v43, 0.0 }
 0x20d   : > { %v1880_v6 = vmul.f32 0.2, %v1832_v57  ;;  %vm1864_vm5 = vcmp.ge.f32.partialorder %v1832_v57, 0.0 }
 0x20f   : > { %v1896_v10 = vsel %vm1864_vm5, %v1832_v57, %v1880_v6  ;;  %v1988_v57 = vpop.permute.xlu0 %1987 }
 0x210   : > { %v1912_v58 = vpack.c.bf16 %v1896_v10, %v1896_v10  ;;  %v1839_v60 = vpop.f32.mrf.mxu2  ;;  %v2040_v52 = vmul.f32 %v1983_v46, %v1896_v10 }
 0x211   : > { %v1840_v59 = vadd.f32 %v3286_v21, %v1839_v60 }
 0x212   : > { %1928 = vst.msk [vmem:[%s3293_s14 + $0x14] sm:$0xf] %vm286_vm6, %v1912_v58  ;;  %v2096_v31 = vmul.f32 %v2040_v52, %v1896_v10  ;;  %v2061_v39 = vsel %vm2051_vm3, %v2040_v52, 0.0 }
 0x213   : > { %v1883_v15 = vmul.f32 0.2, %v1840_v59  ;;  %vm1867_vm7 = vcmp.ge.f32.partialorder %v1840_v59, 0.0 }
 0x214   : > { %v2116_v47 = vsel %vm2051_vm3, %v2096_v31, 0.0 }
 0x215   : > { %v3311_v33 = vsel %vm1867_vm7, %v1840_v59, %v1883_v15 }
 0x216   : > { %v1915_v38 = vpack.c.bf16 %v3311_v33, %v3311_v33 }
 0x218   : > { %1931 = vst.msk [vmem:[%s3293_s14 + $0x20] sm:$0xf] %vm286_vm6, %v1915_v38  ;;  %v1841_v0 = vpop.f32.mrf.mxu2  ;;  %v1998_v38 = vpop.permute.xlu2 %1997 }
 0x219   : > { %v1842_v1 = vadd.f32 %v3286_v21, %v1841_v0 }
 0x21b   : > { %v1884_v25 = vmul.f32 0.2, %v1842_v1  ;;  %vm1868_vm8 = vcmp.ge.f32.partialorder %v1842_v1, 0.0 }
 0x21d   : > { %v3318_v3 = vsel %vm1868_vm8, %v1842_v1, %v1884_v25  ;;  %v2003_v25 = vpop.permute.xlu0 %2002 }
 0x21e   : > { %v1916_v7 = vpack.c.bf16 %v3318_v3, %v3318_v3 }
 0x220   : > { %1932 = vst.msk [vmem:[%s3293_s14 + $0x24] sm:$0xf] %vm286_vm6, %v1916_v7 }
 0x222   : > { %v1824_v56 = vpop.f32.mrf.mxu0 }
 0x223   : > { %v1825_v41 = vadd.f32 %v3286_v21, %v1824_v56 }
 0x225   : > { %vm1861_vm9 = vcmp.ge.f32.partialorder %v1825_v41, 0.0  ;;  %v1877_v62 = vmul.f32 0.2, %v1825_v41 }
 0x227   : > { %v1893_v13 = vsel %vm1861_vm9, %v1825_v41, %v1877_v62  ;;  %v1993_v41 = vpop.permute.xlu1 %1992  ;;  %v2044_v62 = vmul.f32 %v2003_v25, %v3318_v3 }
 0x228   : > { %v1909_v9 = vpack.c.bf16 %v1893_v13, %v1893_v13  ;;  %v2037_v14 = vmul.f32 %v1968_v28, %v1893_v13  ;;  %v2043_v28 = vmul.f32 %v1998_v38, %v3311_v33 }
 0x229   : > { %v2100_v52 = vmul.f32 %v2044_v62, %v3318_v3 }
 0x22a   : > { %1925 = vst.msk [vmem:[%s3293_s14 + $0x8] sm:$0xf] %vm286_vm6, %v1909_v9  ;;  %v1826_v16 = vpop.f32.mrf.mxu0  ;;  %v2093_v19 = vmul.f32 %v2037_v14, %v1893_v13  ;;  %v2055_v35 = vsel %vm2051_vm3, %v2037_v14, 0.0 }
 0x22b   : > { %v1827_v18 = vadd.f32 %v3286_v21, %v1826_v16  ;;  %v2056_v2 = vadd.f32 %v2055_v35, %v2054_v61  ;;  %v2067_v35 = vsel %vm2051_vm3, %v2043_v28, 0.0 }
 0x22c   : > { %v2110_v5 = vsel %vm2051_vm3, %v2093_v19, 0.0 }
 0x22d   : > { %vm1862_vm10 = vcmp.ge.f32.partialorder %v1827_v18, 0.0  ;;  %v1878_v63 = vmul.f32 0.2, %v1827_v18  ;;  %v2111_v29 = vadd.f32 %v2110_v5, %v2109_v54 }
 0x22f   : > { %v1894_v34 = vsel %vm1862_vm10, %v1827_v18, %v1878_v63  ;;  %v2099_v18 = vmul.f32 %v2043_v28, %v3311_v33 }
 0x230   : > { %v1910_v37 = vpack.c.bf16 %v1894_v34, %v1894_v34  ;;  %v2038_v20 = vmul.f32 %v1973_v12, %v1894_v34 }
 0x231   : > { %v1849_v24 = vpop.f32.mrf.mxu3 }
 0x232   : > { %1926 = vst.msk [vmem:[%s3293_s14 + $0xc] sm:$0xf] %vm286_vm6, %v1910_v37  ;;  %v2057_v48 = vsel %vm2051_vm3, %v2038_v20, 0.0  ;;  %v2094_v22 = vmul.f32 %v2038_v20, %v1894_v34  ;;  %v1850_v23 = vadd.f32 %v3286_v21, %v1849_v24  ;;  %v2069_v24 = vsel %vm2051_vm3, %v2044_v62, 0.0 }
 0x233   : > { %v2058_v30 = vadd.f32 %v2057_v48, %v2056_v2  ;;  %v2122_v2 = vsel %vm2051_vm3, %v2099_v18, 0.0 }
 0x234   : > { %v2112_v32 = vsel %vm2051_vm3, %v2094_v22, 0.0  ;;  %v1887_v45 = vmul.f32 0.2, %v1850_v23  ;;  %vm1871_vm11 = vcmp.ge.f32.partialorder %v1850_v23, 0.0 }
 0x235   : > { %v2060_v55 = vadd.f32 %v2059_v27, %v2058_v30  ;;  %v2113_v36 = vadd.f32 %v2112_v32, %v2111_v29  ;;  %v2124_v27 = vsel %vm2051_vm3, %v2100_v52, 0.0 }
 0x236   : > { %v3338_v8 = vsel %vm1871_vm11, %v1850_v23, %v1887_v45 }
 0x237   : > { %v2115_v42 = vadd.f32 %v2114_v11, %v2113_v36  ;;  %v1919_v61 = vpack.c.bf16 %v3338_v8, %v3338_v8  ;;  %v2062_v44 = vadd.f32 %v2061_v39, %v2060_v55  ;;  %v2008_v55 = vpop.permute.xlu1 %2007  ;;  %v2013_v11 = vpop.permute.xlu2 %2012 }
 0x239   : > { %1935 = vst.msk [vmem:[%s3293_s14 + $0x30] sm:$0xf] %vm286_vm6, %v1919_v61  ;;  %v1851_v54 = vpop.f32.mrf.mxu3  ;;  %v2117_v49 = vadd.f32 %v2116_v47, %v2115_v42  ;;  %v2018_v61 = vpop.permute.xlu0 %2017 }
 0x23a   : > { %v1852_v50 = vadd.f32 %v3286_v21, %v1851_v54 }
 0x23c   : > { %v1888_v51 = vmul.f32 0.2, %v1852_v50  ;;  %vm1872_vm12 = vcmp.ge.f32.partialorder %v1852_v50, 0.0 }
 0x23e   : > { %v3346_v4 = vsel %vm1872_vm12, %v1852_v50, %v1888_v51  ;;  %v2047_v50 = vmul.f32 %v2018_v61, %v3338_v8 }
 0x23f   : > { %v1920_v53 = vpack.c.bf16 %v3346_v4, %v3346_v4 }
 0x240   : > { %v2103_v38 = vmul.f32 %v2047_v50, %v3338_v8  ;;  %v2075_v28 = vsel %vm2051_vm3, %v2047_v50, 0.0 }
 0x241   : > { %1936 = vst.msk [vmem:[%s3293_s14 + $0x34] sm:$0xf] %vm286_vm6, %v1920_v53  ;;  %v2033_v18 = vpop.permute.xlu0 %2032 }
 0x242   : > { %v1834_v40 = vpop.f32.mrf.mxu1  ;;  %v2130_v62 = vsel %vm2051_vm3, %v2103_v38, 0.0 }
 0x243   : > { %v1835_v6 = vadd.f32 %v3286_v21, %v1834_v40  ;;  %v2023_v40 = vpop.permute.xlu1 %2022 }
 0x245   : > { %vm1865_vm13 = vcmp.ge.f32.partialorder %v1835_v6, 0.0  ;;  %v1881_v10 = vmul.f32 0.2, %v1835_v6 }
 0x247   : > { %v1897_v58 = vsel %vm1865_vm13, %v1835_v6, %v1881_v10 }
 0x248   : > { %v1913_v60 = vpack.c.bf16 %v1897_v58, %v1897_v58  ;;  %v2041_v59 = vmul.f32 %v1988_v57, %v1897_v58 }
 0x24a   : > { %1929 = vst.msk [vmem:[%s3293_s14 + $0x18] sm:$0xf] %vm286_vm6, %v1913_v60  ;;  %v1836_v15 = vpop.f32.mrf.mxu1  ;;  %v2097_v1 = vmul.f32 %v2041_v59, %v1897_v58  ;;  %v2063_v56 = vsel %vm2051_vm3, %v2041_v59, 0.0  ;;  %v2028_v58 = vpop.permute.xlu2 %2027 }
 0x24b   : > { %v1837_v0 = vadd.f32 %v3286_v21, %v1836_v15  ;;  %v2064_v16 = vadd.f32 %v2063_v56, %v2062_v44 }
 0x24c   : > { %v2118_v13 = vsel %vm2051_vm3, %v2097_v1, 0.0 }
 0x24d   : > { %vm1866_vm14 = vcmp.ge.f32.partialorder %v1837_v0, 0.0  ;;  %v1882_v7 = vmul.f32 0.2, %v1837_v0  ;;  %v2119_v46 = vadd.f32 %v2118_v13, %v2117_v49 }
 0x24f   : > { %v1898_v12 = vsel %vm1866_vm14, %v1837_v0, %v1882_v7  ;;  %v2048_v0 = vmul.f32 %v2023_v40, %v3346_v4 }
 0x250   : > { %v1914_v9 = vpack.c.bf16 %v1898_v12, %v1898_v12  ;;  %v2042_v14 = vmul.f32 %v1993_v41, %v1898_v12 }
 0x251   : > { %v1844_v17 = vpop.f32.mrf.mxu2  ;;  %v2104_v13 = vmul.f32 %v2048_v0, %v3346_v4 }
 0x252   : > { %1930 = vst.msk [vmem:[%s3293_s14 + $0x1c] sm:$0xf] %vm286_vm6, %v1914_v9  ;;  %v2065_v19 = vsel %vm2051_vm3, %v2042_v14, 0.0  ;;  %v2098_v63 = vmul.f32 %v2042_v14, %v1898_v12  ;;  %v1845_v26 = vadd.f32 %v3286_v21, %v1844_v17 }
 0x253   : > { %v2066_v34 = vadd.f32 %v2065_v19, %v2064_v16  ;;  %v2077_v16 = vsel %vm2051_vm3, %v2048_v0, 0.0 }
 0x254   : > { %v2120_v5 = vsel %vm2051_vm3, %v2098_v63, 0.0  ;;  %vm1869_vm15 = vcmp.ge.f32.partialorder %v1845_v26, 0.0  ;;  %v1885_v37 = vmul.f32 0.2, %v1845_v26 }
 0x255   : > { %v2068_v20 = vadd.f32 %v2067_v35, %v2066_v34  ;;  %v2121_v33 = vadd.f32 %v2120_v5, %v2119_v46 }
 0x256   : > { %v1901_v43 = vsel %vm1869_vm15, %v1845_v26, %v1885_v37  ;;  %v2132_v26 = vsel %vm2051_vm3, %v2104_v13, 0.0 }
 0x257   : > { %v2123_v48 = vadd.f32 %v2122_v2, %v2121_v33  ;;  %v1917_v22 = vpack.c.bf16 %v1901_v43, %v1901_v43  ;;  %v2070_v23 = vadd.f32 %v2069_v24, %v2068_v20  ;;  %v2045_v36 = vmul.f32 %v2008_v55, %v1901_v43 }
 0x259   : > { %1933 = vst.msk [vmem:[%s3293_s14 + $0x28] sm:$0xf] %vm286_vm6, %v1917_v22  ;;  %v2125_v3 = vadd.f32 %v2124_v27, %v2123_v48  ;;  %v1846_v29 = vpop.f32.mrf.mxu2  ;;  %v2101_v42 = vmul.f32 %v2045_v36, %v1901_v43  ;;  %v2071_v44 = vsel %vm2051_vm3, %v2045_v36, 0.0 }
 0x25a   : > { %v1847_v30 = vadd.f32 %v3286_v21, %v1846_v29  ;;  %v2072_v57 = vadd.f32 %v2071_v44, %v2070_v23 }
 0x25b   : > { %v2126_v51 = vsel %vm2051_vm3, %v2101_v42, 0.0 }
 0x25c   : > { %vm1870_vm0 = vcmp.ge.f32.partialorder %v1847_v30, 0.0  ;;  %v1886_v31 = vmul.f32 0.2, %v1847_v30  ;;  %v2127_v60 = vadd.f32 %v2126_v51, %v2125_v3 }
 0x25e   : > { %v1902_v32 = vsel %vm1870_vm0, %v1847_v30, %v1886_v31 }
 0x25f   : > { %v1918_v45 = vpack.c.bf16 %v1902_v32, %v1902_v32  ;;  %v2046_v39 = vmul.f32 %v2013_v11, %v1902_v32 }
 0x261   : > { %1934 = vst.msk [vmem:[%s3293_s14 + $0x2c] sm:$0xf] %vm286_vm6, %v1918_v45  ;;  %v2102_v47 = vmul.f32 %v2046_v39, %v1902_v32  ;;  %v2073_v53 = vsel %vm2051_vm3, %v2046_v39, 0.0 }
 0x262   : > { %v2074_v59 = vadd.f32 %v2073_v53, %v2072_v57 }
 0x263   : > { %v2128_v10 = vsel %vm2051_vm3, %v2102_v47, 0.0 }
 0x264   : > { %v2129_v7 = vadd.f32 %v2128_v10, %v2127_v60  ;;  %v2076_v41 = vadd.f32 %v2075_v28, %v2074_v59 }
 0x266   : > { %v2131_v8 = vadd.f32 %v2130_v62, %v2129_v7  ;;  %v2078_v19 = vadd.f32 %v2077_v16, %v2076_v41 }
 0x268   : > { %v1854_v54 = vpop.f32.mrf.mxu3  ;;  %v2133_v4 = vadd.f32 %v2132_v26, %v2131_v8 }
 0x269   : > { %v1855_v49 = vadd.f32 %v3286_v21, %v1854_v54 }
 0x26b   : > { %vm1873_vm1 = vcmp.ge.f32.partialorder %v1855_v49, 0.0  ;;  %v1889_v6 = vmul.f32 0.2, %v1855_v49 }
 0x26d   : > { %v1905_v15 = vsel %vm1873_vm1, %v1855_v49, %v1889_v6 }
 0x26e   : > { %v1921_v1 = vpack.c.bf16 %v1905_v15, %v1905_v15  ;;  %v2049_v25 = vmul.f32 %v2028_v58, %v1905_v15 }
 0x270   : > { %1937 = vst.msk [vmem:[%s3293_s14 + $0x38] sm:$0xf] %vm286_vm6, %v1921_v1  ;;  %v1856_v56 = vpop.f32.mrf.mxu3  ;;  %v2105_v9 = vmul.f32 %v2049_v25, %v1905_v15  ;;  %v2079_v17 = vsel %vm2051_vm3, %v2049_v25, 0.0 }
 0x271   : > { %v1857_v12 = vadd.f32 %v3286_v21, %v1856_v56  ;;  %v2080_v34 = vadd.f32 %v2079_v17, %v2078_v19 }
 0x272   : > { %v2134_v21 = vsel %vm2051_vm3, %v2105_v9, 0.0 }
 0x273   : > { %vm1874_vm2 = vcmp.ge.f32.partialorder %v1857_v12, 0.0  ;;  %v1890_v14 = vmul.f32 0.2, %v1857_v12  ;;  %v2135_v37 = vadd.f32 %v2134_v21, %v2133_v4 }
 0x275   : > { %v1906_v63 = vsel %vm1874_vm2, %v1857_v12, %v1890_v14 }
 0x276   : > { %v1922_v35 = vpack.c.bf16 %v1906_v63, %v1906_v63  ;;  %v2050_v46 = vmul.f32 %v2033_v18, %v1906_v63 }
 0x278   : > { %1938 = vst.msk [vmem:[%s3293_s14 + $0x3c] sm:$0xf] %vm286_vm6, %v1922_v35  ;;  %v2081_v52 = vsel %vm2051_vm3, %v2050_v46, 0.0  ;;  %v2106_v5 = vmul.f32 %v2050_v46, %v1906_v63  ;;  %vm2089_vm6 = vcmask 57344  }
 0x279   : > { %v2082_v20 = vadd.f32 %v2081_v52, %v2080_v34 }
 0x27a   : > { %v2136_v33 = vsel %vm2051_vm3, %v2106_v5, 0.0 }
 0x27b   : > { %v2083_v2 = vrot.slane %v2082_v20, 4  ;;  %v2137_v24 = vadd.f32 %v2136_v33, %v2135_v37 }
 0x27d   : > { %v2084_v43 = vadd.f32 %v2083_v2, %v2082_v20  ;;  %v2138_v48 = vrot.slane %v2137_v24, 4 }
 0x27f   : > { %v2085_v22 = vrot.slane %v2084_v43, 2  ;;  %v2139_v23 = vadd.f32 %v2138_v48, %v2137_v24 }
 0x281   : > { %v2086_v27 = vadd.f32 %v2085_v22, %v2084_v43  ;;  %v2140_v3 = vrot.slane %v2139_v23, 2 }
 0x283   : > { %v2087_v29 = vrot.slane %v2086_v27, 1  ;;  %v2141_v30 = vadd.f32 %v2140_v3, %v2139_v23 }
 0x285   : > { %v2088_v31 = vadd.f32 %v2087_v29, %v2086_v27  ;;  %v2142_v32 = vrot.slane %v2141_v30, 1 }
 0x287   : > { %2090 = vst.msk [vmem:[%s265_s17] sm:$0x1] %vm2089_vm6, %v2088_v31  ;;  %v2143_v45 = vadd.f32 %v2142_v32, %v2141_v30 }
 0x289   : > { %2144 = vst.msk [vmem:[%s268_s20] sm:$0x1] %vm2089_vm6, %v2143_v45 }
 0x28a PF: > { %s17_s21 = sadd.s32 1, %s2375_s21  }
 0x28b   : > { %p14_p4 = scmp.ge.s32.totalorder %s17_s21, 4  }
 0x28d   :  { %16 = sbr.rel (!%p14_p4) target bundleno = 1 (0x1), region = 90 }

// kernel: _lambda_.9
= control target key start
LH: loop header
LB: loop body
LE: loop exit
PB: predicated region body
PF: predicated region fallthrough
CT: control target
= control target key end

     0   :  { %s5071_s12 = smov 0   ;;  %s7576_s0 = inlined_call_operand.vmem [shape: bf16[2,440,4], index: 0, kind: input, shape index: {}]   ;;  %s7577_s1 = inlined_call_operand.vmem [shape: bf16[36,8], index: 1, kind: input, shape index: {}]   ;;  %s7578_s2 = inlined_call_operand.vmem [shape: f32[1,8], index: 2, kind: input, shape index: {}]   ;;  %s7579_s3 = inlined_call_operand.vmem [shape: f32[2,384,8], index: 3, kind: output, shape index: {}]  }
   0x1 LB: > { %s4841_s13 = sadd.s32 4294967295, %s5041_s12   ;;  %p4845_p0 = scmp.ge.s32.totalorder %s5041_s12, 1  ;;  %s5041_s12 = sphi %s5071_s12, %s13_s12  }
   0x2   : > { %p137_p1 = scmp.lt.s32.totalorder %s5041_s12, 3 }
   0x4   : > { %p138_p2 = pnand %p4845_p0, %p137_p1 }
   0x5   : > { %p161_p3 = scmp.lt.s32.totalorder (!%p138_p2), %s4841_s13, 1  ;;  %s5043_s18 = smov (!%p138_p2), 4  }
   0x6   : > { %141 = sbr.rel (%p138_p2) target bundleno = 1302 (0x516), region = 32  ;;  %s5044_s19 = smov (!%p138_p2), 8  }
   0x7   : > { %s5045_s20 = smov (!%p138_p2), 12   ;;  %s5046_s21 = smov (!%p138_p2), 16  }
   0x8   : > { %s5047_s22 = smov (!%p138_p2), 20   ;;  %s5048_s23 = smov (!%p138_p2), 24  }
   0x9   : > { %s5049_s24 = smov (!%p138_p2), 28   ;;  %s5050_s25 = smov (!%p138_p2), 32  }
   0xb   : > { %s7585_s13 = smov (!%p161_p3, %s4841_s13), 1  ;;  %vm318_vm0 = vsmask.f32 3328  ;;  %vm319_vm1 = vsmask.f32 7440  ;;  %vm220_vm3 = vcmask 27648  }
   0xc   : > { %s5016_s14 = smul.u32 220, %s7585_s13  ;;  %vm5095_vm2 = vmor %vm318_vm0, %vm319_vm1  ;;  %vm949_vm4 = vcmask 60448   ;;  %vm1096_vm5 = vcmask 1042432   ;;  %vm1097_vm6 = vcmask 1046532   ;;  %vm1388_vm8 = vcmask 93248  }
   0xd   : > { %vm5350_vm7 = vmor %vm1096_vm5, %vm1097_vm6  ;;  %vm1677_vm9 = vcmask 126048   ;;  %vm2403_vm10 = vcmask 158848   ;;  %vm2839_vm11 = vcmask 191648   ;;  %vm3128_vm12 = vcmask 224448   ;;  %s5017_s5 = smul.u32 384, %s7585_s13 }
   0xe   : > { %s5085_s17 = scalar_lea.vmem %s7576_s0, %s5016_s14  ;;  %vm3854_vm13 = vcmask 257248   ;;  %vm4604_vm14 = vcmask 1041408   ;;  %vm4290_vm15 = vcmask 290048   ;;  %vm4531_vm0 = vcmask 293888  }
   0xf   : > { %v271_v0 = vld [vmem:[%s5085_s17 + $0x8] sm:$0xf]  ;;  %v272_v1 = vld [vmem:[%s5085_s17 + $0xc] sm:$0xf]  ;;  %v269_v2 = vld [vmem:[%s5085_s17] sm:$0xf]  ;;  %s7385_s10 = scalar_lea.vmem %s7579_s3, %s5017_s5 }
  0x10   : > { %v341_v3 = vshll.u32 %v271_v0, 16  ;;  %v345_v4 = vshrl.u32 %v271_v0, 16  ;;  %v351_v5 = vshll.u32 %v272_v1, 16  ;;  %v355_v6 = vshrl.u32 %v272_v1, 16  ;;  %v270_v7 = vld [vmem:[%s5085_s17 + $0x4] sm:$0xf] }
  0x11   : > { %v322_v8 = vshrl.u32 %v269_v2, 16  ;;  %v325_v9 = vshll.u32 %v269_v2, 16  ;;  %v331_v10 = vshll.u32 %v270_v7, 16  ;;  %v335_v11 = vshrl.u32 %v270_v7, 16  ;;  %v273_v12 = vld [vmem:[%s5085_s17 + $0x10] sm:$0xf] }
  0x12   : > { %v343_v13 = vrot.slane %v341_v3, 5  ;;  %v347_v14 = vrot.slane %v345_v4, 4  ;;  %v353_v15 = vrot.slane %v351_v5, 5  ;;  %v357_v16 = vrot.slane %v355_v6, 4  ;;  %v276_v17 = vld [vmem:[%s5085_s17 + $0x1c] sm:$0xf] }
  0x13   : > { %v324_v18 = vrot.slane %v322_v8, 4  ;;  %v327_v19 = vrot.slane %v325_v9, 5  ;;  %v337_v20 = vrot.slane %v335_v11, 4  ;;  %v361_v23 = vshll.u32 %v273_v12, 16  ;;  %v275_v29 = vld [vmem:[%s5085_s17 + $0x18] sm:$0xf] }
  0x14   : > { %v348_v21 = vor.u32 %v347_v14, %v343_v13  ;;  %v358_v22 = vor.u32 %v357_v16, %v353_v15  ;;  %v333_v26 = vrot.slane %v331_v10, 5  ;;  %v391_v27 = vshll.u32 %v276_v17, 16  ;;  %v274_v33 = vld [vmem:[%s5085_s17 + $0x14] sm:$0xf]  ;;  %v277_v42 = vld [vmem:[%s5085_s17 + $0x20] sm:$0xf] }
  0x15   : > { %v328_v25 = vor.u32 %v327_v19, %v324_v18  ;;  %v395_v28 = vshrl.u32 %v276_v17, 16  ;;  %v363_v36 = vrot.slane %v361_v23, 5  ;;  %v381_v37 = vshll.u32 %v275_v29, 16  ;;  %v279_v49 = vld [vmem:[%s5085_s17 + $0x28] sm:$0xf] }
  0x16   : > { %v349_v30 = vrot.slane %v348_v21, 4  ;;  %v338_v32 = vor.u32 %v337_v20, %v333_v26  ;;  %v359_v35 = vrot.slane %v358_v22, 4  ;;  %v393_v39 = vrot.slane %v391_v27, 5  ;;  %v278_v52 = vld [vmem:[%s5085_s17 + $0x24] sm:$0xf] }
  0x17   : > { %v329_v31 = vrot.slane %v328_v25, 4  ;;  %v397_v40 = vrot.slane %v395_v28, 4  ;;  %v385_v41 = vshrl.u32 %v275_v29, 16  ;;  %v365_v43 = vshrl.u32 %v273_v12, 16  ;;  %v280_v6 = vld [vmem:[%s5085_s17 + $0x2c] sm:$0xf] }
  0x18   : > { %v354_v34 = vsel %vm5095_vm2, %v349_v30, %v353_v15  ;;  %v371_v44 = vshll.u32 %v274_v33, 16  ;;  %v375_v45 = vshrl.u32 %v274_v33, 16  ;;  %v339_v46 = vrot.slane %v338_v32, 4  ;;  %v282_v12 = vld [vmem:[%s5085_s17 + $0x34] sm:$0xf] }
  0x19   : > { %809 = vrot.lane.b32.xlu1 %v354_v34, %s5043_s18  ;;  %v334_v38 = vsel %vm5095_vm2, %v329_v31, %v333_v26  ;;  %v383_v47 = vrot.slane %v381_v37, 5  ;;  %v387_v48 = vrot.slane %v385_v41, 4  ;;  %v367_v50 = vrot.slane %v365_v43, 4  ;;  %v281_v14 = vld [vmem:[%s5085_s17 + $0x30] sm:$0xf] }
  0x1a   : > { %805 = vrot.lane.b32.xlu0 %v334_v38, %s5043_s18  ;;  %v377_v51 = vrot.slane %v375_v45, 4  ;;  %v364_v53 = vsel %vm5095_vm2, %v359_v35, %v363_v36  ;;  %v398_v54 = vor.u32 %v397_v40, %v393_v39  ;;  %v401_v55 = vshll.u32 %v277_v42, 16  ;;  %v283_v31 = vld [vmem:[%s5085_s17 + $0x38] sm:$0xf]  ;;  %v285_v37 = vld [vmem:[%s5085_s17 + $0x40] sm:$0xf] }
  0x1b   : > { %v368_v56 = vor.u32 %v367_v50, %v363_v36  ;;  %v373_v57 = vrot.slane %v371_v44, 5  ;;  %v421_v58 = vshll.u32 %v279_v49, 16  ;;  %v425_v59 = vshrl.u32 %v279_v49, 16 }
  0x1c   : > { %v344_v60 = vsel %vm5095_vm2, %v339_v46, %v343_v13  ;;  %v388_v61 = vor.u32 %v387_v48, %v383_v47  ;;  %v411_v62 = vshll.u32 %v278_v52, 16  ;;  %v415_v63 = vshrl.u32 %v278_v52, 16 }
  0x1d   : > { %v369_v0 = vrot.slane %v368_v56, 4  ;;  %v378_v1 = vor.u32 %v377_v51, %v373_v57  ;;  %v403_v2 = vrot.slane %v401_v55, 5  ;;  %v405_v3 = vshrl.u32 %v277_v42, 16  ;;  %v286_v55 = vld [vmem:[%s5085_s17 + $0x44] sm:$0xf] }
  0x1e   : > { %v399_v4 = vrot.slane %v398_v54, 4  ;;  %v423_v7 = vrot.slane %v421_v58, 5  ;;  %v427_v8 = vrot.slane %v425_v59, 4  ;;  %v389_v9 = vrot.slane %v388_v61, 4  ;;  %v288_v61 = vld [vmem:[%s5085_s17 + $0x4c] sm:$0xf] }
  0x1f   : > { %v374_v5 = vsel %vm5095_vm2, %v369_v0, %v373_v57  ;;  %v413_v10 = vrot.slane %v411_v62, 5  ;;  %v417_v11 = vrot.slane %v415_v63, 4  ;;  %v379_v13 = vrot.slane %v378_v1, 4  ;;  %v287_v63 = vld [vmem:[%s5085_s17 + $0x48] sm:$0xf] }
  0x20   : > { %813 = vrot.lane.b32.xlu2 %v374_v5, %s5043_s18  ;;  %v431_v15 = vshll.u32 %v280_v6, 16  ;;  %v407_v16 = vrot.slane %v405_v3, 4  ;;  %v404_v17 = vsel %vm5095_vm2, %v399_v4, %v403_v2  ;;  %v428_v18 = vor.u32 %v427_v8, %v423_v7 }
  0x21   : > { %811 = vrot.lane.b32.xlu1 %v364_v53, %s5043_s18  ;;  %v451_v19 = vshll.u32 %v282_v12, 16  ;;  %v455_v20 = vshrl.u32 %v282_v12, 16  ;;  %v394_v21 = vsel %vm5095_vm2, %v389_v9, %v393_v39  ;;  %v418_v22 = vor.u32 %v417_v11, %v413_v10  ;;  %v284_v39 = vld [vmem:[%s5085_s17 + $0x3c] sm:$0xf] }
  0x22   : > { %807 = vrot.lane.b32.xlu0 %v344_v60, %s5043_s18  ;;  %v441_v23 = vshll.u32 %v281_v14, 16  ;;  %v445_v25 = vshrl.u32 %v281_v14, 16  ;;  %v435_v26 = vshrl.u32 %v280_v6, 16  ;;  %v384_v27 = vsel %vm5095_vm2, %v379_v13, %v383_v47 }
  0x23   : > { %v408_v28 = vor.u32 %v407_v16, %v403_v2  ;;  %v429_v29 = vrot.slane %v428_v18, 4  ;;  %v433_v30 = vrot.slane %v431_v15, 5  ;;  %v453_v32 = vrot.slane %v451_v19, 5  ;;  %v289_v19 = vld [vmem:[%s5085_s17 + $0x50] sm:$0xf] }
  0x24   : > { %v457_v33 = vrot.slane %v455_v20, 4  ;;  %v419_v34 = vrot.slane %v418_v22, 4  ;;  %v443_v35 = vrot.slane %v441_v23, 5  ;;  %v447_v36 = vrot.slane %v445_v25, 4  ;;  %v290_v23 = vld [vmem:[%s5085_s17 + $0x54] sm:$0xf] }
  0x25   : > { %v409_v38 = vrot.slane %v408_v28, 4  ;;  %v437_v40 = vrot.slane %v435_v26, 4  ;;  %v461_v41 = vshll.u32 %v283_v31, 16  ;;  %v434_v42 = vsel %vm5095_vm2, %v429_v29, %v433_v30 }
  0x26   : > { %v458_v43 = vor.u32 %v457_v33, %v453_v32  ;;  %v481_v44 = vshll.u32 %v285_v37, 16  ;;  %v485_v45 = vshrl.u32 %v285_v37, 16  ;;  %v424_v46 = vsel %vm5095_vm2, %v419_v34, %v423_v7 }
  0x27   : > { %v448_v47 = vor.u32 %v447_v36, %v443_v35  ;;  %v471_v48 = vshll.u32 %v284_v39, 16  ;;  %v475_v49 = vshrl.u32 %v284_v39, 16  ;;  %v465_v50 = vshrl.u32 %v283_v31, 16 }
  0x28   : > { %815 = vrot.lane.b32.xlu2 %v384_v27, %s5043_s18  ;;  %v414_v51 = vsel %vm5095_vm2, %v409_v38, %v413_v10  ;;  %v438_v52 = vor.u32 %v437_v40, %v433_v30  ;;  %v459_v53 = vrot.slane %v458_v43, 4  ;;  %v463_v54 = vrot.slane %v461_v41, 5  ;;  %v294_v43 = vld [vmem:[%s5085_s17 + $0x64] sm:$0xf] }
  0x29   : > { %819 = vrot.lane.b32.xlu1 %v404_v17, %s5043_s18  ;;  %v483_v56 = vrot.slane %v481_v44, 5  ;;  %v487_v57 = vrot.slane %v485_v45, 4  ;;  %v449_v58 = vrot.slane %v448_v47, 4  ;;  %v473_v59 = vrot.slane %v471_v48, 5  ;;  %v291_v17 = vld [vmem:[%s5085_s17 + $0x58] sm:$0xf] }
  0x2a   : > { %817 = vrot.lane.b32.xlu0 %v394_v21, %s5043_s18  ;;  %v477_v60 = vrot.slane %v475_v49, 4  ;;  %v439_v62 = vrot.slane %v438_v52, 4  ;;  %v467_v0 = vrot.slane %v465_v50, 4  ;;  %v491_v1 = vshll.u32 %v286_v55, 16  ;;  %v293_v48 = vld [vmem:[%s5085_s17 + $0x60] sm:$0xf] }
  0x2b   : > { %v464_v2 = vsel %vm5095_vm2, %v459_v53, %v463_v54  ;;  %v488_v3 = vor.u32 %v487_v57, %v483_v56  ;;  %v511_v4 = vshll.u32 %v288_v61, 16  ;;  %v515_v5 = vshrl.u32 %v288_v61, 16 }
  0x2c   : > { %v454_v6 = vsel %vm5095_vm2, %v449_v58, %v453_v32  ;;  %v478_v7 = vor.u32 %v477_v60, %v473_v59  ;;  %v501_v8 = vshll.u32 %v287_v63, 16  ;;  %v505_v9 = vshrl.u32 %v287_v63, 16 }
  0x2d   : > { %v495_v10 = vshrl.u32 %v286_v55, 16  ;;  %v444_v11 = vsel %vm5095_vm2, %v439_v62, %v443_v35  ;;  %v468_v12 = vor.u32 %v467_v0, %v463_v54  ;;  %v489_v13 = vrot.slane %v488_v3, 4  ;;  %v297_v3 = vld [vmem:[%s5085_s17 + $0x70] sm:$0xf] }
  0x2e   : > { %v493_v14 = vrot.slane %v491_v1, 5  ;;  %v513_v15 = vrot.slane %v511_v4, 5  ;;  %v517_v16 = vrot.slane %v515_v5, 4  ;;  %v479_v18 = vrot.slane %v478_v7, 4  ;;  %v296_v7 = vld [vmem:[%s5085_s17 + $0x6c] sm:$0xf] }
  0x2f   : > { %v503_v20 = vrot.slane %v501_v8, 5  ;;  %v507_v21 = vrot.slane %v505_v9, 4  ;;  %v469_v22 = vrot.slane %v468_v12, 4  ;;  %v497_v25 = vrot.slane %v495_v10, 4 }
  0x30   : > { %821 = vrot.lane.b32.xlu2 %v414_v51, %s5043_s18  ;;  %v541_v26 = vshll.u32 %v291_v17, 16  ;;  %v545_v27 = vshrl.u32 %v291_v17, 16  ;;  %v494_v28 = vsel %vm5095_vm2, %v489_v13, %v493_v14  ;;  %v518_v29 = vor.u32 %v517_v16, %v513_v15 }
  0x31   : > { %825 = vrot.lane.b32.xlu1 %v434_v42, %s5043_s18  ;;  %v521_v30 = vshll.u32 %v289_v19, 16  ;;  %v484_v31 = vsel %vm5095_vm2, %v479_v18, %v483_v56  ;;  %v508_v32 = vor.u32 %v507_v21, %v503_v20  ;;  %v531_v33 = vshll.u32 %v290_v23, 16  ;;  %v292_v42 = vld [vmem:[%s5085_s17 + $0x5c] sm:$0xf] }
  0x32   : > { %823 = vrot.lane.b32.xlu0 %v424_v46, %s5043_s18  ;;  %v535_v34 = vshrl.u32 %v290_v23, 16  ;;  %v525_v35 = vshrl.u32 %v289_v19, 16  ;;  %v474_v36 = vsel %vm5095_vm2, %v469_v22, %v473_v59  ;;  %v498_v37 = vor.u32 %v497_v25, %v493_v14  ;;  %v298_v25 = vld [vmem:[%s5085_s17 + $0x74] sm:$0xf] }
  0x33   : > { %v543_v38 = vrot.slane %v541_v26, 5  ;;  %v547_v39 = vrot.slane %v545_v27, 4  ;;  %v519_v40 = vrot.slane %v518_v29, 4  ;;  %v523_v41 = vrot.slane %v521_v30, 5 }
  0x34   : > { %v509_v44 = vrot.slane %v508_v32, 4  ;;  %v533_v45 = vrot.slane %v531_v33, 5  ;;  %v537_v46 = vrot.slane %v535_v34, 4  ;;  %v499_v47 = vrot.slane %v498_v37, 4  ;;  %v299_v33 = vld [vmem:[%s5085_s17 + $0x78] sm:$0xf] }
  0x35   : > { %v527_v49 = vrot.slane %v525_v35, 4  ;;  %v548_v50 = vor.u32 %v547_v39, %v543_v38  ;;  %v551_v51 = vshll.u32 %v292_v42, 16  ;;  %v571_v52 = vshll.u32 %v294_v43, 16 }
  0x36   : > { %v575_v53 = vshrl.u32 %v294_v43, 16  ;;  %v524_v54 = vsel %vm5095_vm2, %v519_v40, %v523_v41  ;;  %v514_v55 = vsel %vm5095_vm2, %v509_v44, %v513_v15  ;;  %v538_v56 = vor.u32 %v537_v46, %v533_v45 }
  0x37   : > { %v561_v57 = vshll.u32 %v293_v48, 16  ;;  %v565_v58 = vshrl.u32 %v293_v48, 16  ;;  %v555_v59 = vshrl.u32 %v292_v42, 16  ;;  %v504_v60 = vsel %vm5095_vm2, %v499_v47, %v503_v20  ;;  %v303_v47 = vld [vmem:[%s5085_s17 + $0x88] sm:$0xf] }
  0x38   : > { %827 = vrot.lane.b32.xlu2 %v444_v11, %s5043_s18  ;;  %v528_v61 = vor.u32 %v527_v49, %v523_v41  ;;  %v549_v62 = vrot.slane %v548_v50, 4  ;;  %v553_v63 = vrot.slane %v551_v51, 5  ;;  %v573_v0 = vrot.slane %v571_v52, 5  ;;  %v302_v49 = vld [vmem:[%s5085_s17 + $0x84] sm:$0xf] }
  0x39   : > { %831 = vrot.lane.b32.xlu1 %v464_v2, %s5043_s18  ;;  %v577_v1 = vrot.slane %v575_v53, 4  ;;  %v295_v2 = vld [vmem:[%s5085_s17 + $0x68] sm:$0xf]  ;;  %v539_v4 = vrot.slane %v538_v56, 4  ;;  %v563_v5 = vrot.slane %v561_v57, 5  ;;  %v557_v9 = vrot.slane %v555_v59, 4 }
  0x3a   : > { %829 = vrot.lane.b32.xlu0 %v454_v6, %s5043_s18  ;;  %v567_v6 = vrot.slane %v565_v58, 4  ;;  %v529_v8 = vrot.slane %v528_v61, 4  ;;  %v554_v10 = vsel %vm5095_vm2, %v549_v62, %v553_v63  ;;  %v581_v12 = vshll.u32 %v295_v2, 16 }
  0x3b   : > { %v578_v11 = vor.u32 %v577_v1, %v573_v0  ;;  %v601_v13 = vshll.u32 %v297_v3, 16  ;;  %v605_v14 = vshrl.u32 %v297_v3, 16  ;;  %v591_v15 = vshll.u32 %v296_v7, 16 }
  0x3c   : > { %v595_v16 = vshrl.u32 %v296_v7, 16  ;;  %v544_v17 = vsel %vm5095_vm2, %v539_v4, %v543_v38  ;;  %v568_v18 = vor.u32 %v567_v6, %v563_v5  ;;  %v585_v19 = vshrl.u32 %v295_v2, 16 }
  0x3d   : > { %v534_v20 = vsel %vm5095_vm2, %v529_v8, %v533_v45  ;;  %v558_v21 = vor.u32 %v557_v9, %v553_v63  ;;  %v579_v22 = vrot.slane %v578_v11, 4  ;;  %v583_v23 = vrot.slane %v581_v12, 5  ;;  %v304_v8 = vld [vmem:[%s5085_s17 + $0x8c] sm:$0xf] }
  0x3e   : > { %v603_v26 = vrot.slane %v601_v13, 5  ;;  %v607_v27 = vrot.slane %v605_v14, 4  ;;  %v597_v29 = vrot.slane %v595_v16, 4  ;;  %v569_v30 = vrot.slane %v568_v18, 4  ;;  %v306_v14 = vld [vmem:[%s5085_s17 + $0x94] sm:$0xf] }
  0x3f   : > { %v559_v32 = vrot.slane %v558_v21, 4  ;;  %v587_v34 = vrot.slane %v585_v19, 4  ;;  %v584_v35 = vsel %vm5095_vm2, %v579_v22, %v583_v23  ;;  %v621_v42 = vshll.u32 %v299_v33, 16 }
  0x40   : > { %833 = vrot.lane.b32.xlu2 %v474_v36, %s5043_s18  ;;  %v611_v36 = vshll.u32 %v298_v25, 16  ;;  %v608_v37 = vor.u32 %v607_v27, %v603_v26  ;;  %v574_v41 = vsel %vm5095_vm2, %v569_v30, %v573_v0  ;;  %v625_v43 = vshrl.u32 %v299_v33, 16 }
  0x41   : > { %837 = vrot.lane.b32.xlu1 %v494_v28, %s5043_s18  ;;  %v593_v28 = vrot.slane %v591_v15, 5  ;;  %v615_v44 = vshrl.u32 %v298_v25, 16  ;;  %v564_v45 = vsel %vm5095_vm2, %v559_v32, %v563_v5  ;;  %v588_v46 = vor.u32 %v587_v34, %v583_v23  ;;  %v305_v15 = vld [vmem:[%s5085_s17 + $0x90] sm:$0xf] }
  0x42   : > { %835 = vrot.lane.b32.xlu0 %v484_v31, %s5043_s18  ;;  %v300_v31 = vld [vmem:[%s5085_s17 + $0x7c] sm:$0xf]  ;;  %v613_v48 = vrot.slane %v611_v36, 5  ;;  %v609_v50 = vrot.slane %v608_v37, 4  ;;  %v627_v56 = vrot.slane %v625_v43, 4  ;;  %v661_v57 = vshll.u32 %v303_v47, 16 }
  0x43   : > { %v598_v38 = vor.u32 %v597_v29, %v593_v28  ;;  %v631_v39 = vshll.u32 %v300_v31, 16  ;;  %v635_v40 = vshrl.u32 %v300_v31, 16  ;;  %v665_v58 = vshrl.u32 %v303_v47, 16  ;;  %v307_v31 = vld [vmem:[%s5085_s17 + $0x98] sm:$0xf] }
  0x44   : > { %v589_v59 = vrot.slane %v588_v46, 4  ;;  %v655_v61 = vshrl.u32 %v302_v49, 16  ;;  %v617_v62 = vrot.slane %v615_v44, 4  ;;  %v614_v63 = vsel %vm5095_vm2, %v609_v50, %v613_v48  ;;  %v176_v43 = vld [vmem:[%s5085_s17 + $0x10] sm:$0xf] }
  0x45   : > { %v599_v51 = vrot.slane %v598_v38, 4  ;;  %v633_v52 = vrot.slane %v631_v39, 5  ;;  %v637_v53 = vrot.slane %v635_v40, 4  ;;  %v5210_v5 = vrot.slane %v661_v57, 5  ;;  %v309_v40 = vld [vmem:[%s5085_s17 + $0xa0] sm:$0xf] }
  0x46   : > { %v667_v6 = vrot.slane %v665_v58, 4  ;;  %v594_v7 = vsel %vm5095_vm2, %v589_v59, %v593_v28  ;;  %v618_v11 = vor.u32 %v617_v62, %v613_v48  ;;  %v691_v22 = vshll.u32 %v306_v14, 16  ;;  %225 = vst.msk [vmem:[#allocation2 + $0x10] sm:$0xf] %vm220_vm3, %v176_v43  ;;  %v174_v44 = vld [vmem:[%s5085_s17 + $0x8] sm:$0xf] }
  0x47   : > { %v638_v0 = vor.u32 %v637_v53, %v633_v52  ;;  %v604_v3 = vsel %vm5095_vm2, %v599_v51, %v603_v26  ;;  %v695_v23 = vshrl.u32 %v306_v14, 16  ;;  %v681_v25 = vshll.u32 %v305_v15, 16  ;;  %223 = vst.msk [vmem:[#allocation2 + $0x8] sm:$0xf] %vm220_vm3, %v174_v44 }
  0x48   : > { %839 = vrot.lane.b32.xlu2 %v504_v60, %s5043_s18  ;;  %v651_v60 = vshll.u32 %v302_v49, 16  ;;  %v668_v18 = vor.u32 %v667_v6, %v5210_v5  ;;  %v685_v26 = vshrl.u32 %v305_v15, 16  ;;  %v675_v30 = vshrl.u32 %v304_v8, 16  ;;  %v175_v6 = vld [vmem:[%s5085_s17 + $0xc] sm:$0xf] }
  0x49   : > { %843 = vrot.lane.b32.xlu1 %v524_v54, %s5043_s18  ;;  %v301_v54 = vld [vmem:[%s5085_s17 + $0x80] sm:$0xf]  ;;  %v639_v12 = vrot.slane %v638_v0, 4  ;;  %v5232_v36 = vrot.slane %v691_v22, 5  ;;  %v697_v37 = vrot.slane %v695_v23, 4  ;;  %v5234_v38 = vrot.slane %v681_v25, 5 }
  0x4a   : > { %841 = vrot.lane.b32.xlu0 %v514_v55, %s5043_s18  ;;  %v623_v55 = vrot.slane %v621_v42, 5  ;;  %v641_v1 = vshll.u32 %v301_v54, 16  ;;  %v645_v2 = vshrl.u32 %v301_v54, 16  ;;  %v5215_v9 = vrot.slane %v651_v60, 5  ;;  %v308_v42 = vld [vmem:[%s5085_s17 + $0x9c] sm:$0xf] }
  0x4b   : > { %v669_v32 = vrot.slane %v668_v18, 4  ;;  %v687_v39 = vrot.slane %v685_v26, 4  ;;  %v721_v47 = vshll.u32 %v309_v40, 16  ;;  %v725_v48 = vshrl.u32 %v309_v40, 16  ;;  %v310_v0 = vld [vmem:[%s5085_s17 + $0xa4] sm:$0xf] }
  0x4c   : > { %v628_v4 = vor.u32 %v627_v56, %v623_v55  ;;  %v643_v13 = vrot.slane %v641_v1, 5  ;;  %v647_v21 = vrot.slane %v645_v2, 4  ;;  %v677_v49 = vrot.slane %v675_v30, 4  ;;  %224 = vst.msk [vmem:[#allocation2 + $0xc] sm:$0xf] %vm220_vm3, %v175_v6 }
  0x4d   : > { %v698_v50 = vor.u32 %v697_v37, %v5232_v36  ;;  %v688_v51 = vor.u32 %v687_v39, %v5234_v38  ;;  %v715_v53 = vshrl.u32 %v308_v42, 16  ;;  %v705_v57 = vshrl.u32 %v307_v31, 16  ;;  %v313_v23 = vld [vmem:[%s5085_s17 + $0xb0] sm:$0xf]  ;;  %v315_v30 = vld [vmem:[%s5085_s17 + $0xb8] sm:$0xf] }
  0x4e   : > { %v629_v16 = vrot.slane %v628_v4, 4  ;;  %v644_v27 = vsel %vm5095_vm2, %v639_v12, %v643_v13  ;;  %v5256_v59 = vrot.slane %v721_v47, 5  ;;  %v727_v60 = vrot.slane %v725_v48, 4  ;;  %v311_v4 = vld [vmem:[%s5085_s17 + $0xa8] sm:$0xf] }
  0x4f   : > { %v699_v62 = vrot.slane %v698_v50, 4  ;;  %v717_v2 = vrot.slane %v715_v53, 4  ;;  %v741_v14 = vshll.u32 %v311_v4, 16  ;;  %v745_v15 = vshrl.u32 %v311_v4, 16 }
  0x50   : > { %845 = vrot.lane.b32.xlu2 %v534_v20, %s5043_s18  ;;  %v619_v20 = vrot.slane %v618_v11, 4  ;;  %v634_v28 = vsel %vm5095_vm2, %v629_v16, %v633_v52  ;;  %v711_v52 = vshll.u32 %v308_v42, 16  ;;  %v707_v11 = vrot.slane %v705_v57, 4 }
  0x51   : > { %849 = vrot.lane.b32.xlu1 %v554_v10, %s5043_s18  ;;  %v657_v10 = vrot.slane %v655_v61, 4  ;;  %v761_v40 = vshll.u32 %v313_v23, 16  ;;  %v781_v43 = vshll.u32 %v315_v30, 16  ;;  %v785_v44 = vshrl.u32 %v315_v30, 16 }
  0x52   : > { %847 = vrot.lane.b32.xlu0 %v544_v17, %s5043_s18  ;;  %v671_v17 = vshll.u32 %v304_v8, 16  ;;  %v624_v34 = vsel %vm5095_vm2, %v619_v20, %v623_v55  ;;  %v5260_v1 = vrot.slane %v711_v52, 5  ;;  %v728_v8 = vor.u32 %v727_v60, %v5256_v59  ;;  %v182_v60 = vld [vmem:[%s5085_s17 + $0x28] sm:$0xf] }
  0x53   : > { %v658_v19 = vor.u32 %v657_v10, %v5215_v9  ;;  %v765_v48 = vshrl.u32 %v313_v23, 16  ;;  %v763_v52 = vrot.slane %v761_v40, 5  ;;  %231 = vst.msk [vmem:[#allocation2 + $0x28] sm:$0xf] %vm220_vm3, %v182_v60  ;;  %v1000_v23 = vld [vmem:[%s5085_s17 + $0x8] sm:$0xf] }
  0x54   : > { %v673_v29 = vrot.slane %v671_v17, 5  ;;  %v718_v17 = vor.u32 %v717_v2, %v5260_v1  ;;  %v729_v20 = vrot.slane %v728_v8, 4  ;;  %v191_v60 = vld [vmem:[%s5085_s17 + $0x4c] sm:$0xf]  ;;  %vm4737_vm1 = vcmask 64512  }
  0x55   : > { %v659_v33 = vrot.slane %v658_v19, 4  ;;  %v735_v19 = vshrl.u32 %v310_v0, 16  ;;  %240 = vst.msk [vmem:[#allocation2 + $0x4c] sm:$0xf] %vm220_vm3, %v191_v60 }
  0x56   : > { %v674_v54 = vsel %vm5095_vm2, %v669_v32, %v673_v29  ;;  %v678_v61 = vor.u32 %v677_v49, %v673_v29  ;;  %v747_v29 = vrot.slane %v745_v15, 4  ;;  %v314_v32 = vld [vmem:[%s5085_s17 + $0xb4] sm:$0xf] }
  0x57   : > { %v664_v55 = vsel %vm5095_vm2, %v659_v33, %v5210_v5  ;;  %v177_v5 = vld [vmem:[%s5085_s17 + $0x14] sm:$0xf]  ;;  %v180_v33 = vld [vmem:[%s5085_s17 + $0x20] sm:$0xf]  ;;  %v737_v37 = vrot.slane %v735_v19, 4 }
  0x58   : > { %851 = vrot.lane.b32.xlu2 %v564_v45, %s5043_s18  ;;  %v172_v45 = vld [vmem:[%s5085_s17] sm:$0xf]  ;;  %226 = vst.msk [vmem:[#allocation2 + $0x14] sm:$0xf] %vm220_vm3, %v177_v5  ;;  %v679_v10 = vrot.slane %v678_v61, 4 }
  0x59   : > { %855 = vrot.lane.b32.xlu1 %v584_v35, %s5043_s18  ;;  %v648_v35 = vor.u32 %v647_v21, %v643_v13  ;;  %221 = vst.msk [vmem:[#allocation2] sm:$0xf] %vm220_vm3, %v172_v45  ;;  %v771_v45 = vshll.u32 %v314_v32, 16  ;;  %v181_v61 = vld [vmem:[%s5085_s17 + $0x24] sm:$0xf] }
  0x5a   : > { %853 = vrot.lane.b32.xlu0 %v574_v41, %s5043_s18  ;;  %v701_v41 = vshll.u32 %v307_v31, 16  ;;  %v684_v22 = vsel %vm5095_vm2, %v679_v10, %v5234_v38  ;;  %v719_v31 = vrot.slane %v718_v17, 4  ;;  %229 = vst.msk [vmem:[#allocation2 + $0x20] sm:$0xf] %vm220_vm3, %v180_v33 }
  0x5b   : > { %v649_v46 = vrot.slane %v648_v35, 4  ;;  %v178_v35 = vld [vmem:[%s5085_s17 + $0x18] sm:$0xf]  ;;  %v773_v57 = vrot.slane %v771_v45, 5  ;;  %230 = vst.msk [vmem:[#allocation2 + $0x24] sm:$0xf] %vm220_vm3, %v181_v61 }
  0x5c   : > { %v703_v56 = vrot.slane %v701_v41, 5  ;;  %227 = vst.msk [vmem:[#allocation2 + $0x18] sm:$0xf] %vm220_vm3, %v178_v35  ;;  %v724_v47 = vsel %vm5095_vm2, %v719_v31, %v5256_v59  ;;  %v183_v59 = vld [vmem:[%s5085_s17 + $0x2c] sm:$0xf] }
  0x5d   : > { %v654_v58 = vsel %vm5095_vm2, %v649_v46, %v5215_v9  ;;  %v731_v9 = vshll.u32 %v310_v0, 16  ;;  %v775_v46 = vshrl.u32 %v314_v32, 16  ;;  %232 = vst.msk [vmem:[#allocation2 + $0x2c] sm:$0xf] %vm220_vm3, %v183_v59  ;;  %v1104_v32 = vrot.slane %v1000_v23, 5 }
  0x5e   : > { %v704_v16 = vsel %vm5095_vm2, %v699_v62, %v703_v56  ;;  %v708_v25 = vor.u32 %v707_v11, %v703_v56  ;;  %v787_v56 = vrot.slane %v785_v44, 4  ;;  %v186_v11 = vld [vmem:[%s5085_s17 + $0x38] sm:$0xf]  ;;  %v187_v44 = vld [vmem:[%s5085_s17 + $0x3c] sm:$0xf] }
  0x5f   : > { %v733_v21 = vrot.slane %v731_v9, 5  ;;  %235 = vst.msk [vmem:[#allocation2 + $0x38] sm:$0xf] %vm220_vm3, %v186_v11  ;;  %v1106_v59 = vrot.slane %v1104_v32, 4  ;;  %v1007_v11 = vld [vmem:[%s5085_s17 + $0x24] sm:$0xf] }
  0x60   : > { %857 = vrot.lane.b32.xlu2 %v594_v7, %s5043_s18  ;;  %v173_v7 = vld [vmem:[%s5085_s17 + $0x4] sm:$0xf]  ;;  %236 = vst.msk [vmem:[#allocation2 + $0x3c] sm:$0xf] %vm220_vm3, %v187_v44 }
  0x61   : > { %861 = vrot.lane.b32.xlu1 %v614_v63, %s5043_s18  ;;  %v689_v63 = vrot.slane %v688_v51, 4  ;;  %222 = vst.msk [vmem:[#allocation2 + $0x4] sm:$0xf] %vm220_vm3, %v173_v7  ;;  %v734_v38 = vsel %vm5095_vm2, %v729_v20, %v733_v21  ;;  %v738_v50 = vor.u32 %v737_v37, %v733_v21  ;;  %v317_v20 = vld [vmem:[%s5085_s17 + $0xc0] sm:$0x1] }
  0x62   : > { %859 = vrot.lane.b32.xlu0 %v604_v3, %s5043_s18  ;;  %v312_v3 = vld [vmem:[%s5085_s17 + $0xac] sm:$0xf]  ;;  %v184_v21 = vld [vmem:[%s5085_s17 + $0x30] sm:$0xf]  ;;  %v801_v30 = vshll.u32 %v317_v20, 16 }
  0x63   : > { %v751_v12 = vshll.u32 %v312_v3, 16  ;;  %v755_v13 = vshrl.u32 %v312_v3, 16  ;;  %v694_v18 = vsel %vm5095_vm2, %v689_v63, %v5232_v36  ;;  %v709_v36 = vrot.slane %v708_v25, 4  ;;  %233 = vst.msk [vmem:[#allocation2 + $0x30] sm:$0xf] %vm220_vm3, %v184_v21 }
  0x64   : > { %v739_v62 = vrot.slane %v738_v50, 4  ;;  %v767_v63 = vrot.slane %v765_v48, 4  ;;  %v1002_v37 = vld [vmem:[%s5085_s17 + $0x10] sm:$0xf]  ;;  %v1009_v21 = vld [vmem:[%s5085_s17 + $0x2c] sm:$0xf] }
  0x65   : > { %v753_v26 = vrot.slane %v751_v12, 5  ;;  %v714_v49 = vsel %vm5095_vm2, %v709_v36, %v5260_v1 }
  0x66   : > { %v768_v8 = vor.u32 %v767_v63, %v763_v52 }
  0x68   : > { %863 = vrot.lane.b32.xlu2 %v624_v34, %s5043_s18  ;;  %v179_v34 = vld [vmem:[%s5085_s17 + $0x1c] sm:$0xf] }
  0x69   : > { %867 = vrot.lane.b32.xlu1 %v644_v27, %s5043_s18  ;;  %v757_v27 = vrot.slane %v755_v13, 4  ;;  %228 = vst.msk [vmem:[#allocation2 + $0x1c] sm:$0xf] %vm220_vm3, %v179_v34  ;;  %v189_v34 = vld [vmem:[%s5085_s17 + $0x44] sm:$0xf] }
  0x6a   : > { %865 = vrot.lane.b32.xlu0 %v634_v28, %s5043_s18  ;;  %v5284_v28 = vrot.slane %v741_v14, 5  ;;  %v999_v14 = vld [vmem:[%s5085_s17 + $0x4] sm:$0xf]  ;;  %238 = vst.msk [vmem:[#allocation2 + $0x44] sm:$0xf] %vm220_vm3, %v189_v34 }
  0x6b   : > { %v758_v39 = vor.u32 %v757_v27, %v753_v26  ;;  %v1101_v25 = vrot.slane %v999_v14, 5  ;;  %v998_v27 = vld [vmem:[%s5085_s17] sm:$0xe]  ;;  %v194_v14 = vld [vmem:[%s5085_s17 + $0x58] sm:$0xf] }
  0x6c   : > { %v748_v41 = vor.u32 %v747_v29, %v5284_v28  ;;  %v744_v7 = vsel %vm5095_vm2, %v739_v62, %v5284_v28  ;;  %v4848_v33 = vrot.slane %v998_v27, 9  ;;  %v190_v62 = vld [vmem:[%s5085_s17 + $0x48] sm:$0xf]  ;;  %243 = vst.msk [vmem:[#allocation2 + $0x58] sm:$0xf] %vm220_vm3, %v194_v14 }
  0x6d   : > { %v759_v51 = vrot.slane %v758_v39, 4  ;;  %v1103_v31 = vrot.slane %v1101_v25, 4  ;;  %239 = vst.msk [vmem:[#allocation2 + $0x48] sm:$0xf] %vm220_vm3, %v190_v62  ;;  %v198_v27 = vld [vmem:[%s5085_s17 + $0x68] sm:$0xf] }
  0x6e   : > { %v749_v53 = vrot.slane %v748_v41, 4  ;;  %v803_v41 = vrot.slane %v801_v30, 5  ;;  %v1102_v48 = vsel %vm5350_vm7, %v4848_v33, %v1101_v25  ;;  %v1131_v25 = vrot.slane %v1009_v21, 5  ;;  %v1010_v30 = vld [vmem:[%s5085_s17 + $0x30] sm:$0xf] }
  0x6f   : > { %v764_v1 = vsel %vm5095_vm2, %v759_v51, %v763_v52  ;;  %v1105_v45 = vsel %vm5350_vm7, %v1103_v31, %v1104_v32  ;;  %247 = vst.msk [vmem:[#allocation2 + $0x68] sm:$0xf] %vm220_vm3, %v198_v27  ;;  %v197_v33 = vld [vmem:[%s5085_s17 + $0x64] sm:$0xf]  ;;  %v1019_v21 = vld [vmem:[%s5085_s17 + $0x54] sm:$0xf] }
  0x70   : > { %869 = vrot.lane.b32.xlu2 %v654_v58, %s5043_s18  ;;  %v777_v58 = vrot.slane %v775_v46, 4  ;;  %v754_v4 = vsel %vm5095_vm2, %v749_v53, %v753_v26  ;;  %v1110_v46 = vrot.slane %v1002_v37, 5  ;;  %246 = vst.msk [vmem:[#allocation2 + $0x64] sm:$0xf] %vm220_vm3, %v197_v33  ;;  %v205_v27 = vld [vmem:[%s5085_s17 + $0x84] sm:$0xf] }
  0x71   : > { %873 = vrot.lane.b32.xlu1 %v674_v54, %s5043_s18  ;;  %v316_v54 = vld [vmem:[%s5085_s17 + $0xbc] sm:$0xf]  ;;  %254 = vst.msk [vmem:[#allocation2 + $0x84] sm:$0xf] %vm220_vm3, %v205_v27 }
  0x72   : > { %871 = vrot.lane.b32.xlu0 %v664_v55, %s5043_s18  ;;  %v783_v55 = vrot.slane %v781_v43, 5  ;;  %v791_v3 = vshll.u32 %v316_v54, 16  ;;  %v778_v5 = vor.u32 %v777_v58, %v773_v57  ;;  %v795_v6 = vshrl.u32 %v316_v54, 16  ;;  %v192_v54 = vld [vmem:[%s5085_s17 + $0x50] sm:$0xf] }
  0x73   : > { %v1112_v51 = vrot.slane %v1110_v46, 4  ;;  %241 = vst.msk [vmem:[#allocation2 + $0x50] sm:$0xf] %vm220_vm3, %v192_v54  ;;  %v199_v54 = vld [vmem:[%s5085_s17 + $0x6c] sm:$0xf] }
  0x74   : > { %v788_v2 = vor.u32 %v787_v56, %v783_v55  ;;  %v793_v10 = vrot.slane %v791_v3, 5  ;;  %v779_v13 = vrot.slane %v778_v5, 4  ;;  %v797_v17 = vrot.slane %v795_v6, 4  ;;  %v1005_v56 = vld [vmem:[%s5085_s17 + $0x1c] sm:$0xf] }
  0x75   : > { %v1006_v3 = vld [vmem:[%s5085_s17 + $0x20] sm:$0xf]  ;;  %248 = vst.msk [vmem:[#allocation2 + $0x6c] sm:$0xf] %vm220_vm3, %v199_v54 }
  0x76   : > { %v789_v9 = vrot.slane %v788_v2, 4  ;;  %v784_v26 = vsel %vm5095_vm2, %v779_v13, %v783_v55  ;;  %v798_v29 = vor.u32 %v797_v17, %v793_v10  ;;  %v1122_v6 = vrot.slane %v1006_v3, 5  ;;  %v1016_v3 = vld [vmem:[%s5085_s17 + $0x48] sm:$0xf] }
  0x78   : > { %875 = vrot.lane.b32.xlu2 %v684_v22, %s5043_s18  ;;  %v794_v22 = vsel %vm5095_vm2, %v789_v9, %v793_v10  ;;  %v799_v40 = vrot.slane %v798_v29, 4  ;;  %v1008_v10 = vld [vmem:[%s5085_s17 + $0x28] sm:$0xf]  ;;  %v1011_v29 = vld [vmem:[%s5085_s17 + $0x34] sm:$0xf]  ;;  %v1124_v32 = vrot.slane %v1122_v6, 4 }
  0x79   : > { %879 = vrot.lane.b32.xlu1 %v704_v16, %s5043_s18  ;;  %v769_v16 = vrot.slane %v768_v8, 4  ;;  %v195_v8 = vld [vmem:[%s5085_s17 + $0x5c] sm:$0xf] }
  0x7a   : > { %877 = vrot.lane.b32.xlu0 %v694_v18, %s5043_s18  ;;  %v814_v42 = vpop.permute.xlu2 %813  ;;  %v185_v18 = vld [vmem:[%s5085_s17 + $0x34] sm:$0xf]  ;;  %v804_v50 = vsel %vm5095_vm2, %v799_v40, %v803_v41  ;;  %244 = vst.msk [vmem:[#allocation2 + $0x5c] sm:$0xf] %vm220_vm3, %v195_v8  ;;  %v1012_v41 = vld [vmem:[%s5085_s17 + $0x38] sm:$0xf] }
  0x7b   : > { %954 = vst.msk [vmem:[#allocation2 + $0x10] sm:$0xf] %vm949_vm4, %v814_v42  ;;  %v774_v28 = vsel %vm5095_vm2, %v769_v16, %v773_v57  ;;  %v188_v42 = vld [vmem:[%s5085_s17 + $0x40] sm:$0xf]  ;;  %v1004_v57 = vld [vmem:[%s5085_s17 + $0x18] sm:$0xf] }
  0x7c   : > { %234 = vst.msk [vmem:[#allocation2 + $0x34] sm:$0xf] %vm220_vm3, %v185_v18  ;;  %v193_v16 = vld [vmem:[%s5085_s17 + $0x54] sm:$0xf]  ;;  %v1128_v18 = vrot.slane %v1008_v10, 5  ;;  %v1140_v44 = vrot.slane %v1012_v41, 5 }
  0x7d   : > { %237 = vst.msk [vmem:[#allocation2 + $0x40] sm:$0xf] %vm220_vm3, %v188_v42  ;;  %v202_v8 = vld [vmem:[%s5085_s17 + $0x78] sm:$0xf]  ;;  %v1022_v41 = vld [vmem:[%s5085_s17 + $0x60] sm:$0xf] }
  0x7e   : > { %242 = vst.msk [vmem:[#allocation2 + $0x54] sm:$0xf] %vm220_vm3, %v193_v16  ;;  %v1130_v23 = vrot.slane %v1128_v18, 4 }
  0x7f   : > { %251 = vst.msk [vmem:[#allocation2 + $0x78] sm:$0xf] %vm220_vm3, %v202_v8 }
  0x80   : > { %881 = vrot.lane.b32.xlu2 %v714_v49, %s5043_s18  ;;  %v1003_v49 = vld [vmem:[%s5085_s17 + $0x14] sm:$0xf]  ;;  %v1132_v37 = vsel %vm5350_vm7, %v1130_v23, %v1131_v25 }
  0x81   : > { %885 = vrot.lane.b32.xlu1 %v734_v38, %s5043_s18  ;;  %v1001_v38 = vld [vmem:[%s5085_s17 + $0xc] sm:$0xf]  ;;  %v1113_v52 = vrot.slane %v1003_v49, 5  ;;  %v1013_v49 = vld [vmem:[%s5085_s17 + $0x3c] sm:$0xf] }
  0x82   : > { %883 = vrot.lane.b32.xlu0 %v724_v47, %s5043_s18  ;;  %v816_v0 = vpop.permute.xlu2 %815  ;;  %v1107_v47 = vrot.slane %v1001_v38, 5  ;;  %v1137_v38 = vrot.slane %v1011_v29, 5 }
  0x83   : > { %955 = vst.msk [vmem:[#allocation2 + $0x14] sm:$0xf] %vm949_vm4, %v816_v0  ;;  %v1114_v63 = vsel %vm5350_vm7, %v1112_v51, %v1113_v52  ;;  %v1119_v0 = vrot.slane %v1005_v56, 5  ;;  %v1115_v13 = vrot.slane %v1113_v52, 4  ;;  %v1133_v51 = vrot.slane %v1131_v25, 4 }
  0x84   : > { %v1109_v53 = vrot.slane %v1107_v47, 4  ;;  %v200_v52 = vld [vmem:[%s5085_s17 + $0x70] sm:$0xf]  ;;  %v206_v25 = vld [vmem:[%s5085_s17 + $0x88] sm:$0xf] }
  0x85   : > { %v1121_v5 = vrot.slane %v1119_v0, 4  ;;  %249 = vst.msk [vmem:[#allocation2 + $0x70] sm:$0xf] %vm220_vm3, %v200_v52 }
  0x86   : > { %v1111_v2 = vsel %vm5350_vm7, %v1109_v53, %v1110_v46  ;;  %v201_v46 = vld [vmem:[%s5085_s17 + $0x74] sm:$0xf]  ;;  %255 = vst.msk [vmem:[#allocation2 + $0x88] sm:$0xf] %vm220_vm3, %v206_v25 }
  0x87   : > { %v1123_v17 = vsel %vm5350_vm7, %v1121_v5, %v1122_v6  ;;  %250 = vst.msk [vmem:[#allocation2 + $0x74] sm:$0xf] %vm220_vm3, %v201_v46  ;;  %v1142_v5 = vrot.slane %v1140_v44, 4  ;;  %v203_v6 = vld [vmem:[%s5085_s17 + $0x7c] sm:$0xf] }
  0x88   : > { %887 = vrot.lane.b32.xlu2 %v744_v7, %s5043_s18  ;;  %252 = vst.msk [vmem:[#allocation2 + $0x7c] sm:$0xf] %vm220_vm3, %v203_v6  ;;  %v208_v46 = vld [vmem:[%s5085_s17 + $0x90] sm:$0xf] }
  0x89   : > { %891 = vrot.lane.b32.xlu1 %v764_v1, %s5043_s18  ;;  %v1116_v1 = vrot.slane %v1004_v57, 5  ;;  %v1143_v57 = vrot.slane %v1013_v49, 5  ;;  %v1170_v49 = vrot.slane %v1022_v41, 5  ;;  %257 = vst.msk [vmem:[#allocation2 + $0x90] sm:$0xf] %vm220_vm3, %v208_v46 }
  0x8a   : > { %889 = vrot.lane.b32.xlu0 %v754_v4, %s5043_s18  ;;  %v822_v19 = vpop.permute.xlu2 %821  ;;  %v1108_v4 = vsel %vm5350_vm7, %v1106_v59, %v1107_v47  ;;  %v1015_v59 = vld [vmem:[%s5085_s17 + $0x44] sm:$0xf] }
  0x8b   : > { %v810_v12 = vpop.permute.xlu1 %809  ;;  %958 = vst.msk [vmem:[#allocation2 + $0x20] sm:$0xf] %vm949_vm4, %v822_v19  ;;  %v1118_v7 = vrot.slane %v1116_v1, 4  ;;  %v1125_v19 = vrot.slane %v1007_v11, 5  ;;  %v1149_v62 = vrot.slane %v1015_v59, 5  ;;  %v1152_v11 = vrot.slane %v1016_v3, 5 }
  0x8c   : > { %952 = vst.msk [vmem:[#allocation2 + $0x8] sm:$0xf] %vm949_vm4, %v810_v12  ;;  %v806_v15 = vpop.permute.xlu0 %805  ;;  %v1144_v14 = vsel %vm5350_vm7, %v1142_v5, %v1143_v57  ;;  %v1025_v59 = vld [vmem:[%s5085_s17 + $0x6c] sm:$0xf]  ;;  %v1027_v5 = vld [vmem:[%s5085_s17 + $0x74] sm:$0xf] }
  0x8d   : > { %950 = vst.msk [vmem:[#allocation2] sm:$0xf] %vm949_vm4, %v806_v15  ;;  %v1120_v20 = vsel %vm5350_vm7, %v1118_v7, %v1119_v0  ;;  %v1126_v42 = vsel %vm5350_vm7, %v1124_v32, %v1125_v19  ;;  %v204_v0 = vld [vmem:[%s5085_s17 + $0x80] sm:$0xf]  ;;  %v1151_v23 = vrot.slane %v1149_v62, 4  ;;  %v1179_v3 = vrot.slane %v1025_v59, 5 }
  0x8e   : > { %253 = vst.msk [vmem:[#allocation2 + $0x80] sm:$0xf] %vm220_vm3, %v204_v0  ;;  %v1021_v32 = vld [vmem:[%s5085_s17 + $0x5c] sm:$0xf]  ;;  %v1185_v8 = vrot.slane %v1027_v5, 5 }
  0x8f   : > { %v1153_v33 = vsel %vm5350_vm7, %v1151_v23, %v1152_v11  ;;  %v211_v0 = vld [vmem:[%s5085_s17 + $0x9c] sm:$0xf]  ;;  %v1030_v23 = vld [vmem:[%s5085_s17 + $0x80] sm:$0xf] }
  0x90   : > { %893 = vrot.lane.b32.xlu2 %v774_v28, %s5043_s18  ;;  %260 = vst.msk [vmem:[#allocation2 + $0x9c] sm:$0xf] %vm220_vm3, %v211_v0  ;;  %v1194_v27 = vrot.slane %v1030_v23, 5  ;;  %v1038_v0 = vld [vmem:[%s5085_s17 + $0xa0] sm:$0xf] }
  0x91   : > { %897 = vrot.lane.b32.xlu1 %v794_v22, %s5043_s18  ;;  %v1117_v22 = vsel %vm5350_vm7, %v1115_v13, %v1116_v1  ;;  %v1018_v13 = vld [vmem:[%s5085_s17 + $0x50] sm:$0xf] }
  0x92   : > { %895 = vrot.lane.b32.xlu0 %v784_v26, %s5043_s18  ;;  %v828_v43 = vpop.permute.xlu2 %827  ;;  %v1127_v26 = vrot.slane %v1125_v19, 4  ;;  %v1158_v16 = vrot.slane %v1018_v13, 5  ;;  %v1028_v13 = vld [vmem:[%s5085_s17 + $0x78] sm:$0xf]  ;;  %v1042_v23 = vld [vmem:[%s5085_s17 + $0xb0] sm:$0xf] }
  0x93   : > { %v812_v35 = vpop.permute.xlu1 %811  ;;  %961 = vst.msk [vmem:[#allocation2 + $0x2c] sm:$0xf] %vm949_vm4, %v828_v43  ;;  %v1139_v43 = vrot.slane %v1137_v38, 4 }
  0x94   : > { %953 = vst.msk [vmem:[#allocation2 + $0xc] sm:$0xf] %vm949_vm4, %v812_v35  ;;  %v808_v39 = vpop.permute.xlu0 %807  ;;  %v196_v35 = vld [vmem:[%s5085_s17 + $0x60] sm:$0xf]  ;;  %v1129_v40 = vsel %vm5350_vm7, %v1127_v26, %v1128_v18  ;;  %v207_v18 = vld [vmem:[%s5085_s17 + $0x8c] sm:$0xf] }
  0x95   : > { %951 = vst.msk [vmem:[#allocation2 + $0x4] sm:$0xf] %vm949_vm4, %v808_v39  ;;  %v1134_v39 = vrot.slane %v1010_v30, 5  ;;  %v1161_v30 = vrot.slane %v1019_v21, 5  ;;  %v1188_v21 = vrot.slane %v1028_v13, 5 }
  0x96   : > { %245 = vst.msk [vmem:[#allocation2 + $0x60] sm:$0xf] %vm220_vm3, %v196_v35  ;;  %v1167_v35 = vrot.slane %v1021_v32, 5  ;;  %v1031_v32 = vld [vmem:[%s5085_s17 + $0x84] sm:$0xf] }
  0x97   : > { %v1135_v60 = vsel %vm5350_vm7, %v1133_v51, %v1134_v39  ;;  %256 = vst.msk [vmem:[#allocation2 + $0x8c] sm:$0xf] %vm220_vm3, %v207_v18  ;;  %v1024_v51 = vld [vmem:[%s5085_s17 + $0x68] sm:$0xf] }
  0x98   : > { %899 = vrot.lane.b32.xlu2 %v804_v50, %s5043_s18  ;;  %v1176_v54 = vrot.slane %v1024_v51, 5  ;;  %v214_v18 = vld [vmem:[%s5085_s17 + $0xa8] sm:$0xf]  ;;  %v1034_v51 = vld [vmem:[%s5085_s17 + $0x90] sm:$0xf] }
  0x99   : > { %1246 = vrot.lane.b32.xlu1 %v1105_v45, %s5044_s19  ;;  %v1136_v45 = vrot.slane %v1134_v39, 4  ;;  %263 = vst.msk [vmem:[#allocation2 + $0xa8] sm:$0xf] %vm220_vm3, %v214_v18 }
  0x9a   : > { %1244 = vrot.lane.b32.xlu0 %v1102_v48, %s5044_s19  ;;  %v834_v61 = vpop.permute.xlu2 %833  ;;  %v1014_v48 = vld [vmem:[%s5085_s17 + $0x40] sm:$0xf] }
  0x9b   : > { %v820_v55 = vpop.permute.xlu1 %819  ;;  %964 = vst.msk [vmem:[#allocation2 + $0x38] sm:$0xf] %vm949_vm4, %v834_v61  ;;  %v1146_v56 = vrot.slane %v1014_v48, 5 }
  0x9c   : > { %957 = vst.msk [vmem:[#allocation2 + $0x1c] sm:$0xf] %vm949_vm4, %v820_v55  ;;  %v818_v58 = vpop.permute.xlu0 %817  ;;  %v1141_v55 = vsel %vm5350_vm7, %v1139_v43, %v1140_v44  ;;  %v1160_v43 = vrot.slane %v1158_v16, 4  ;;  %v209_v44 = vld [vmem:[%s5085_s17 + $0x94] sm:$0xf] }
  0x9d   : > { %956 = vst.msk [vmem:[#allocation2 + $0x18] sm:$0xf] %vm949_vm4, %v818_v58  ;;  %v1138_v58 = vsel %vm5350_vm7, %v1136_v45, %v1137_v38  ;;  %v1148_v61 = vrot.slane %v1146_v56, 4  ;;  %v210_v38 = vld [vmem:[%s5085_s17 + $0x98] sm:$0xf] }
  0x9e   : > { %259 = vst.msk [vmem:[#allocation2 + $0x98] sm:$0xf] %vm220_vm3, %v210_v38  ;;  %v1162_v52 = vsel %vm5350_vm7, %v1160_v43, %v1161_v30  ;;  %v217_v38 = vld [vmem:[%s5085_s17 + $0xb4] sm:$0xf]  ;;  %v1197_v43 = vrot.slane %v1031_v32, 5 }
  0x9f   : > { %258 = vst.msk [vmem:[#allocation2 + $0x94] sm:$0xf] %vm220_vm3, %v209_v44 }
  0xa0   : > { %1248 = vrot.lane.b32.xlu2 %v1108_v4, %s5044_s19  ;;  %266 = vst.msk [vmem:[#allocation2 + $0xb4] sm:$0xf] %vm220_vm3, %v217_v38 }
  0xa1   : > { %1252 = vrot.lane.b32.xlu1 %v1114_v63, %s5044_s19  ;;  %v1145_v63 = vrot.slane %v1143_v57, 4 }
  0xa2   : > { %1250 = vrot.lane.b32.xlu0 %v1111_v2, %s5044_s19  ;;  %v840_v15 = vpop.permute.xlu2 %839  ;;  %v1017_v2 = vld [vmem:[%s5085_s17 + $0x4c] sm:$0xf] }
  0xa3   : > { %v826_v9 = vpop.permute.xlu1 %825  ;;  %967 = vst.msk [vmem:[#allocation2 + $0x44] sm:$0xf] %vm949_vm4, %v840_v15  ;;  %v1155_v10 = vrot.slane %v1017_v2, 5 }
  0xa4   : > { %960 = vst.msk [vmem:[#allocation2 + $0x28] sm:$0xf] %vm949_vm4, %v826_v9  ;;  %v824_v12 = vpop.permute.xlu0 %823  ;;  %v1150_v9 = vsel %vm5350_vm7, %v1148_v61, %v1149_v62  ;;  %v1169_v61 = vrot.slane %v1167_v35, 4  ;;  %v212_v62 = vld [vmem:[%s5085_s17 + $0xa0] sm:$0xf] }
  0xa5   : > { %959 = vst.msk [vmem:[#allocation2 + $0x24] sm:$0xf] %vm949_vm4, %v824_v12  ;;  %v1147_v12 = vsel %vm5350_vm7, %v1145_v63, %v1146_v56  ;;  %v1157_v15 = vrot.slane %v1155_v10, 4  ;;  %v213_v56 = vld [vmem:[%s5085_s17 + $0xa4] sm:$0xf] }
  0xa6   : > { %262 = vst.msk [vmem:[#allocation2 + $0xa4] sm:$0xf] %vm220_vm3, %v213_v56  ;;  %v1171_v6 = vsel %vm5350_vm7, %v1169_v61, %v1170_v49 }
  0xa7   : > { %261 = vst.msk [vmem:[#allocation2 + $0xa0] sm:$0xf] %vm220_vm3, %v212_v62 }
  0xa8   : > { %1254 = vrot.lane.b32.xlu2 %v1117_v22, %s5044_s19 }
  0xa9   : > { %1258 = vrot.lane.b32.xlu1 %v1123_v17, %s5044_s19  ;;  %v1154_v17 = vrot.slane %v1152_v11, 4 }
  0xaa   : > { %1256 = vrot.lane.b32.xlu0 %v1120_v20, %s5044_s19  ;;  %v846_v34 = vpop.permute.xlu2 %845  ;;  %v1020_v20 = vld [vmem:[%s5085_s17 + $0x58] sm:$0xf] }
  0xab   : > { %v832_v28 = vpop.permute.xlu1 %831  ;;  %970 = vst.msk [vmem:[#allocation2 + $0x50] sm:$0xf] %vm949_vm4, %v846_v34  ;;  %v1164_v29 = vrot.slane %v1020_v20, 5 }
  0xac   : > { %963 = vst.msk [vmem:[#allocation2 + $0x34] sm:$0xf] %vm949_vm4, %v832_v28  ;;  %v830_v31 = vpop.permute.xlu0 %829  ;;  %v1159_v28 = vsel %vm5350_vm7, %v1157_v15, %v1158_v16  ;;  %v1178_v15 = vrot.slane %v1176_v54, 4  ;;  %v215_v16 = vld [vmem:[%s5085_s17 + $0xac] sm:$0xf] }
  0xad   : > { %962 = vst.msk [vmem:[#allocation2 + $0x30] sm:$0xf] %vm949_vm4, %v830_v31  ;;  %v1156_v31 = vsel %vm5350_vm7, %v1154_v17, %v1155_v10  ;;  %v1166_v34 = vrot.slane %v1164_v29, 4  ;;  %v216_v10 = vld [vmem:[%s5085_s17 + $0xb0] sm:$0xf] }
  0xae   : > { %265 = vst.msk [vmem:[#allocation2 + $0xb0] sm:$0xf] %vm220_vm3, %v216_v10  ;;  %v1180_v25 = vsel %vm5350_vm7, %v1178_v15, %v1179_v3  ;;  %v1041_v15 = vld [vmem:[%s5085_s17 + $0xac] sm:$0xf] }
  0xaf   : > { %264 = vst.msk [vmem:[#allocation2 + $0xac] sm:$0xf] %vm220_vm3, %v215_v16 }
  0xb0   : > { %1260 = vrot.lane.b32.xlu2 %v1126_v42, %s5044_s19 }
  0xb1   : > { %1264 = vrot.lane.b32.xlu1 %v1132_v37, %s5044_s19  ;;  %v1163_v37 = vrot.slane %v1161_v30, 4 }
  0xb2   : > { %1262 = vrot.lane.b32.xlu0 %v1129_v40, %s5044_s19  ;;  %v852_v53 = vpop.permute.xlu2 %851  ;;  %v1023_v40 = vld [vmem:[%s5085_s17 + $0x64] sm:$0xf] }
  0xb3   : > { %v838_v47 = vpop.permute.xlu1 %837  ;;  %973 = vst.msk [vmem:[#allocation2 + $0x5c] sm:$0xf] %vm949_vm4, %v852_v53  ;;  %v1173_v48 = vrot.slane %v1023_v40, 5 }
  0xb4   : > { %966 = vst.msk [vmem:[#allocation2 + $0x40] sm:$0xf] %vm949_vm4, %v838_v47  ;;  %v836_v50 = vpop.permute.xlu0 %835  ;;  %v1168_v47 = vsel %vm5350_vm7, %v1166_v34, %v1167_v35  ;;  %v1187_v34 = vrot.slane %v1185_v8, 4  ;;  %v218_v35 = vld [vmem:[%s5085_s17 + $0xb8] sm:$0xf] }
  0xb5   : > { %965 = vst.msk [vmem:[#allocation2 + $0x3c] sm:$0xf] %vm949_vm4, %v836_v50  ;;  %v1165_v50 = vsel %vm5350_vm7, %v1163_v37, %v1164_v29  ;;  %v1175_v53 = vrot.slane %v1173_v48, 4  ;;  %v219_v29 = vld [vmem:[%s5085_s17 + $0xbc] sm:$0xf] }
  0xb6   : > { %268 = vst.msk [vmem:[#allocation2 + $0xbc] sm:$0xf] %vm220_vm3, %v219_v29  ;;  %v1189_v44 = vsel %vm5350_vm7, %v1187_v34, %v1188_v21 }
  0xb7   : > { %267 = vst.msk [vmem:[#allocation2 + $0xb8] sm:$0xf] %vm220_vm3, %v218_v35 }
  0xb8   : > { %1266 = vrot.lane.b32.xlu2 %v1135_v60, %s5044_s19 }
  0xb9   : > { %1270 = vrot.lane.b32.xlu1 %v1141_v55, %s5044_s19  ;;  %v1172_v55 = vrot.slane %v1170_v49, 4  ;;  %v1035_v49 = vld [vmem:[%s5085_s17 + $0x94] sm:$0xf] }
  0xba   : > { %1268 = vrot.lane.b32.xlu0 %v1138_v58, %s5044_s19  ;;  %v858_v7 = vpop.permute.xlu2 %857  ;;  %v1026_v58 = vld [vmem:[%s5085_s17 + $0x70] sm:$0xf] }
  0xbb   : > { %v844_v1 = vpop.permute.xlu1 %843  ;;  %976 = vst.msk [vmem:[#allocation2 + $0x68] sm:$0xf] %vm949_vm4, %v858_v7  ;;  %v1182_v2 = vrot.slane %v1026_v58, 5  ;;  %v1206_v58 = vrot.slane %v1034_v51, 5 }
  0xbc   : > { %969 = vst.msk [vmem:[#allocation2 + $0x4c] sm:$0xf] %vm949_vm4, %v844_v1  ;;  %v842_v4 = vpop.permute.xlu0 %841  ;;  %v1177_v1 = vsel %vm5350_vm7, %v1175_v53, %v1176_v54 }
  0xbd   : > { %968 = vst.msk [vmem:[#allocation2 + $0x48] sm:$0xf] %vm949_vm4, %v842_v4  ;;  %v1174_v4 = vsel %vm5350_vm7, %v1172_v55, %v1173_v48  ;;  %v1184_v7 = vrot.slane %v1182_v2, 4  ;;  %v1199_v48 = vrot.slane %v1197_v43, 4  ;;  %v1209_v55 = vrot.slane %v1035_v49, 5 }
  0xc0   : > { %1272 = vrot.lane.b32.xlu2 %v1144_v14, %s5044_s19 }
  0xc1   : > { %1276 = vrot.lane.b32.xlu1 %v1150_v9, %s5044_s19  ;;  %v1181_v9 = vrot.slane %v1179_v3, 4 }
  0xc2   : > { %1274 = vrot.lane.b32.xlu0 %v1147_v12, %s5044_s19  ;;  %v864_v26 = vpop.permute.xlu2 %863  ;;  %v1029_v12 = vld [vmem:[%s5085_s17 + $0x7c] sm:$0xf] }
  0xc3   : > { %v850_v19 = vpop.permute.xlu1 %849  ;;  %979 = vst.msk [vmem:[#allocation2 + $0x74] sm:$0xf] %vm949_vm4, %v864_v26  ;;  %v1191_v20 = vrot.slane %v1029_v12, 5 }
  0xc4   : > { %972 = vst.msk [vmem:[#allocation2 + $0x58] sm:$0xf] %vm949_vm4, %v850_v19  ;;  %v848_v22 = vpop.permute.xlu0 %847  ;;  %v1186_v19 = vsel %vm5350_vm7, %v1184_v7, %v1185_v8  ;;  %v1039_v8 = vld [vmem:[%s5085_s17 + $0xa4] sm:$0xf] }
  0xc5   : > { %971 = vst.msk [vmem:[#allocation2 + $0x54] sm:$0xf] %vm949_vm4, %v848_v22  ;;  %v1183_v22 = vsel %vm5350_vm7, %v1181_v9, %v1182_v2  ;;  %v1193_v26 = vrot.slane %v1191_v20, 4  ;;  %v1037_v2 = vld [vmem:[%s5085_s17 + $0x9c] sm:$0xf]  ;;  %v1221_v12 = vrot.slane %v1039_v8, 5 }
  0xc6   : > { %v1215_v9 = vrot.slane %v1037_v2, 5  ;;  %v1440_v2 = vld [vmem:[%s5085_s17 + $0x18] sm:$0xf]  ;;  %v1443_v8 = vld [vmem:[%s5085_s17 + $0x24] sm:$0xf] }
  0xc7   : > { %v1223_v34 = vrot.slane %v1221_v12, 4 }
  0xc8   : > { %1278 = vrot.lane.b32.xlu2 %v1153_v33, %s5044_s19 }
  0xc9   : > { %1282 = vrot.lane.b32.xlu1 %v1159_v28, %s5044_s19  ;;  %v1190_v28 = vrot.slane %v1188_v21, 4  ;;  %v1227_v21 = vrot.slane %v1041_v15, 5  ;;  %v1445_v15 = vld [vmem:[%s5085_s17 + $0x2c] sm:$0xf] }
  0xca   : > { %1280 = vrot.lane.b32.xlu0 %v1156_v31, %s5044_s19  ;;  %v870_v45 = vpop.permute.xlu2 %869  ;;  %v1032_v31 = vld [vmem:[%s5085_s17 + $0x88] sm:$0xf] }
  0xcb   : > { %v856_v39 = vpop.permute.xlu1 %855  ;;  %982 = vst.msk [vmem:[#allocation2 + $0x80] sm:$0xf] %vm949_vm4, %v870_v45  ;;  %v1200_v40 = vrot.slane %v1032_v31, 5  ;;  %v1192_v41 = vsel %vm5350_vm7, %v1190_v28, %v1191_v20  ;;  %v1230_v28 = vrot.slane %v1042_v23, 5  ;;  %v1044_v31 = vld [vmem:[%s5085_s17 + $0xb8] sm:$0xf] }
  0xcc   : > { %975 = vst.msk [vmem:[#allocation2 + $0x64] sm:$0xf] %vm949_vm4, %v856_v39  ;;  %v854_v42 = vpop.permute.xlu0 %853  ;;  %v1195_v39 = vsel %vm5350_vm7, %v1193_v26, %v1194_v27  ;;  %v1236_v38 = vrot.slane %v1044_v31, 5 }
  0xcd   : > { %974 = vst.msk [vmem:[#allocation2 + $0x60] sm:$0xf] %vm949_vm4, %v854_v42  ;;  %v1033_v42 = vld [vmem:[%s5085_s17 + $0x8c] sm:$0xf]  ;;  %v1202_v45 = vrot.slane %v1200_v40, 4  ;;  %v1201_v56 = vsel %vm5350_vm7, %v1199_v48, %v1200_v40  ;;  %v1232_v48 = vrot.slane %v1230_v28, 4 }
  0xce   : > { %v1203_v46 = vrot.slane %v1033_v42, 5  ;;  %v1045_v40 = vld [vmem:[%s5085_s17 + $0xbc] sm:$0xf] }
  0xd0   : > { %1284 = vrot.lane.b32.xlu2 %v1162_v52, %s5044_s19  ;;  %v1196_v52 = vrot.slane %v1194_v27, 4  ;;  %v1204_v54 = vsel %vm5350_vm7, %v1202_v45, %v1203_v46  ;;  %v1205_v3 = vrot.slane %v1203_v46, 4  ;;  %v1229_v27 = vrot.slane %v1227_v21, 4 }
  0xd1   : > { %1288 = vrot.lane.b32.xlu1 %v1168_v47, %s5044_s19 }
  0xd2   : > { %1286 = vrot.lane.b32.xlu0 %v1165_v50, %s5044_s19  ;;  %v876_v63 = vpop.permute.xlu2 %875  ;;  %v1198_v59 = vsel %vm5350_vm7, %v1196_v52, %v1197_v43  ;;  %v1207_v10 = vsel %vm5350_vm7, %v1205_v3, %v1206_v58  ;;  %v1238_v43 = vrot.slane %v1236_v38, 4  ;;  %v1439_v3 = vld [vmem:[%s5085_s17 + $0x14] sm:$0xf] }
  0xd3   : > { %v862_v57 = vpop.permute.xlu1 %861  ;;  %985 = vst.msk [vmem:[#allocation2 + $0x8c] sm:$0xf] %vm949_vm4, %v876_v63  ;;  %v1208_v63 = vrot.slane %v1206_v58, 4 }
  0xd4   : > { %978 = vst.msk [vmem:[#allocation2 + $0x70] sm:$0xf] %vm949_vm4, %v862_v57  ;;  %v860_v60 = vpop.permute.xlu0 %859  ;;  %v1036_v57 = vld [vmem:[%s5085_s17 + $0x98] sm:$0xf] }
  0xd5   : > { %977 = vst.msk [vmem:[#allocation2 + $0x6c] sm:$0xf] %vm949_vm4, %v860_v60  ;;  %v1211_v60 = vrot.slane %v1209_v55, 4  ;;  %v1212_v61 = vrot.slane %v1036_v57, 5  ;;  %v1210_v7 = vsel %vm5350_vm7, %v1208_v63, %v1209_v55 }
  0xd7   : > { %v1213_v5 = vsel %vm5350_vm7, %v1211_v60, %v1212_v61  ;;  %v1214_v18 = vrot.slane %v1212_v61, 4  ;;  %v1437_v60 = vld [vmem:[%s5085_s17 + $0xc] sm:$0xf] }
  0xd8   : > { %1290 = vrot.lane.b32.xlu2 %v1171_v6, %s5044_s19  ;;  %v1218_v6 = vrot.slane %v1038_v0, 5 }
  0xd9   : > { %1294 = vrot.lane.b32.xlu1 %v1177_v1, %s5044_s19  ;;  %v1216_v26 = vsel %vm5350_vm7, %v1214_v18, %v1215_v9 }
  0xda   : > { %1292 = vrot.lane.b32.xlu0 %v1174_v4, %s5044_s19  ;;  %v882_v17 = vpop.permute.xlu2 %881 }
  0xdb   : > { %v868_v11 = vpop.permute.xlu1 %867  ;;  %988 = vst.msk [vmem:[#allocation2 + $0x98] sm:$0xf] %vm949_vm4, %v882_v17  ;;  %v1040_v17 = vld [vmem:[%s5085_s17 + $0xa8] sm:$0xf] }
  0xdc   : > { %981 = vst.msk [vmem:[#allocation2 + $0x7c] sm:$0xf] %vm949_vm4, %v868_v11  ;;  %v866_v14 = vpop.permute.xlu0 %865  ;;  %v1220_v11 = vrot.slane %v1218_v6, 4 }
  0xdd   : > { %980 = vst.msk [vmem:[#allocation2 + $0x78] sm:$0xf] %vm949_vm4, %v866_v14  ;;  %v1217_v14 = vrot.slane %v1215_v9, 4  ;;  %v1442_v9 = vld [vmem:[%s5085_s17 + $0x20] sm:$0xf] }
  0xde   : > { %v1222_v20 = vsel %vm5350_vm7, %v1220_v11, %v1221_v12 }
  0xe0   : > { %1296 = vrot.lane.b32.xlu2 %v1180_v25, %s5044_s19  ;;  %v1224_v25 = vrot.slane %v1040_v17, 5 }
  0xe1   : > { %1300 = vrot.lane.b32.xlu1 %v1186_v19, %s5044_s19 }
  0xe2   : > { %1298 = vrot.lane.b32.xlu0 %v1183_v22, %s5044_s19  ;;  %v888_v37 = vpop.permute.xlu2 %887  ;;  %v1219_v22 = vsel %vm5350_vm7, %v1217_v14, %v1218_v6  ;;  %v1225_v42 = vsel %vm5350_vm7, %v1223_v34, %v1224_v25  ;;  %v1446_v14 = vld [vmem:[%s5085_s17 + $0x30] sm:$0xf] }
  0xe3   : > { %v874_v30 = vpop.permute.xlu1 %873  ;;  %991 = vst.msk [vmem:[#allocation2 + $0xa4] sm:$0xf] %vm949_vm4, %v888_v37  ;;  %v1231_v37 = vsel %vm5350_vm7, %v1229_v27, %v1230_v28  ;;  %v1452_v27 = vld [vmem:[%s5085_s17 + $0x48] sm:$0xf]  ;;  %v1451_v28 = vld [vmem:[%s5085_s17 + $0x44] sm:$0xf] }
  0xe4   : > { %984 = vst.msk [vmem:[#allocation2 + $0x88] sm:$0xf] %vm949_vm4, %v874_v30  ;;  %v872_v33 = vpop.permute.xlu0 %871  ;;  %v1226_v30 = vrot.slane %v1224_v25, 4  ;;  %v1454_v34 = vld [vmem:[%s5085_s17 + $0x50] sm:$0xf] }
  0xe5   : > { %983 = vst.msk [vmem:[#allocation2 + $0x84] sm:$0xf] %vm949_vm4, %v872_v33  ;;  %v1043_v33 = vld [vmem:[%s5085_s17 + $0xb4] sm:$0xf] }
  0xe8   : > { %1302 = vrot.lane.b32.xlu2 %v1189_v44, %s5044_s19  ;;  %v1239_v44 = vrot.slane %v1045_v40, 5  ;;  %v1458_v40 = vld [vmem:[%s5085_s17 + $0x60] sm:$0xf] }
  0xe9   : > { %1306 = vrot.lane.b32.xlu1 %v1195_v39, %s5044_s19  ;;  %v1228_v39 = vsel %vm5350_vm7, %v1226_v30, %v1227_v21  ;;  %v1448_v21 = vld [vmem:[%s5085_s17 + $0x38] sm:$0xf] }
  0xea   : > { %1304 = vrot.lane.b32.xlu0 %v1192_v41, %s5044_s19  ;;  %v894_v53 = vpop.permute.xlu2 %893  ;;  %v1233_v41 = vrot.slane %v1043_v33, 5  ;;  %v1455_v33 = vld [vmem:[%s5085_s17 + $0x54] sm:$0xf] }
  0xeb   : > { %v880_v47 = vpop.permute.xlu1 %879  ;;  %994 = vst.msk [vmem:[#allocation2 + $0xb0] sm:$0xf] %vm949_vm4, %v894_v53  ;;  %v1046_v53 = vld [vmem:[%s5085_s17 + $0xc0] sm:$0x1] }
  0xec   : > { %987 = vst.msk [vmem:[#allocation2 + $0x94] sm:$0xf] %vm949_vm4, %v880_v47  ;;  %v878_v50 = vpop.permute.xlu0 %877  ;;  %v1235_v46 = vrot.slane %v1233_v41, 4  ;;  %v1234_v52 = vsel %vm5350_vm7, %v1232_v48, %v1233_v41  ;;  %v1242_v57 = vrot.slane %v1046_v53, 5  ;;  %v1457_v41 = vld [vmem:[%s5085_s17 + $0x5c] sm:$0xf] }
  0xed   : > { %986 = vst.msk [vmem:[#allocation2 + $0x90] sm:$0xf] %vm949_vm4, %v878_v50  ;;  %v1240_v50 = vsel %vm5350_vm7, %v1238_v43, %v1239_v44  ;;  %v1463_v53 = vld [vmem:[%s5085_s17 + $0x74] sm:$0xf] }
  0xee   : > { %v1237_v51 = vsel %vm5350_vm7, %v1235_v46, %v1236_v38  ;;  %v1461_v46 = vld [vmem:[%s5085_s17 + $0x6c] sm:$0xf] }
  0xf0   : > { %1308 = vrot.lane.b32.xlu2 %v1198_v59, %s5044_s19  ;;  %v1438_v59 = vld [vmem:[%s5085_s17 + $0x10] sm:$0xf] }
  0xf1   : > { %1312 = vrot.lane.b32.xlu1 %v1204_v54, %s5044_s19 }
  0xf2   : > { %1310 = vrot.lane.b32.xlu0 %v1201_v56, %s5044_s19  ;;  %v900_v4 = vpop.permute.xlu2 %899  ;;  %v1241_v56 = vrot.slane %v1239_v44, 4 }
  0xf3   : > { %v886_v62 = vpop.permute.xlu1 %885  ;;  %997 = vst.msk [vmem:[#allocation2 + $0xbc] sm:$0xf] %vm949_vm4, %v900_v4 }
  0xf4   : > { %990 = vst.msk [vmem:[#allocation2 + $0xa0] sm:$0xf] %vm949_vm4, %v886_v62  ;;  %v884_v1 = vpop.permute.xlu0 %883  ;;  %v1243_v61 = vsel %vm5350_vm7, %v1241_v56, %v1242_v57  ;;  %v1468_v57 = vld [vmem:[%s5085_s17 + $0x88] sm:$0xf] }
  0xf5   : > { %989 = vst.msk [vmem:[#allocation2 + $0x9c] sm:$0xf] %vm949_vm4, %v884_v1  ;;  %v1441_v1 = vld [vmem:[%s5085_s17 + $0x1c] sm:$0xf] }
  0xf8   : > { %1314 = vrot.lane.b32.xlu2 %v1207_v10, %s5044_s19 }
  0xf9   : > { %1318 = vrot.lane.b32.xlu1 %v1213_v5, %s5044_s19 }
  0xfa   : > { %1316 = vrot.lane.b32.xlu0 %v1210_v7, %s5044_s19  ;;  %v1249_v19 = vpop.permute.xlu2 %1248  ;;  %v1444_v7 = vld [vmem:[%s5085_s17 + $0x28] sm:$0xf] }
  0xfb   : > { %v892_v13 = vpop.permute.xlu1 %891  ;;  %1391 = vst.msk [vmem:[#allocation2 + $0x8] sm:$0xf] %vm1388_vm8, %v1249_v19  ;;  %v1450_v19 = vld [vmem:[%s5085_s17 + $0x40] sm:$0xf] }
  0xfc   : > { %993 = vst.msk [vmem:[#allocation2 + $0xac] sm:$0xf] %vm949_vm4, %v892_v13  ;;  %v890_v16 = vpop.permute.xlu0 %889  ;;  %v1447_v13 = vld [vmem:[%s5085_s17 + $0x34] sm:$0xf] }
  0xfd   : > { %992 = vst.msk [vmem:[#allocation2 + $0xa8] sm:$0xf] %vm949_vm4, %v890_v16 }
 0x100   : > { %1320 = vrot.lane.b32.xlu2 %v1216_v26, %s5044_s19  ;;  %v1453_v26 = vld [vmem:[%s5085_s17 + $0x4c] sm:$0xf] }
 0x101   : > { %1324 = vrot.lane.b32.xlu1 %v1222_v20, %s5044_s19  ;;  %v1449_v20 = vld [vmem:[%s5085_s17 + $0x3c] sm:$0xf] }
 0x102   : > { %1322 = vrot.lane.b32.xlu0 %v1219_v22, %s5044_s19  ;;  %v1255_v35 = vpop.permute.xlu2 %1254 }
 0x103   : > { %v898_v29 = vpop.permute.xlu1 %897  ;;  %1394 = vst.msk [vmem:[#allocation2 + $0x14] sm:$0xf] %vm1388_vm8, %v1255_v35 }
 0x104   : > { %996 = vst.msk [vmem:[#allocation2 + $0xb8] sm:$0xf] %vm949_vm4, %v898_v29  ;;  %v896_v32 = vpop.permute.xlu0 %895 }
 0x105   : > { %995 = vst.msk [vmem:[#allocation2 + $0xb4] sm:$0xf] %vm949_vm4, %v896_v32  ;;  %v1456_v32 = vld [vmem:[%s5085_s17 + $0x58] sm:$0xf] }
 0x108   : > { %1326 = vrot.lane.b32.xlu2 %v1225_v42, %s5044_s19 }
 0x109   : > { %1330 = vrot.lane.b32.xlu1 %v1231_v37, %s5044_s19 }
 0x10a   : > { %1328 = vrot.lane.b32.xlu0 %v1228_v39, %s5044_s19  ;;  %v1261_v49 = vpop.permute.xlu2 %1260  ;;  %v1459_v39 = vld [vmem:[%s5085_s17 + $0x64] sm:$0xf] }
 0x10b   : > { %v1247_v45 = vpop.permute.xlu1 %1246  ;;  %1397 = vst.msk [vmem:[#allocation2 + $0x20] sm:$0xf] %vm1388_vm8, %v1261_v49 }
 0x10c   : > { %1390 = vst.msk [vmem:[#allocation2 + $0x4] sm:$0xf] %vm1388_vm8, %v1247_v45  ;;  %v1245_v47 = vpop.permute.xlu0 %1244  ;;  %v1462_v45 = vld [vmem:[%s5085_s17 + $0x70] sm:$0xf] }
 0x10d   : > { %1389 = vst.msk [vmem:[#allocation2] sm:$0xf] %vm1388_vm8, %v1245_v47  ;;  %v1460_v47 = vld [vmem:[%s5085_s17 + $0x68] sm:$0xf] }
 0x110   : > { %1332 = vrot.lane.b32.xlu2 %v1234_v52, %s5044_s19  ;;  %v1464_v52 = vld [vmem:[%s5085_s17 + $0x78] sm:$0xf] }
 0x111   : > { %1336 = vrot.lane.b32.xlu1 %v1240_v50, %s5044_s19 }
 0x112   : > { %1334 = vrot.lane.b32.xlu0 %v1237_v51, %s5044_s19  ;;  %v1267_v58 = vpop.permute.xlu2 %1266  ;;  %v1465_v51 = vld [vmem:[%s5085_s17 + $0x7c] sm:$0xf] }
 0x113   : > { %v1253_v54 = vpop.permute.xlu1 %1252  ;;  %1400 = vst.msk [vmem:[#allocation2 + $0x2c] sm:$0xf] %vm1388_vm8, %v1267_v58  ;;  %v1467_v58 = vld [vmem:[%s5085_s17 + $0x84] sm:$0xf] }
 0x114   : > { %1393 = vst.msk [vmem:[#allocation2 + $0x10] sm:$0xf] %vm1388_vm8, %v1253_v54  ;;  %v1251_v55 = vpop.permute.xlu0 %1250 }
 0x115   : > { %1392 = vst.msk [vmem:[#allocation2 + $0xc] sm:$0xf] %vm1388_vm8, %v1251_v55 }
 0x118   : > { %1338 = vrot.lane.b32.xlu2 %v1243_v61, %s5044_s19 }
 0x119   : > { %1535 = vrot.lane.b32.xlu1 %v1438_v59, %s5045_s20  ;;  %v1466_v59 = vld [vmem:[%s5085_s17 + $0x80] sm:$0xf] }
 0x11a   : > { %1533 = vrot.lane.b32.xlu0 %v1437_v60, %s5045_s20  ;;  %v1273_v0 = vpop.permute.xlu2 %1272 }
 0x11b   : > { %v1259_v62 = vpop.permute.xlu1 %1258  ;;  %1403 = vst.msk [vmem:[#allocation2 + $0x38] sm:$0xf] %vm1388_vm8, %v1273_v0  ;;  %v1470_v0 = vld [vmem:[%s5085_s17 + $0x90] sm:$0xf] }
 0x11c   : > { %1396 = vst.msk [vmem:[#allocation2 + $0x1c] sm:$0xf] %vm1388_vm8, %v1259_v62  ;;  %v1257_v63 = vpop.permute.xlu0 %1256 }
 0x11d   : > { %1395 = vst.msk [vmem:[#allocation2 + $0x18] sm:$0xf] %vm1388_vm8, %v1257_v63  ;;  %v1471_v63 = vld [vmem:[%s5085_s17 + $0x94] sm:$0xf] }
 0x120   : > { %1537 = vrot.lane.b32.xlu2 %v1439_v3, %s5045_s20 }
 0x121   : > { %1541 = vrot.lane.b32.xlu1 %v1441_v1, %s5045_s20  ;;  %v1469_v1 = vld [vmem:[%s5085_s17 + $0x8c] sm:$0xf] }
 0x122   : > { %1539 = vrot.lane.b32.xlu0 %v1440_v2, %s5045_s20  ;;  %v1279_v6 = vpop.permute.xlu2 %1278 }
 0x123   : > { %v1265_v4 = vpop.permute.xlu1 %1264  ;;  %1406 = vst.msk [vmem:[#allocation2 + $0x44] sm:$0xf] %vm1388_vm8, %v1279_v6  ;;  %v1473_v6 = vld [vmem:[%s5085_s17 + $0x9c] sm:$0xf] }
 0x124   : > { %1399 = vst.msk [vmem:[#allocation2 + $0x28] sm:$0xf] %vm1388_vm8, %v1265_v4  ;;  %v1263_v5 = vpop.permute.xlu0 %1262 }
 0x125   : > { %1398 = vst.msk [vmem:[#allocation2 + $0x24] sm:$0xf] %vm1388_vm8, %v1263_v5  ;;  %v1474_v5 = vld [vmem:[%s5085_s17 + $0xa0] sm:$0xf] }
 0x128   : > { %1543 = vrot.lane.b32.xlu2 %v1442_v9, %s5045_s20 }
 0x129   : > { %1547 = vrot.lane.b32.xlu1 %v1444_v7, %s5045_s20  ;;  %v1472_v7 = vld [vmem:[%s5085_s17 + $0x98] sm:$0xf] }
 0x12a   : > { %1545 = vrot.lane.b32.xlu0 %v1443_v8, %s5045_s20  ;;  %v1285_v12 = vpop.permute.xlu2 %1284 }
 0x12b   : > { %v1271_v10 = vpop.permute.xlu1 %1270  ;;  %1409 = vst.msk [vmem:[#allocation2 + $0x50] sm:$0xf] %vm1388_vm8, %v1285_v12  ;;  %v1476_v12 = vld [vmem:[%s5085_s17 + $0xa8] sm:$0xf] }
 0x12c   : > { %1402 = vst.msk [vmem:[#allocation2 + $0x34] sm:$0xf] %vm1388_vm8, %v1271_v10  ;;  %v1269_v11 = vpop.permute.xlu0 %1268 }
 0x12d   : > { %1401 = vst.msk [vmem:[#allocation2 + $0x30] sm:$0xf] %vm1388_vm8, %v1269_v11  ;;  %v1477_v11 = vld [vmem:[%s5085_s17 + $0xac] sm:$0xf] }
 0x130   : > { %1549 = vrot.lane.b32.xlu2 %v1445_v15, %s5045_s20 }
 0x131   : > { %1553 = vrot.lane.b32.xlu1 %v1447_v13, %s5045_s20  ;;  %v1475_v13 = vld [vmem:[%s5085_s17 + $0xa4] sm:$0xf] }
 0x132   : > { %1551 = vrot.lane.b32.xlu0 %v1446_v14, %s5045_s20  ;;  %v1291_v18 = vpop.permute.xlu2 %1290  ;;  %v1727_v14 = vld [vmem:[%s5085_s17 + $0x10] sm:$0xf] }
 0x133   : > { %v1277_v16 = vpop.permute.xlu1 %1276  ;;  %1412 = vst.msk [vmem:[#allocation2 + $0x5c] sm:$0xf] %vm1388_vm8, %v1291_v18 }
 0x134   : > { %1405 = vst.msk [vmem:[#allocation2 + $0x40] sm:$0xf] %vm1388_vm8, %v1277_v16  ;;  %v1275_v17 = vpop.permute.xlu0 %1274  ;;  %v1726_v16 = vld [vmem:[%s5085_s17 + $0xc] sm:$0xf] }
 0x135   : > { %1404 = vst.msk [vmem:[#allocation2 + $0x3c] sm:$0xf] %vm1388_vm8, %v1275_v17 }
 0x138   : > { %1555 = vrot.lane.b32.xlu2 %v1448_v21, %s5045_s20  ;;  %v1480_v21 = vld [vmem:[%s5085_s17 + $0xb8] sm:$0xf] }
 0x139   : > { %1559 = vrot.lane.b32.xlu1 %v1450_v19, %s5045_s20  ;;  %v1785_v19 = vshll.u32 %v1727_v14, 16 }
 0x13a   : > { %1557 = vrot.lane.b32.xlu0 %v1449_v20, %s5045_s20  ;;  %v1297_v25 = vpop.permute.xlu2 %1296  ;;  %v1789_v20 = vshrl.u32 %v1727_v14, 16 }
 0x13b   : > { %v1283_v22 = vpop.permute.xlu1 %1282  ;;  %1415 = vst.msk [vmem:[#allocation2 + $0x68] sm:$0xf] %vm1388_vm8, %v1297_v25  ;;  %v1479_v25 = vld [vmem:[%s5085_s17 + $0xb4] sm:$0xf] }
 0x13c   : > { %1408 = vst.msk [vmem:[#allocation2 + $0x4c] sm:$0xf] %vm1388_vm8, %v1283_v22  ;;  %v1281_v23 = vpop.permute.xlu0 %1280  ;;  %v1776_v22 = vshrl.u32 %v1726_v16, 16 }
 0x13d   : > { %1407 = vst.msk [vmem:[#allocation2 + $0x48] sm:$0xf] %vm1388_vm8, %v1281_v23  ;;  %v1779_v23 = vshll.u32 %v1726_v16, 16 }
 0x140   : > { %1561 = vrot.lane.b32.xlu2 %v1451_v28, %s5045_s20  ;;  %v1791_v28 = vrot.slane %v1789_v20, 4  ;;  %v1736_v20 = vld [vmem:[%s5085_s17 + $0x34] sm:$0xf] }
 0x141   : > { %1565 = vrot.lane.b32.xlu1 %v1453_v26, %s5045_s20  ;;  %v1478_v26 = vld [vmem:[%s5085_s17 + $0xb0] sm:$0xf] }
 0x142   : > { %1563 = vrot.lane.b32.xlu0 %v1452_v27, %s5045_s20  ;;  %v1303_v31 = vpop.permute.xlu2 %1302  ;;  %v1787_v27 = vrot.slane %v1785_v19, 5 }
 0x143   : > { %v1289_v29 = vpop.permute.xlu1 %1288  ;;  %1418 = vst.msk [vmem:[#allocation2 + $0x74] sm:$0xf] %vm1388_vm8, %v1303_v31  ;;  %v1781_v31 = vrot.slane %v1779_v23, 5  ;;  %v1735_v23 = vld [vmem:[%s5085_s17 + $0x30] sm:$0xf] }
 0x144   : > { %1411 = vst.msk [vmem:[#allocation2 + $0x58] sm:$0xf] %vm1388_vm8, %v1289_v29  ;;  %v1287_v30 = vpop.permute.xlu0 %1286  ;;  %v1728_v29 = vld [vmem:[%s5085_s17 + $0x14] sm:$0xf] }
 0x145   : > { %1410 = vst.msk [vmem:[#allocation2 + $0x54] sm:$0xf] %vm1388_vm8, %v1287_v30  ;;  %v1778_v30 = vrot.slane %v1776_v22, 4 }
 0x148   : > { %1567 = vrot.lane.b32.xlu2 %v1454_v34, %s5045_s20 }
 0x149   : > { %1571 = vrot.lane.b32.xlu1 %v1456_v32, %s5045_s20 }
 0x14a   : > { %1569 = vrot.lane.b32.xlu0 %v1455_v33, %s5045_s20  ;;  %v1309_v38 = vpop.permute.xlu2 %1308  ;;  %v1730_v33 = vld [vmem:[%s5085_s17 + $0x1c] sm:$0xf] }
 0x14b   : > { %v1295_v35 = vpop.permute.xlu1 %1294  ;;  %1421 = vst.msk [vmem:[#allocation2 + $0x80] sm:$0xf] %vm1388_vm8, %v1309_v38  ;;  %v1795_v38 = vshll.u32 %v1728_v29, 16 }
 0x14c   : > { %1414 = vst.msk [vmem:[#allocation2 + $0x64] sm:$0xf] %vm1388_vm8, %v1295_v35  ;;  %v1293_v37 = vpop.permute.xlu0 %1292  ;;  %v1729_v35 = vld [vmem:[%s5085_s17 + $0x18] sm:$0xf] }
 0x14d   : > { %1413 = vst.msk [vmem:[#allocation2 + $0x60] sm:$0xf] %vm1388_vm8, %v1293_v37  ;;  %v1792_v37 = vor.u32 %v1791_v28, %v1787_v27 }
 0x150   : > { %1573 = vrot.lane.b32.xlu2 %v1457_v41, %s5045_s20  ;;  %v1782_v41 = vor.u32 %v1781_v31, %v1778_v30  ;;  %v1875_v31 = vshll.u32 %v1736_v20, 16 }
 0x151   : > { %1577 = vrot.lane.b32.xlu1 %v1459_v39, %s5045_s20 }
 0x152   : > { %1575 = vrot.lane.b32.xlu0 %v1458_v40, %s5045_s20  ;;  %v1315_v44 = vpop.permute.xlu2 %1314  ;;  %v1483_v40 = vld [vmem:[%s5085_s17 + $0xc4] sm:$0xf] }
 0x153   : > { %v1301_v42 = vpop.permute.xlu1 %1300  ;;  %1424 = vst.msk [vmem:[#allocation2 + $0x8c] sm:$0xf] %vm1388_vm8, %v1315_v44  ;;  %v1482_v44 = vld [vmem:[%s5085_s17 + $0xc0] sm:$0xf] }
 0x154   : > { %1417 = vst.msk [vmem:[#allocation2 + $0x70] sm:$0xf] %vm1388_vm8, %v1301_v42  ;;  %v1299_v43 = vpop.permute.xlu0 %1298  ;;  %v1815_v42 = vshll.u32 %v1730_v33, 16 }
 0x155   : > { %1416 = vst.msk [vmem:[#allocation2 + $0x6c] sm:$0xf] %vm1388_vm8, %v1299_v43  ;;  %v1819_v43 = vshrl.u32 %v1730_v33, 16 }
 0x158   : > { %1579 = vrot.lane.b32.xlu2 %v1460_v47, %s5045_s20  ;;  %v1799_v47 = vshrl.u32 %v1728_v29, 16 }
 0x159   : > { %1583 = vrot.lane.b32.xlu1 %v1462_v45, %s5045_s20  ;;  %v1805_v45 = vshll.u32 %v1729_v35, 16 }
 0x15a   : > { %1581 = vrot.lane.b32.xlu0 %v1461_v46, %s5045_s20  ;;  %v1321_v50 = vpop.permute.xlu2 %1320  ;;  %v1809_v46 = vshrl.u32 %v1729_v35, 16  ;;  %v1869_v35 = vshrl.u32 %v1735_v23, 16 }
 0x15b   : > { %v1307_v48 = vpop.permute.xlu1 %1306  ;;  %1427 = vst.msk [vmem:[#allocation2 + $0x98] sm:$0xf] %vm1388_vm8, %v1321_v50  ;;  %v1797_v50 = vrot.slane %v1795_v38, 5 }
 0x15c   : > { %1420 = vst.msk [vmem:[#allocation2 + $0x7c] sm:$0xf] %vm1388_vm8, %v1307_v48  ;;  %v1305_v49 = vpop.permute.xlu0 %1304  ;;  %v1481_v48 = vld [vmem:[%s5085_s17 + $0xbc] sm:$0xf] }
 0x15d   : > { %1419 = vst.msk [vmem:[#allocation2 + $0x78] sm:$0xf] %vm1388_vm8, %v1305_v49  ;;  %v1793_v49 = vrot.slane %v1792_v37, 4 }
 0x160   : > { %1585 = vrot.lane.b32.xlu2 %v1463_v53, %s5045_s20  ;;  %v1821_v53 = vrot.slane %v1819_v43, 4  ;;  %v5850_v43 = vrot.slane %v1875_v31, 5 }
 0x161   : > { %1589 = vrot.lane.b32.xlu1 %v1465_v51, %s5045_s20  ;;  %v1783_v51 = vrot.slane %v1782_v41, 4 }
 0x162   : > { %1587 = vrot.lane.b32.xlu0 %v1464_v52, %s5045_s20  ;;  %v1327_v56 = vpop.permute.xlu2 %1326  ;;  %v5807_v52 = vrot.slane %v1815_v42, 5 }
 0x163   : > { %v1313_v54 = vpop.permute.xlu1 %1312  ;;  %1430 = vst.msk [vmem:[#allocation2 + $0xa4] sm:$0xf] %vm1388_vm8, %v1327_v56  ;;  %v1731_v56 = vld [vmem:[%s5085_s17 + $0x20] sm:$0xf] }
 0x164   : > { %1423 = vst.msk [vmem:[#allocation2 + $0x88] sm:$0xf] %vm1388_vm8, %v1313_v54  ;;  %v1311_v55 = vpop.permute.xlu0 %1310  ;;  %v1733_v54 = vld [vmem:[%s5085_s17 + $0x28] sm:$0xf] }
 0x165   : > { %1422 = vst.msk [vmem:[#allocation2 + $0x84] sm:$0xf] %vm1388_vm8, %v1311_v55 }
 0x168   : > { %1591 = vrot.lane.b32.xlu2 %v1466_v59, %s5045_s20  ;;  %v1732_v59 = vld [vmem:[%s5085_s17 + $0x24] sm:$0xf] }
 0x169   : > { %1595 = vrot.lane.b32.xlu1 %v1468_v57, %s5045_s20  ;;  %v5812_v57 = vrot.slane %v1805_v45, 5  ;;  %v1739_v45 = vld [vmem:[%s5085_s17 + $0x40] sm:$0xf] }
 0x16a   : > { %1593 = vrot.lane.b32.xlu0 %v1467_v58, %s5045_s20  ;;  %v1333_v62 = vpop.permute.xlu2 %1332  ;;  %v1811_v58 = vrot.slane %v1809_v46, 4 }
 0x16b   : > { %v1319_v60 = vpop.permute.xlu1 %1318  ;;  %1433 = vst.msk [vmem:[#allocation2 + $0xb0] sm:$0xf] %vm1388_vm8, %v1333_v62  ;;  %v1798_v62 = vsel %vm5095_vm2, %v1793_v49, %v1797_v50  ;;  %v1871_v49 = vrot.slane %v1869_v35, 4 }
 0x16c   : > { %1426 = vst.msk [vmem:[#allocation2 + $0x94] sm:$0xf] %vm1388_vm8, %v1319_v60  ;;  %v1317_v61 = vpop.permute.xlu0 %1316 }
 0x16d   : > { %1425 = vst.msk [vmem:[#allocation2 + $0x90] sm:$0xf] %vm1388_vm8, %v1317_v61  ;;  %v1801_v61 = vrot.slane %v1799_v47, 4  ;;  %v1737_v47 = vld [vmem:[%s5085_s17 + $0x38] sm:$0xf] }
 0x170   : > { %1597 = vrot.lane.b32.xlu2 %v1469_v1, %s5045_s20  ;;  %v1849_v1 = vshrl.u32 %v1733_v54, 16 }
 0x171   : > { %1601 = vrot.lane.b32.xlu1 %v1471_v63, %s5045_s20 }
 0x172   : > { %1599 = vrot.lane.b32.xlu0 %v1470_v0, %s5045_s20  ;;  %v1339_v4 = vpop.permute.xlu2 %1338  ;;  %v1845_v0 = vshll.u32 %v1733_v54, 16 }
 0x173   : > { %v1325_v2 = vpop.permute.xlu1 %1324  ;;  %1436 = vst.msk [vmem:[#allocation2 + $0xbc] sm:$0xf] %vm1388_vm8, %v1339_v4  ;;  %v1835_v4 = vshll.u32 %v1732_v59, 16 }
 0x174   : > { %1429 = vst.msk [vmem:[#allocation2 + $0xa0] sm:$0xf] %vm1388_vm8, %v1325_v2  ;;  %v1323_v3 = vpop.permute.xlu0 %1322  ;;  %v1822_v2 = vor.u32 %v1821_v53, %v5807_v52 }
 0x175   : > { %1428 = vst.msk [vmem:[#allocation2 + $0x9c] sm:$0xf] %vm1388_vm8, %v1323_v3  ;;  %v1825_v3 = vshll.u32 %v1731_v56, 16  ;;  %v5830_v16 = vrot.slane %v1835_v4, 5 }
 0x177   : > { %v1827_v14 = vrot.slane %v1825_v3, 5 }
 0x178   : > { %1603 = vrot.lane.b32.xlu2 %v1472_v7, %s5045_s20  ;;  %v1812_v7 = vor.u32 %v1811_v58, %v5812_v57 }
 0x179   : > { %1607 = vrot.lane.b32.xlu1 %v1474_v5, %s5045_s20  ;;  %v1839_v5 = vshrl.u32 %v1732_v59, 16  ;;  %v1885_v59 = vshll.u32 %v1737_v47, 16 }
 0x17a   : > { %1605 = vrot.lane.b32.xlu0 %v1473_v6, %s5045_s20  ;;  %v1538_v10 = vpop.permute.xlu2 %1537  ;;  %v1788_v6 = vsel %vm5095_vm2, %v1783_v51, %v1787_v27  ;;  %v1813_v19 = vrot.slane %v1812_v7, 4  ;;  %v1740_v7 = vld [vmem:[%s5085_s17 + $0x44] sm:$0xf] }
 0x17b   : > { %v1331_v8 = vpop.permute.xlu1 %1330  ;;  %1680 = vst.msk [vmem:[#allocation2 + $0x8] sm:$0xf] %vm1677_vm9, %v1538_v10  ;;  %v1802_v10 = vor.u32 %v1801_v61, %v1797_v50  ;;  %v1738_v50 = vld [vmem:[%s5085_s17 + $0x3c] sm:$0xf] }
 0x17c   : > { %1432 = vst.msk [vmem:[#allocation2 + $0xac] sm:$0xf] %vm1388_vm8, %v1331_v8  ;;  %v1329_v9 = vpop.permute.xlu0 %1328  ;;  %v1829_v8 = vshrl.u32 %v1731_v56, 16  ;;  %v1818_v33 = vsel %vm5095_vm2, %v1813_v19, %v5807_v52  ;;  %v1905_v56 = vshll.u32 %v1739_v45, 16  ;;  %v1899_v61 = vshrl.u32 %v1738_v50, 16 }
 0x17d   : > { %1431 = vst.msk [vmem:[#allocation2 + $0xa8] sm:$0xf] %vm1388_vm8, %v1329_v9  ;;  %v1484_v9 = vld [vmem:[%s5085_s17 + $0xc8] sm:$0xf]  ;;  %v1803_v22 = vrot.slane %v1802_v10, 4 }
 0x17e   : > { %v5872_v3 = vrot.slane %v1905_v56, 5 }
 0x17f   : > { %v1808_v38 = vsel %vm5095_vm2, %v1803_v22, %v5812_v57  ;;  %v1909_v57 = vshrl.u32 %v1739_v45, 16 }
 0x180   : > { %1609 = vrot.lane.b32.xlu2 %v1475_v13, %s5045_s20  ;;  %v1823_v13 = vrot.slane %v1822_v2, 4 }
 0x181   : > { %1613 = vrot.lane.b32.xlu1 %v1477_v11, %s5045_s20  ;;  %v5826_v11 = vrot.slane %v1845_v0, 5  ;;  %v1889_v0 = vshrl.u32 %v1737_v47, 16  ;;  %v1911_v4 = vrot.slane %v1909_v57, 4 }
 0x182   : > { %1611 = vrot.lane.b32.xlu0 %v1476_v12, %s5045_s20  ;;  %v1544_v18 = vpop.permute.xlu2 %1543  ;;  %v1851_v12 = vrot.slane %v1849_v1, 4  ;;  %v1828_v29 = vsel %vm5095_vm2, %v1823_v13, %v1827_v14 }
 0x183   : > { %v1337_v15 = vpop.permute.xlu1 %1336  ;;  %1683 = vst.msk [vmem:[#allocation2 + $0x14] sm:$0xf] %vm1677_vm9, %v1544_v18 }
 0x184   : > { %1435 = vst.msk [vmem:[#allocation2 + $0xb8] sm:$0xf] %vm1388_vm8, %v1337_v15  ;;  %v1335_v17 = vpop.permute.xlu0 %1334  ;;  %v1734_v15 = vld [vmem:[%s5085_s17 + $0x2c] sm:$0xf] }
 0x185   : > { %1434 = vst.msk [vmem:[#allocation2 + $0xb4] sm:$0xf] %vm1388_vm8, %v1335_v17  ;;  %v1841_v17 = vrot.slane %v1839_v5, 4  ;;  %v1855_v27 = vshll.u32 %v1734_v15, 16  ;;  %v1859_v37 = vshrl.u32 %v1734_v15, 16 }
 0x186   : > { %v1741_v15 = vld [vmem:[%s5085_s17 + $0x48] sm:$0xf] }
 0x187   : > { %v1842_v30 = vor.u32 %v1841_v17, %v5830_v16  ;;  %v1857_v41 = vrot.slane %v1855_v27, 5  ;;  %v1861_v53 = vrot.slane %v1859_v37, 4  ;;  %v1912_v17 = vor.u32 %v1911_v4, %v5872_v3  ;;  %v1745_v37 = vld [vmem:[%s5085_s17 + $0x58] sm:$0xf]  ;;  %v1748_v4 = vld [vmem:[%s5085_s17 + $0x64] sm:$0xf] }
 0x188   : > { %1615 = vrot.lane.b32.xlu2 %v1478_v26, %s5045_s20  ;;  %v1852_v26 = vor.u32 %v1851_v12, %v5826_v11  ;;  %v1742_v12 = vld [vmem:[%s5085_s17 + $0x4c] sm:$0xf]  ;;  %v1929_v27 = vshrl.u32 %v1741_v15, 16 }
 0x189   : > { %1619 = vrot.lane.b32.xlu1 %v1480_v21, %s5045_s20  ;;  %v1843_v42 = vrot.slane %v1842_v30, 4  ;;  %v1862_v2 = vor.u32 %v1861_v53, %v1857_v41  ;;  %v1935_v22 = vshll.u32 %v1742_v12, 16  ;;  %v1913_v31 = vrot.slane %v1912_v17, 4 }
 0x18a   : > { %1617 = vrot.lane.b32.xlu0 %v1479_v25, %s5045_s20  ;;  %v1550_v39 = vpop.permute.xlu2 %1549  ;;  %v1831_v25 = vrot.slane %v1829_v8, 4 }
 0x18b   : > { %v1536_v32 = vpop.permute.xlu1 %1535  ;;  %1686 = vst.msk [vmem:[#allocation2 + $0x20] sm:$0xf] %vm1677_vm9, %v1550_v39 }
 0x18c   : > { %1679 = vst.msk [vmem:[#allocation2 + $0x4] sm:$0xf] %vm1677_vm9, %v1536_v32  ;;  %v1534_v34 = vpop.permute.xlu0 %1533  ;;  %v1879_v32 = vshrl.u32 %v1736_v20, 16  ;;  %v1832_v39 = vor.u32 %v1831_v25, %v1827_v14  ;;  %v1863_v14 = vrot.slane %v1862_v2, 4 }
 0x18d   : > { %1678 = vst.msk [vmem:[#allocation2] sm:$0xf] %vm1677_vm9, %v1534_v34  ;;  %v1865_v34 = vshll.u32 %v1735_v23, 16  ;;  %v1939_v23 = vshrl.u32 %v1742_v12, 16 }
 0x18e   : > { %v1833_v52 = vrot.slane %v1832_v39, 4  ;;  %v1743_v39 = vld [vmem:[%s5085_s17 + $0x50] sm:$0xf] }
 0x18f   : > { %v1941_v35 = vrot.slane %v1939_v23, 4  ;;  %v1949_v56 = vshrl.u32 %v1743_v39, 16 }
 0x190   : > { %1621 = vrot.lane.b32.xlu2 %v1481_v48, %s5045_s20  ;;  %v5855_v48 = vrot.slane %v1865_v34, 5  ;;  %v1838_v1 = vsel %vm5095_vm2, %v1833_v52, %v5830_v16  ;;  %v1891_v16 = vrot.slane %v1889_v0, 4  ;;  %v5896_v34 = vrot.slane %v1935_v22, 5 }
 0x191   : > { %1625 = vrot.lane.b32.xlu1 %v1483_v40, %s5045_s20  ;;  %v1853_v40 = vrot.slane %v1852_v26, 4  ;;  %v1925_v26 = vshll.u32 %v1741_v15, 16  ;;  %v1999_v15 = vshrl.u32 %v1748_v4, 16 }
 0x192   : > { %1623 = vrot.lane.b32.xlu0 %v1482_v44, %s5045_s20  ;;  %v1556_v63 = vpop.permute.xlu2 %1555  ;;  %v1881_v44 = vrot.slane %v1879_v32, 4 }
 0x193   : > { %v1542_v55 = vpop.permute.xlu1 %1541  ;;  %1689 = vst.msk [vmem:[#allocation2 + $0x2c] sm:$0xf] %vm1677_vm9, %v1556_v63  ;;  %v1858_v54 = vsel %vm5095_vm2, %v1853_v40, %v1857_v41  ;;  %v1872_v63 = vor.u32 %v1871_v49, %v5855_v48  ;;  %v5901_v40 = vrot.slane %v1925_v26, 5  ;;  %v1931_v41 = vrot.slane %v1929_v27, 4 }
 0x194   : > { %1682 = vst.msk [vmem:[#allocation2 + $0x10] sm:$0xf] %vm1677_vm9, %v1542_v55  ;;  %v1540_v60 = vpop.permute.xlu0 %1539  ;;  %v1882_v58 = vor.u32 %v1881_v44, %v5850_v43  ;;  %v1969_v49 = vshrl.u32 %v1745_v37, 16  ;;  %v2001_v27 = vrot.slane %v1999_v15, 4 }
 0x195   : > { %1681 = vst.msk [vmem:[#allocation2 + $0xc] sm:$0xf] %vm1677_vm9, %v1540_v60  ;;  %v1895_v60 = vshll.u32 %v1738_v50, 16  ;;  %v1942_v50 = vor.u32 %v1941_v35, %v5896_v34 }
 0x196   : > { %v1883_v5 = vrot.slane %v1882_v58, 4 }
 0x197   : > { %v5876_v8 = vrot.slane %v1895_v60, 5  ;;  %v1971_v60 = vrot.slane %v1969_v49, 4 }
 0x198   : > { %1627 = vrot.lane.b32.xlu2 %v1484_v9, %s5045_s20  ;;  %v1901_v9 = vrot.slane %v1899_v61, 4  ;;  %v1943_v61 = vrot.slane %v1942_v50, 4 }
 0x199   : > { %2261 = vrot.lane.b32.xlu1 %v1798_v62, %s5046_s21  ;;  %v1848_v62 = vsel %vm5095_vm2, %v1843_v42, %v5826_v11  ;;  %v1873_v11 = vrot.slane %v1872_v63, 4  ;;  %v1744_v42 = vld [vmem:[%s5085_s17 + $0x54] sm:$0xf]  ;;  %v1746_v63 = vld [vmem:[%s5085_s17 + $0x5c] sm:$0xf] }
 0x19a   : > { %2259 = vrot.lane.b32.xlu0 %v1788_v6, %s5046_s21  ;;  %v1562_v28 = vpop.permute.xlu2 %1561  ;;  %v1887_v6 = vrot.slane %v1885_v59, 5  ;;  %v1955_v52 = vshll.u32 %v1744_v42, 16  ;;  %v1959_v53 = vshrl.u32 %v1744_v42, 16 }
 0x19b   : > { %v1548_v18 = vpop.permute.xlu1 %1547  ;;  %1692 = vst.msk [vmem:[#allocation2 + $0x38] sm:$0xf] %vm1677_vm9, %v1562_v28  ;;  %v1878_v25 = vsel %vm5095_vm2, %v1873_v11, %v5850_v43  ;;  %v1919_v28 = vshrl.u32 %v1740_v7, 16 }
 0x19c   : > { %1685 = vst.msk [vmem:[#allocation2 + $0x1c] sm:$0xf] %vm1677_vm9, %v1548_v18  ;;  %v1546_v21 = vpop.permute.xlu0 %1545  ;;  %v1915_v18 = vshll.u32 %v1740_v7, 16  ;;  %v1888_v20 = vsel %vm5095_vm2, %v1883_v5, %v1887_v6  ;;  %v1892_v30 = vor.u32 %v1891_v16, %v1887_v6  ;;  %v5922_v0 = vrot.slane %v1955_v52, 5  ;;  %v1747_v7 = vld [vmem:[%s5085_s17 + $0x60] sm:$0xf] }
 0x19d   : > { %1684 = vst.msk [vmem:[#allocation2 + $0x18] sm:$0xf] %vm1677_vm9, %v1546_v21  ;;  %v1902_v21 = vor.u32 %v1901_v9, %v5876_v8  ;;  %v1921_v45 = vrot.slane %v1919_v28, 4  ;;  %v1985_v17 = vshll.u32 %v1747_v7, 16  ;;  %v1751_v28 = vld [vmem:[%s5085_s17 + $0x70] sm:$0xf] }
 0x19e   : > { %v1917_v32 = vrot.slane %v1915_v18, 5  ;;  %v1893_v44 = vrot.slane %v1892_v30, 4  ;;  %v1989_v18 = vshrl.u32 %v1747_v7, 16  ;;  %v1749_v30 = vld [vmem:[%s5085_s17 + $0x68] sm:$0xf] }
 0x1a0   : > { %2263 = vrot.lane.b32.xlu2 %v1808_v38, %s5046_s21  ;;  %v1898_v57 = vsel %vm5095_vm2, %v1893_v44, %v5876_v8  ;;  %v1922_v58 = vor.u32 %v1921_v45, %v1917_v32  ;;  %v1951_v8 = vrot.slane %v1949_v56, 4 }
 0x1a1   : > { %2267 = vrot.lane.b32.xlu1 %v1828_v29, %s5046_s21  ;;  %v1868_v29 = vsel %vm5095_vm2, %v1863_v14, %v5855_v48  ;;  %v1965_v48 = vshll.u32 %v1745_v37, 16  ;;  %v1995_v14 = vshll.u32 %v1748_v4, 16 }
 0x1a2   : > { %2265 = vrot.lane.b32.xlu0 %v1818_v33, %s5046_s21  ;;  %v1568_v55 = vpop.permute.xlu2 %1567  ;;  %v1903_v33 = vrot.slane %v1902_v21, 4  ;;  %v1923_v6 = vrot.slane %v1922_v58, 4 }
 0x1a3   : > { %v1554_v46 = vpop.permute.xlu1 %1553  ;;  %1695 = vst.msk [vmem:[#allocation2 + $0x44] sm:$0xf] %vm1677_vm9, %v1568_v55  ;;  %v1932_v55 = vor.u32 %v1931_v41, %v5901_v40  ;;  %v5918_v59 = vrot.slane %v1965_v48, 5  ;;  %v5942_v26 = vrot.slane %v1995_v14, 5  ;;  %v2029_v41 = vshrl.u32 %v1751_v28, 16 }
 0x1a4   : > { %1688 = vst.msk [vmem:[#allocation2 + $0x28] sm:$0xf] %vm1677_vm9, %v1554_v46  ;;  %v1552_v51 = vpop.permute.xlu0 %1551  ;;  %v1918_v46 = vsel %vm5095_vm2, %v1913_v31, %v1917_v32  ;;  %v5947_v31 = vrot.slane %v1985_v17, 5  ;;  %v1991_v32 = vrot.slane %v1989_v18, 4  ;;  %v2009_v48 = vshrl.u32 %v1749_v30, 16 }
 0x1a5   : > { %1687 = vst.msk [vmem:[#allocation2 + $0x24] sm:$0xf] %vm1677_vm9, %v1552_v51  ;;  %v1945_v51 = vshll.u32 %v1743_v39, 16  ;;  %v1972_v9 = vor.u32 %v1971_v60, %v5918_v59  ;;  %v2002_v42 = vor.u32 %v2001_v27, %v5942_v26  ;;  %v2031_v52 = vrot.slane %v2029_v41, 4  ;;  %v1754_v60 = vld [vmem:[%s5085_s17 + $0x7c] sm:$0xf] }
 0x1a6   : > { %v2059_v7 = vshrl.u32 %v1754_v60, 16 }
 0x1a7   : > { %v1973_v22 = vrot.slane %v1972_v9, 4 }
 0x1a8   : > { %2269 = vrot.lane.b32.xlu2 %v1838_v1, %s5046_s21  ;;  %v1961_v1 = vrot.slane %v1959_v53, 4  ;;  %v2003_v53 = vrot.slane %v2002_v42, 4  ;;  %v2061_v18 = vrot.slane %v2059_v7, 4 }
 0x1a9   : > { %2273 = vrot.lane.b32.xlu1 %v1858_v54, %s5046_s21  ;;  %v1908_v54 = vsel %vm5095_vm2, %v1903_v33, %v5872_v3  ;;  %v1933_v3 = vrot.slane %v1932_v55, 4  ;;  %v1750_v33 = vld [vmem:[%s5085_s17 + $0x6c] sm:$0xf]  ;;  %v1752_v55 = vld [vmem:[%s5085_s17 + $0x74] sm:$0xf] }
 0x1aa   : > { %2271 = vrot.lane.b32.xlu0 %v1848_v62, %s5046_s21  ;;  %v1574_v19 = vpop.permute.xlu2 %1573  ;;  %v1947_v62 = vrot.slane %v1945_v51, 5  ;;  %v2015_v44 = vshll.u32 %v1750_v33, 16  ;;  %v2019_v45 = vshrl.u32 %v1750_v33, 16 }
 0x1ab   : > { %v1560_v10 = vpop.permute.xlu1 %1559  ;;  %1698 = vst.msk [vmem:[#allocation2 + $0x50] sm:$0xf] %vm1677_vm9, %v1574_v19  ;;  %v1938_v16 = vsel %vm5095_vm2, %v1933_v3, %v5896_v34  ;;  %v1979_v19 = vshrl.u32 %v1746_v63, 16 }
 0x1ac   : > { %1691 = vst.msk [vmem:[#allocation2 + $0x34] sm:$0xf] %vm1677_vm9, %v1560_v10  ;;  %v1558_v13 = vpop.permute.xlu0 %1557  ;;  %v1975_v10 = vshll.u32 %v1746_v63, 16  ;;  %v1948_v12 = vsel %vm5095_vm2, %v1943_v61, %v1947_v62  ;;  %v1952_v21 = vor.u32 %v1951_v8, %v1947_v62  ;;  %v5968_v56 = vrot.slane %v2015_v44, 5  ;;  %v1753_v63 = vld [vmem:[%s5085_s17 + $0x78] sm:$0xf] }
 0x1ad   : > { %1690 = vst.msk [vmem:[#allocation2 + $0x30] sm:$0xf] %vm1677_vm9, %v1558_v13  ;;  %v1962_v13 = vor.u32 %v1961_v1, %v5922_v0  ;;  %v1981_v37 = vrot.slane %v1979_v19, 4  ;;  %v2045_v9 = vshll.u32 %v1753_v63, 16  ;;  %v1757_v19 = vld [vmem:[%s5085_s17 + $0x88] sm:$0xf] }
 0x1ae   : > { %v1977_v23 = vrot.slane %v1975_v10, 5  ;;  %v1953_v35 = vrot.slane %v1952_v21, 4  ;;  %v2049_v10 = vshrl.u32 %v1753_v63, 16  ;;  %v1755_v21 = vld [vmem:[%s5085_s17 + $0x80] sm:$0xf] }
 0x1b0   : > { %2275 = vrot.lane.b32.xlu2 %v1868_v29, %s5046_s21  ;;  %v1958_v49 = vsel %vm5095_vm2, %v1953_v35, %v5922_v0  ;;  %v1982_v50 = vor.u32 %v1981_v37, %v1977_v23  ;;  %v2011_v0 = vrot.slane %v2009_v48, 4 }
 0x1b1   : > { %2279 = vrot.lane.b32.xlu1 %v1888_v20, %s5046_s21  ;;  %v1928_v20 = vsel %vm5095_vm2, %v1923_v6, %v5901_v40  ;;  %v2025_v40 = vshll.u32 %v1751_v28, 16  ;;  %v2055_v6 = vshll.u32 %v1754_v60, 16 }
 0x1b2   : > { %2277 = vrot.lane.b32.xlu0 %v1878_v25, %s5046_s21  ;;  %v1580_v47 = vpop.permute.xlu2 %1579  ;;  %v1963_v25 = vrot.slane %v1962_v13, 4  ;;  %v1983_v62 = vrot.slane %v1982_v50, 4 }
 0x1b3   : > { %v1566_v38 = vpop.permute.xlu1 %1565  ;;  %1701 = vst.msk [vmem:[#allocation2 + $0x5c] sm:$0xf] %vm1677_vm9, %v1580_v47  ;;  %v1992_v47 = vor.u32 %v1991_v32, %v5947_v31  ;;  %v5964_v51 = vrot.slane %v2025_v40, 5  ;;  %v5988_v17 = vrot.slane %v2055_v6, 5  ;;  %v2089_v32 = vshrl.u32 %v1757_v19, 16 }
 0x1b4   : > { %1694 = vst.msk [vmem:[#allocation2 + $0x40] sm:$0xf] %vm1677_vm9, %v1566_v38  ;;  %v1564_v43 = vpop.permute.xlu0 %1563  ;;  %v1978_v38 = vsel %vm5095_vm2, %v1973_v22, %v1977_v23  ;;  %v5993_v22 = vrot.slane %v2045_v9, 5  ;;  %v2051_v23 = vrot.slane %v2049_v10, 4  ;;  %v2069_v40 = vshrl.u32 %v1755_v21, 16 }
 0x1b5   : > { %1693 = vst.msk [vmem:[#allocation2 + $0x3c] sm:$0xf] %vm1677_vm9, %v1564_v43  ;;  %v2005_v43 = vshll.u32 %v1749_v30, 16  ;;  %v2032_v1 = vor.u32 %v2031_v52, %v5964_v51  ;;  %v2062_v33 = vor.u32 %v2061_v18, %v5988_v17  ;;  %v2091_v44 = vrot.slane %v2089_v32, 4  ;;  %v1760_v52 = vld [vmem:[%s5085_s17 + $0x94] sm:$0xf] }
 0x1b6   : > { %v2119_v63 = vshrl.u32 %v1760_v52, 16  ;;  %v1762_v18 = vld [vmem:[%s5085_s17 + $0x9c] sm:$0xf] }
 0x1b7   : > { %v2033_v14 = vrot.slane %v2032_v1, 4 }
 0x1b8   : > { %2281 = vrot.lane.b32.xlu2 %v1898_v57, %s5046_s21  ;;  %v2021_v57 = vrot.slane %v2019_v45, 4  ;;  %v2063_v45 = vrot.slane %v2062_v33, 4  ;;  %v2121_v10 = vrot.slane %v2119_v63, 4 }
 0x1b9   : > { %2285 = vrot.lane.b32.xlu1 %v1918_v46, %s5046_s21  ;;  %v1968_v46 = vsel %vm5095_vm2, %v1963_v25, %v5918_v59  ;;  %v1993_v59 = vrot.slane %v1992_v47, 4  ;;  %v1756_v25 = vld [vmem:[%s5085_s17 + $0x84] sm:$0xf]  ;;  %v1758_v47 = vld [vmem:[%s5085_s17 + $0x8c] sm:$0xf] }
 0x1ba   : > { %2283 = vrot.lane.b32.xlu0 %v1908_v54, %s5046_s21  ;;  %v1586_v11 = vpop.permute.xlu2 %1585  ;;  %v2007_v54 = vrot.slane %v2005_v43, 5  ;;  %v2075_v35 = vshll.u32 %v1756_v25, 16  ;;  %v2079_v37 = vshrl.u32 %v1756_v25, 16 }
 0x1bb   : > { %v1572_v2 = vpop.permute.xlu1 %1571  ;;  %1704 = vst.msk [vmem:[#allocation2 + $0x68] sm:$0xf] %vm1677_vm9, %v1586_v11  ;;  %v1998_v8 = vsel %vm5095_vm2, %v1993_v59, %v5942_v26  ;;  %v2039_v11 = vshrl.u32 %v1752_v55, 16 }
 0x1bc   : > { %1697 = vst.msk [vmem:[#allocation2 + $0x4c] sm:$0xf] %vm1677_vm9, %v1572_v2  ;;  %v1570_v5 = vpop.permute.xlu0 %1569  ;;  %v2035_v2 = vshll.u32 %v1752_v55, 16  ;;  %v2008_v4 = vsel %vm5095_vm2, %v2003_v53, %v2007_v54  ;;  %v2012_v13 = vor.u32 %v2011_v0, %v2007_v54  ;;  %v6014_v48 = vrot.slane %v2075_v35, 5  ;;  %v1759_v55 = vld [vmem:[%s5085_s17 + $0x90] sm:$0xf] }
 0x1bd   : > { %1696 = vst.msk [vmem:[#allocation2 + $0x48] sm:$0xf] %vm1677_vm9, %v1570_v5  ;;  %v2022_v5 = vor.u32 %v2021_v57, %v5968_v56  ;;  %v2041_v28 = vrot.slane %v2039_v11, 4  ;;  %v2105_v1 = vshll.u32 %v1759_v55, 16 }
 0x1be   : > { %v2037_v15 = vrot.slane %v2035_v2, 5  ;;  %v2013_v27 = vrot.slane %v2012_v13, 4  ;;  %v2109_v2 = vshrl.u32 %v1759_v55, 16 }
 0x1bf   : > { %v6038_v13 = vrot.slane %v2105_v1, 5 }
 0x1c0   : > { %2287 = vrot.lane.b32.xlu2 %v1928_v20, %s5046_s21  ;;  %v2018_v41 = vsel %vm5095_vm2, %v2013_v27, %v5968_v56  ;;  %v2042_v42 = vor.u32 %v2041_v28, %v2037_v15  ;;  %v2071_v56 = vrot.slane %v2069_v40, 4 }
 0x1c1   : > { %2291 = vrot.lane.b32.xlu1 %v1948_v12, %s5046_s21  ;;  %v1988_v12 = vsel %vm5095_vm2, %v1983_v62, %v5947_v31  ;;  %v2085_v31 = vshll.u32 %v1757_v19, 16  ;;  %v2115_v62 = vshll.u32 %v1760_v52, 16 }
 0x1c2   : > { %2289 = vrot.lane.b32.xlu0 %v1938_v16, %s5046_s21  ;;  %v1592_v39 = vpop.permute.xlu2 %1591  ;;  %v2023_v16 = vrot.slane %v2022_v5, 4  ;;  %v2043_v54 = vrot.slane %v2042_v42, 4  ;;  %v1764_v42 = vld [vmem:[%s5085_s17 + $0xa4] sm:$0xf] }
 0x1c3   : > { %v1578_v29 = vpop.permute.xlu1 %1577  ;;  %1707 = vst.msk [vmem:[#allocation2 + $0x74] sm:$0xf] %vm1677_vm9, %v1592_v39  ;;  %v2052_v39 = vor.u32 %v2051_v23, %v5993_v22  ;;  %v6010_v43 = vrot.slane %v2085_v31, 5  ;;  %v6034_v9 = vrot.slane %v2115_v62, 5 }
 0x1c4   : > { %1700 = vst.msk [vmem:[#allocation2 + $0x58] sm:$0xf] %vm1677_vm9, %v1578_v29  ;;  %v1576_v34 = vpop.permute.xlu0 %1575  ;;  %v2038_v29 = vsel %vm5095_vm2, %v2033_v14, %v2037_v15  ;;  %v2111_v14 = vrot.slane %v2109_v2, 4  ;;  %v1763_v15 = vld [vmem:[%s5085_s17 + $0xa0] sm:$0xf] }
 0x1c5   : > { %1699 = vst.msk [vmem:[#allocation2 + $0x54] sm:$0xf] %vm1677_vm9, %v1576_v34  ;;  %v2065_v34 = vshll.u32 %v1755_v21, 16  ;;  %v2092_v57 = vor.u32 %v2091_v44, %v6010_v43  ;;  %v2145_v25 = vshll.u32 %v1763_v15, 16  ;;  %v1767_v2 = vld [vmem:[%s5085_s17 + $0xb0] sm:$0xf] }
 0x1c6   : > { %v2112_v28 = vor.u32 %v2111_v14, %v6038_v13 }
 0x1c7   : > { %v2093_v6 = vrot.slane %v2092_v57, 4 }
 0x1c8   : > { %2293 = vrot.lane.b32.xlu2 %v1958_v49, %s5046_s21  ;;  %v2081_v49 = vrot.slane %v2079_v37, 4  ;;  %v6057_v37 = vrot.slane %v2145_v25, 5 }
 0x1c9   : > { %2297 = vrot.lane.b32.xlu1 %v1978_v38, %s5046_s21  ;;  %v2028_v38 = vsel %vm5095_vm2, %v2023_v16, %v5964_v51  ;;  %v2053_v51 = vrot.slane %v2052_v39, 4  ;;  %v1766_v39 = vld [vmem:[%s5085_s17 + $0xac] sm:$0xf] }
 0x1ca   : > { %2295 = vrot.lane.b32.xlu0 %v1968_v46, %s5046_s21  ;;  %v1598_v3 = vpop.permute.xlu2 %1597  ;;  %v2067_v46 = vrot.slane %v2065_v34, 5 }
 0x1cb   : > { %v1584_v58 = vpop.permute.xlu1 %1583  ;;  %1710 = vst.msk [vmem:[#allocation2 + $0x80] sm:$0xf] %vm1677_vm9, %v1598_v3  ;;  %v2058_v0 = vsel %vm5095_vm2, %v2053_v51, %v5988_v17  ;;  %v2099_v3 = vshrl.u32 %v1758_v47, 16  ;;  %v2179_v51 = vshrl.u32 %v1766_v39, 16 }
 0x1cc   : > { %1703 = vst.msk [vmem:[#allocation2 + $0x64] sm:$0xf] %vm1677_vm9, %v1584_v58  ;;  %v1582_v61 = vpop.permute.xlu0 %1581  ;;  %v2095_v58 = vshll.u32 %v1758_v47, 16  ;;  %v2068_v60 = vsel %vm5095_vm2, %v2063_v45, %v2067_v46  ;;  %v2072_v5 = vor.u32 %v2071_v56, %v2067_v46  ;;  %v1765_v47 = vld [vmem:[%s5085_s17 + $0xa8] sm:$0xf] }
 0x1cd   : > { %1702 = vst.msk [vmem:[#allocation2 + $0x60] sm:$0xf] %vm1677_vm9, %v1582_v61  ;;  %v2082_v61 = vor.u32 %v2081_v49, %v6014_v48  ;;  %v2101_v19 = vrot.slane %v2099_v3, 4  ;;  %v2165_v57 = vshll.u32 %v1765_v47, 16  ;;  %v2181_v63 = vrot.slane %v2179_v51, 4 }
 0x1ce   : > { %v2097_v7 = vrot.slane %v2095_v58, 5  ;;  %v2073_v17 = vrot.slane %v2072_v5, 4  ;;  %v2169_v58 = vshrl.u32 %v1765_v47, 16 }
 0x1cf   : > { %v6084_v5 = vrot.slane %v2165_v57, 5 }
 0x1d0   : > { %2299 = vrot.lane.b32.xlu2 %v1988_v12, %s5046_s21  ;;  %v1761_v12 = vld [vmem:[%s5085_s17 + $0x98] sm:$0xf]  ;;  %v2078_v32 = vsel %vm5095_vm2, %v2073_v17, %v6014_v48  ;;  %v2102_v33 = vor.u32 %v2101_v19, %v2097_v7 }
 0x1d1   : > { %2303 = vrot.lane.b32.xlu1 %v2008_v4, %s5046_s21  ;;  %v2048_v4 = vsel %vm5095_vm2, %v2043_v54, %v5993_v22  ;;  %v2122_v22 = vor.u32 %v2121_v10, %v6034_v9  ;;  %v2125_v23 = vshll.u32 %v1761_v12, 16  ;;  %v2129_v31 = vshrl.u32 %v1761_v12, 16  ;;  %v1768_v10 = vld [vmem:[%s5085_s17 + $0xb4] sm:$0xf] }
 0x1d2   : > { %2301 = vrot.lane.b32.xlu0 %v1998_v8, %s5046_s21  ;;  %v1604_v30 = vpop.permute.xlu2 %1603  ;;  %v2083_v8 = vrot.slane %v2082_v61, 4  ;;  %v2103_v46 = vrot.slane %v2102_v33, 4  ;;  %v2155_v54 = vshll.u32 %v1764_v42, 16 }
 0x1d3   : > { %v1590_v20 = vpop.permute.xlu1 %1589  ;;  %1713 = vst.msk [vmem:[#allocation2 + $0x8c] sm:$0xf] %vm1677_vm9, %v1604_v30  ;;  %v2139_v30 = vshrl.u32 %v1762_v18, 16  ;;  %v2123_v34 = vrot.slane %v2122_v22, 4  ;;  %v2127_v35 = vrot.slane %v2125_v23, 5  ;;  %v2131_v48 = vrot.slane %v2129_v31, 4 }
 0x1d4   : > { %1706 = vst.msk [vmem:[#allocation2 + $0x70] sm:$0xf] %vm1677_vm9, %v1590_v20  ;;  %v1588_v26 = vpop.permute.xlu0 %1587  ;;  %v2098_v20 = vsel %vm5095_vm2, %v2093_v6, %v2097_v7  ;;  %v2088_v27 = vsel %vm5095_vm2, %v2083_v8, %v6010_v43  ;;  %v2157_v1 = vrot.slane %v2155_v54, 5  ;;  %v2171_v6 = vrot.slane %v2169_v58, 4  ;;  %v1769_v7 = vld [vmem:[%s5085_s17 + $0xb8] sm:$0xf] }
 0x1d5   : > { %1705 = vst.msk [vmem:[#allocation2 + $0x6c] sm:$0xf] %vm1677_vm9, %v1588_v26  ;;  %v2149_v26 = vshrl.u32 %v1763_v15, 16  ;;  %v2141_v44 = vrot.slane %v2139_v30, 4  ;;  %v2128_v52 = vsel %vm5095_vm2, %v2123_v34, %v2127_v35  ;;  %v2132_v61 = vor.u32 %v2131_v48, %v2127_v35  ;;  %v1772_v35 = vld [vmem:[%s5085_s17 + $0xc4] sm:$0xf] }
 0x1d6   : > { %v2209_v17 = vshrl.u32 %v1769_v7, 16  ;;  %v2172_v19 = vor.u32 %v2171_v6, %v6084_v5  ;;  %v2189_v22 = vshrl.u32 %v1767_v2, 16 }
 0x1d8   : > { %2305 = vrot.lane.b32.xlu2 %v2018_v41, %s5046_s21  ;;  %v2113_v41 = vrot.slane %v2112_v28, 4  ;;  %v1770_v28 = vld [vmem:[%s5085_s17 + $0xbc] sm:$0xf]  ;;  %v2211_v30 = vrot.slane %v2209_v17, 4 }
 0x1d9   : > { %2309 = vrot.lane.b32.xlu1 %v2038_v29, %s5046_s21  ;;  %v2135_v29 = vshll.u32 %v1762_v18, 16  ;;  %v2219_v51 = vshrl.u32 %v1770_v28, 16 }
 0x1da   : > { %2307 = vrot.lane.b32.xlu0 %v2028_v38, %s5046_s21  ;;  %v1610_v59 = vpop.permute.xlu2 %1609  ;;  %v2151_v38 = vrot.slane %v2149_v26, 4  ;;  %v2118_v55 = vsel %vm5095_vm2, %v2113_v41, %v6034_v9  ;;  %v2133_v9 = vrot.slane %v2132_v61, 4 }
 0x1db   : > { %v1596_v50 = vpop.permute.xlu1 %1595  ;;  %1716 = vst.msk [vmem:[#allocation2 + $0x98] sm:$0xf] %vm1677_vm9, %v1610_v59  ;;  %v6062_v43 = vrot.slane %v2135_v29, 5  ;;  %v2159_v59 = vshrl.u32 %v1764_v42, 16 }
 0x1dc   : > { %1709 = vst.msk [vmem:[#allocation2 + $0x7c] sm:$0xf] %vm1677_vm9, %v1596_v50  ;;  %v1594_v53 = vpop.permute.xlu0 %1593  ;;  %v2175_v50 = vshll.u32 %v1766_v39, 16  ;;  %v1771_v39 = vld [vmem:[%s5085_s17 + $0xc0] sm:$0xf] }
 0x1dd   : > { %1708 = vst.msk [vmem:[#allocation2 + $0x78] sm:$0xf] %vm1677_vm9, %v1594_v53  ;;  %v2152_v53 = vor.u32 %v2151_v38, %v6057_v37  ;;  %v2142_v56 = vor.u32 %v2141_v44, %v6062_v43  ;;  %v2138_v23 = vsel %vm5095_vm2, %v2133_v9, %v6062_v43  ;;  %v2215_v44 = vshll.u32 %v1770_v28, 16 }
 0x1de   : > { %v6079_v62 = vrot.slane %v2175_v50, 5  ;;  %v2229_v50 = vshrl.u32 %v1771_v39, 16 }
 0x1e0   : > { %2311 = vrot.lane.b32.xlu2 %v2048_v4, %s5046_s21  ;;  %v2143_v4 = vrot.slane %v2142_v56, 4  ;;  %v2182_v12 = vor.u32 %v2181_v63, %v6079_v62 }
 0x1e1   : > { %2315 = vrot.lane.b32.xlu1 %v2068_v60, %s5046_s21  ;;  %v2108_v60 = vsel %vm5095_vm2, %v2103_v46, %v6038_v13  ;;  %v2185_v13 = vshll.u32 %v1767_v2, 16  ;;  %v2239_v46 = vshrl.u32 %v1772_v35, 16 }
 0x1e2   : > { %2313 = vrot.lane.b32.xlu0 %v2058_v0, %s5046_s21  ;;  %v1616_v21 = vpop.permute.xlu2 %1615  ;;  %v2153_v0 = vrot.slane %v2152_v53, 4  ;;  %v2148_v18 = vsel %vm5095_vm2, %v2143_v4, %v6057_v37  ;;  %v2183_v26 = vrot.slane %v2182_v12, 4 }
 0x1e3   : > { %v1602_v11 = vpop.permute.xlu1 %1601  ;;  %1719 = vst.msk [vmem:[#allocation2 + $0xa4] sm:$0xf] %vm1677_vm9, %v1616_v21  ;;  %v2199_v21 = vshrl.u32 %v1768_v10, 16  ;;  %v2241_v57 = vrot.slane %v2239_v46, 4 }
 0x1e4   : > { %1712 = vst.msk [vmem:[#allocation2 + $0x88] sm:$0xf] %vm1677_vm9, %v1602_v11  ;;  %v1600_v16 = vpop.permute.xlu0 %1599  ;;  %v2161_v11 = vrot.slane %v2159_v59, 4  ;;  %v2158_v15 = vsel %vm5095_vm2, %v2153_v0, %v2157_v1 }
 0x1e5   : > { %1711 = vst.msk [vmem:[#allocation2 + $0x84] sm:$0xf] %vm1677_vm9, %v1600_v16  ;;  %v2205_v16 = vshll.u32 %v1769_v7, 16  ;;  %v2201_v34 = vrot.slane %v2199_v21, 4 }
 0x1e6   : > { %v2162_v25 = vor.u32 %v2161_v11, %v2157_v1  ;;  %v2221_v1 = vrot.slane %v2219_v51, 4  ;;  %v2459_v51 = vld [vmem:[%s5085_s17 + $0x28] sm:$0xf] }
 0x1e7   : > { %v2207_v29 = vrot.slane %v2205_v16, 5 }
 0x1e8   : > { %2317 = vrot.lane.b32.xlu2 %v2078_v32, %s5046_s21  ;;  %v2173_v32 = vrot.slane %v2172_v19, 4  ;;  %v2163_v38 = vrot.slane %v2162_v25, 4  ;;  %v2454_v25 = vld [vmem:[%s5085_s17 + $0x14] sm:$0xf] }
 0x1e9   : > { %2321 = vrot.lane.b32.xlu1 %v2098_v20, %s5046_s21  ;;  %v2195_v20 = vshll.u32 %v1768_v10, 16  ;;  %v2212_v43 = vor.u32 %v2211_v30, %v2207_v29 }
 0x1ea   : > { %2319 = vrot.lane.b32.xlu0 %v2088_v27, %s5046_s21  ;;  %v1622_v49 = vpop.permute.xlu2 %1621  ;;  %v2187_v27 = vrot.slane %v2185_v13, 5  ;;  %v2178_v47 = vsel %vm5095_vm2, %v2173_v32, %v6079_v62  ;;  %v2231_v62 = vrot.slane %v2229_v50, 4 }
 0x1eb   : > { %v1608_v40 = vpop.permute.xlu1 %1607  ;;  %1722 = vst.msk [vmem:[#allocation2 + $0xb0] sm:$0xf] %vm1677_vm9, %v1622_v49  ;;  %v2197_v33 = vrot.slane %v2195_v20, 5  ;;  %v2225_v49 = vshll.u32 %v1771_v39, 16  ;;  %v2213_v54 = vrot.slane %v2212_v43, 4 }
 0x1ec   : > { %1715 = vst.msk [vmem:[#allocation2 + $0x94] sm:$0xf] %vm1677_vm9, %v1608_v40  ;;  %v1606_v45 = vpop.permute.xlu0 %1605  ;;  %v2191_v40 = vrot.slane %v2189_v22, 4  ;;  %v2188_v41 = vsel %vm5095_vm2, %v2183_v26, %v2187_v27  ;;  %v1774_v20 = vld [vmem:[%s5085_s17 + $0xcc] sm:$0x1] }
 0x1ed   : > { %1714 = vst.msk [vmem:[#allocation2 + $0x90] sm:$0xf] %vm1677_vm9, %v1606_v45  ;;  %v2235_v45 = vshll.u32 %v1772_v35, 16  ;;  %v2202_v48 = vor.u32 %v2201_v34, %v2197_v33  ;;  %v2227_v61 = vrot.slane %v2225_v49, 5  ;;  %v2452_v26 = vld [vmem:[%s5085_s17 + $0xc] sm:$0xe] }
 0x1ee   : > { %v2192_v53 = vor.u32 %v2191_v40, %v2187_v27  ;;  %v2456_v34 = vld [vmem:[%s5085_s17 + $0x1c] sm:$0xf] }
 0x1ef   : > { %v2237_v56 = vrot.slane %v2235_v45, 5  ;;  %v2203_v59 = vrot.slane %v2202_v48, 4  ;;  %v2232_v7 = vor.u32 %v2231_v62, %v2227_v61 }
 0x1f0   : > { %2323 = vrot.lane.b32.xlu2 %v2108_v60, %s5046_s21  ;;  %v1773_v60 = vld [vmem:[%s5085_s17 + $0xc8] sm:$0xf]  ;;  %v2193_v0 = vrot.slane %v2192_v53, 4  ;;  %v2458_v53 = vld [vmem:[%s5085_s17 + $0x24] sm:$0xf] }
 0x1f1   : > { %2327 = vrot.lane.b32.xlu1 %v2128_v52, %s5046_s21  ;;  %v2168_v52 = vsel %vm5095_vm2, %v2163_v38, %v6084_v5  ;;  %v2242_v4 = vor.u32 %v2241_v57, %v2237_v56  ;;  %v2245_v5 = vshll.u32 %v1773_v60, 16  ;;  %v2208_v6 = vsel %vm5095_vm2, %v2203_v59, %v2207_v29  ;;  %v2460_v59 = vld [vmem:[%s5085_s17 + $0x2c] sm:$0xf] }
 0x1f2   : > { %2325 = vrot.lane.b32.xlu0 %v2118_v55, %s5046_s21  ;;  %v1628_v14 = vpop.permute.xlu2 %1627  ;;  %v2217_v55 = vrot.slane %v2215_v44, 5  ;;  %v2198_v9 = vsel %vm5095_vm2, %v2193_v0, %v2197_v33  ;;  %v2255_v29 = vshll.u32 %v1774_v20, 16  ;;  %v4849_v33 = vrot.slane %v2452_v26, 9  ;;  %v2457_v44 = vld [vmem:[%s5085_s17 + $0x20] sm:$0xf] }
 0x1f3   : > { %v1614_v3 = vpop.permute.xlu1 %1613  ;;  %1725 = vst.msk [vmem:[#allocation2 + $0xbc] sm:$0xf] %vm1677_vm9, %v1628_v14  ;;  %v2243_v11 = vrot.slane %v2242_v4, 4  ;;  %v2247_v12 = vrot.slane %v2245_v5, 5  ;;  %v2233_v14 = vrot.slane %v2232_v7, 4  ;;  %v2564_v48 = vrot.slane %v2457_v44, 5 }
 0x1f4   : > { %1718 = vst.msk [vmem:[#allocation2 + $0xa0] sm:$0xf] %vm1677_vm9, %v1614_v3  ;;  %v1612_v8 = vpop.permute.xlu0 %1611  ;;  %v2218_v3 = vsel %vm5095_vm2, %v2213_v54, %v2217_v55  ;;  %v2222_v10 = vor.u32 %v2221_v1, %v2217_v55  ;;  %v2257_v39 = vrot.slane %v2255_v29, 5  ;;  %v2570_v57 = vrot.slane %v2459_v51, 5  ;;  %v2461_v4 = vld [vmem:[%s5085_s17 + $0x30] sm:$0xf] }
 0x1f5   : > { %1717 = vst.msk [vmem:[#allocation2 + $0x9c] sm:$0xf] %vm1677_vm9, %v1612_v8  ;;  %v2249_v8 = vshrl.u32 %v1773_v60, 16  ;;  %v2248_v21 = vsel %vm5095_vm2, %v2243_v11, %v2247_v12  ;;  %v2567_v60 = vrot.slane %v2458_v53, 5  ;;  %v2566_v5 = vrot.slane %v2564_v48, 4 }
 0x1f6   : > { %v2223_v17 = vrot.slane %v2222_v10, 4  ;;  %v2572_v62 = vrot.slane %v2570_v57, 4  ;;  %v2463_v10 = vld [vmem:[%s5085_s17 + $0x38] sm:$0xf]  ;;  %v2576_v11 = vrot.slane %v2461_v4, 5 }
 0x1f7   : > { %v2569_v1 = vrot.slane %v2567_v60, 4  ;;  %v2466_v26 = vld [vmem:[%s5085_s17 + $0x44] sm:$0xf]  ;;  %v2470_v51 = vld [vmem:[%s5085_s17 + $0x54] sm:$0xf] }
 0x1f8   : > { %2329 = vrot.lane.b32.xlu2 %v2138_v23, %s5046_s21  ;;  %v2238_v23 = vsel %vm5095_vm2, %v2233_v14, %v2237_v56  ;;  %v2228_v27 = vsel %vm5095_vm2, %v2223_v17, %v2227_v61  ;;  %v2582_v14 = vrot.slane %v2463_v10, 5  ;;  %v2465_v17 = vld [vmem:[%s5085_s17 + $0x40] sm:$0xf] }
 0x1f9   : > { %2333 = vrot.lane.b32.xlu1 %v2158_v15, %s5046_s21  ;;  %v2453_v15 = vld [vmem:[%s5085_s17 + $0x10] sm:$0xf] }
 0x1fa   : > { %2331 = vrot.lane.b32.xlu0 %v2148_v18, %s5046_s21  ;;  %v2264_v42 = vpop.permute.xlu2 %2263  ;;  %v2251_v18 = vrot.slane %v2249_v8, 4  ;;  %v2552_v22 = vrot.slane %v2453_v15, 5 }
 0x1fb   : > { %v1620_v31 = vpop.permute.xlu1 %1619  ;;  %2406 = vst.msk [vmem:[#allocation2 + $0x8] sm:$0xf] %vm2403_vm10, %v2264_v42  ;;  %v2561_v42 = vrot.slane %v2456_v34, 5 }
 0x1fc   : > { %1721 = vst.msk [vmem:[#allocation2 + $0xac] sm:$0xf] %vm1677_vm9, %v1620_v31  ;;  %v1618_v37 = vpop.permute.xlu0 %1617  ;;  %v2252_v28 = vor.u32 %v2251_v18, %v2247_v12  ;;  %v2554_v30 = vrot.slane %v2552_v22, 4  ;;  %v2555_v31 = vrot.slane %v2454_v25, 5  ;;  %v2553_v43 = vsel %vm5350_vm7, %v4849_v33, %v2552_v22  ;;  %v2468_v33 = vld [vmem:[%s5085_s17 + $0x4c] sm:$0xf] }
 0x1fd   : > { %1720 = vst.msk [vmem:[#allocation2 + $0xa8] sm:$0xf] %vm1677_vm9, %v1618_v37  ;;  %v2455_v37 = vld [vmem:[%s5085_s17 + $0x18] sm:$0xf]  ;;  %v2568_v12 = vsel %vm5350_vm7, %v2566_v5, %v2567_v60 }
 0x1fe   : > { %v2253_v38 = vrot.slane %v2252_v28, 4  ;;  %v2558_v45 = vrot.slane %v2455_v37, 5  ;;  %v2557_v54 = vrot.slane %v2555_v31, 4  ;;  %v2584_v37 = vrot.slane %v2582_v14, 4 }
 0x200   : > { %2335 = vrot.lane.b32.xlu2 %v2168_v52, %s5046_s21  ;;  %v2258_v46 = vsel %vm5095_vm2, %v2253_v38, %v2257_v39  ;;  %v2560_v50 = vrot.slane %v2558_v45, 4  ;;  %v2559_v61 = vsel %vm5350_vm7, %v2557_v54, %v2558_v45 }
 0x201   : > { %2339 = vrot.lane.b32.xlu1 %v2188_v41, %s5046_s21  ;;  %v2556_v41 = vsel %vm5350_vm7, %v2554_v30, %v2555_v31  ;;  %v2591_v30 = vrot.slane %v2466_v26, 5 }
 0x202   : > { %2337 = vrot.lane.b32.xlu0 %v2178_v47, %s5046_s21  ;;  %v2270_v2 = vpop.permute.xlu2 %2269  ;;  %v2563_v47 = vrot.slane %v2561_v42, 4 }
 0x203   : > { %v1626_v58 = vpop.permute.xlu1 %1625  ;;  %2409 = vst.msk [vmem:[#allocation2 + $0x14] sm:$0xf] %vm2403_vm10, %v2270_v2  ;;  %v2462_v2 = vld [vmem:[%s5085_s17 + $0x34] sm:$0xf] }
 0x204   : > { %1724 = vst.msk [vmem:[#allocation2 + $0xb8] sm:$0xf] %vm1677_vm9, %v1626_v58  ;;  %v1624_v63 = vpop.permute.xlu0 %1623  ;;  %v2565_v56 = vsel %vm5350_vm7, %v2563_v47, %v2564_v48  ;;  %v2562_v58 = vsel %vm5350_vm7, %v2560_v50, %v2561_v42  ;;  %v2579_v8 = vrot.slane %v2462_v2, 5  ;;  %v2469_v42 = vld [vmem:[%s5085_s17 + $0x50] sm:$0xf] }
 0x205   : > { %1723 = vst.msk [vmem:[#allocation2 + $0xb4] sm:$0xf] %vm1677_vm9, %v1624_v63  ;;  %v2573_v63 = vrot.slane %v2460_v59, 5  ;;  %v2473_v2 = vld [vmem:[%s5085_s17 + $0x60] sm:$0xf] }
 0x207   : > { %v2574_v7 = vsel %vm5350_vm7, %v2572_v62, %v2573_v63  ;;  %v2575_v20 = vrot.slane %v2573_v63, 4 }
 0x208   : > { %2341 = vrot.lane.b32.xlu2 %v2198_v9, %s5046_s21  ;;  %v2571_v9 = vsel %vm5350_vm7, %v2569_v1, %v2570_v57  ;;  %v2472_v57 = vld [vmem:[%s5085_s17 + $0x5c] sm:$0xf] }
 0x209   : > { %2345 = vrot.lane.b32.xlu1 %v2218_v3, %s5046_s21  ;;  %v2577_v28 = vsel %vm5350_vm7, %v2575_v20, %v2576_v11 }
 0x20a   : > { %2343 = vrot.lane.b32.xlu0 %v2208_v6, %s5046_s21  ;;  %v2276_v19 = vpop.permute.xlu2 %2275 }
 0x20b   : > { %v2262_v13 = vpop.permute.xlu1 %2261  ;;  %2412 = vst.msk [vmem:[#allocation2 + $0x20] sm:$0xf] %vm2403_vm10, %v2276_v19  ;;  %v2464_v19 = vld [vmem:[%s5085_s17 + $0x3c] sm:$0xf] }
 0x20c   : > { %2405 = vst.msk [vmem:[#allocation2 + $0x4] sm:$0xf] %vm2403_vm10, %v2262_v13  ;;  %v2260_v16 = vpop.permute.xlu0 %2259  ;;  %v2581_v13 = vrot.slane %v2579_v8, 4 }
 0x20d   : > { %2404 = vst.msk [vmem:[#allocation2] sm:$0xf] %vm2403_vm10, %v2260_v16  ;;  %v2578_v16 = vrot.slane %v2576_v11, 4 }
 0x20e   : > { %v2583_v22 = vsel %vm5350_vm7, %v2581_v13, %v2582_v14 }
 0x20f   : > { %v2580_v25 = vsel %vm5350_vm7, %v2578_v16, %v2579_v8  ;;  %v2475_v8 = vld [vmem:[%s5085_s17 + $0x68] sm:$0xf] }
 0x210   : > { %2347 = vrot.lane.b32.xlu2 %v2228_v27, %s5046_s21  ;;  %v2585_v27 = vrot.slane %v2464_v19, 5 }
 0x211   : > { %2351 = vrot.lane.b32.xlu1 %v2248_v21, %s5046_s21 }
 0x212   : > { %2349 = vrot.lane.b32.xlu0 %v2238_v23, %s5046_s21  ;;  %v2282_v40 = vpop.permute.xlu2 %2281  ;;  %v2588_v23 = vrot.slane %v2465_v17, 5  ;;  %v2586_v44 = vsel %vm5350_vm7, %v2584_v37, %v2585_v27  ;;  %v2476_v17 = vld [vmem:[%s5085_s17 + $0x6c] sm:$0xf] }
 0x213   : > { %v2268_v32 = vpop.permute.xlu1 %2267  ;;  %2415 = vst.msk [vmem:[#allocation2 + $0x2c] sm:$0xf] %vm2403_vm10, %v2282_v40  ;;  %v2597_v40 = vrot.slane %v2468_v33, 5  ;;  %v2479_v33 = vld [vmem:[%s5085_s17 + $0x78] sm:$0xf] }
 0x214   : > { %2408 = vst.msk [vmem:[#allocation2 + $0x10] sm:$0xf] %vm2403_vm10, %v2268_v32  ;;  %v2266_v35 = vpop.permute.xlu0 %2265  ;;  %v2590_v29 = vrot.slane %v2588_v23, 4  ;;  %v2587_v32 = vrot.slane %v2585_v27, 4 }
 0x215   : > { %2407 = vst.msk [vmem:[#allocation2 + $0xc] sm:$0xf] %vm2403_vm10, %v2266_v35  ;;  %v2467_v35 = vld [vmem:[%s5085_s17 + $0x48] sm:$0xf]  ;;  %v2599_v45 = vrot.slane %v2597_v40, 4 }
 0x216   : > { %v2592_v39 = vsel %vm5350_vm7, %v2590_v29, %v2591_v30 }
 0x218   : > { %2353 = vrot.lane.b32.xlu2 %v2258_v46, %s5046_s21  ;;  %v2600_v46 = vrot.slane %v2469_v42, 5 }
 0x219   : > { %2697 = vrot.lane.b32.xlu1 %v2556_v41, %s5047_s22  ;;  %v2589_v41 = vsel %vm5350_vm7, %v2587_v32, %v2588_v23  ;;  %v2478_v23 = vld [vmem:[%s5085_s17 + $0x74] sm:$0xf] }
 0x21a   : > { %2695 = vrot.lane.b32.xlu0 %v2553_v43, %s5047_s22  ;;  %v2288_v55 = vpop.permute.xlu2 %2287  ;;  %v2594_v43 = vrot.slane %v2467_v35, 5  ;;  %v2601_v54 = vsel %vm5350_vm7, %v2599_v45, %v2600_v46 }
 0x21b   : > { %v2274_v49 = vpop.permute.xlu1 %2273  ;;  %2418 = vst.msk [vmem:[#allocation2 + $0x38] sm:$0xf] %vm2403_vm10, %v2288_v55 }
 0x21c   : > { %2411 = vst.msk [vmem:[#allocation2 + $0x1c] sm:$0xf] %vm2403_vm10, %v2274_v49  ;;  %v2272_v52 = vpop.permute.xlu0 %2271  ;;  %v2596_v48 = vrot.slane %v2594_v43, 4  ;;  %v2471_v49 = vld [vmem:[%s5085_s17 + $0x58] sm:$0xf] }
 0x21d   : > { %2410 = vst.msk [vmem:[#allocation2 + $0x18] sm:$0xf] %vm2403_vm10, %v2272_v52  ;;  %v2593_v52 = vrot.slane %v2591_v30, 4  ;;  %v2606_v55 = vrot.slane %v2471_v49, 5  ;;  %v2482_v49 = vld [vmem:[%s5085_s17 + $0x84] sm:$0xf] }
 0x21f   : > { %v2595_v59 = vsel %vm5350_vm7, %v2593_v52, %v2594_v43  ;;  %v2608_v60 = vrot.slane %v2606_v55, 4 }
 0x220   : > { %2699 = vrot.lane.b32.xlu2 %v2559_v61, %s5047_s22  ;;  %v2609_v61 = vrot.slane %v2472_v57, 5 }
 0x221   : > { %2703 = vrot.lane.b32.xlu1 %v2565_v56, %s5047_s22  ;;  %v2598_v56 = vsel %vm5350_vm7, %v2596_v48, %v2597_v40  ;;  %v2481_v40 = vld [vmem:[%s5085_s17 + $0x80] sm:$0xf] }
 0x222   : > { %2701 = vrot.lane.b32.xlu0 %v2562_v58, %s5047_s22  ;;  %v2294_v6 = vpop.permute.xlu2 %2293  ;;  %v2603_v58 = vrot.slane %v2470_v51, 5  ;;  %v2610_v5 = vsel %vm5350_vm7, %v2608_v60, %v2609_v61 }
 0x223   : > { %v2280_v0 = vpop.permute.xlu1 %2279  ;;  %2421 = vst.msk [vmem:[#allocation2 + $0x44] sm:$0xf] %vm2403_vm10, %v2294_v6 }
 0x224   : > { %2414 = vst.msk [vmem:[#allocation2 + $0x28] sm:$0xf] %vm2403_vm10, %v2280_v0  ;;  %v2278_v3 = vpop.permute.xlu0 %2277  ;;  %v2605_v63 = vrot.slane %v2603_v58, 4  ;;  %v2474_v0 = vld [vmem:[%s5085_s17 + $0x64] sm:$0xf] }
 0x225   : > { %2413 = vst.msk [vmem:[#allocation2 + $0x24] sm:$0xf] %vm2403_vm10, %v2278_v3  ;;  %v2602_v3 = vrot.slane %v2600_v46, 4  ;;  %v2615_v6 = vrot.slane %v2474_v0, 5  ;;  %v2485_v0 = vld [vmem:[%s5085_s17 + $0x90] sm:$0xf] }
 0x227   : > { %v2604_v10 = vsel %vm5350_vm7, %v2602_v3, %v2603_v58  ;;  %v2617_v11 = vrot.slane %v2615_v6, 4 }
 0x228   : > { %2705 = vrot.lane.b32.xlu2 %v2568_v12, %s5047_s22  ;;  %v2618_v12 = vrot.slane %v2475_v8, 5 }
 0x229   : > { %2709 = vrot.lane.b32.xlu1 %v2574_v7, %s5047_s22  ;;  %v2607_v7 = vsel %vm5350_vm7, %v2605_v63, %v2606_v55  ;;  %v2484_v55 = vld [vmem:[%s5085_s17 + $0x8c] sm:$0xf] }
 0x22a   : > { %2707 = vrot.lane.b32.xlu0 %v2571_v9, %s5047_s22  ;;  %v2300_v21 = vpop.permute.xlu2 %2299  ;;  %v2612_v9 = vrot.slane %v2473_v2, 5  ;;  %v2619_v20 = vsel %vm5350_vm7, %v2617_v11, %v2618_v12 }
 0x22b   : > { %v2286_v15 = vpop.permute.xlu1 %2285  ;;  %2424 = vst.msk [vmem:[#allocation2 + $0x50] sm:$0xf] %vm2403_vm10, %v2300_v21 }
 0x22c   : > { %2417 = vst.msk [vmem:[#allocation2 + $0x34] sm:$0xf] %vm2403_vm10, %v2286_v15  ;;  %v2284_v18 = vpop.permute.xlu0 %2283  ;;  %v2614_v14 = vrot.slane %v2612_v9, 4  ;;  %v2477_v15 = vld [vmem:[%s5085_s17 + $0x70] sm:$0xf] }
 0x22d   : > { %2416 = vst.msk [vmem:[#allocation2 + $0x30] sm:$0xf] %vm2403_vm10, %v2284_v18  ;;  %v2611_v18 = vrot.slane %v2609_v61, 4  ;;  %v2624_v21 = vrot.slane %v2477_v15, 5  ;;  %v2488_v15 = vld [vmem:[%s5085_s17 + $0x9c] sm:$0xf] }
 0x22f   : > { %v2613_v26 = vsel %vm5350_vm7, %v2611_v18, %v2612_v9  ;;  %v2626_v27 = vrot.slane %v2624_v21, 4 }
 0x230   : > { %2711 = vrot.lane.b32.xlu2 %v2577_v28, %s5047_s22  ;;  %v2627_v28 = vrot.slane %v2478_v23, 5 }
 0x231   : > { %2715 = vrot.lane.b32.xlu1 %v2583_v22, %s5047_s22  ;;  %v2616_v22 = vsel %vm5350_vm7, %v2614_v14, %v2615_v6  ;;  %v2487_v6 = vld [vmem:[%s5085_s17 + $0x98] sm:$0xf] }
 0x232   : > { %2713 = vrot.lane.b32.xlu0 %v2580_v25, %s5047_s22  ;;  %v2306_v38 = vpop.permute.xlu2 %2305  ;;  %v2621_v25 = vrot.slane %v2476_v17, 5  ;;  %v2628_v37 = vsel %vm5350_vm7, %v2626_v27, %v2627_v28 }
 0x233   : > { %v2292_v31 = vpop.permute.xlu1 %2291  ;;  %2427 = vst.msk [vmem:[#allocation2 + $0x5c] sm:$0xf] %vm2403_vm10, %v2306_v38 }
 0x234   : > { %2420 = vst.msk [vmem:[#allocation2 + $0x40] sm:$0xf] %vm2403_vm10, %v2292_v31  ;;  %v2290_v34 = vpop.permute.xlu0 %2289  ;;  %v2623_v30 = vrot.slane %v2621_v25, 4  ;;  %v2480_v31 = vld [vmem:[%s5085_s17 + $0x7c] sm:$0xf] }
 0x235   : > { %2419 = vst.msk [vmem:[#allocation2 + $0x3c] sm:$0xf] %vm2403_vm10, %v2290_v34  ;;  %v2620_v34 = vrot.slane %v2618_v12, 4  ;;  %v2633_v38 = vrot.slane %v2480_v31, 5  ;;  %v2491_v31 = vld [vmem:[%s5085_s17 + $0xa8] sm:$0xf] }
 0x237   : > { %v2622_v42 = vsel %vm5350_vm7, %v2620_v34, %v2621_v25  ;;  %v2635_v43 = vrot.slane %v2633_v38, 4 }
 0x238   : > { %2717 = vrot.lane.b32.xlu2 %v2586_v44, %s5047_s22  ;;  %v2636_v44 = vrot.slane %v2481_v40, 5 }
 0x239   : > { %2721 = vrot.lane.b32.xlu1 %v2592_v39, %s5047_s22  ;;  %v2625_v39 = vsel %vm5350_vm7, %v2623_v30, %v2624_v21  ;;  %v2490_v21 = vld [vmem:[%s5085_s17 + $0xa4] sm:$0xf] }
 0x23a   : > { %2719 = vrot.lane.b32.xlu0 %v2589_v41, %s5047_s22  ;;  %v2312_v53 = vpop.permute.xlu2 %2311  ;;  %v2630_v41 = vrot.slane %v2479_v33, 5  ;;  %v2637_v52 = vsel %vm5350_vm7, %v2635_v43, %v2636_v44 }
 0x23b   : > { %v2298_v47 = vpop.permute.xlu1 %2297  ;;  %2430 = vst.msk [vmem:[#allocation2 + $0x68] sm:$0xf] %vm2403_vm10, %v2312_v53 }
 0x23c   : > { %2423 = vst.msk [vmem:[#allocation2 + $0x4c] sm:$0xf] %vm2403_vm10, %v2298_v47  ;;  %v2296_v50 = vpop.permute.xlu0 %2295  ;;  %v2632_v46 = vrot.slane %v2630_v41, 4  ;;  %v2483_v47 = vld [vmem:[%s5085_s17 + $0x88] sm:$0xf] }
 0x23d   : > { %2422 = vst.msk [vmem:[#allocation2 + $0x48] sm:$0xf] %vm2403_vm10, %v2296_v50  ;;  %v2629_v50 = vrot.slane %v2627_v28, 4  ;;  %v2642_v53 = vrot.slane %v2483_v47, 5  ;;  %v2494_v47 = vld [vmem:[%s5085_s17 + $0xb4] sm:$0xf] }
 0x23f   : > { %v2631_v57 = vsel %vm5350_vm7, %v2629_v50, %v2630_v41  ;;  %v2644_v58 = vrot.slane %v2642_v53, 4 }
 0x240   : > { %2723 = vrot.lane.b32.xlu2 %v2595_v59, %s5047_s22  ;;  %v2645_v59 = vrot.slane %v2484_v55, 5 }
 0x241   : > { %2727 = vrot.lane.b32.xlu1 %v2601_v54, %s5047_s22  ;;  %v2634_v54 = vsel %vm5350_vm7, %v2632_v46, %v2633_v38  ;;  %v2493_v38 = vld [vmem:[%s5085_s17 + $0xb0] sm:$0xf] }
 0x242   : > { %2725 = vrot.lane.b32.xlu0 %v2598_v56, %s5047_s22  ;;  %v2318_v4 = vpop.permute.xlu2 %2317  ;;  %v2639_v56 = vrot.slane %v2482_v49, 5  ;;  %v2646_v3 = vsel %vm5350_vm7, %v2644_v58, %v2645_v59 }
 0x243   : > { %v2304_v62 = vpop.permute.xlu1 %2303  ;;  %2433 = vst.msk [vmem:[#allocation2 + $0x74] sm:$0xf] %vm2403_vm10, %v2318_v4 }
 0x244   : > { %2426 = vst.msk [vmem:[#allocation2 + $0x58] sm:$0xf] %vm2403_vm10, %v2304_v62  ;;  %v2302_v1 = vpop.permute.xlu0 %2301  ;;  %v2641_v61 = vrot.slane %v2639_v56, 4  ;;  %v2486_v62 = vld [vmem:[%s5085_s17 + $0x94] sm:$0xf] }
 0x245   : > { %2425 = vst.msk [vmem:[#allocation2 + $0x54] sm:$0xf] %vm2403_vm10, %v2302_v1  ;;  %v2638_v1 = vrot.slane %v2636_v44, 4  ;;  %v2651_v4 = vrot.slane %v2486_v62, 5  ;;  %v2497_v62 = vld [vmem:[%s5085_s17 + $0xc0] sm:$0xf] }
 0x247   : > { %v2640_v8 = vsel %vm5350_vm7, %v2638_v1, %v2639_v56  ;;  %v2653_v9 = vrot.slane %v2651_v4, 4 }
 0x248   : > { %2729 = vrot.lane.b32.xlu2 %v2604_v10, %s5047_s22  ;;  %v2654_v10 = vrot.slane %v2487_v6, 5 }
 0x249   : > { %2733 = vrot.lane.b32.xlu1 %v2610_v5, %s5047_s22  ;;  %v2643_v5 = vsel %vm5350_vm7, %v2641_v61, %v2642_v53  ;;  %v2496_v53 = vld [vmem:[%s5085_s17 + $0xbc] sm:$0xf] }
 0x24a   : > { %2731 = vrot.lane.b32.xlu0 %v2607_v7, %s5047_s22  ;;  %v2324_v19 = vpop.permute.xlu2 %2323  ;;  %v2648_v7 = vrot.slane %v2485_v0, 5  ;;  %v2655_v18 = vsel %vm5350_vm7, %v2653_v9, %v2654_v10 }
 0x24b   : > { %v2310_v13 = vpop.permute.xlu1 %2309  ;;  %2436 = vst.msk [vmem:[#allocation2 + $0x80] sm:$0xf] %vm2403_vm10, %v2324_v19 }
 0x24c   : > { %2429 = vst.msk [vmem:[#allocation2 + $0x64] sm:$0xf] %vm2403_vm10, %v2310_v13  ;;  %v2308_v16 = vpop.permute.xlu0 %2307  ;;  %v2650_v12 = vrot.slane %v2648_v7, 4  ;;  %v2489_v13 = vld [vmem:[%s5085_s17 + $0xa0] sm:$0xf] }
 0x24d   : > { %2428 = vst.msk [vmem:[#allocation2 + $0x60] sm:$0xf] %vm2403_vm10, %v2308_v16  ;;  %v2647_v16 = vrot.slane %v2645_v59, 4  ;;  %v2660_v19 = vrot.slane %v2489_v13, 5 }
 0x24f   : > { %v2649_v23 = vsel %vm5350_vm7, %v2647_v16, %v2648_v7  ;;  %v2662_v25 = vrot.slane %v2660_v19, 4 }
 0x250   : > { %2735 = vrot.lane.b32.xlu2 %v2613_v26, %s5047_s22  ;;  %v2663_v26 = vrot.slane %v2490_v21, 5 }
 0x251   : > { %2739 = vrot.lane.b32.xlu1 %v2619_v20, %s5047_s22  ;;  %v2652_v20 = vsel %vm5350_vm7, %v2650_v12, %v2651_v4  ;;  %v2499_v4 = vld [vmem:[%s5085_s17 + $0xc8] sm:$0xf] }
 0x252   : > { %2737 = vrot.lane.b32.xlu0 %v2616_v22, %s5047_s22  ;;  %v2330_v35 = vpop.permute.xlu2 %2329  ;;  %v2657_v22 = vrot.slane %v2488_v15, 5  ;;  %v2664_v34 = vsel %vm5350_vm7, %v2662_v25, %v2663_v26  ;;  %v2888_v25 = vld [vmem:[%s5085_s17 + $0x18] sm:$0xf] }
 0x253   : > { %v2316_v29 = vpop.permute.xlu1 %2315  ;;  %2439 = vst.msk [vmem:[#allocation2 + $0x8c] sm:$0xf] %vm2403_vm10, %v2330_v35 }
 0x254   : > { %2432 = vst.msk [vmem:[#allocation2 + $0x70] sm:$0xf] %vm2403_vm10, %v2316_v29  ;;  %v2314_v32 = vpop.permute.xlu0 %2313  ;;  %v2659_v28 = vrot.slane %v2657_v22, 4  ;;  %v2492_v29 = vld [vmem:[%s5085_s17 + $0xac] sm:$0xf] }
 0x255   : > { %2431 = vst.msk [vmem:[#allocation2 + $0x6c] sm:$0xf] %vm2403_vm10, %v2314_v32  ;;  %v2656_v32 = vrot.slane %v2654_v10, 4  ;;  %v2669_v35 = vrot.slane %v2492_v29, 5 }
 0x257   : > { %v2658_v40 = vsel %vm5350_vm7, %v2656_v32, %v2657_v22  ;;  %v2671_v41 = vrot.slane %v2669_v35, 4  ;;  %v2890_v32 = vld [vmem:[%s5085_s17 + $0x20] sm:$0xf] }
 0x258   : > { %2741 = vrot.lane.b32.xlu2 %v2622_v42, %s5047_s22  ;;  %v2672_v42 = vrot.slane %v2493_v38, 5  ;;  %v2894_v38 = vld [vmem:[%s5085_s17 + $0x30] sm:$0xf] }
 0x259   : > { %2745 = vrot.lane.b32.xlu1 %v2628_v37, %s5047_s22  ;;  %v2661_v37 = vsel %vm5350_vm7, %v2659_v28, %v2660_v19 }
 0x25a   : > { %2743 = vrot.lane.b32.xlu0 %v2625_v39, %s5047_s22  ;;  %v2336_v51 = vpop.permute.xlu2 %2335  ;;  %v2666_v39 = vrot.slane %v2491_v31, 5  ;;  %v2673_v50 = vsel %vm5350_vm7, %v2671_v41, %v2672_v42  ;;  %v2891_v31 = vld [vmem:[%s5085_s17 + $0x24] sm:$0xf] }
 0x25b   : > { %v2322_v45 = vpop.permute.xlu1 %2321  ;;  %2442 = vst.msk [vmem:[#allocation2 + $0x98] sm:$0xf] %vm2403_vm10, %v2336_v51 }
 0x25c   : > { %2435 = vst.msk [vmem:[#allocation2 + $0x7c] sm:$0xf] %vm2403_vm10, %v2322_v45  ;;  %v2320_v48 = vpop.permute.xlu0 %2319  ;;  %v2668_v44 = vrot.slane %v2666_v39, 4  ;;  %v2495_v45 = vld [vmem:[%s5085_s17 + $0xb8] sm:$0xf] }
 0x25d   : > { %2434 = vst.msk [vmem:[#allocation2 + $0x78] sm:$0xf] %vm2403_vm10, %v2320_v48  ;;  %v2665_v48 = vrot.slane %v2663_v26, 4  ;;  %v2678_v51 = vrot.slane %v2495_v45, 5  ;;  %v2896_v45 = vld [vmem:[%s5085_s17 + $0x38] sm:$0xf] }
 0x25f   : > { %v2667_v55 = vsel %vm5350_vm7, %v2665_v48, %v2666_v39  ;;  %v2680_v56 = vrot.slane %v2678_v51, 4  ;;  %v2893_v39 = vld [vmem:[%s5085_s17 + $0x2c] sm:$0xf] }
 0x260   : > { %2747 = vrot.lane.b32.xlu2 %v2631_v57, %s5047_s22  ;;  %v2681_v57 = vrot.slane %v2496_v53, 5 }
 0x261   : > { %2751 = vrot.lane.b32.xlu1 %v2637_v52, %s5047_s22  ;;  %v2670_v52 = vsel %vm5350_vm7, %v2668_v44, %v2669_v35  ;;  %v2897_v44 = vld [vmem:[%s5085_s17 + $0x3c] sm:$0xf] }
 0x262   : > { %2749 = vrot.lane.b32.xlu0 %v2634_v54, %s5047_s22  ;;  %v2342_v2 = vpop.permute.xlu2 %2341  ;;  %v2675_v54 = vrot.slane %v2494_v47, 5  ;;  %v2682_v1 = vsel %vm5350_vm7, %v2680_v56, %v2681_v57  ;;  %v2683_v12 = vrot.slane %v2681_v57, 4  ;;  %v2903_v56 = vld [vmem:[%s5085_s17 + $0x54] sm:$0xf]  ;;  %v2902_v57 = vld [vmem:[%s5085_s17 + $0x50] sm:$0xf] }
 0x263   : > { %v2328_v60 = vpop.permute.xlu1 %2327  ;;  %2445 = vst.msk [vmem:[#allocation2 + $0xa4] sm:$0xf] %vm2403_vm10, %v2342_v2 }
 0x264   : > { %2438 = vst.msk [vmem:[#allocation2 + $0x88] sm:$0xf] %vm2403_vm10, %v2328_v60  ;;  %v2326_v63 = vpop.permute.xlu0 %2325  ;;  %v2677_v59 = vrot.slane %v2675_v54, 4  ;;  %v2498_v60 = vld [vmem:[%s5085_s17 + $0xc4] sm:$0xf] }
 0x265   : > { %2437 = vst.msk [vmem:[#allocation2 + $0x84] sm:$0xf] %vm2403_vm10, %v2326_v63  ;;  %v2674_v63 = vrot.slane %v2672_v42, 4  ;;  %v2687_v2 = vrot.slane %v2498_v60, 5 }
 0x267   : > { %v2676_v6 = vsel %vm5350_vm7, %v2674_v63, %v2675_v54  ;;  %v2689_v7 = vrot.slane %v2687_v2, 4  ;;  %v2905_v63 = vld [vmem:[%s5085_s17 + $0x5c] sm:$0xf] }
 0x268   : > { %2753 = vrot.lane.b32.xlu2 %v2640_v8, %s5047_s22  ;;  %v2690_v8 = vrot.slane %v2499_v4, 5  ;;  %v2909_v4 = vld [vmem:[%s5085_s17 + $0x6c] sm:$0xf] }
 0x269   : > { %2757 = vrot.lane.b32.xlu1 %v2646_v3, %s5047_s22  ;;  %v2679_v3 = vsel %vm5350_vm7, %v2677_v59, %v2678_v51  ;;  %v2899_v51 = vld [vmem:[%s5085_s17 + $0x44] sm:$0xf] }
 0x26a   : > { %2755 = vrot.lane.b32.xlu0 %v2643_v5, %s5047_s22  ;;  %v2348_v17 = vpop.permute.xlu2 %2347  ;;  %v2684_v5 = vrot.slane %v2497_v62, 5  ;;  %v2906_v62 = vld [vmem:[%s5085_s17 + $0x60] sm:$0xf] }
 0x26b   : > { %v2334_v11 = vpop.permute.xlu1 %2333  ;;  %2448 = vst.msk [vmem:[#allocation2 + $0xb0] sm:$0xf] %vm2403_vm10, %v2348_v17  ;;  %v2500_v17 = vld [vmem:[%s5085_s17 + $0xcc] sm:$0x1] }
 0x26c   : > { %2441 = vst.msk [vmem:[#allocation2 + $0x94] sm:$0xf] %vm2403_vm10, %v2334_v11  ;;  %v2332_v14 = vpop.permute.xlu0 %2331  ;;  %v2686_v10 = vrot.slane %v2684_v5, 4  ;;  %v2685_v16 = vsel %vm5350_vm7, %v2683_v12, %v2684_v5  ;;  %v2693_v21 = vrot.slane %v2500_v17, 5  ;;  %v2908_v5 = vld [vmem:[%s5085_s17 + $0x68] sm:$0xf] }
 0x26d   : > { %2440 = vst.msk [vmem:[#allocation2 + $0x90] sm:$0xf] %vm2403_vm10, %v2332_v14  ;;  %v2691_v14 = vsel %vm5350_vm7, %v2689_v7, %v2690_v8  ;;  %v2914_v17 = vld [vmem:[%s5085_s17 + $0x80] sm:$0xf] }
 0x26e   : > { %v2688_v15 = vsel %vm5350_vm7, %v2686_v10, %v2687_v2  ;;  %v2912_v10 = vld [vmem:[%s5085_s17 + $0x78] sm:$0xf] }
 0x270   : > { %2759 = vrot.lane.b32.xlu2 %v2649_v23, %s5047_s22  ;;  %v2889_v23 = vld [vmem:[%s5085_s17 + $0x1c] sm:$0xf] }
 0x271   : > { %2763 = vrot.lane.b32.xlu1 %v2655_v18, %s5047_s22 }
 0x272   : > { %2761 = vrot.lane.b32.xlu0 %v2652_v20, %s5047_s22  ;;  %v2354_v33 = vpop.permute.xlu2 %2353  ;;  %v2692_v20 = vrot.slane %v2690_v8, 4 }
 0x273   : > { %v2340_v27 = vpop.permute.xlu1 %2339  ;;  %2451 = vst.msk [vmem:[#allocation2 + $0xbc] sm:$0xf] %vm2403_vm10, %v2354_v33 }
 0x274   : > { %2444 = vst.msk [vmem:[#allocation2 + $0xa0] sm:$0xf] %vm2403_vm10, %v2340_v27  ;;  %v2338_v30 = vpop.permute.xlu0 %2337  ;;  %v2694_v26 = vsel %vm5350_vm7, %v2692_v20, %v2693_v21  ;;  %v2919_v21 = vld [vmem:[%s5085_s17 + $0x94] sm:$0xf] }
 0x275   : > { %2443 = vst.msk [vmem:[#allocation2 + $0x9c] sm:$0xf] %vm2403_vm10, %v2338_v30  ;;  %v2892_v30 = vld [vmem:[%s5085_s17 + $0x28] sm:$0xf] }
 0x278   : > { %2765 = vrot.lane.b32.xlu2 %v2658_v40, %s5047_s22 }
 0x279   : > { %2769 = vrot.lane.b32.xlu1 %v2664_v34, %s5047_s22 }
 0x27a   : > { %2767 = vrot.lane.b32.xlu0 %v2661_v37, %s5047_s22  ;;  %v2700_v49 = vpop.permute.xlu2 %2699  ;;  %v2895_v37 = vld [vmem:[%s5085_s17 + $0x34] sm:$0xf] }
 0x27b   : > { %v2346_v43 = vpop.permute.xlu1 %2345  ;;  %2842 = vst.msk [vmem:[#allocation2 + $0x8] sm:$0xf] %vm2839_vm11, %v2700_v49  ;;  %v2901_v49 = vld [vmem:[%s5085_s17 + $0x4c] sm:$0xf] }
 0x27c   : > { %2447 = vst.msk [vmem:[#allocation2 + $0xac] sm:$0xf] %vm2403_vm10, %v2346_v43  ;;  %v2344_v46 = vpop.permute.xlu0 %2343  ;;  %v2898_v43 = vld [vmem:[%s5085_s17 + $0x40] sm:$0xf] }
 0x27d   : > { %2446 = vst.msk [vmem:[#allocation2 + $0xa8] sm:$0xf] %vm2403_vm10, %v2344_v46 }
 0x280   : > { %2771 = vrot.lane.b32.xlu2 %v2667_v55, %s5047_s22  ;;  %v2904_v55 = vld [vmem:[%s5085_s17 + $0x58] sm:$0xf] }
 0x281   : > { %2775 = vrot.lane.b32.xlu1 %v2673_v50, %s5047_s22  ;;  %v2900_v50 = vld [vmem:[%s5085_s17 + $0x48] sm:$0xf] }
 0x282   : > { %2773 = vrot.lane.b32.xlu0 %v2670_v52, %s5047_s22  ;;  %v2706_v0 = vpop.permute.xlu2 %2705 }
 0x283   : > { %v2352_v58 = vpop.permute.xlu1 %2351  ;;  %2845 = vst.msk [vmem:[#allocation2 + $0x14] sm:$0xf] %vm2839_vm11, %v2706_v0 }
 0x284   : > { %2450 = vst.msk [vmem:[#allocation2 + $0xb8] sm:$0xf] %vm2403_vm10, %v2352_v58  ;;  %v2350_v61 = vpop.permute.xlu0 %2349 }
 0x285   : > { %2449 = vst.msk [vmem:[#allocation2 + $0xb4] sm:$0xf] %vm2403_vm10, %v2350_v61  ;;  %v2907_v61 = vld [vmem:[%s5085_s17 + $0x64] sm:$0xf] }
 0x288   : > { %2777 = vrot.lane.b32.xlu2 %v2676_v6, %s5047_s22 }
 0x289   : > { %2781 = vrot.lane.b32.xlu1 %v2682_v1, %s5047_s22 }
 0x28a   : > { %2779 = vrot.lane.b32.xlu0 %v2679_v3, %s5047_s22  ;;  %v2712_v13 = vpop.permute.xlu2 %2711  ;;  %v2910_v3 = vld [vmem:[%s5085_s17 + $0x70] sm:$0xf] }
 0x28b   : > { %v2698_v9 = vpop.permute.xlu1 %2697  ;;  %2848 = vst.msk [vmem:[#allocation2 + $0x20] sm:$0xf] %vm2839_vm11, %v2712_v13 }
 0x28c   : > { %2841 = vst.msk [vmem:[#allocation2 + $0x4] sm:$0xf] %vm2839_vm11, %v2698_v9  ;;  %v2696_v11 = vpop.permute.xlu0 %2695  ;;  %v2913_v9 = vld [vmem:[%s5085_s17 + $0x7c] sm:$0xf] }
 0x28d   : > { %2840 = vst.msk [vmem:[#allocation2] sm:$0xf] %vm2839_vm11, %v2696_v11  ;;  %v2911_v11 = vld [vmem:[%s5085_s17 + $0x74] sm:$0xf] }
 0x290   : > { %2783 = vrot.lane.b32.xlu2 %v2685_v16, %s5047_s22  ;;  %v2915_v16 = vld [vmem:[%s5085_s17 + $0x84] sm:$0xf] }
 0x291   : > { %2787 = vrot.lane.b32.xlu1 %v2691_v14, %s5047_s22 }
 0x292   : > { %2785 = vrot.lane.b32.xlu0 %v2688_v15, %s5047_s22  ;;  %v2718_v22 = vpop.permute.xlu2 %2717  ;;  %v2916_v15 = vld [vmem:[%s5085_s17 + $0x88] sm:$0xf] }
 0x293   : > { %v2704_v18 = vpop.permute.xlu1 %2703  ;;  %2851 = vst.msk [vmem:[#allocation2 + $0x2c] sm:$0xf] %vm2839_vm11, %v2718_v22  ;;  %v2918_v22 = vld [vmem:[%s5085_s17 + $0x90] sm:$0xf] }
 0x294   : > { %2844 = vst.msk [vmem:[#allocation2 + $0x10] sm:$0xf] %vm2839_vm11, %v2704_v18  ;;  %v2702_v19 = vpop.permute.xlu0 %2701 }
 0x295   : > { %2843 = vst.msk [vmem:[#allocation2 + $0xc] sm:$0xf] %vm2839_vm11, %v2702_v19 }
 0x298   : > { %2789 = vrot.lane.b32.xlu2 %v2694_v26, %s5047_s22 }
 0x299   : > { %2986 = vrot.lane.b32.xlu1 %v2889_v23, %s5048_s23  ;;  %v2917_v23 = vld [vmem:[%s5085_s17 + $0x8c] sm:$0xf] }
 0x29a   : > { %2984 = vrot.lane.b32.xlu0 %v2888_v25, %s5048_s23  ;;  %v2724_v29 = vpop.permute.xlu2 %2723 }
 0x29b   : > { %v2710_v27 = vpop.permute.xlu1 %2709  ;;  %2854 = vst.msk [vmem:[#allocation2 + $0x38] sm:$0xf] %vm2839_vm11, %v2724_v29  ;;  %v2921_v29 = vld [vmem:[%s5085_s17 + $0x9c] sm:$0xf] }
 0x29c   : > { %2847 = vst.msk [vmem:[#allocation2 + $0x1c] sm:$0xf] %vm2839_vm11, %v2710_v27  ;;  %v2708_v28 = vpop.permute.xlu0 %2707 }
 0x29d   : > { %2846 = vst.msk [vmem:[#allocation2 + $0x18] sm:$0xf] %vm2839_vm11, %v2708_v28  ;;  %v2922_v28 = vld [vmem:[%s5085_s17 + $0xa0] sm:$0xf] }
 0x2a0   : > { %2988 = vrot.lane.b32.xlu2 %v2890_v32, %s5048_s23 }
 0x2a1   : > { %2992 = vrot.lane.b32.xlu1 %v2892_v30, %s5048_s23  ;;  %v2920_v30 = vld [vmem:[%s5085_s17 + $0x98] sm:$0xf] }
 0x2a2   : > { %2990 = vrot.lane.b32.xlu0 %v2891_v31, %s5048_s23  ;;  %v2730_v35 = vpop.permute.xlu2 %2729 }
 0x2a3   : > { %v2716_v33 = vpop.permute.xlu1 %2715  ;;  %2857 = vst.msk [vmem:[#allocation2 + $0x44] sm:$0xf] %vm2839_vm11, %v2730_v35  ;;  %v2924_v35 = vld [vmem:[%s5085_s17 + $0xa8] sm:$0xf] }
 0x2a4   : > { %2850 = vst.msk [vmem:[#allocation2 + $0x28] sm:$0xf] %vm2839_vm11, %v2716_v33  ;;  %v2714_v34 = vpop.permute.xlu0 %2713 }
 0x2a5   : > { %2849 = vst.msk [vmem:[#allocation2 + $0x24] sm:$0xf] %vm2839_vm11, %v2714_v34  ;;  %v2925_v34 = vld [vmem:[%s5085_s17 + $0xac] sm:$0xf] }
 0x2a8   : > { %2994 = vrot.lane.b32.xlu2 %v2893_v39, %s5048_s23 }
 0x2a9   : > { %2998 = vrot.lane.b32.xlu1 %v2895_v37, %s5048_s23  ;;  %v2923_v37 = vld [vmem:[%s5085_s17 + $0xa4] sm:$0xf] }
 0x2aa   : > { %2996 = vrot.lane.b32.xlu0 %v2894_v38, %s5048_s23  ;;  %v2736_v42 = vpop.permute.xlu2 %2735 }
 0x2ab   : > { %v2722_v40 = vpop.permute.xlu1 %2721  ;;  %2860 = vst.msk [vmem:[#allocation2 + $0x50] sm:$0xf] %vm2839_vm11, %v2736_v42  ;;  %v2927_v42 = vld [vmem:[%s5085_s17 + $0xb4] sm:$0xf] }
 0x2ac   : > { %2853 = vst.msk [vmem:[#allocation2 + $0x34] sm:$0xf] %vm2839_vm11, %v2722_v40  ;;  %v2720_v41 = vpop.permute.xlu0 %2719 }
 0x2ad   : > { %2852 = vst.msk [vmem:[#allocation2 + $0x30] sm:$0xf] %vm2839_vm11, %v2720_v41  ;;  %v2928_v41 = vld [vmem:[%s5085_s17 + $0xb8] sm:$0xf] }
 0x2b0   : > { %3000 = vrot.lane.b32.xlu2 %v2896_v45, %s5048_s23 }
 0x2b1   : > { %3004 = vrot.lane.b32.xlu1 %v2898_v43, %s5048_s23  ;;  %v2926_v43 = vld [vmem:[%s5085_s17 + $0xb0] sm:$0xf] }
 0x2b2   : > { %3002 = vrot.lane.b32.xlu0 %v2897_v44, %s5048_s23  ;;  %v2742_v48 = vpop.permute.xlu2 %2741  ;;  %v3178_v44 = vld [vmem:[%s5085_s17 + $0x1c] sm:$0xf] }
 0x2b3   : > { %v2728_v46 = vpop.permute.xlu1 %2727  ;;  %2863 = vst.msk [vmem:[#allocation2 + $0x5c] sm:$0xf] %vm2839_vm11, %v2742_v48 }
 0x2b4   : > { %2856 = vst.msk [vmem:[#allocation2 + $0x40] sm:$0xf] %vm2839_vm11, %v2728_v46  ;;  %v2726_v47 = vpop.permute.xlu0 %2725  ;;  %v3177_v46 = vld [vmem:[%s5085_s17 + $0x18] sm:$0xf] }
 0x2b5   : > { %2855 = vst.msk [vmem:[#allocation2 + $0x3c] sm:$0xf] %vm2839_vm11, %v2726_v47 }
 0x2b8   : > { %3006 = vrot.lane.b32.xlu2 %v2899_v51, %s5048_s23  ;;  %v2931_v51 = vld [vmem:[%s5085_s17 + $0xc4] sm:$0xf] }
 0x2b9   : > { %3010 = vrot.lane.b32.xlu1 %v2901_v49, %s5048_s23  ;;  %v3236_v49 = vshll.u32 %v3178_v44, 16 }
 0x2ba   : > { %3008 = vrot.lane.b32.xlu0 %v2900_v50, %s5048_s23  ;;  %v2748_v54 = vpop.permute.xlu2 %2747  ;;  %v3240_v50 = vshrl.u32 %v3178_v44, 16 }
 0x2bb   : > { %v2734_v52 = vpop.permute.xlu1 %2733  ;;  %2866 = vst.msk [vmem:[#allocation2 + $0x68] sm:$0xf] %vm2839_vm11, %v2748_v54  ;;  %v2930_v54 = vld [vmem:[%s5085_s17 + $0xc0] sm:$0xf] }
 0x2bc   : > { %2859 = vst.msk [vmem:[#allocation2 + $0x4c] sm:$0xf] %vm2839_vm11, %v2734_v52  ;;  %v2732_v53 = vpop.permute.xlu0 %2731  ;;  %v3227_v52 = vshrl.u32 %v3177_v46, 16 }
 0x2bd   : > { %2858 = vst.msk [vmem:[#allocation2 + $0x48] sm:$0xf] %vm2839_vm11, %v2732_v53  ;;  %v3230_v53 = vshll.u32 %v3177_v46, 16 }
 0x2c0   : > { %3012 = vrot.lane.b32.xlu2 %v2902_v57, %s5048_s23  ;;  %v3242_v57 = vrot.slane %v3240_v50, 4 }
 0x2c1   : > { %3016 = vrot.lane.b32.xlu1 %v2904_v55, %s5048_s23  ;;  %v2929_v55 = vld [vmem:[%s5085_s17 + $0xbc] sm:$0xf] }
 0x2c2   : > { %3014 = vrot.lane.b32.xlu0 %v2903_v56, %s5048_s23  ;;  %v2754_v60 = vpop.permute.xlu2 %2753  ;;  %v3238_v56 = vrot.slane %v3236_v49, 5  ;;  %v6561_v49 = vld [vmem:[%s5085_s17 + $0x80] sm:$0xf] }
 0x2c3   : > { %v2740_v58 = vpop.permute.xlu1 %2739  ;;  %2869 = vst.msk [vmem:[#allocation2 + $0x74] sm:$0xf] %vm2839_vm11, %v2754_v60  ;;  %v3232_v60 = vrot.slane %v3230_v53, 5 }
 0x2c4   : > { %2862 = vst.msk [vmem:[#allocation2 + $0x58] sm:$0xf] %vm2839_vm11, %v2740_v58  ;;  %v2738_v59 = vpop.permute.xlu0 %2737  ;;  %v3179_v58 = vld [vmem:[%s5085_s17 + $0x20] sm:$0xf] }
 0x2c5   : > { %2861 = vst.msk [vmem:[#allocation2 + $0x54] sm:$0xf] %vm2839_vm11, %v2738_v59  ;;  %v3229_v59 = vrot.slane %v3227_v52, 4  ;;  %v3214_v52 = vld [vmem:[%s5085_s17 + $0xac] sm:$0xf] }
 0x2c8   : > { %3018 = vrot.lane.b32.xlu2 %v2905_v63, %s5048_s23  ;;  %v3180_v63 = vld [vmem:[%s5085_s17 + $0x24] sm:$0xf] }
 0x2c9   : > { %3022 = vrot.lane.b32.xlu1 %v2907_v61, %s5048_s23  ;;  %v3181_v61 = vld [vmem:[%s5085_s17 + $0x28] sm:$0xf] }
 0x2ca   : > { %3020 = vrot.lane.b32.xlu0 %v2906_v62, %s5048_s23  ;;  %v2760_v2 = vpop.permute.xlu2 %2759 }
 0x2cb   : > { %v2746_v0 = vpop.permute.xlu1 %2745  ;;  %2872 = vst.msk [vmem:[#allocation2 + $0x80] sm:$0xf] %vm2839_vm11, %v2760_v2  ;;  %v3246_v2 = vshll.u32 %v3179_v58, 16 }
 0x2cc   : > { %2865 = vst.msk [vmem:[#allocation2 + $0x64] sm:$0xf] %vm2839_vm11, %v2746_v0  ;;  %v2744_v1 = vpop.permute.xlu0 %2743 }
 0x2cd   : > { %2864 = vst.msk [vmem:[#allocation2 + $0x60] sm:$0xf] %vm2839_vm11, %v2744_v1  ;;  %v3243_v1 = vor.u32 %v3242_v57, %v3238_v56 }
 0x2d0   : > { %3024 = vrot.lane.b32.xlu2 %v2908_v5, %s5048_s23  ;;  %v3270_v5 = vshrl.u32 %v3181_v61, 16 }
 0x2d1   : > { %3028 = vrot.lane.b32.xlu1 %v2910_v3, %s5048_s23 }
 0x2d2   : > { %3026 = vrot.lane.b32.xlu0 %v2909_v4, %s5048_s23  ;;  %v2766_v8 = vpop.permute.xlu2 %2765  ;;  %v3266_v4 = vshll.u32 %v3181_v61, 16 }
 0x2d3   : > { %v2752_v6 = vpop.permute.xlu1 %2751  ;;  %2875 = vst.msk [vmem:[#allocation2 + $0x8c] sm:$0xf] %vm2839_vm11, %v2766_v8  ;;  %v3256_v8 = vshll.u32 %v3180_v63, 16 }
 0x2d4   : > { %2868 = vst.msk [vmem:[#allocation2 + $0x70] sm:$0xf] %vm2839_vm11, %v2752_v6  ;;  %v2750_v7 = vpop.permute.xlu0 %2749  ;;  %v2934_v6 = vld [vmem:[%s5085_s17 + $0xd0] sm:$0xf] }
 0x2d5   : > { %2867 = vst.msk [vmem:[#allocation2 + $0x6c] sm:$0xf] %vm2839_vm11, %v2750_v7  ;;  %v3233_v7 = vor.u32 %v3232_v60, %v3229_v59  ;;  %v3486_v59 = vshll.u32 %v6561_v49, 16 }
 0x2d8   : > { %3030 = vrot.lane.b32.xlu2 %v2911_v11, %s5048_s23  ;;  %v3260_v11 = vshrl.u32 %v3180_v63, 16  ;;  %v3596_v63 = vshll.u32 %v3214_v52, 16 }
 0x2d9   : > { %3034 = vrot.lane.b32.xlu1 %v2913_v9, %s5048_s23  ;;  %v2933_v9 = vld [vmem:[%s5085_s17 + $0xcc] sm:$0xf] }
 0x2da   : > { %3032 = vrot.lane.b32.xlu0 %v2912_v10, %s5048_s23  ;;  %v2772_v14 = vpop.permute.xlu2 %2771  ;;  %v3250_v10 = vshrl.u32 %v3179_v58, 16 }
 0x2db   : > { %v2758_v12 = vpop.permute.xlu1 %2757  ;;  %2878 = vst.msk [vmem:[#allocation2 + $0x98] sm:$0xf] %vm2839_vm11, %v2772_v14  ;;  %v3248_v14 = vrot.slane %v3246_v2, 5 }
 0x2dc   : > { %2871 = vst.msk [vmem:[#allocation2 + $0x7c] sm:$0xf] %vm2839_vm11, %v2758_v12  ;;  %v2756_v13 = vpop.permute.xlu0 %2755  ;;  %v2932_v12 = vld [vmem:[%s5085_s17 + $0xc8] sm:$0xf] }
 0x2dd   : > { %2870 = vst.msk [vmem:[#allocation2 + $0x78] sm:$0xf] %vm2839_vm11, %v2756_v13  ;;  %v3244_v13 = vrot.slane %v3243_v1, 4 }
 0x2e0   : > { %3036 = vrot.lane.b32.xlu2 %v2914_v17, %s5048_s23  ;;  %v3234_v17 = vrot.slane %v3233_v7, 4 }
 0x2e1   : > { %3040 = vrot.lane.b32.xlu1 %v2916_v15, %s5048_s23  ;;  %v6536_v15 = vrot.slane %v3266_v4, 5 }
 0x2e2   : > { %3038 = vrot.lane.b32.xlu0 %v2915_v16, %s5048_s23  ;;  %v2778_v20 = vpop.permute.xlu2 %2777  ;;  %v3272_v16 = vrot.slane %v3270_v5, 4 }
 0x2e3   : > { %v2764_v18 = vpop.permute.xlu1 %2763  ;;  %2881 = vst.msk [vmem:[#allocation2 + $0xa4] sm:$0xf] %vm2839_vm11, %v2778_v20 }
 0x2e4   : > { %2874 = vst.msk [vmem:[#allocation2 + $0x88] sm:$0xf] %vm2839_vm11, %v2764_v18  ;;  %v2762_v19 = vpop.permute.xlu0 %2761  ;;  %v3182_v18 = vld [vmem:[%s5085_s17 + $0x2c] sm:$0xf] }
 0x2e5   : > { %2873 = vst.msk [vmem:[#allocation2 + $0x84] sm:$0xf] %vm2839_vm11, %v2762_v19  ;;  %v6540_v19 = vrot.slane %v3256_v8, 5 }
 0x2e8   : > { %3042 = vrot.lane.b32.xlu2 %v2917_v23, %s5048_s23  ;;  %v3201_v23 = vld [vmem:[%s5085_s17 + $0x78] sm:$0xf] }
 0x2e9   : > { %3046 = vrot.lane.b32.xlu1 %v2919_v21, %s5048_s23  ;;  %v3262_v21 = vrot.slane %v3260_v11, 4  ;;  %v3598_v11 = vrot.slane %v3596_v63, 5 }
 0x2ea   : > { %3044 = vrot.lane.b32.xlu0 %v2918_v22, %s5048_s23  ;;  %v2784_v27 = vpop.permute.xlu2 %2783  ;;  %v3202_v22 = vld [vmem:[%s5085_s17 + $0x7c] sm:$0xf] }
 0x2eb   : > { %v2770_v25 = vpop.permute.xlu1 %2769  ;;  %2884 = vst.msk [vmem:[#allocation2 + $0xb0] sm:$0xf] %vm2839_vm11, %v2784_v27  ;;  %v3249_v27 = vsel %vm5095_vm2, %v3244_v13, %v3248_v14 }
 0x2ec   : > { %2877 = vst.msk [vmem:[#allocation2 + $0x94] sm:$0xf] %vm2839_vm11, %v2770_v25  ;;  %v2768_v26 = vpop.permute.xlu0 %2767  ;;  %v3252_v25 = vrot.slane %v3250_v10, 4  ;;  %v6591_v10 = vld [vmem:[%s5085_s17 + $0xb0] sm:$0xf] }
 0x2ed   : > { %2876 = vst.msk [vmem:[#allocation2 + $0x90] sm:$0xf] %vm2839_vm11, %v2768_v26 }
 0x2f0   : > { %3048 = vrot.lane.b32.xlu2 %v2920_v30, %s5048_s23 }
 0x2f1   : > { %3052 = vrot.lane.b32.xlu1 %v2922_v28, %s5048_s23  ;;  %v3273_v28 = vor.u32 %v3272_v16, %v6536_v15 }
 0x2f2   : > { %3050 = vrot.lane.b32.xlu0 %v2921_v29, %s5048_s23  ;;  %v2790_v33 = vpop.permute.xlu2 %2789  ;;  %v3276_v29 = vshll.u32 %v3182_v18, 16 }
 0x2f3   : > { %v2776_v31 = vpop.permute.xlu1 %2775  ;;  %2887 = vst.msk [vmem:[#allocation2 + $0xbc] sm:$0xf] %vm2839_vm11, %v2790_v33  ;;  %v3466_v33 = vshll.u32 %v3201_v23, 16 }
 0x2f4   : > { %2880 = vst.msk [vmem:[#allocation2 + $0xa0] sm:$0xf] %vm2839_vm11, %v2776_v31  ;;  %v2774_v32 = vpop.permute.xlu0 %2773  ;;  %v3476_v31 = vshll.u32 %v3202_v22, 16 }
 0x2f5   : > { %2879 = vst.msk [vmem:[#allocation2 + $0x9c] sm:$0xf] %vm2839_vm11, %v2774_v32  ;;  %v3480_v32 = vshrl.u32 %v3202_v22, 16  ;;  %v3928_v22 = vld [vmem:[%s5085_s17 + $0x7c] sm:$0xf] }
 0x2f7   : > { %v3482_v44 = vrot.slane %v3480_v32, 4 }
 0x2f8   : > { %3054 = vrot.lane.b32.xlu2 %v2923_v37, %s5048_s23  ;;  %v3263_v37 = vor.u32 %v3262_v21, %v6540_v19 }
 0x2f9   : > { %3058 = vrot.lane.b32.xlu1 %v2925_v34, %s5048_s23  ;;  %v3470_v34 = vshrl.u32 %v3201_v23, 16 }
 0x2fa   : > { %3056 = vrot.lane.b32.xlu0 %v2924_v35, %s5048_s23  ;;  %v2989_v40 = vpop.permute.xlu2 %2988  ;;  %v3239_v35 = vsel %vm5095_vm2, %v3234_v17, %v3238_v56  ;;  %v3213_v56 = vld [vmem:[%s5085_s17 + $0xa8] sm:$0xf] }
 0x2fb   : > { %v2782_v38 = vpop.permute.xlu1 %2781  ;;  %3131 = vst.msk [vmem:[#allocation2 + $0x8] sm:$0xf] %vm3128_vm12, %v2989_v40  ;;  %v2935_v40 = vld [vmem:[%s5085_s17 + $0xd4] sm:$0xf]  ;;  %v3472_v46 = vrot.slane %v3470_v34, 4  ;;  %v3590_v4 = vshrl.u32 %v3213_v56, 16 }
 0x2fc   : > { %2883 = vst.msk [vmem:[#allocation2 + $0xac] sm:$0xf] %vm2839_vm11, %v2782_v38  ;;  %v2780_v39 = vpop.permute.xlu0 %2779  ;;  %v3253_v38 = vor.u32 %v3252_v25, %v3248_v14  ;;  %v3606_v25 = vshll.u32 %v6591_v10, 16  ;;  %v6621_v34 = vld [vmem:[%s5085_s17 + $0xa8] sm:$0xf] }
 0x2fd   : > { %2882 = vst.msk [vmem:[#allocation2 + $0xa8] sm:$0xf] %vm2839_vm11, %v2780_v39  ;;  %v3280_v39 = vshrl.u32 %v3182_v18, 16  ;;  %v3592_v17 = vrot.slane %v3590_v4, 4 }
 0x2fe   : > { %v3254_v50 = vrot.slane %v3253_v38, 4  ;;  %v6616_v32 = vrot.slane %v3606_v25, 5  ;;  %v3190_v38 = vld [vmem:[%s5085_s17 + $0x4c] sm:$0xf]  ;;  %v6678_v25 = vld [vmem:[%s5085_s17 + $0x48] sm:$0xf] }
 0x2ff   : > { %v3282_v53 = vrot.slane %v3280_v39, 4 }
 0x300   : > { %3060 = vrot.lane.b32.xlu2 %v2926_v43, %s5048_s23  ;;  %v3478_v43 = vrot.slane %v3476_v31, 5 }
 0x301   : > { %3064 = vrot.lane.b32.xlu1 %v2928_v41, %s5048_s23  ;;  %v3274_v41 = vrot.slane %v3273_v28, 4 }
 0x302   : > { %3062 = vrot.lane.b32.xlu0 %v2927_v42, %s5048_s23  ;;  %v2995_v48 = vpop.permute.xlu2 %2994  ;;  %v3278_v42 = vrot.slane %v3276_v29, 5  ;;  %v3483_v58 = vor.u32 %v3482_v44, %v3478_v43  ;;  %v4075_v29 = vrot.slane %v3928_v22, 5  ;;  %v6634_v44 = vld [vmem:[%s5085_s17 + $0xb0] sm:$0xf] }
 0x303   : > { %v2788_v45 = vpop.permute.xlu1 %2787  ;;  %3134 = vst.msk [vmem:[#allocation2 + $0x14] sm:$0xf] %vm3128_vm12, %v2995_v48  ;;  %v3264_v48 = vrot.slane %v3263_v37, 4 }
 0x304   : > { %2886 = vst.msk [vmem:[#allocation2 + $0xb8] sm:$0xf] %vm2839_vm11, %v2788_v45  ;;  %v2786_v47 = vpop.permute.xlu0 %2785  ;;  %v6557_v45 = vrot.slane %v3466_v33, 5  ;;  %v3279_v57 = vsel %vm5095_vm2, %v3274_v41, %v3278_v42  ;;  %v3283_v1 = vor.u32 %v3282_v53, %v3278_v42  ;;  %v3484_v5 = vrot.slane %v3483_v58, 4  ;;  %v3940_v33 = vld [vmem:[%s5085_s17 + $0xac] sm:$0xf] }
 0x305   : > { %2885 = vst.msk [vmem:[#allocation2 + $0xb4] sm:$0xf] %vm2839_vm11, %v2786_v47  ;;  %v3269_v61 = vsel %vm5095_vm2, %v3264_v48, %v6536_v15  ;;  %v4111_v42 = vrot.slane %v3940_v33, 5  ;;  %v3360_v48 = vshrl.u32 %v3190_v38, 16  ;;  %v6641_v53 = vld [vmem:[%s5085_s17 + $0x80] sm:$0xf] }
 0x306   : > { %v3473_v60 = vor.u32 %v3472_v46, %v6557_v45  ;;  %v3284_v14 = vrot.slane %v3283_v1, 4  ;;  %v4108_v46 = vrot.slane %v6621_v34, 5  ;;  %v4077_v63 = vrot.slane %v4075_v29, 4 }
 0x308   : > { %3066 = vrot.lane.b32.xlu2 %v2929_v55, %s5048_s23  ;;  %v6567_v55 = vld [vmem:[%s5085_s17 + $0x30] sm:$0xf]  ;;  %v3474_v7 = vrot.slane %v3473_v60, 4  ;;  %v4110_v58 = vrot.slane %v4108_v46, 4 }
 0x309   : > { %3070 = vrot.lane.b32.xlu1 %v2931_v51, %s5048_s23  ;;  %v3286_v2 = vshll.u32 %v6567_v55, 16 }
 0x30a   : > { %3068 = vrot.lane.b32.xlu0 %v2930_v54, %s5048_s23  ;;  %v3001_v3 = vpop.permute.xlu2 %3000  ;;  %v3479_v21 = vsel %vm5095_vm2, %v3474_v7, %v3478_v43  ;;  %v3903_v7 = vld [vmem:[%s5085_s17 + $0x18] sm:$0xe] }
 0x30b   : > { %v2987_v62 = vpop.permute.xlu1 %2986  ;;  %3137 = vst.msk [vmem:[#allocation2 + $0x20] sm:$0xf] %vm3128_vm12, %v3001_v3  ;;  %v3586_v3 = vshll.u32 %v3213_v56, 16  ;;  %v6594_v15 = vrot.slane %v3286_v2, 5  ;;  %v4114_v56 = vrot.slane %v6634_v44, 5 }
 0x30c   : > { %3130 = vst.msk [vmem:[#allocation2 + $0x4] sm:$0xf] %vm3128_vm12, %v2987_v62  ;;  %v2985_v0 = vpop.permute.xlu0 %2984  ;;  %v3259_v62 = vsel %vm5095_vm2, %v3254_v50, %v6540_v19 }
 0x30d   : > { %3129 = vst.msk [vmem:[#allocation2] sm:$0xf] %vm3128_vm12, %v2985_v0  ;;  %v3600_v0 = vshrl.u32 %v3214_v52, 16  ;;  %v6596_v16 = vrot.slane %v3586_v3, 5 }
 0x310   : > { %3072 = vrot.lane.b32.xlu2 %v2932_v12, %s5048_s23  ;;  %v3602_v12 = vrot.slane %v3600_v0, 4  ;;  %v4078_v0 = vrot.slane %v6641_v53, 5 }
 0x311   : > { %3076 = vrot.lane.b32.xlu1 %v2934_v6, %s5048_s23  ;;  %v6584_v6 = vrot.slane %v3486_v59, 5  ;;  %v6649_v59 = vld [vmem:[%s5085_s17 + $0x50] sm:$0xf] }
 0x312   : > { %3074 = vrot.lane.b32.xlu0 %v2933_v9, %s5048_s23  ;;  %v3007_v30 = vpop.permute.xlu2 %3006  ;;  %v6588_v9 = vld [vmem:[%s5085_s17 + $0x78] sm:$0xf]  ;;  %v3603_v23 = vor.u32 %v3602_v12, %v3598_v11  ;;  %v3366_v12 = vshll.u32 %v6649_v59, 16 }
 0x313   : > { %v2993_v20 = vpop.permute.xlu1 %2992  ;;  %3140 = vst.msk [vmem:[#allocation2 + $0x2c] sm:$0xf] %vm3128_vm12, %v3007_v30  ;;  %v3489_v19 = vsel %vm5095_vm2, %v3484_v5, %v6584_v6  ;;  %v4112_v5 = vsel %vm5350_vm7, %v4110_v58, %v4111_v42 }
 0x314   : > { %3133 = vst.msk [vmem:[#allocation2 + $0x10] sm:$0xf] %vm3128_vm12, %v2993_v20  ;;  %v2991_v26 = vpop.permute.xlu0 %2990  ;;  %v4072_v20 = vrot.slane %v6588_v9, 5  ;;  %v3604_v31 = vrot.slane %v3603_v23, 4  ;;  %v6673_v22 = vrot.slane %v3366_v12, 5 }
 0x315   : > { %3132 = vst.msk [vmem:[#allocation2 + $0xc] sm:$0xf] %vm3128_vm12, %v2991_v26  ;;  %v3289_v26 = vsel %vm5095_vm2, %v3284_v14, %v6594_v15  ;;  %v3916_v23 = vld [vmem:[%s5085_s17 + $0x4c] sm:$0xf] }
 0x316   : > { %v4074_v28 = vrot.slane %v4072_v20, 4  ;;  %v3609_v43 = vsel %vm5095_vm2, %v3604_v31, %v6616_v32  ;;  %v4039_v33 = vrot.slane %v3916_v23, 5 }
 0x318   : > { %3078 = vrot.lane.b32.xlu2 %v2935_v40, %s5048_s23  ;;  %v3189_v40 = vld [vmem:[%s5085_s17 + $0x48] sm:$0xf]  ;;  %v4076_v41 = vsel %vm5350_vm7, %v4074_v28, %v4075_v29  ;;  %v3204_v28 = vld [vmem:[%s5085_s17 + $0x84] sm:$0xf] }
 0x319   : > { %3712 = vrot.lane.b32.xlu1 %v3249_v27, %s5049_s24  ;;  %v3593_v27 = vor.u32 %v3592_v17, %v6596_v16  ;;  %v3350_v52 = vshrl.u32 %v3189_v40, 16  ;;  %v4850_v17 = vrot.slane %v3903_v7, 9 }
 0x31a   : > { %3710 = vrot.lane.b32.xlu0 %v3239_v35, %s5049_s24  ;;  %v3013_v54 = vpop.permute.xlu2 %3012 }
 0x31b   : > { %v2999_v47 = vpop.permute.xlu1 %2998  ;;  %3143 = vst.msk [vmem:[#allocation2 + $0x38] sm:$0xf] %vm3128_vm12, %v3013_v54  ;;  %v3594_v37 = vrot.slane %v3593_v27, 4  ;;  %v4113_v54 = vrot.slane %v4111_v42, 4  ;;  %v3352_v2 = vrot.slane %v3350_v52, 4 }
 0x31c   : > { %3136 = vst.msk [vmem:[#allocation2 + $0x1c] sm:$0xf] %vm3128_vm12, %v2999_v47  ;;  %v2997_v51 = vpop.permute.xlu0 %2996  ;;  %v3356_v47 = vshll.u32 %v3190_v38, 16  ;;  %v6692_v38 = vld [vmem:[%s5085_s17 + $0x50] sm:$0xf] }
 0x31d   : > { %3135 = vst.msk [vmem:[#allocation2 + $0x18] sm:$0xf] %vm3128_vm12, %v2997_v51  ;;  %v3599_v50 = vsel %vm5095_vm2, %v3594_v37, %v3598_v11  ;;  %v3346_v51 = vshll.u32 %v3189_v40, 16  ;;  %v4115_v4 = vsel %vm5350_vm7, %v4113_v54, %v4114_v56  ;;  %v3500_v40 = vshrl.u32 %v3204_v28, 16  ;;  %v6699_v42 = vld [vmem:[%s5085_s17 + $0x20] sm:$0xf] }
 0x31e   : > { %v3358_v60 = vrot.slane %v3356_v47, 5  ;;  %v4042_v47 = vrot.slane %v6692_v38, 5  ;;  %v6708_v52 = vld [vmem:[%s5085_s17 + $0x88] sm:$0xf] }
 0x31f   : > { %v6653_v1 = vrot.slane %v3346_v51, 5 }
 0x320   : > { %3714 = vrot.lane.b32.xlu2 %v3259_v62, %s5049_s24 }
 0x321   : > { %3718 = vrot.lane.b32.xlu1 %v3279_v57, %s5049_s24  ;;  %v3353_v14 = vor.u32 %v3352_v2, %v6653_v1 }
 0x322   : > { %3716 = vrot.lane.b32.xlu0 %v3269_v61, %s5049_s24  ;;  %v3019_v18 = vpop.permute.xlu2 %3018  ;;  %v3362_v61 = vrot.slane %v3360_v48, 4 }
 0x323   : > { %v3005_v8 = vpop.permute.xlu1 %3004  ;;  %3146 = vst.msk [vmem:[#allocation2 + $0x44] sm:$0xf] %vm3128_vm12, %v3019_v18  ;;  %v3354_v27 = vrot.slane %v3353_v14, 4 }
 0x324   : > { %3139 = vst.msk [vmem:[#allocation2 + $0x28] sm:$0xf] %vm3128_vm12, %v3005_v8  ;;  %v3003_v13 = vpop.permute.xlu0 %3002  ;;  %v3904_v8 = vld [vmem:[%s5085_s17 + $0x1c] sm:$0xf]  ;;  %v3363_v11 = vor.u32 %v3362_v61, %v3358_v60  ;;  %v4006_v61 = vrot.slane %v6699_v42, 5 }
 0x325   : > { %3138 = vst.msk [vmem:[#allocation2 + $0x24] sm:$0xf] %vm3128_vm12, %v3003_v13  ;;  %v4079_v13 = vsel %vm5350_vm7, %v4077_v63, %v4078_v0  ;;  %v4003_v18 = vrot.slane %v3904_v8, 5  ;;  %v3506_v8 = vshll.u32 %v6708_v52, 16 }
 0x327   : > { %v4004_v31 = vsel %vm5350_vm7, %v4850_v17, %v4003_v18 }
 0x328   : > { %3720 = vrot.lane.b32.xlu2 %v3289_v26, %s5049_s24 }
 0x329   : > { %3760 = vrot.lane.b32.xlu1 %v3489_v19, %s5049_s24 }
 0x32a   : > { %3758 = vrot.lane.b32.xlu0 %v3479_v21, %s5049_s24  ;;  %v3025_v39 = vpop.permute.xlu2 %3024  ;;  %v3364_v21 = vrot.slane %v3363_v11, 4 }
 0x32b   : > { %v3011_v30 = vpop.permute.xlu1 %3010  ;;  %3149 = vst.msk [vmem:[#allocation2 + $0x50] sm:$0xf] %vm3128_vm12, %v3025_v39  ;;  %v3496_v39 = vshll.u32 %v3204_v28, 16  ;;  %v6736_v28 = vld [vmem:[%s5085_s17 + $0xb8] sm:$0xf] }
 0x32c   : > { %3142 = vst.msk [vmem:[#allocation2 + $0x34] sm:$0xf] %vm3128_vm12, %v3011_v30  ;;  %v3009_v35 = vpop.permute.xlu0 %3008  ;;  %v3610_v30 = vshrl.u32 %v6591_v10, 16  ;;  %v3369_v37 = vsel %vm5095_vm2, %v3364_v21, %v6673_v22  ;;  %v3490_v10 = vshrl.u32 %v6561_v49, 16  ;;  %v3216_v49 = vld [vmem:[%s5085_s17 + $0xb4] sm:$0xf] }
 0x32d   : > { %3141 = vst.msk [vmem:[#allocation2 + $0x30] sm:$0xf] %vm3128_vm12, %v3009_v35  ;;  %v4036_v35 = vrot.slane %v6678_v25, 5  ;;  %v3498_v54 = vrot.slane %v3496_v39, 5  ;;  %v3620_v11 = vshrl.u32 %v3216_v49, 16 }
 0x32e   : > { %v3930_v21 = vld [vmem:[%s5085_s17 + $0x84] sm:$0xf] }
 0x32f   : > { %v4038_v48 = vrot.slane %v4036_v35, 4 }
 0x330   : > { %3782 = vrot.lane.b32.xlu2 %v3599_v50, %s5049_s24  ;;  %v3612_v50 = vrot.slane %v3610_v30, 4 }
 0x331   : > { %4194 = vrot.lane.b32.xlu1 %v4076_v41, %s5050_s25  ;;  %v3359_v41 = vsel %vm5095_vm2, %v3354_v27, %v3358_v60  ;;  %v4005_v60 = vrot.slane %v4003_v18, 4 }
 0x332   : > { %3784 = vrot.lane.b32.xlu0 %v3609_v43, %s5049_s24  ;;  %v3031_v3 = vpop.permute.xlu2 %3030  ;;  %v4041_v43 = vrot.slane %v4039_v33, 4 }
 0x333   : > { %v3017_v57 = vpop.permute.xlu1 %3016  ;;  %3152 = vst.msk [vmem:[#allocation2 + $0x5c] sm:$0xf] %vm3128_vm12, %v3031_v3  ;;  %v3613_v3 = vor.u32 %v3612_v50, %v6616_v32  ;;  %v4007_v12 = vsel %vm5350_vm7, %v4005_v60, %v4006_v61  ;;  %v4080_v50 = vrot.slane %v4078_v0, 4 }
 0x334   : > { %3145 = vst.msk [vmem:[#allocation2 + $0x40] sm:$0xf] %vm3128_vm12, %v3017_v57  ;;  %v3015_v62 = vpop.permute.xlu0 %3014  ;;  %v3502_v57 = vrot.slane %v3500_v40, 4  ;;  %v4043_v2 = vsel %vm5350_vm7, %v4041_v43, %v4042_v47 }
 0x335   : > { %3144 = vst.msk [vmem:[#allocation2 + $0x3c] sm:$0xf] %vm3128_vm12, %v3015_v62  ;;  %v3492_v62 = vrot.slane %v3490_v10, 4  ;;  %v3614_v32 = vrot.slane %v3613_v3, 4 }
 0x336   : > { %v3503_v7 = vor.u32 %v3502_v57, %v3498_v54 }
 0x338   : > { %4196 = vrot.lane.b32.xlu2 %v4079_v13, %s5050_s25  ;;  %v3493_v13 = vor.u32 %v3492_v62, %v6584_v6  ;;  %v3504_v18 = vrot.slane %v3503_v7, 4  ;;  %v3622_v6 = vrot.slane %v3620_v11, 4 }
 0x339   : > { %4220 = vrot.lane.b32.xlu1 %v4115_v4, %s5050_s25  ;;  %v3616_v4 = vshll.u32 %v3216_v49, 16 }
 0x33a   : > { %4218 = vrot.lane.b32.xlu0 %v4112_v5, %s5050_s25  ;;  %v3037_v29 = vpop.permute.xlu2 %3036  ;;  %v4040_v5 = vsel %vm5350_vm7, %v4038_v48, %v4039_v33 }
 0x33b   : > { %v3023_v19 = vpop.permute.xlu1 %3022  ;;  %3155 = vst.msk [vmem:[#allocation2 + $0x68] sm:$0xf] %vm3128_vm12, %v3037_v29  ;;  %v3618_v14 = vrot.slane %v3616_v4, 5  ;;  %v3370_v29 = vshrl.u32 %v6649_v59, 16  ;;  %v3626_v59 = vshll.u32 %v6736_v28, 16 }
 0x33c   : > { %3148 = vst.msk [vmem:[#allocation2 + $0x4c] sm:$0xf] %vm3128_vm12, %v3023_v19  ;;  %v3021_v26 = vpop.permute.xlu0 %3020  ;;  %v6729_v19 = vrot.slane %v3506_v8, 5  ;;  %v6772_v4 = vld [vmem:[%s5085_s17 + $0xb8] sm:$0xf] }
 0x33d   : > { %3147 = vst.msk [vmem:[#allocation2 + $0x48] sm:$0xf] %vm3128_vm12, %v3021_v26  ;;  %v3494_v26 = vrot.slane %v3493_v13, 4  ;;  %v3619_v30 = vsel %vm5095_vm2, %v3614_v32, %v3618_v14  ;;  %v3623_v40 = vor.u32 %v3622_v6, %v3618_v14  ;;  %v3372_v43 = vrot.slane %v3370_v29, 4  ;;  %v3906_v8 = vld [vmem:[%s5085_s17 + $0x24] sm:$0xf] }
 0x33e   : > { %v3509_v33 = vsel %vm5095_vm2, %v3504_v18, %v6729_v19  ;;  %v4120_v13 = vrot.slane %v6772_v4, 5  ;;  %v4116_v14 = vrot.slane %v4114_v56, 4  ;;  %v4009_v18 = vrot.slane %v3906_v8, 5 }
 0x33f   : > { %v3499_v39 = vsel %vm5095_vm2, %v3494_v26, %v3498_v54  ;;  %v3942_v54 = vld [vmem:[%s5085_s17 + $0xb4] sm:$0xf]  ;;  %v3624_v57 = vrot.slane %v3623_v40, 4  ;;  %v3373_v0 = vor.u32 %v3372_v43, %v6673_v22  ;;  %v3510_v26 = vshrl.u32 %v6708_v52, 16 }
 0x340   : > { %3734 = vrot.lane.b32.xlu2 %v3359_v41, %s5049_s24  ;;  %v4008_v40 = vrot.slane %v4006_v61, 4 }
 0x341   : > { %4146 = vrot.lane.b32.xlu1 %v4004_v31, %s5050_s25  ;;  %v4081_v31 = vrot.slane %v3930_v21, 5  ;;  %v3374_v22 = vrot.slane %v3373_v0, 4 }
 0x342   : > { %3736 = vrot.lane.b32.xlu0 %v3369_v37, %s5049_s24  ;;  %v3043_v63 = vpop.permute.xlu2 %3042  ;;  %v6746_v37 = vld [vmem:[%s5085_s17 + $0x88] sm:$0xf]  ;;  %v4010_v0 = vsel %vm5350_vm7, %v4008_v40, %v4009_v18 }
 0x343   : > { %v3029_v51 = vpop.permute.xlu1 %3028  ;;  %3158 = vst.msk [vmem:[#allocation2 + $0x74] sm:$0xf] %vm3128_vm12, %v3043_v63  ;;  %v4083_v10 = vrot.slane %v4081_v31, 4  ;;  %v4084_v41 = vrot.slane %v6746_v37, 5  ;;  %v4082_v63 = vsel %vm5350_vm7, %v4080_v50, %v4081_v31 }
 0x344   : > { %3151 = vst.msk [vmem:[#allocation2 + $0x58] sm:$0xf] %vm3128_vm12, %v3029_v51  ;;  %v3027_v58 = vpop.permute.xlu0 %3026  ;;  %v3192_v51 = vld [vmem:[%s5085_s17 + $0x54] sm:$0xf] }
 0x345   : > { %3150 = vst.msk [vmem:[#allocation2 + $0x54] sm:$0xf] %vm3128_vm12, %v3027_v58  ;;  %v6760_v58 = vrot.slane %v3626_v59, 5  ;;  %v4085_v53 = vsel %vm5350_vm7, %v4083_v10, %v4084_v41  ;;  %v3376_v62 = vshll.u32 %v3192_v51, 16  ;;  %v3380_v3 = vshrl.u32 %v3192_v51, 16 }
 0x346   : > { %v3206_v59 = vld [vmem:[%s5085_s17 + $0x8c] sm:$0xf]  ;;  %v3218_v10 = vld [vmem:[%s5085_s17 + $0xbc] sm:$0xf]  ;;  %v4086_v4 = vrot.slane %v4084_v41, 4 }
 0x347   : > { %v3378_v7 = vrot.slane %v3376_v62, 5 }
 0x348   : > { %4148 = vrot.lane.b32.xlu2 %v4007_v12, %s5050_s25 }
 0x349   : > { %4172 = vrot.lane.b32.xlu1 %v4043_v2, %s5050_s25  ;;  %v4117_v2 = vrot.slane %v3942_v54, 5  ;;  %v3379_v6 = vsel %vm5095_vm2, %v3374_v22, %v3378_v7  ;;  %v3516_v54 = vshll.u32 %v3206_v59, 16 }
 0x34a   : > { %4170 = vrot.lane.b32.xlu0 %v4040_v5, %s5050_s25  ;;  %v3049_v27 = vpop.permute.xlu2 %3048  ;;  %v3629_v5 = vsel %vm5095_vm2, %v3624_v57, %v6760_v58  ;;  %v3636_v57 = vshll.u32 %v3218_v10, 16 }
 0x34b   : > { %v3035_v17 = vpop.permute.xlu1 %3034  ;;  %3161 = vst.msk [vmem:[#allocation2 + $0x80] sm:$0xf] %vm3128_vm12, %v3049_v27  ;;  %v4119_v12 = vrot.slane %v4117_v2, 4  ;;  %v6793_v27 = vld [vmem:[%s5085_s17 + $0x28] sm:$0xf]  ;;  %v4118_v56 = vsel %vm5350_vm7, %v4116_v14, %v4117_v2 }
 0x34c   : > { %3154 = vst.msk [vmem:[#allocation2 + $0x64] sm:$0xf] %vm3128_vm12, %v3035_v17  ;;  %v3033_v23 = vpop.permute.xlu0 %3032  ;;  %v3382_v17 = vrot.slane %v3380_v3, 4  ;;  %v4012_v31 = vrot.slane %v6793_v27, 5  ;;  %v6826_v2 = vld [vmem:[%s5085_s17 + $0x58] sm:$0xf] }
 0x34d   : > { %3153 = vst.msk [vmem:[#allocation2 + $0x60] sm:$0xf] %vm3128_vm12, %v3033_v23  ;;  %v6787_v23 = vld [vmem:[%s5085_s17 + $0x58] sm:$0xf]  ;;  %v4121_v44 = vsel %vm5350_vm7, %v4119_v12, %v4120_v13  ;;  %v6836_v12 = vld [vmem:[%s5085_s17 + $0xc0] sm:$0xf] }
 0x34e   : > { %v3383_v29 = vor.u32 %v3382_v17, %v3378_v7  ;;  %v3386_v52 = vshll.u32 %v6787_v23, 16  ;;  %v4044_v17 = vrot.slane %v4042_v47, 4 }
 0x350   : > { %3762 = vrot.lane.b32.xlu2 %v3499_v39, %s5049_s24  ;;  %v3384_v50 = vrot.slane %v3383_v29, 4  ;;  %v6813_v51 = vrot.slane %v3386_v52, 5 }
 0x351   : > { %3786 = vrot.lane.b32.xlu1 %v3619_v30, %s5049_s24  ;;  %v4011_v30 = vrot.slane %v4009_v18, 4 }
 0x352   : > { %3764 = vrot.lane.b32.xlu0 %v3509_v33, %s5049_s24  ;;  %v3055_v60 = vpop.permute.xlu2 %3054  ;;  %v3512_v33 = vrot.slane %v3510_v26, 4  ;;  %v3389_v3 = vsel %vm5095_vm2, %v3384_v50, %v6813_v51  ;;  %v6843_v26 = vld [vmem:[%s5085_s17 + $0x90] sm:$0xf] }
 0x353   : > { %v3041_v48 = vpop.permute.xlu1 %3040  ;;  %3164 = vst.msk [vmem:[#allocation2 + $0x8c] sm:$0xf] %vm3128_vm12, %v3055_v60  ;;  %v4013_v42 = vsel %vm5350_vm7, %v4011_v30, %v4012_v31  ;;  %v3640_v60 = vshrl.u32 %v3218_v10, 16  ;;  %v3526_v30 = vshll.u32 %v6843_v26, 16  ;;  %v3194_v10 = vld [vmem:[%s5085_s17 + $0x5c] sm:$0xf] }
 0x354   : > { %3157 = vst.msk [vmem:[#allocation2 + $0x70] sm:$0xf] %vm3128_vm12, %v3041_v48  ;;  %v3039_v49 = vpop.permute.xlu0 %3038  ;;  %v3918_v48 = vld [vmem:[%s5085_s17 + $0x54] sm:$0xf] }
 0x355   : > { %3156 = vst.msk [vmem:[#allocation2 + $0x6c] sm:$0xf] %vm3128_vm12, %v3039_v49  ;;  %v3513_v49 = vor.u32 %v3512_v33, %v6729_v19  ;;  %v4045_v62 = vrot.slane %v3918_v48, 5  ;;  %v3642_v22 = vrot.slane %v3640_v60, 4  ;;  %v6865_v50 = vrot.slane %v3526_v30, 5 }
 0x357   : > { %v3514_v19 = vrot.slane %v3513_v49, 4  ;;  %v4047_v8 = vrot.slane %v4045_v62, 4  ;;  %v4046_v29 = vsel %vm5350_vm7, %v4044_v17, %v4045_v62  ;;  %v3396_v49 = vshll.u32 %v3194_v10, 16  ;;  %v6877_v62 = vld [vmem:[%s5085_s17 + $0x90] sm:$0xf] }
 0x358   : > { %3788 = vrot.lane.b32.xlu2 %v3629_v5, %s5049_s24  ;;  %v3518_v5 = vrot.slane %v3516_v54, 5  ;;  %v3400_v54 = vshrl.u32 %v3194_v10, 16  ;;  %v3908_v10 = vld [vmem:[%s5085_s17 + $0x2c] sm:$0xf] }
 0x359   : > { %4200 = vrot.lane.b32.xlu1 %v4085_v53, %s5050_s25  ;;  %v3630_v53 = vshrl.u32 %v6736_v28, 16  ;;  %v3638_v28 = vrot.slane %v3636_v57, 5  ;;  %v3390_v57 = vshrl.u32 %v6787_v23, 16 }
 0x35a   : > { %4198 = vrot.lane.b32.xlu0 %v4082_v63, %s5050_s25  ;;  %v3061_v21 = vpop.permute.xlu2 %3060  ;;  %v3520_v63 = vshrl.u32 %v3206_v59, 16 }
 0x35b   : > { %v3047_v11 = vpop.permute.xlu1 %3046  ;;  %3167 = vst.msk [vmem:[#allocation2 + $0x98] sm:$0xf] %vm3128_vm12, %v3061_v21 }
 0x35c   : > { %3160 = vst.msk [vmem:[#allocation2 + $0x7c] sm:$0xf] %vm3128_vm12, %v3047_v11  ;;  %v3045_v32 = vpop.permute.xlu0 %3044  ;;  %v4048_v11 = vrot.slane %v6826_v2, 5  ;;  %v3522_v18 = vrot.slane %v3520_v63, 4  ;;  %v4014_v2 = vrot.slane %v4012_v31, 4 }
 0x35d   : > { %3159 = vst.msk [vmem:[#allocation2 + $0x78] sm:$0xf] %vm3128_vm12, %v3045_v32  ;;  %v3632_v32 = vrot.slane %v3630_v53, 4  ;;  %v3944_v53 = vld [vmem:[%s5085_s17 + $0xbc] sm:$0xf] }
 0x35e   : > { %v4049_v38 = vsel %vm5350_vm7, %v4047_v8, %v4048_v11  ;;  %v3523_v52 = vor.u32 %v3522_v18, %v3518_v5  ;;  %v4123_v23 = vrot.slane %v3944_v53, 5  ;;  %v6889_v8 = vld [vmem:[%s5085_s17 + $0x60] sm:$0xf]  ;;  %v3920_v53 = vld [vmem:[%s5085_s17 + $0x5c] sm:$0xf] }
 0x35f   : > { %v3633_v47 = vor.u32 %v3632_v32, %v6760_v58  ;;  %v3392_v32 = vrot.slane %v3390_v57, 4  ;;  %v3530_v57 = vshrl.u32 %v6843_v26, 16  ;;  %v5005_v26 = vld [vmem:[%s7577_s1] sm:$0xff] }
 0x360   : > { %4222 = vrot.lane.b32.xlu2 %v4118_v56, %s5050_s25  ;;  %v3646_v56 = vshll.u32 %v6836_v12, 16  ;;  %v3524_v48 = vrot.slane %v3523_v52, 4 }
 0x361   : > { %3738 = vrot.lane.b32.xlu1 %v3379_v6, %s5049_s24  ;;  %v3519_v6 = vsel %vm5095_vm2, %v3514_v19, %v3518_v5  ;;  %v3634_v59 = vrot.slane %v3633_v47, 4  ;;  %v3398_v19 = vrot.slane %v3396_v49, 5  ;;  %v3402_v5 = vrot.slane %v3400_v54, 4 }
 0x362   : > { %4224 = vrot.lane.b32.xlu0 %v4121_v44, %s5050_s25  ;;  %v3067_v61 = vpop.permute.xlu2 %3066  ;;  %v3643_v44 = vor.u32 %v3642_v22, %v3638_v28  ;;  %v3529_v63 = vsel %vm5095_vm2, %v3524_v48, %v6865_v50  ;;  %v3393_v41 = vor.u32 %v3392_v32, %v6813_v51  ;;  %v3208_v51 = vld [vmem:[%s5085_s17 + $0x94] sm:$0xf] }
 0x363   : > { %v3053_v39 = vpop.permute.xlu1 %3052  ;;  %3170 = vst.msk [vmem:[#allocation2 + $0xa4] sm:$0xf] %vm3128_vm12, %v3067_v61  ;;  %v3639_v60 = vsel %vm5095_vm2, %v3634_v59, %v3638_v28  ;;  %v3403_v18 = vor.u32 %v3402_v5, %v3398_v19  ;;  %v3536_v49 = vshll.u32 %v3208_v51, 16  ;;  %v3540_v54 = vshrl.u32 %v3208_v51, 16 }
 0x364   : > { %3163 = vst.msk [vmem:[#allocation2 + $0x88] sm:$0xf] %vm3128_vm12, %v3053_v39  ;;  %v3051_v43 = vpop.permute.xlu0 %3050  ;;  %v3644_v33 = vrot.slane %v3643_v44, 4  ;;  %v6859_v39 = vrot.slane %v3646_v56, 5 }
 0x365   : > { %3162 = vst.msk [vmem:[#allocation2 + $0x84] sm:$0xf] %vm3128_vm12, %v3051_v43  ;;  %v3932_v43 = vld [vmem:[%s5085_s17 + $0x8c] sm:$0xf]  ;;  %v3538_v5 = vrot.slane %v3536_v49, 5 }
 0x366   : > { %v3649_v61 = vsel %vm5095_vm2, %v3644_v33, %v6859_v39  ;;  %v3394_v33 = vrot.slane %v3393_v41, 4 }
 0x368   : > { %3740 = vrot.lane.b32.xlu2 %v3389_v3, %s5049_s24  ;;  %v4122_v3 = vrot.slane %v4120_v13, 4 }
 0x369   : > { %4152 = vrot.lane.b32.xlu1 %v4013_v42, %s5050_s25 }
 0x36a   : > { %4150 = vrot.lane.b32.xlu0 %v4010_v0, %s5050_s25  ;;  %v3073_v21 = vpop.permute.xlu2 %3072  ;;  %v4087_v0 = vrot.slane %v3932_v43, 5  ;;  %v4124_v17 = vsel %vm5350_vm7, %v4122_v3, %v4123_v23 }
 0x36b   : > { %v3059_v7 = vpop.permute.xlu1 %3058  ;;  %3173 = vst.msk [vmem:[#allocation2 + $0xb0] sm:$0xf] %vm3128_vm12, %v3073_v21  ;;  %v3406_v21 = vshll.u32 %v6889_v8, 16 }
 0x36c   : > { %3166 = vst.msk [vmem:[#allocation2 + $0x94] sm:$0xf] %vm3128_vm12, %v3059_v7  ;;  %v3057_v14 = vpop.permute.xlu0 %3056  ;;  %v4089_v28 = vrot.slane %v4087_v0, 4  ;;  %v4090_v7 = vrot.slane %v6877_v62, 5  ;;  %v4088_v56 = vsel %vm5350_vm7, %v4086_v4, %v4087_v0  ;;  %v4015_v0 = vrot.slane %v3908_v10, 5 }
 0x36d   : > { %3165 = vst.msk [vmem:[#allocation2 + $0x90] sm:$0xf] %vm3128_vm12, %v3057_v14  ;;  %v6914_v52 = vrot.slane %v3406_v21, 5  ;;  %v6950_v4 = vld [vmem:[%s5085_s17 + $0x98] sm:$0xf] }
 0x36e   : > { %v4091_v37 = vsel %vm5350_vm7, %v4089_v28, %v4090_v7  ;;  %v4017_v32 = vrot.slane %v4015_v0, 4 }
 0x370   : > { %4174 = vrot.lane.b32.xlu2 %v4046_v29, %s5050_s25  ;;  %v3404_v29 = vrot.slane %v3403_v18, 4 }
 0x371   : > { %3766 = vrot.lane.b32.xlu1 %v3519_v6, %s5049_s24  ;;  %v4391_v6 = vld [vmem:[%s7577_s1 + $0x10] sm:$0x3] }
 0x372   : > { %4176 = vrot.lane.b32.xlu0 %v4049_v38, %s5050_s25  ;;  %v3079_v42 = vpop.permute.xlu2 %3078  ;;  %v4525_v44 = vunpack.c.l.b16 %v4391_v6  ;;  %v6911_v38 = vld [vmem:[%s5085_s17 + $0xc0] sm:$0xf] }
 0x373   : > { %v3065_v40 = vpop.permute.xlu1 %3064  ;;  %3176 = vst.msk [vmem:[#allocation2 + $0xbc] sm:$0xf] %vm3128_vm12, %v3079_v42  ;;  %v4126_v43 = vrot.slane %v6911_v38, 5  ;;  %v5006_v42 = vld [vmem:[%s7577_s1 + $0x8] sm:$0xff] }
 0x374   : > { %3169 = vst.msk [vmem:[#allocation2 + $0xa0] sm:$0xf] %vm3128_vm12, %v3065_v40  ;;  %v3063_v58 = vpop.permute.xlu0 %3062  ;;  %v4528_v47 = vpack.c.b16 %v4525_v44, %v4525_v44 }
 0x375   : > { %3168 = vst.msk [vmem:[#allocation2 + $0x9c] sm:$0xf] %vm3128_vm12, %v3063_v58  ;;  %v4125_v58 = vrot.slane %v4123_v23, 4  ;;  %v4050_v23 = vrot.slane %v4048_v11, 4  ;;  %v3220_v11 = vld [vmem:[%s5085_s17 + $0xc4] sm:$0xf] }
 0x376   : > { %v4606_v40 = vsel %vm4604_vm14, %v4528_v47, 0  ;;  %v3656_v41 = vshll.u32 %v3220_v11, 16  ;;  %v3660_v44 = vshrl.u32 %v3220_v11, 16  ;;  %v4016_v47 = vsel %vm5350_vm7, %v4014_v2, %v4015_v0 }
 0x377   : > { %5008 = vmatpush.bf16.msra.mxu2 %v4606_v40  ;;  %5009 = vmatpush.bf16.msra.mxu3 %v4606_v40  ;;  %v4127_v3 = vsel %vm5350_vm7, %v4125_v58, %v4126_v43 }
 0x378   : > { %3768 = vrot.lane.b32.xlu2 %v3529_v63, %s5049_s24  ;;  %4613 = vmatpush.bf16.msra.mxu0 %v4606_v40  ;;  %v6934_v63 = vld [vmem:[%s5085_s17 + $0x30] sm:$0xf] }
 0x379   : > { %3792 = vrot.lane.b32.xlu1 %v3649_v61, %s5049_s24  ;;  %5007 = vmatpush.bf16.msra.mxu1 %v4606_v40  ;;  %v3409_v61 = vsel %vm5095_vm2, %v3404_v29, %v6914_v52  ;;  %v6971_v29 = vld [vmem:[%s5085_s17 + $0x60] sm:$0xf] }
 0x37a   : > { %3790 = vrot.lane.b32.xlu0 %v3639_v60, %s5049_s24  ;;  %v3715_v13 = vpop.permute.xlu2 %3714  ;;  %v3399_v60 = vsel %vm5095_vm2, %v3394_v33, %v3398_v19  ;;  %v4051_v19 = vrot.slane %v3920_v53, 5 }
 0x37b   : > { %v3071_v22 = vpop.permute.xlu1 %3070  ;;  %3857 = vst.msk [vmem:[#allocation2 + $0x8] sm:$0xf] %vm3854_vm13, %v3715_v13  ;;  %5011 = vmatpush.bf16.msra.mxu2 %v5006_v42  ;;  %5012 = vmatpush.bf16.msra.mxu3 %v5006_v42  ;;  %v3532_v13 = vrot.slane %v3530_v57, 4  ;;  %v3934_v57 = vld [vmem:[%s5085_s17 + $0x94] sm:$0xf] }
 0x37c   : > { %3172 = vst.msk [vmem:[#allocation2 + $0xac] sm:$0xf] %vm3128_vm12, %v3071_v22  ;;  %v3069_v14 = vpop.permute.xlu0 %3068  ;;  %4614 = vmatpush.bf16.msra.mxu0 %v5006_v42  ;;  %v3542_v22 = vrot.slane %v3540_v54, 4  ;;  %v4052_v21 = vsel %vm5350_vm7, %v4050_v23, %v4051_v19  ;;  %v4053_v58 = vrot.slane %v4051_v19, 4  ;;  %v4093_v23 = vrot.slane %v3934_v57, 5 }
 0x37d   : > { %3171 = vst.msk [vmem:[#allocation2 + $0xa8] sm:$0xf] %vm3128_vm12, %v3069_v14  ;;  %5010 = vmatpush.bf16.msra.mxu1 %v5006_v42  ;;  %v4018_v14 = vrot.slane %v6934_v63, 5  ;;  %v3533_v31 = vor.u32 %v3532_v13, %v6865_v50  ;;  %v6978_v50 = vld [vmem:[%s5085_s17 + $0xc8] sm:$0xf] }
 0x37e   : > { %v3543_v6 = vor.u32 %v3542_v22, %v3538_v5  ;;  %v3666_v53 = vshll.u32 %v6978_v50, 16  ;;  %v3184_v13 = vld [vmem:[%s5085_s17 + $0x34] sm:$0xf] }
 0x37f   : > { %5014 = vmatpush.bf16.msra.mxu2 %v5005_v26  ;;  %5015 = vmatpush.bf16.msra.mxu3 %v5005_v26  ;;  %v4019_v27 = vsel %vm5350_vm7, %v4017_v32, %v4018_v14  ;;  %v3534_v40 = vrot.slane %v3533_v31, 4 }
 0x380   : > { %4202 = vrot.lane.b32.xlu2 %v4088_v56, %s5050_s25  ;;  %4615 = vmatpush.bf16.msra.mxu0 %v5005_v26  ;;  %v3650_v56 = vshrl.u32 %v6836_v12, 16  ;;  %v3658_v12 = vrot.slane %v3656_v41, 5  ;;  %v6999_v22 = vrot.slane %v3666_v53, 5 }
 0x381   : > { %4226 = vrot.lane.b32.xlu1 %v4124_v17, %s5050_s25  ;;  %5013 = vmatpush.bf16.msra.mxu1 %v5005_v26  ;;  %v3539_v54 = vsel %vm5095_vm2, %v3534_v40, %v3538_v5  ;;  %v4092_v26 = vrot.slane %v4090_v7, 4  ;;  %v3410_v7 = vshrl.u32 %v6889_v8, 16  ;;  %v3290_v8 = vshrl.u32 %v6567_v55, 16  ;;  %v3196_v55 = vld [vmem:[%s5085_s17 + $0x64] sm:$0xf] }
 0x382   : > { %4204 = vrot.lane.b32.xlu0 %v4091_v37, %s5050_s25  ;;  %v3721_v48 = vpop.permute.xlu2 %3720  ;;  %v3546_v37 = vshll.u32 %v6950_v4, 16  ;;  %v3652_v42 = vrot.slane %v3650_v56, 4 }
 0x383   : > { %v3077_v30 = vpop.permute.xlu1 %3076  ;;  %3860 = vst.msk [vmem:[#allocation2 + $0x14] sm:$0xf] %vm3854_vm13, %v3721_v48  ;;  %v4054_v48 = vrot.slane %v6971_v29, 5  ;;  %v3412_v56 = vrot.slane %v3410_v7, 4  ;;  %v7060_v7 = vld [vmem:[%s5085_s17 + $0x68] sm:$0xf] }
 0x384   : > { %3175 = vst.msk [vmem:[#allocation2 + $0xb8] sm:$0xf] %vm3128_vm12, %v3077_v30  ;;  %v3075_v59 = vpop.permute.xlu0 %3074  ;;  %v3544_v30 = vrot.slane %v3543_v6, 4  ;;  %v6974_v33 = vrot.slane %v3546_v37, 5  ;;  %v3300_v6 = vshrl.u32 %v3184_v13, 16 }
 0x385   : > { %3174 = vst.msk [vmem:[#allocation2 + $0xb4] sm:$0xf] %vm3128_vm12, %v3075_v59  ;;  %v3662_v59 = vrot.slane %v3660_v44, 4  ;;  %v4055_v0 = vsel %vm5350_vm7, %v4053_v58, %v4054_v48  ;;  %v4128_v44 = vrot.slane %v4126_v43, 4  ;;  %v3292_v58 = vrot.slane %v3290_v8, 4 }
 0x386   : > { %v3549_v49 = vsel %vm5095_vm2, %v3544_v30, %v6974_v33  ;;  %v7031_v30 = vld [vmem:[%s5085_s17 + $0x38] sm:$0xf]  ;;  %v3302_v40 = vrot.slane %v3300_v6, 4 }
 0x387   : > { %v3306_v57 = vshll.u32 %v7031_v30, 16 }
 0x388   : > { %4228 = vrot.lane.b32.xlu2 %v4127_v3, %s5050_s25  ;;  %v3653_v3 = vor.u32 %v3652_v42, %v6859_v39  ;;  %v3413_v42 = vor.u32 %v3412_v56, %v6914_v52 }
 0x389   : > { %3744 = vrot.lane.b32.xlu1 %v3409_v61, %s5049_s24 }
 0x38a   : > { %3742 = vrot.lane.b32.xlu0 %v3399_v60, %s5049_s24  ;;  %v3783_v18 = vpop.permute.xlu2 %3782  ;;  %v3663_v60 = vor.u32 %v3662_v59, %v3658_v12  ;;  %v3654_v32 = vrot.slane %v3653_v3, 4  ;;  %v4095_v59 = vrot.slane %v4093_v23, 4  ;;  %v3414_v52 = vrot.slane %v3413_v42, 4 }
 0x38b   : > { %v3713_v28 = vpop.permute.xlu1 %3712  ;;  %3891 = vst.msk [vmem:[#allocation2 + $0x90] sm:$0xf] %vm3854_vm13, %v3783_v18  ;;  %v7014_v18 = vld [vmem:[%s5085_s17 + $0xc8] sm:$0xf] }
 0x38c   : > { %3856 = vst.msk [vmem:[#allocation2 + $0x4] sm:$0xf] %vm3854_vm13, %v3713_v28  ;;  %v3711_v17 = vpop.permute.xlu0 %3710  ;;  %v3664_v5 = vrot.slane %v3663_v60, 4  ;;  %v3946_v28 = vld [vmem:[%s5085_s17 + $0xc4] sm:$0xf]  ;;  %v3659_v37 = vsel %vm5095_vm2, %v3654_v32, %v3658_v12  ;;  %v4132_v41 = vrot.slane %v7014_v18, 5 }
 0x38d   : > { %3855 = vst.msk [vmem:[#allocation2] sm:$0xf] %vm3854_vm13, %v3711_v17  ;;  %v4094_v17 = vsel %vm5350_vm7, %v4092_v26, %v4093_v23  ;;  %v4129_v2 = vrot.slane %v3946_v28, 5  ;;  %v3420_v60 = vshrl.u32 %v3196_v55, 16  ;;  %v3910_v26 = vld [vmem:[%s5085_s17 + $0x34] sm:$0xf] }
 0x38e   : > { %v3669_v11 = vsel %vm5095_vm2, %v3664_v5, %v6999_v22  ;;  %v7053_v28 = vrot.slane %v3306_v57, 5 }
 0x38f   : > { %v4131_v31 = vrot.slane %v4129_v2, 4  ;;  %v3422_v32 = vrot.slane %v3420_v60, 4 }
 0x390   : > { %4154 = vrot.lane.b32.xlu2 %v4016_v47, %s5050_s25 }
 0x391   : > { %4178 = vrot.lane.b32.xlu1 %v4052_v21, %s5050_s25  ;;  %v3296_v21 = vshll.u32 %v3184_v13, 16  ;;  %v4133_v43 = vsel %vm5350_vm7, %v4131_v31, %v4132_v41  ;;  %v4021_v13 = vrot.slane %v3910_v26, 5 }
 0x392   : > { %4156 = vrot.lane.b32.xlu0 %v4019_v27, %s5050_s25  ;;  %v4197_v61 = vpop.permute.xlu2 %4196  ;;  %v7022_v27 = vld [vmem:[%s5085_s17 + $0x98] sm:$0xf] }
 0x393   : > { %v3719_v51 = vpop.permute.xlu1 %3718 }
 0x394   : > { %3859 = vst.msk [vmem:[#allocation2 + $0x10] sm:$0xf] %vm3854_vm13, %v3719_v51  ;;  %v3717_v10 = vpop.permute.xlu0 %3716  ;;  %v3298_v51 = vrot.slane %v3296_v21, 5 }
 0x395   : > { %3858 = vst.msk [vmem:[#allocation2 + $0xc] sm:$0xf] %vm3854_vm13, %v3717_v10  ;;  %v4096_v10 = vrot.slane %v7022_v27, 5 }
 0x397   : > { %v4097_v53 = vsel %vm5350_vm7, %v4095_v59, %v4096_v10  ;;  %v4098_v18 = vrot.slane %v4096_v10, 4 }
 0x398   : > { %4180 = vrot.lane.b32.xlu2 %v4055_v0, %s5050_s25  ;;  %v3293_v0 = vor.u32 %v3292_v58, %v6594_v15 }
 0x399   : > { %3772 = vrot.lane.b32.xlu1 %v3549_v49, %s5049_s24  ;;  %v4130_v49 = vsel %vm5350_vm7, %v4128_v44, %v4129_v2  ;;  %v4020_v44 = vrot.slane %v4018_v14, 4 }
 0x39a   : > { %3770 = vrot.lane.b32.xlu0 %v3539_v54, %s5049_s24  ;;  %v3735_v62 = vpop.permute.xlu2 %3734  ;;  %v3303_v54 = vor.u32 %v3302_v40, %v3298_v51  ;;  %v3922_v40 = vld [vmem:[%s5085_s17 + $0x64] sm:$0xf] }
 0x39b   : > { %v3761_v19 = vpop.permute.xlu1 %3760  ;;  %3867 = vst.msk [vmem:[#allocation2 + $0x30] sm:$0xf] %vm3854_vm13, %v3735_v62  ;;  %v4022_v57 = vsel %vm5350_vm7, %v4020_v44, %v4021_v13  ;;  %v4057_v60 = vrot.slane %v3922_v40, 5 }
 0x39c   : > { %3880 = vst.msk [vmem:[#allocation2 + $0x64] sm:$0xf] %vm3854_vm13, %v3761_v19  ;;  %v3759_v39 = vpop.permute.xlu0 %3758  ;;  %v3304_v5 = vrot.slane %v3303_v54, 4  ;;  %v3670_v54 = vshrl.u32 %v6978_v50, 16 }
 0x39d   : > { %3879 = vst.msk [vmem:[#allocation2 + $0x60] sm:$0xf] %vm3854_vm13, %v3759_v39  ;;  %v3294_v39 = vrot.slane %v3293_v0, 4  ;;  %v7099_v0 = vld [vmem:[%s5085_s17 + $0x68] sm:$0xf] }
 0x39e   : > { %4316 = vst.msk [vmem:[#allocation2 + $0x64] sm:$0xf] %vm4290_vm15, %v4197_v61  ;;  %v3416_v61 = vshll.u32 %v3196_v55, 16  ;;  %v3309_v21 = vsel %vm5095_vm2, %v3304_v5, %v7053_v28  ;;  %v3210_v55 = vld [vmem:[%s5085_s17 + $0x9c] sm:$0xf]  ;;  %v4059_v5 = vrot.slane %v4057_v60, 4 }
 0x39f   : > { %v3299_v6 = vsel %vm5095_vm2, %v3294_v39, %v3298_v51  ;;  %v3222_v51 = vld [vmem:[%s5085_s17 + $0xcc] sm:$0xf]  ;;  %v3556_v42 = vshll.u32 %v3210_v55, 16  ;;  %v7109_v39 = vld [vmem:[%s5085_s17 + $0xd0] sm:$0xf] }
 0x3a0   : > { %3794 = vrot.lane.b32.xlu2 %v3659_v37, %s5049_s24  ;;  %v3418_v3 = vrot.slane %v3416_v61, 5  ;;  %v4023_v37 = vrot.slane %v4021_v13, 4  ;;  %v3676_v61 = vshll.u32 %v3222_v51, 16 }
 0x3a1   : > { %4206 = vrot.lane.b32.xlu1 %v4094_v17, %s5050_s25  ;;  %v3550_v17 = vshrl.u32 %v6950_v4, 16  ;;  %v3426_v4 = vshll.u32 %v7060_v7, 16 }
 0x3a2   : > { %3796 = vrot.lane.b32.xlu0 %v3669_v11, %s5049_s24  ;;  %v4149_v38 = vpop.permute.xlu2 %4148  ;;  %v3419_v2 = vsel %vm5095_vm2, %v3414_v52, %v3418_v3  ;;  %v7066_v11 = vld [vmem:[%s5085_s17 + $0x38] sm:$0xf]  ;;  %v3423_v8 = vor.u32 %v3422_v32, %v3418_v3  ;;  %v3558_v3 = vrot.slane %v3556_v42, 5  ;;  %v3678_v26 = vrot.slane %v3676_v61, 5 }
 0x3a3   : > { %v4195_v47 = vpop.permute.xlu1 %4194  ;;  %4292 = vst.msk [vmem:[#allocation2 + $0x4] sm:$0xf] %vm4290_vm15, %v4149_v38  ;;  %v4024_v31 = vrot.slane %v7066_v11, 5  ;;  %v3552_v56 = vrot.slane %v3550_v17, 4  ;;  %v7085_v38 = vrot.slane %v3426_v4, 5  ;;  %v3672_v32 = vrot.slane %v3670_v54, 4 }
 0x3a4   : > { %4315 = vst.msk [vmem:[#allocation2 + $0x60] sm:$0xf] %vm4290_vm15, %v4195_v47  ;;  %v3785_v12 = vpop.permute.xlu0 %3784  ;;  %v3424_v58 = vrot.slane %v3423_v8, 4  ;;  %v3686_v4 = vshll.u32 %v7109_v39, 16  ;;  %v3310_v54 = vshrl.u32 %v7031_v30, 16  ;;  %v4134_v30 = vrot.slane %v4132_v41, 4 }
 0x3a5   : > { %3892 = vst.msk [vmem:[#allocation2 + $0x94] sm:$0xf] %vm3854_vm13, %v3785_v12  ;;  %v4025_v63 = vsel %vm5350_vm7, %v4023_v37, %v4024_v31  ;;  %v3198_v41 = vld [vmem:[%s5085_s17 + $0x6c] sm:$0xf] }
 0x3a6   : > { %v3429_v52 = vsel %vm5095_vm2, %v3424_v58, %v7085_v38  ;;  %v3436_v27 = vshll.u32 %v3198_v41, 16  ;;  %v3440_v10 = vshrl.u32 %v3198_v41, 16 }
 0x3a8   : > { %4208 = vrot.lane.b32.xlu2 %v4097_v53, %s5050_s25  ;;  %v3560_v53 = vshrl.u32 %v3210_v55, 16  ;;  %v7132_v55 = vrot.slane %v3686_v4, 5 }
 0x3a9   : > { %4232 = vrot.lane.b32.xlu1 %v4133_v43, %s5050_s25  ;;  %v3553_v43 = vor.u32 %v3552_v56, %v6974_v33 }
 0x3aa   : > { %4230 = vrot.lane.b32.xlu0 %v4130_v49, %s5050_s25  ;;  %v3763_v62 = vpop.permute.xlu2 %3762  ;;  %v3680_v49 = vshrl.u32 %v3222_v51, 16  ;;  %v3562_v17 = vrot.slane %v3560_v53, 4 }
 0x3ab   : > { %v4221_v23 = vpop.permute.xlu1 %4220  ;;  %v4993_v19 = vld [vmem:[#allocation2 + $0x60] sm:$0xff]  ;;  %3881 = vst.msk [vmem:[#allocation2 + $0x68] sm:$0xf] %vm3854_vm13, %v3763_v62  ;;  %v3554_v33 = vrot.slane %v3553_v43, 4  ;;  %v4056_v62 = vrot.slane %v4054_v48, 4  ;;  %v3673_v48 = vor.u32 %v3672_v32, %v6999_v22 }
 0x3ac   : > { %4328 = vst.msk [vmem:[#allocation2 + $0x94] sm:$0xf] %vm4290_vm15, %v4221_v23  ;;  %v4219_v15 = vpop.permute.xlu0 %4218  ;;  %4967 = vmatmul.msk.bf16.vlgmr.msra.gmra.mxu2 %vm4531_vm0, %v4993_v19  ;;  %v3682_v50 = vrot.slane %v3680_v49, 4  ;;  %v3563_v44 = vor.u32 %v3562_v17, %v3558_v3  ;;  %v3186_v22 = vld [vmem:[%s5085_s17 + $0x3c] sm:$0xf] }
 0x3ad   : > { %4327 = vst.msk [vmem:[#allocation2 + $0x90] sm:$0xf] %vm4290_vm15, %v4219_v15  ;;  %v4060_v15 = vrot.slane %v7099_v0, 5  ;;  %v4058_v37 = vsel %vm5350_vm7, %v4056_v62, %v4057_v60  ;;  %v3674_v51 = vrot.slane %v3673_v48, 4  ;;  %v3316_v61 = vshll.u32 %v3186_v22, 16 }
 0x3ae   : > { %v3683_v8 = vor.u32 %v3682_v50, %v3678_v26  ;;  %v3320_v49 = vshrl.u32 %v3186_v22, 16  ;;  %v3948_v60 = vld [vmem:[%s5085_s17 + $0xcc] sm:$0xf]  ;;  %v7164_v32 = vld [vmem:[%s5085_s17 + $0x40] sm:$0xf]  ;;  %v3430_v48 = vshrl.u32 %v7060_v7, 16 }
 0x3af   : > { %v4061_v29 = vsel %vm5350_vm7, %v4059_v5, %v4060_v15  ;;  %v3438_v7 = vrot.slane %v3436_v27, 5  ;;  %v7237_v27 = vld [vmem:[%s5085_s17 + $0x40] sm:$0xf] }
 0x3b0   : > { %3722 = vrot.lane.b32.xlu2 %v3299_v6, %s5049_s24  ;;  %v3559_v6 = vsel %vm5095_vm2, %v3554_v33, %v3558_v3  ;;  %v4135_v3 = vrot.slane %v3948_v60, 5  ;;  %v3322_v50 = vrot.slane %v3320_v49, 4 }
 0x3b1   : > { %3746 = vrot.lane.b32.xlu1 %v3419_v2, %s5049_s24 }
 0x3b2   : > { %3724 = vrot.lane.b32.xlu0 %v3309_v21, %s5049_s24  ;;  %v3789_v14 = vpop.permute.xlu2 %3788  ;;  %v7117_v21 = vld [vmem:[%s5085_s17 + $0xa0] sm:$0xf] }
 0x3b3   : > { %v4147_v47 = vpop.permute.xlu1 %4146  ;;  %3894 = vst.msk [vmem:[#allocation2 + $0x9c] sm:$0xf] %vm3854_vm13, %v3789_v14  ;;  %v3566_v56 = vshll.u32 %v7117_v21, 16 }
 0x3b4   : > { %4291 = vst.msk [vmem:[#allocation2] sm:$0xf] %vm4290_vm15, %v4147_v47  ;;  %v3737_v12 = vpop.permute.xlu0 %3736  ;;  %v4999_v59 = vld [vmem:[#allocation2 + $0x90] sm:$0xff]  ;;  %v3684_v47 = vrot.slane %v3683_v8, 4  ;;  %v3326_v8 = vshll.u32 %v7164_v32, 16 }
 0x3b5   : > { %3868 = vst.msk [vmem:[#allocation2 + $0x34] sm:$0xf] %vm3854_vm13, %v3737_v12  ;;  %4973 = vmatmul.msk.bf16.vlgmr.msra.gmra.mxu3 %vm4531_vm0, %v4999_v59  ;;  %v3936_v12 = vld [vmem:[%s5085_s17 + $0x9c] sm:$0xf]  ;;  %v7138_v14 = vrot.slane %v3566_v56, 5 }
 0x3b6   : > { %v3689_v42 = vsel %vm5095_vm2, %v3684_v47, %v7132_v55  ;;  %v4099_v53 = vrot.slane %v3936_v12, 5  ;;  %v7187_v47 = vrot.slane %v3326_v8, 5  ;;  %v3442_v12 = vrot.slane %v3440_v10, 4 }
 0x3b8   : > { %3748 = vrot.lane.b32.xlu2 %v3429_v52, %s5049_s24  ;;  %v7152_v52 = vld [vmem:[%s5085_s17 + $0xa0] sm:$0xf] }
 0x3b9   : > { %4160 = vrot.lane.b32.xlu1 %v4025_v63, %s5050_s25  ;;  %v3564_v63 = vrot.slane %v3563_v44, 4  ;;  %v4102_v5 = vrot.slane %v7152_v52, 5  ;;  %v7184_v44 = vld [vmem:[%s5085_s17 + $0xd0] sm:$0xf] }
 0x3ba   : > { %4158 = vrot.lane.b32.xlu0 %v4022_v57, %s5050_s25  ;;  %v4223_v2 = vpop.permute.xlu2 %4222  ;;  %v3679_v57 = vsel %vm5095_vm2, %v3674_v51, %v3678_v26  ;;  %v3318_v26 = vrot.slane %v3316_v61, 5 }
 0x3bb   : > { %v4173_v23 = vpop.permute.xlu1 %4172  ;;  %v4981_v19 = vld [vmem:[#allocation2] sm:$0xff]  ;;  %v3569_v33 = vsel %vm5095_vm2, %v3564_v63, %v7138_v14  ;;  %v4138_v63 = vrot.slane %v7184_v44, 5 }
 0x3bc   : > { %4304 = vst.msk [vmem:[#allocation2 + $0x34] sm:$0xf] %vm4290_vm15, %v4173_v23  ;;  %v4171_v13 = vpop.permute.xlu0 %4170  ;;  %4955 = vmatmul.msk.bf16.vlgmr.msra.gmra.mxu0 %vm4531_vm0, %v4981_v19  ;;  %v4101_v19 = vrot.slane %v4099_v53, 4 }
 0x3bd   : > { %4303 = vst.msk [vmem:[#allocation2 + $0x30] sm:$0xf] %vm4290_vm15, %v4171_v13  ;;  %v3312_v13 = vrot.slane %v3310_v54, 4  ;;  %v3912_v54 = vld [vmem:[%s5085_s17 + $0x3c] sm:$0xf] }
 0x3be   : > { %v4103_v4 = vsel %vm5350_vm7, %v4101_v19, %v4102_v5  ;;  %v3924_v19 = vld [vmem:[%s5085_s17 + $0x6c] sm:$0xf] }
 0x3c0   : > { %4182 = vrot.lane.b32.xlu2 %v4058_v37, %s5050_s25  ;;  %v4100_v37 = vsel %vm5350_vm7, %v4098_v18, %v4099_v53  ;;  %v3212_v18 = vld [vmem:[%s5085_s17 + $0xa4] sm:$0xf] }
 0x3c1   : > { %3774 = vrot.lane.b32.xlu1 %v3559_v6, %s5049_s24  ;;  %v3323_v6 = vor.u32 %v3322_v50, %v3318_v26  ;;  %v3576_v8 = vshll.u32 %v3212_v18, 16 }
 0x3c2   : > { %4184 = vrot.lane.b32.xlu0 %v4061_v29, %s5050_s25  ;;  %v3741_v43 = vpop.permute.xlu2 %3740  ;;  %v3313_v29 = vor.u32 %v3312_v13, %v7053_v28  ;;  %v7191_v28 = vld [vmem:[%s5085_s17 + $0x70] sm:$0xf] }
 0x3c3   : > { %v3787_v40 = vpop.permute.xlu1 %3786  ;;  %3870 = vst.msk [vmem:[#allocation2 + $0x3c] sm:$0xf] %vm3854_vm13, %v3741_v43  ;;  %v3324_v56 = vrot.slane %v3323_v6, 4  ;;  %v3432_v43 = vrot.slane %v3430_v48, 4  ;;  %v3446_v60 = vshll.u32 %v7191_v28, 16 }
 0x3c4   : > { %3893 = vst.msk [vmem:[#allocation2 + $0x98] sm:$0xf] %vm3854_vm13, %v3787_v40  ;;  %v3765_v59 = vpop.permute.xlu0 %3764  ;;  %v4987_v58 = vld [vmem:[#allocation2 + $0x30] sm:$0xff]  ;;  %v3314_v51 = vrot.slane %v3313_v29, 4  ;;  %v3570_v29 = vshrl.u32 %v7117_v21, 16 }
 0x3c5   : > { %3882 = vst.msk [vmem:[#allocation2 + $0x6c] sm:$0xf] %vm3854_vm13, %v3765_v59  ;;  %4961 = vmatmul.msk.bf16.vlgmr.msra.gmra.mxu1 %vm4531_vm0, %v4987_v58  ;;  %v4137_v58 = vrot.slane %v4135_v3, 4  ;;  %v3329_v61 = vsel %vm5095_vm2, %v3324_v56, %v7187_v47  ;;  %v7230_v6 = vld [vmem:[%s5085_s17 + $0x70] sm:$0xf] }
 0x3c6   : > { %4329 = vst.msk [vmem:[#allocation2 + $0x98] sm:$0xf] %vm4290_vm15, %v4223_v2  ;;  %v4136_v2 = vsel %vm5350_vm7, %v4134_v30, %v4135_v3  ;;  %v3319_v49 = vsel %vm5095_vm2, %v3314_v51, %v3318_v26  ;;  %v4026_v30 = vrot.slane %v4024_v31, 4  ;;  %v4027_v3 = vrot.slane %v3912_v54, 5  ;;  %v3224_v21 = vld [vmem:[%s5085_s17 + $0xd4] sm:$0xf] }
 0x3c7   : > { %v4139_v53 = vsel %vm5350_vm7, %v4137_v58, %v4138_v63  ;;  %v3690_v31 = vshrl.u32 %v7109_v39, 16  ;;  %v4066_v48 = vrot.slane %v7230_v6, 5  ;;  %v3578_v51 = vrot.slane %v3576_v8, 5 }
 0x3c8   : > { %3776 = vrot.lane.b32.xlu2 %v3569_v33, %s5049_s24  ;;  %v3433_v33 = vor.u32 %v3432_v43, %v7085_v38  ;;  %v4028_v41 = vsel %vm5350_vm7, %v4026_v30, %v4027_v3  ;;  %v4030_v58 = vrot.slane %v7237_v27, 5  ;;  %v3572_v43 = vrot.slane %v3570_v29, 4  ;;  %v3938_v30 = vld [vmem:[%s5085_s17 + $0xa4] sm:$0xf] }
 0x3c9   : > { %3800 = vrot.lane.b32.xlu1 %v3689_v42, %s5049_s24 }
 0x3ca   : > { %3798 = vrot.lane.b32.xlu0 %v3679_v57, %s5049_s24  ;;  %v4175_v17 = vpop.permute.xlu2 %4174  ;;  %v3443_v57 = vor.u32 %v3442_v12, %v3438_v7  ;;  %v4032_v24 = vrot.slane %v4030_v58, 4 }
 0x3cb   : > { %v4201_v23 = vpop.permute.xlu1 %4200 }
 0x3cc   : > { %4318 = vst.msk [vmem:[#allocation2 + $0x6c] sm:$0xf] %vm4290_vm15, %v4201_v23  ;;  %v4199_v62 = vpop.permute.xlu0 %4198  ;;  %v3444_v50 = vrot.slane %v3443_v57, 4  ;;  %v7215_v23 = vrot.slane %v3446_v60, 5  ;;  %v3700_v57 = vshrl.u32 %v3224_v21, 16 }
 0x3cd   : > { %4317 = vst.msk [vmem:[#allocation2 + $0x68] sm:$0xf] %vm4290_vm15, %v4199_v62  ;;  %v3434_v62 = vrot.slane %v3433_v33, 4 }
 0x3cf   : > { %v3439_v39 = vsel %vm5095_vm2, %v3434_v62, %v3438_v7 }
 0x3d0   : > { %4210 = vrot.lane.b32.xlu2 %v4100_v37, %s5050_s25  ;;  %v3692_v37 = vrot.slane %v3690_v31, 4 }
 0x3d1   : > { %4234 = vrot.lane.b32.xlu1 %v4136_v2, %s5050_s25  ;;  %v3449_v2 = vsel %vm5095_vm2, %v3444_v50, %v7215_v23 }
 0x3d2   : > { %4212 = vrot.lane.b32.xlu0 %v4103_v4, %s5050_s25  ;;  %v3769_v42 = vpop.permute.xlu2 %3768  ;;  %v3580_v4 = vshrl.u32 %v3212_v18, 16  ;;  %v3225_v18 = vld [vmem:[%s5085_s17 + $0xd8] sm:$0x1] }
 0x3d3   : > { %v3739_v40 = vpop.permute.xlu1 %3738  ;;  %3884 = vst.msk [vmem:[#allocation2 + $0x74] sm:$0xf] %vm3854_vm13, %v3769_v42 }
 0x3d4   : > { %3869 = vst.msk [vmem:[#allocation2 + $0x38] sm:$0xf] %vm3854_vm13, %v3739_v40  ;;  %v4225_v22 = vpop.permute.xlu0 %4224  ;;  %v4994_v59 = vld [vmem:[#allocation2 + $0x68] sm:$0xff]  ;;  %v4062_v40 = vrot.slane %v4060_v15, 4  ;;  %v3582_v12 = vrot.slane %v3580_v4, 4  ;;  %v3693_v15 = vor.u32 %v3692_v37, %v7132_v55 }
 0x3d5   : > { %4330 = vst.msk [vmem:[#allocation2 + $0x9c] sm:$0xf] %vm4290_vm15, %v4225_v22  ;;  %4968 = vmatmul.msk.bf16.gmra.mxu2 %vm4531_vm0, %v4994_v59  ;;  %v4029_v59 = vrot.slane %v4027_v3, 4 }
 0x3d6   : > { %4305 = vst.msk [vmem:[#allocation2 + $0x38] sm:$0xf] %vm4290_vm15, %v4175_v17  ;;  %v4063_v17 = vrot.slane %v3924_v19, 5  ;;  %v3583_v54 = vor.u32 %v3582_v12, %v3578_v51  ;;  %v3694_v33 = vrot.slane %v3693_v15, 4  ;;  %v3951_v15 = vld [vmem:[%s5085_s17 + $0xd8] sm:$0x1] }
 0x3d7   : > { %v4031_v60 = vsel %vm5350_vm7, %v4029_v59, %v4030_v58  ;;  %v3450_v59 = vshrl.u32 %v7191_v28, 16 }
 0x3d8   : > { %4236 = vrot.lane.b32.xlu2 %v4139_v53, %s5050_s25  ;;  %v4065_v10 = vrot.slane %v4063_v17, 4  ;;  %v3573_v53 = vor.u32 %v3572_v43, %v7138_v14  ;;  %v4105_v14 = vrot.slane %v3938_v30, 5  ;;  %v4140_v30 = vrot.slane %v4138_v63, 4 }
 0x3d9   : > { %3728 = vrot.lane.b32.xlu1 %v3329_v61, %s5049_s24  ;;  %v3696_v61 = vshll.u32 %v3224_v21, 16 }
 0x3da   : > { %3726 = vrot.lane.b32.xlu0 %v3319_v49, %s5049_s24  ;;  %v4203_v11 = vpop.permute.xlu2 %4202  ;;  %v4067_v0 = vsel %vm5350_vm7, %v4065_v10, %v4066_v48  ;;  %v4064_v49 = vsel %vm5350_vm7, %v4062_v40, %v4063_v17  ;;  %v4107_v8 = vrot.slane %v4105_v14, 4  ;;  %v3200_v10 = vld [vmem:[%s5085_s17 + $0x74] sm:$0xf] }
 0x3db   : > { %v4153_v26 = vpop.permute.xlu1 %4152  ;;  %v3698_v55 = vrot.slane %v3696_v61, 5 }
 0x3dc   : > { %4294 = vst.msk [vmem:[#allocation2 + $0xc] sm:$0xf] %vm4290_vm15, %v4153_v26  ;;  %v4151_v13 = vpop.permute.xlu0 %4150  ;;  %v5000_v38 = vld [vmem:[#allocation2 + $0x98] sm:$0xff]  ;;  %v3584_v26 = vrot.slane %v3583_v54, 4 }
 0x3dd   : > { %4293 = vst.msk [vmem:[#allocation2 + $0x8] sm:$0xf] %vm4290_vm15, %v4151_v13  ;;  %4974 = vmatmul.msk.bf16.gmra.mxu3 %vm4531_vm0, %v5000_v38  ;;  %v3574_v13 = vrot.slane %v3573_v53, 4  ;;  %v3702_v38 = vrot.slane %v3700_v57, 4  ;;  %v3699_v31 = vsel %vm5095_vm2, %v3694_v33, %v3698_v55  ;;  %v3452_v53 = vrot.slane %v3450_v59, 4 }
 0x3df   : > { %v3579_v17 = vsel %vm5095_vm2, %v3574_v13, %v3578_v51  ;;  %v4109_v51 = vsel %vm5350_vm7, %v4107_v8, %v4108_v46  ;;  %v3453_v44 = vor.u32 %v3452_v53, %v7215_v23  ;;  %v3914_v23 = vld [vmem:[%s5085_s17 + $0x44] sm:$0xf] }
 0x3e0   : > { %3750 = vrot.lane.b32.xlu2 %v3439_v39, %s5049_s24  ;;  %v4104_v39 = vrot.slane %v4102_v5, 4  ;;  %v4033_v8 = vrot.slane %v3914_v23, 5 }
 0x3e1   : > { %4162 = vrot.lane.b32.xlu1 %v4028_v41, %s5050_s25  ;;  %v3589_v41 = vsel %vm5095_vm2, %v3584_v26, %v6596_v16  ;;  %v3188_v16 = vld [vmem:[%s5085_s17 + $0x44] sm:$0xf] }
 0x3e2   : > { %3752 = vrot.lane.b32.xlu0 %v3449_v2, %s5049_s24  ;;  %v4229_v42 = vpop.permute.xlu2 %4228  ;;  %v3706_v2 = vshll.u32 %v3225_v18, 16  ;;  %v3336_v12 = vshll.u32 %v3188_v16, 16  ;;  %v4106_v43 = vsel %vm5350_vm7, %v4104_v39, %v4105_v14  ;;  %v3454_v18 = vrot.slane %v3453_v44, 4 }
 0x3e3   : > { %v3767_v56 = vpop.permute.xlu1 %3766  ;;  %v4034_v27 = vsel %vm5350_vm7, %v4032_v24, %v4033_v8 }
 0x3e4   : > { %3883 = vst.msk [vmem:[#allocation2 + $0x70] sm:$0xf] %vm3854_vm13, %v3767_v56  ;;  %v4177_v7 = vpop.permute.xlu0 %4176  ;;  %v4982_v22 = vld [vmem:[#allocation2 + $0x8] sm:$0xff]  ;;  %v3950_v56 = vld [vmem:[%s5085_s17 + $0xd4] sm:$0xf]  ;;  %v3708_v21 = vrot.slane %v3706_v2, 5 }
 0x3e5   : > { %4306 = vst.msk [vmem:[#allocation2 + $0x3c] sm:$0xf] %vm4290_vm15, %v4177_v7  ;;  %4956 = vmatmul.msk.bf16.gmra.mxu0 %vm4531_vm0, %v4982_v22  ;;  %v3456_v7 = vshll.u32 %v3200_v10, 16  ;;  %v3460_v22 = vshrl.u32 %v3200_v10, 16  ;;  %v3926_v2 = vld [vmem:[%s5085_s17 + $0x74] sm:$0xf] }
 0x3e6   : > { %4319 = vst.msk [vmem:[#allocation2 + $0x70] sm:$0xf] %vm4290_vm15, %v4203_v11  ;;  %v3330_v11 = vshrl.u32 %v7164_v32, 16  ;;  %v3703_v32 = vor.u32 %v3702_v38, %v3698_v55  ;;  %v4069_v39 = vrot.slane %v3926_v2, 5 }
 0x3e7   : > { %v3458_v61 = vrot.slane %v3456_v7, 5 }
 0x3e8   : > { %4164 = vrot.lane.b32.xlu2 %v4031_v60, %s5050_s25  ;;  %v3332_v4 = vrot.slane %v3330_v11, 4  ;;  %v3704_v40 = vrot.slane %v3703_v32, 4  ;;  %v4144_v60 = vrot.slane %v3951_v15, 5 }
 0x3e9   : > { %4188 = vrot.lane.b32.xlu1 %v4067_v0, %s5050_s25  ;;  %v3340_v0 = vshrl.u32 %v3188_v16, 16  ;;  %v3459_v32 = vsel %vm5095_vm2, %v3454_v18, %v3458_v61 }
 0x3ea   : > { %4186 = vrot.lane.b32.xlu0 %v4064_v49, %s5050_s25  ;;  %v4155_v62 = vpop.permute.xlu2 %4154  ;;  %v3333_v5 = vor.u32 %v3332_v4, %v7187_v47  ;;  %v3709_v34 = vsel %vm5095_vm2, %v3704_v40, %v3708_v21  ;;  %v3338_v47 = vrot.slane %v3336_v12, 5  ;;  %v3462_v49 = vrot.slane %v3460_v22, 4 }
 0x3eb   : > { %v3793_v3 = vpop.permute.xlu1 %3792  ;;  %4295 = vst.msk [vmem:[#allocation2 + $0x10] sm:$0xf] %vm4290_vm15, %v4155_v62  ;;  %v4071_v21 = vrot.slane %v4069_v39, 4 }
 0x3ec   : > { %3896 = vst.msk [vmem:[#allocation2 + $0xa4] sm:$0xf] %vm3854_vm13, %v3793_v3  ;;  %v3791_v50 = vpop.permute.xlu0 %3790  ;;  %v4988_v19 = vld [vmem:[#allocation2 + $0x38] sm:$0xff]  ;;  %v3334_v46 = vrot.slane %v3333_v5, 4  ;;  %v3342_v3 = vrot.slane %v3340_v0, 4 }
 0x3ed   : > { %3895 = vst.msk [vmem:[#allocation2 + $0xa0] sm:$0xf] %vm3854_vm13, %v3791_v50  ;;  %4962 = vmatmul.msk.bf16.gmra.mxu1 %vm4531_vm0, %v4988_v19  ;;  %v3463_v19 = vor.u32 %v3462_v49, %v3458_v61 }
 0x3ee   : > { %4332 = vst.msk [vmem:[#allocation2 + $0xa4] sm:$0xf] %vm4290_vm15, %v4229_v42  ;;  %v4141_v42 = vrot.slane %v3950_v56, 5  ;;  %v3339_v50 = vsel %vm5095_vm2, %v3334_v46, %v3338_v47  ;;  %v3343_v38 = vor.u32 %v3342_v3, %v3338_v47 }
 0x3ef   : > { %v3464_v14 = vrot.slane %v3463_v19, 4 }
 0x3f0   : > { %3778 = vrot.lane.b32.xlu2 %v3579_v17, %s5049_s24  ;;  %v4143_v28 = vrot.slane %v4141_v42, 4  ;;  %v4142_v63 = vsel %vm5350_vm7, %v4140_v30, %v4141_v42 }
 0x3f1   : > { %3802 = vrot.lane.b32.xlu1 %v3699_v31, %s5049_s24  ;;  %v3344_v31 = vrot.slane %v3343_v38, 4  ;;  %v3469_v17 = vsel %vm5095_vm2, %v3464_v14, %v6557_v45  ;;  %v4035_v45 = vrot.slane %v4033_v8, 4 }
 0x3f2   : > { %3780 = vrot.lane.b32.xlu0 %v3589_v41, %s5049_s24  ;;  %v4181_v52 = vpop.permute.xlu2 %4180  ;;  %v4145_v13 = vsel %vm5350_vm7, %v4143_v28, %v4144_v60 }
 0x3f3   : > { %v4227_v29 = vpop.permute.xlu1 %4226  ;;  %v3349_v4 = vsel %vm5095_vm2, %v3344_v31, %v6653_v1 }
 0x3f4   : > { %4331 = vst.msk [vmem:[#allocation2 + $0xa0] sm:$0xf] %vm4290_vm15, %v4227_v29  ;;  %v4205_v37 = vpop.permute.xlu0 %4204  ;;  %v4068_v29 = vrot.slane %v4066_v48, 4  ;;  %v4037_v48 = vsel %vm5350_vm7, %v4035_v45, %v4036_v35  ;;  %v4073_v35 = vsel %vm5350_vm7, %v4071_v21, %v4072_v20 }
 0x3f5   : > { %4320 = vst.msk [vmem:[#allocation2 + $0x74] sm:$0xf] %vm4290_vm15, %v4205_v37 }
 0x3f6   : > { %v4070_v6 = vsel %vm5350_vm7, %v4068_v29, %v4069_v39 }
 0x3f8   : > { %3804 = vrot.lane.b32.xlu2 %v3709_v34, %s5049_s24 }
 0x3f9   : > { %4216 = vrot.lane.b32.xlu1 %v4109_v51, %s5050_s25 }
 0x3fa   : > { %4214 = vrot.lane.b32.xlu0 %v4106_v43, %s5050_s25  ;;  %v3795_v26 = vpop.permute.xlu2 %3794  ;;  %v7380_v43 = vld [vmem:[%s7578_s2] ss:$0 sm:$0xff] }
 0x3fb   : > { %v3745_v54 = vpop.permute.xlu1 %3744  ;;  %v5001_v57 = vld [vmem:[#allocation2 + $0xa0] sm:$0xff]  ;;  %3897 = vst.msk [vmem:[#allocation2 + $0xa8] sm:$0xf] %vm3854_vm13, %v3795_v26 }
 0x3fc   : > { %3872 = vst.msk [vmem:[#allocation2 + $0x44] sm:$0xf] %vm3854_vm13, %v3745_v54  ;;  %v3743_v33 = vpop.permute.xlu0 %3742  ;;  %v4995_v55 = vld [vmem:[#allocation2 + $0x70] sm:$0xff]  ;;  %4975 = vmatmul.msk.bf16.gmra.mxu3 %vm4531_vm0, %v5001_v57 }
 0x3fd   : > { %3871 = vst.msk [vmem:[#allocation2 + $0x40] sm:$0xf] %vm3854_vm13, %v3743_v33  ;;  %4969 = vmatmul.msk.bf16.gmra.mxu2 %vm4531_vm0, %v4995_v55 }
 0x3fe   : > { %4308 = vst.msk [vmem:[#allocation2 + $0x44] sm:$0xf] %vm4290_vm15, %v4181_v52 }
 0x400   : > { %4238 = vrot.lane.b32.xlu2 %v4142_v63, %s5050_s25 }
 0x401   : > { %3730 = vrot.lane.b32.xlu1 %v3339_v50, %s5049_s24 }
 0x402   : > { %4240 = vrot.lane.b32.xlu0 %v4145_v13, %s5050_s25  ;;  %v4209_v41 = vpop.permute.xlu2 %4208 }
 0x403   : > { %v4179_v62 = vpop.permute.xlu1 %4178 }
 0x404   : > { %4307 = vst.msk [vmem:[#allocation2 + $0x40] sm:$0xf] %vm4290_vm15, %v4179_v62  ;;  %v4157_v11 = vpop.permute.xlu0 %4156 }
 0x405   : > { %4296 = vst.msk [vmem:[#allocation2 + $0x14] sm:$0xf] %vm4290_vm15, %v4157_v11 }
 0x408   : > { %3732 = vrot.lane.b32.xlu2 %v3349_v4, %s5049_s24 }
 0x409   : > { %3756 = vrot.lane.b32.xlu1 %v3469_v17, %s5049_s24 }
 0x40a   : > { %3754 = vrot.lane.b32.xlu0 %v3459_v32, %s5049_s24  ;;  %v3723_v1 = vpop.permute.xlu2 %3722 }
 0x40b   : > { %v3773_v16 = vpop.permute.xlu1 %3772  ;;  %v4989_v10 = vld [vmem:[#allocation2 + $0x40] sm:$0xff]  ;;  %3861 = vst.msk [vmem:[#allocation2 + $0x18] sm:$0xf] %vm3854_vm13, %v3723_v1 }
 0x40c   : > { %3886 = vst.msk [vmem:[#allocation2 + $0x7c] sm:$0xf] %vm3854_vm13, %v3773_v16  ;;  %v3771_v37 = vpop.permute.xlu0 %3770  ;;  %v4983_v56 = vld [vmem:[#allocation2 + $0x10] sm:$0xff]  ;;  %4963 = vmatmul.msk.bf16.gmra.mxu1 %vm4531_vm0, %v4989_v10 }
 0x40d   : > { %3885 = vst.msk [vmem:[#allocation2 + $0x78] sm:$0xf] %vm3854_vm13, %v3771_v37  ;;  %4957 = vmatmul.msk.bf16.gmra.mxu0 %vm4531_vm0, %v4983_v56 }
 0x40e   : > { %4322 = vst.msk [vmem:[#allocation2 + $0x7c] sm:$0xf] %vm4290_vm15, %v4209_v41 }
 0x410   : > { %4166 = vrot.lane.b32.xlu2 %v4034_v27, %s5050_s25 }
 0x411   : > { %4190 = vrot.lane.b32.xlu1 %v4070_v6, %s5050_s25 }
 0x412   : > { %4168 = vrot.lane.b32.xlu0 %v4037_v48, %s5050_s25  ;;  %v3749_v25 = vpop.permute.xlu2 %3748 }
 0x413   : > { %v4207_v58 = vpop.permute.xlu1 %4206  ;;  %3874 = vst.msk [vmem:[#allocation2 + $0x4c] sm:$0xf] %vm3854_vm13, %v3749_v25 }
 0x414   : > { %4321 = vst.msk [vmem:[#allocation2 + $0x78] sm:$0xf] %vm4290_vm15, %v4207_v58  ;;  %v3797_v40 = vpop.permute.xlu0 %3796 }
 0x415   : > { %3898 = vst.msk [vmem:[#allocation2 + $0xac] sm:$0xf] %vm3854_vm13, %v3797_v40 }
 0x418   : > { %4192 = vrot.lane.b32.xlu2 %v4073_v35, %s5050_s25 }
 0x41a   : > { %v4183_v12 = vpop.permute.xlu2 %4182 }
 0x41b   : > { %v4233_v51 = vpop.permute.xlu1 %4232  ;;  %v4996_v52 = vld [vmem:[#allocation2 + $0x78] sm:$0xff] }
 0x41c   : > { %4334 = vst.msk [vmem:[#allocation2 + $0xac] sm:$0xf] %vm4290_vm15, %v4233_v51  ;;  %v4231_v5 = vpop.permute.xlu0 %4230  ;;  %4970 = vmatmul.msk.bf16.gmra.mxu2 %vm4531_vm0, %v4996_v52 }
 0x41d   : > { %4333 = vst.msk [vmem:[#allocation2 + $0xa8] sm:$0xf] %vm4290_vm15, %v4231_v5 }
 0x422   : > { %v3777_v36 = vpop.permute.xlu2 %3776 }
 0x423   : > { %v3747_v7 = vpop.permute.xlu1 %3746  ;;  %3888 = vst.msk [vmem:[#allocation2 + $0x84] sm:$0xf] %vm3854_vm13, %v3777_v36 }
 0x424   : > { %3873 = vst.msk [vmem:[#allocation2 + $0x48] sm:$0xf] %vm3854_vm13, %v3747_v7  ;;  %v3725_v9 = vpop.permute.xlu0 %3724  ;;  %v5002_v22 = vld [vmem:[#allocation2 + $0xa8] sm:$0xff] }
 0x425   : > { %3862 = vst.msk [vmem:[#allocation2 + $0x1c] sm:$0xf] %vm3854_vm13, %v3725_v9  ;;  %4976 = vmatmul.msk.bf16.gmra.mxu3 %vm4531_vm0, %v5002_v22 }
 0x426   : > { %4309 = vst.msk [vmem:[#allocation2 + $0x48] sm:$0xf] %vm4290_vm15, %v4183_v12 }
 0x42a   : > { %v4211_v42 = vpop.permute.xlu2 %4210 }
 0x42b   : > { %v4161_v20 = vpop.permute.xlu1 %4160 }
 0x42c   : > { %4298 = vst.msk [vmem:[#allocation2 + $0x1c] sm:$0xf] %vm4290_vm15, %v4161_v20  ;;  %v4159_v59 = vpop.permute.xlu0 %4158 }
 0x42d   : > { %4297 = vst.msk [vmem:[#allocation2 + $0x18] sm:$0xf] %vm4290_vm15, %v4159_v59 }
 0x42f   : > { %v4677_v0 = vpop.f32.mrf.mxu2 }
 0x430   : > { %v4678_v15 = vadd.f32 %v7380_v43, %v4677_v0 }
 0x432   : > { %4762 = vst.msk [vmem:[%s7385_s10 + $0xc0] sm:$0xff] %vm4737_vm1, %v4678_v15  ;;  %v4237_v61 = vpop.permute.xlu2 %4236 }
 0x433   : > { %v3775_v34 = vpop.permute.xlu1 %3774 }
 0x434   : > { %3887 = vst.msk [vmem:[#allocation2 + $0x80] sm:$0xf] %vm3854_vm13, %v3775_v34  ;;  %v4185_v46 = vpop.permute.xlu0 %4184  ;;  %v4984_v47 = vld [vmem:[#allocation2 + $0x18] sm:$0xff] }
 0x435   : > { %4310 = vst.msk [vmem:[#allocation2 + $0x4c] sm:$0xf] %vm4290_vm15, %v4185_v46  ;;  %4958 = vmatmul.msk.bf16.gmra.mxu0 %vm4531_vm0, %v4984_v47 }
 0x436   : > { %4323 = vst.msk [vmem:[#allocation2 + $0x80] sm:$0xf] %vm4290_vm15, %v4211_v42 }
 0x437   : > { %v4679_v49 = vpop.f32.mrf.mxu2 }
 0x438   : > { %v4680_v54 = vadd.f32 %v7380_v43, %v4679_v49  ;;  %v4707_v57 = vpop.f32.mrf.mxu3 }
 0x439   : > { %v4708_v28 = vadd.f32 %v7380_v43, %v4707_v57  ;;  %v4617_v60 = vpop.f32.mrf.mxu0 }
 0x43a   : > { %4763 = vst.msk [vmem:[%s7385_s10 + $0xc8] sm:$0xff] %vm4737_vm1, %v4680_v54  ;;  %v4618_v33 = vadd.f32 %v7380_v43, %v4617_v60  ;;  %v3751_v3 = vpop.permute.xlu2 %3750 }
 0x43b   : > { %v3801_v53 = vpop.permute.xlu1 %3800  ;;  %4774 = vst.msk [vmem:[%s7385_s10 + $0x120] sm:$0xff] %vm4737_vm1, %v4708_v28 }
 0x43c   : > { %v3799_v55 = vpop.permute.xlu0 %3798  ;;  %v4990_v30 = vld [vmem:[#allocation2 + $0x48] sm:$0xff]  ;;  %3900 = vst.msk [vmem:[#allocation2 + $0xb4] sm:$0xf] %vm3854_vm13, %v3801_v53 }
 0x43d   : > { %3899 = vst.msk [vmem:[#allocation2 + $0xb0] sm:$0xf] %vm3854_vm13, %v3799_v55  ;;  %4964 = vmatmul.msk.bf16.gmra.mxu1 %vm4531_vm0, %v4990_v30 }
 0x43e   : > { %4738 = vst.msk [vmem:[%s7385_s10] sm:$0xff] %vm4737_vm1, %v4618_v33 }
 0x43f   : > { %4336 = vst.msk [vmem:[#allocation2 + $0xb4] sm:$0xf] %vm4290_vm15, %v4237_v61 }
 0x440   : > { %v4709_v26 = vpop.f32.mrf.mxu3  ;;  %3875 = vst.msk [vmem:[#allocation2 + $0x50] sm:$0xf] %vm3854_vm13, %v3751_v3 }
 0x441   : > { %v4710_v50 = vadd.f32 %v7380_v43, %v4709_v26  ;;  %v4619_v19 = vpop.f32.mrf.mxu0 }
 0x442   : > { %v4620_v44 = vadd.f32 %v7380_v43, %v4619_v19  ;;  %v4647_v63 = vpop.f32.mrf.mxu1  ;;  %v4165_v62 = vpop.permute.xlu2 %4164 }
 0x443   : > { %v4235_v13 = vpop.permute.xlu1 %4234  ;;  %4775 = vst.msk [vmem:[%s7385_s10 + $0x128] sm:$0xff] %vm4737_vm1, %v4710_v50  ;;  %v4648_v14 = vadd.f32 %v7380_v43, %v4647_v63 }
 0x444   : > { %v4213_v38 = vpop.permute.xlu0 %4212  ;;  %4335 = vst.msk [vmem:[#allocation2 + $0xb0] sm:$0xf] %vm4290_vm15, %v4235_v13 }
 0x445   : > { %4324 = vst.msk [vmem:[#allocation2 + $0x84] sm:$0xf] %vm4290_vm15, %v4213_v38 }
 0x446   : > { %4739 = vst.msk [vmem:[%s7385_s10 + $0x8] sm:$0xff] %vm4737_vm1, %v4620_v44 }
 0x447   : > { %4750 = vst.msk [vmem:[%s7385_s10 + $0x60] sm:$0xff] %vm4737_vm1, %v4648_v14 }
 0x44a   : > { %v4649_v11 = vpop.f32.mrf.mxu1  ;;  %v3779_v32 = vpop.permute.xlu2 %3778 }
 0x44b   : > { %v3729_v18 = vpop.permute.xlu1 %3728  ;;  %v4650_v31 = vadd.f32 %v7380_v43, %v4649_v11  ;;  %v5003_v41 = vld [vmem:[#allocation2 + $0xb0] sm:$0xff]  ;;  %3889 = vst.msk [vmem:[#allocation2 + $0x88] sm:$0xf] %vm3854_vm13, %v3779_v32 }
 0x44c   : > { %3864 = vst.msk [vmem:[#allocation2 + $0x24] sm:$0xf] %vm3854_vm13, %v3729_v18  ;;  %v3727_v23 = vpop.permute.xlu0 %3726  ;;  %v4997_v17 = vld [vmem:[#allocation2 + $0x80] sm:$0xff]  ;;  %4977 = vmatmul.msk.bf16.gmra.mxu3 %vm4531_vm0, %v5003_v41 }
 0x44d   : > { %3863 = vst.msk [vmem:[#allocation2 + $0x20] sm:$0xf] %vm3854_vm13, %v3727_v23  ;;  %4971 = vmatmul.msk.bf16.gmra.mxu2 %vm4531_vm0, %v4997_v17 }
 0x44e   : > { %4751 = vst.msk [vmem:[%s7385_s10 + $0x68] sm:$0xff] %vm4737_vm1, %v4650_v31 }
 0x44f   : > { %4300 = vst.msk [vmem:[#allocation2 + $0x24] sm:$0xf] %vm4290_vm15, %v4165_v62 }
 0x452   : > { %v3805_v4 = vpop.permute.xlu2 %3804 }
 0x453   : > { %v4163_v2 = vpop.permute.xlu1 %4162  ;;  %3902 = vst.msk [vmem:[#allocation2 + $0xbc] sm:$0xf] %vm3854_vm13, %v3805_v4 }
 0x454   : > { %4299 = vst.msk [vmem:[#allocation2 + $0x20] sm:$0xf] %vm4290_vm15, %v4163_v2  ;;  %v3753_v8 = vpop.permute.xlu0 %3752 }
 0x455   : > { %3876 = vst.msk [vmem:[#allocation2 + $0x54] sm:$0xf] %vm3854_vm13, %v3753_v8 }
 0x458   : > { %v4682_v29 = vpop.f32.mrf.mxu2 }
 0x459   : > { %v4683_v39 = vadd.f32 %v7380_v43, %v4682_v29 }
 0x45a   : > { %v4239_v37 = vpop.permute.xlu2 %4238 }
 0x45b   : > { %v4189_v16 = vpop.permute.xlu1 %4188  ;;  %v4985_v10 = vld [vmem:[#allocation2 + $0x20] sm:$0xff]  ;;  %4764 = vst.msk [vmem:[%s7385_s10 + $0xd0] sm:$0xff] %vm4737_vm1, %v4683_v39 }
 0x45c   : > { %v4187_v45 = vpop.permute.xlu0 %4186  ;;  %4312 = vst.msk [vmem:[#allocation2 + $0x54] sm:$0xf] %vm4290_vm15, %v4189_v16  ;;  %4959 = vmatmul.msk.bf16.gmra.mxu0 %vm4531_vm0, %v4985_v10 }
 0x45d   : > { %4311 = vst.msk [vmem:[#allocation2 + $0x50] sm:$0xf] %vm4290_vm15, %v4187_v45 }
 0x460   : > { %v4684_v56 = vpop.f32.mrf.mxu2  ;;  %v4712_v24 = vpop.f32.mrf.mxu3 }
 0x461   : > { %v4685_v1 = vadd.f32 %v7380_v43, %v4684_v56  ;;  %v4713_v6 = vadd.f32 %v7380_v43, %v4712_v24 }
 0x462   : > { %v4622_v27 = vpop.f32.mrf.mxu0  ;;  %v3733_v25 = vpop.permute.xlu2 %3732 }
 0x463   : > { %v3803_v48 = vpop.permute.xlu1 %3802  ;;  %4765 = vst.msk [vmem:[%s7385_s10 + $0xd8] sm:$0xff] %vm4737_vm1, %v4685_v1  ;;  %v4623_v40 = vadd.f32 %v7380_v43, %v4622_v27 }
 0x464   : > { %v3781_v58 = vpop.permute.xlu0 %3780  ;;  %4776 = vst.msk [vmem:[%s7385_s10 + $0x130] sm:$0xff] %vm4737_vm1, %v4713_v6  ;;  %v4991_v21 = vld [vmem:[#allocation2 + $0x50] sm:$0xff] }
 0x465   : > { %3901 = vst.msk [vmem:[#allocation2 + $0xb8] sm:$0xf] %vm3854_vm13, %v3803_v48  ;;  %4965 = vmatmul.msk.bf16.gmra.mxu1 %vm4531_vm0, %v4991_v21 }
 0x466   : > { %3890 = vst.msk [vmem:[#allocation2 + $0x8c] sm:$0xf] %vm3854_vm13, %v3781_v58 }
 0x467   : > { %4740 = vst.msk [vmem:[%s7385_s10 + $0x10] sm:$0xff] %vm4737_vm1, %v4623_v40 }
 0x468   : > { %v4714_v35 = vpop.f32.mrf.mxu3  ;;  %4337 = vst.msk [vmem:[#allocation2 + $0xb8] sm:$0xf] %vm4290_vm15, %v4239_v37 }
 0x469   : > { %v4715_v51 = vadd.f32 %v7380_v43, %v4714_v35  ;;  %3866 = vst.msk [vmem:[#allocation2 + $0x2c] sm:$0xf] %vm3854_vm13, %v3733_v25 }
 0x46a   : > { %v4624_v5 = vpop.f32.mrf.mxu0  ;;  %v4652_v9 = vpop.f32.mrf.mxu1 }
 0x46b   : > { %v4217_v52 = vpop.permute.xlu1 %4216  ;;  %4777 = vst.msk [vmem:[%s7385_s10 + $0x138] sm:$0xff] %vm4737_vm1, %v4715_v51  ;;  %v4625_v7 = vadd.f32 %v7380_v43, %v4624_v5  ;;  %v4653_v22 = vadd.f32 %v7380_v43, %v4652_v9  ;;  %v4167_v36 = vpop.permute.xlu2 %4166 }
 0x46c   : > { %v4215_v12 = vpop.permute.xlu0 %4214  ;;  %4326 = vst.msk [vmem:[#allocation2 + $0x8c] sm:$0xf] %vm4290_vm15, %v4217_v52 }
 0x46d   : > { %4325 = vst.msk [vmem:[#allocation2 + $0x88] sm:$0xf] %vm4290_vm15, %v4215_v12 }
 0x46e   : > { %4741 = vst.msk [vmem:[%s7385_s10 + $0x18] sm:$0xff] %vm4737_vm1, %v4625_v7 }
 0x46f   : > { %4752 = vst.msk [vmem:[%s7385_s10 + $0x70] sm:$0xff] %vm4737_vm1, %v4653_v22 }
 0x472   : > { %v4654_v42 = vpop.f32.mrf.mxu1 }
 0x473   : > { %v3731_v20 = vpop.permute.xlu1 %3730  ;;  %v4655_v0 = vadd.f32 %v7380_v43, %v4654_v42  ;;  %v4193_v46 = vpop.permute.xlu2 %4192 }
 0x474   : > { %3865 = vst.msk [vmem:[#allocation2 + $0x28] sm:$0xf] %vm3854_vm13, %v3731_v20  ;;  %v4241_v59 = vpop.permute.xlu0 %4240  ;;  %v4998_v15 = vld [vmem:[#allocation2 + $0x88] sm:$0xff] }
 0x475   : > { %4338 = vst.msk [vmem:[#allocation2 + $0xbc] sm:$0xf] %vm4290_vm15, %v4241_v59  ;;  %4972 = vmatmul.msk.bf16.gmra.mxu2 %vm4531_vm0, %v4998_v15 }
 0x476   : > { %4301 = vst.msk [vmem:[#allocation2 + $0x28] sm:$0xf] %vm4290_vm15, %v4167_v36 }
 0x477   : > { %4753 = vst.msk [vmem:[%s7385_s10 + $0x78] sm:$0xff] %vm4737_vm1, %v4655_v0 }
 0x47b   : > { %v3757_v34 = vpop.permute.xlu1 %3756 }
 0x47c   : > { %3878 = vst.msk [vmem:[#allocation2 + $0x5c] sm:$0xf] %vm3854_vm13, %v3757_v34  ;;  %v3755_v47 = vpop.permute.xlu0 %3754  ;;  %v5004_v61 = vld [vmem:[#allocation2 + $0xb8] sm:$0xff] }
 0x47d   : > { %3877 = vst.msk [vmem:[#allocation2 + $0x58] sm:$0xf] %vm3854_vm13, %v3755_v47  ;;  %4978 = vmatmul.msk.bf16.gmra.mxu3 %vm4531_vm0, %v5004_v61 }
 0x47e   : > { %4314 = vst.msk [vmem:[#allocation2 + $0x5c] sm:$0xf] %vm4290_vm15, %v4193_v46 }
 0x47f   : > { %v4717_v49 = vpop.f32.mrf.mxu3 }
 0x480   : > { %v4687_v54 = vpop.f32.mrf.mxu2  ;;  %v4718_v57 = vadd.f32 %v7380_v43, %v4717_v49 }
 0x481   : > { %v4688_v28 = vadd.f32 %v7380_v43, %v4687_v54 }
 0x482   : > { %4778 = vst.msk [vmem:[%s7385_s10 + $0x140] sm:$0xff] %vm4737_vm1, %v4718_v57 }
 0x483   : > { %v4191_v60 = vpop.permute.xlu1 %4190  ;;  %4766 = vst.msk [vmem:[%s7385_s10 + $0xe0] sm:$0xff] %vm4737_vm1, %v4688_v28 }
 0x484   : > { %v4169_v53 = vpop.permute.xlu0 %4168  ;;  %4313 = vst.msk [vmem:[#allocation2 + $0x58] sm:$0xf] %vm4290_vm15, %v4191_v60 }
 0x485   : > { %4302 = vst.msk [vmem:[#allocation2 + $0x2c] sm:$0xf] %vm4290_vm15, %v4169_v53 }
 0x487   : > { %v4719_v33 = vpop.f32.mrf.mxu3 }
 0x488   : > { %v4689_v55 = vpop.f32.mrf.mxu2  ;;  %v4720_v30 = vadd.f32 %v7380_v43, %v4719_v33 }
 0x489   : > { %v4690_v3 = vadd.f32 %v7380_v43, %v4689_v55  ;;  %v4657_v26 = vpop.f32.mrf.mxu1 }
 0x48a   : > { %4779 = vst.msk [vmem:[%s7385_s10 + $0x148] sm:$0xff] %vm4737_vm1, %v4720_v30  ;;  %v4627_v50 = vpop.f32.mrf.mxu0  ;;  %v4658_v19 = vadd.f32 %v7380_v43, %v4657_v26 }
 0x48b   : > { %4767 = vst.msk [vmem:[%s7385_s10 + $0xe8] sm:$0xff] %vm4737_vm1, %v4690_v3  ;;  %v4628_v13 = vadd.f32 %v7380_v43, %v4627_v50  ;;  %v4992_v44 = vld [vmem:[#allocation2 + $0x58] sm:$0xff] }
 0x48c   : > { %4754 = vst.msk [vmem:[%s7385_s10 + $0x80] sm:$0xff] %vm4737_vm1, %v4658_v19  ;;  %v4986_v63 = vld [vmem:[#allocation2 + $0x28] sm:$0xff]  ;;  %4966 = vmatmul.msk.bf16.gmra.mxu1 %vm4531_vm0, %v4992_v44 }
 0x48d   : > { %4742 = vst.msk [vmem:[%s7385_s10 + $0x20] sm:$0xff] %vm4737_vm1, %v4628_v13  ;;  %4960 = vmatmul.msk.bf16.gmra.mxu0 %vm4531_vm0, %v4986_v63 }
 0x491   : > { %v4659_v38 = vpop.f32.mrf.mxu1 }
 0x492   : > { %v4629_v14 = vpop.f32.mrf.mxu0  ;;  %v4660_v62 = vadd.f32 %v7380_v43, %v4659_v38 }
 0x493   : > { %v4630_v18 = vadd.f32 %v7380_v43, %v4629_v14 }
 0x494   : > { %4755 = vst.msk [vmem:[%s7385_s10 + $0x88] sm:$0xff] %vm4737_vm1, %v4660_v62 }
 0x495   : > { %4743 = vst.msk [vmem:[%s7385_s10 + $0x28] sm:$0xff] %vm4737_vm1, %v4630_v18 }
 0x49f   : > { %v4692_v11 = vpop.f32.mrf.mxu2 }
 0x4a0   : > { %v4693_v23 = vadd.f32 %v7380_v43, %v4692_v11 }
 0x4a2   : > { %4768 = vst.msk [vmem:[%s7385_s10 + $0xf0] sm:$0xff] %vm4737_vm1, %v4693_v23 }
 0x4a7   : > { %v4694_v31 = vpop.f32.mrf.mxu2 }
 0x4a8   : > { %v4695_v41 = vadd.f32 %v7380_v43, %v4694_v31  ;;  %v4722_v17 = vpop.f32.mrf.mxu3 }
 0x4a9   : > { %v4723_v32 = vadd.f32 %v7380_v43, %v4722_v17 }
 0x4aa   : > { %4769 = vst.msk [vmem:[%s7385_s10 + $0xf8] sm:$0xff] %vm4737_vm1, %v4695_v41 }
 0x4ab   : > { %4780 = vst.msk [vmem:[%s7385_s10 + $0x150] sm:$0xff] %vm4737_vm1, %v4723_v32 }
 0x4b0   : > { %v4724_v2 = vpop.f32.mrf.mxu3 }
 0x4b1   : > { %v4725_v8 = vadd.f32 %v7380_v43, %v4724_v2 }
 0x4b2   : > { %v4632_v4 = vpop.f32.mrf.mxu0 }
 0x4b3   : > { %4781 = vst.msk [vmem:[%s7385_s10 + $0x158] sm:$0xff] %vm4737_vm1, %v4725_v8  ;;  %v4633_v29 = vadd.f32 %v7380_v43, %v4632_v4 }
 0x4b5   : > { %4744 = vst.msk [vmem:[%s7385_s10 + $0x30] sm:$0xff] %vm4737_vm1, %v4633_v29 }
 0x4ba   : > { %v4634_v39 = vpop.f32.mrf.mxu0  ;;  %v4662_v16 = vpop.f32.mrf.mxu1 }
 0x4bb   : > { %v4635_v10 = vadd.f32 %v7380_v43, %v4634_v39  ;;  %v4663_v45 = vadd.f32 %v7380_v43, %v4662_v16 }
 0x4bd   : > { %4745 = vst.msk [vmem:[%s7385_s10 + $0x38] sm:$0xff] %vm4737_vm1, %v4635_v10 }
 0x4be   : > { %4756 = vst.msk [vmem:[%s7385_s10 + $0x90] sm:$0xff] %vm4737_vm1, %v4663_v45 }
 0x4c2   : > { %v4664_v37 = vpop.f32.mrf.mxu1 }
 0x4c3   : > { %v4665_v56 = vadd.f32 %v7380_v43, %v4664_v37 }
 0x4c5   : > { %4757 = vst.msk [vmem:[%s7385_s10 + $0x98] sm:$0xff] %vm4737_vm1, %v4665_v56 }
 0x4cf   : > { %v4727_v24 = vpop.f32.mrf.mxu3 }
 0x4d0   : > { %v4697_v1 = vpop.f32.mrf.mxu2  ;;  %v4728_v6 = vadd.f32 %v7380_v43, %v4727_v24 }
 0x4d1   : > { %v4698_v48 = vadd.f32 %v7380_v43, %v4697_v1 }
 0x4d2   : > { %4782 = vst.msk [vmem:[%s7385_s10 + $0x160] sm:$0xff] %vm4737_vm1, %v4728_v6 }
 0x4d3   : > { %4770 = vst.msk [vmem:[%s7385_s10 + $0x100] sm:$0xff] %vm4737_vm1, %v4698_v48 }
 0x4d7   : > { %v4729_v27 = vpop.f32.mrf.mxu3 }
 0x4d8   : > { %v4699_v58 = vpop.f32.mrf.mxu2  ;;  %v4730_v40 = vadd.f32 %v7380_v43, %v4729_v27 }
 0x4d9   : > { %v4637_v21 = vpop.f32.mrf.mxu0  ;;  %v4700_v25 = vadd.f32 %v7380_v43, %v4699_v58 }
 0x4da   : > { %v4638_v35 = vadd.f32 %v7380_v43, %v4637_v21  ;;  %4783 = vst.msk [vmem:[%s7385_s10 + $0x168] sm:$0xff] %vm4737_vm1, %v4730_v40 }
 0x4db   : > { %4771 = vst.msk [vmem:[%s7385_s10 + $0x108] sm:$0xff] %vm4737_vm1, %v4700_v25 }
 0x4dc   : > { %4746 = vst.msk [vmem:[%s7385_s10 + $0x40] sm:$0xff] %vm4737_vm1, %v4638_v35 }
 0x4e1   : > { %v4639_v51 = vpop.f32.mrf.mxu0 }
 0x4e2   : > { %v4640_v52 = vadd.f32 %v7380_v43, %v4639_v51  ;;  %v4667_v5 = vpop.f32.mrf.mxu1 }
 0x4e3   : > { %v4668_v12 = vadd.f32 %v7380_v43, %v4667_v5 }
 0x4e4   : > { %4747 = vst.msk [vmem:[%s7385_s10 + $0x48] sm:$0xff] %vm4737_vm1, %v4640_v52 }
 0x4e5   : > { %4758 = vst.msk [vmem:[%s7385_s10 + $0xa0] sm:$0xff] %vm4737_vm1, %v4668_v12 }
 0x4ea   : > { %v4669_v7 = vpop.f32.mrf.mxu1 }
 0x4eb   : > { %v4670_v9 = vadd.f32 %v7380_v43, %v4669_v7 }
 0x4ed   : > { %4759 = vst.msk [vmem:[%s7385_s10 + $0xa8] sm:$0xff] %vm4737_vm1, %v4670_v9 }
 0x4f8   : > { %v4702_v22 = vpop.f32.mrf.mxu2 }
 0x4f9   : > { %v4703_v36 = vadd.f32 %v7380_v43, %v4702_v22 }
 0x4fb   : > { %4772 = vst.msk [vmem:[%s7385_s10 + $0x110] sm:$0xff] %vm4737_vm1, %v4703_v36 }
 0x500   : > { %v4732_v20 = vpop.f32.mrf.mxu3  ;;  %v4704_v59 = vpop.f32.mrf.mxu2 }
 0x501   : > { %v4733_v42 = vadd.f32 %v7380_v43, %v4732_v20  ;;  %v4705_v0 = vadd.f32 %v7380_v43, %v4704_v59 }
 0x503   : > { %4784 = vst.msk [vmem:[%s7385_s10 + $0x170] sm:$0xff] %vm4737_vm1, %v4733_v42 }
 0x504   : > { %4773 = vst.msk [vmem:[%s7385_s10 + $0x118] sm:$0xff] %vm4737_vm1, %v4705_v0 }
 0x508   : > { %v4734_v15 = vpop.f32.mrf.mxu3 }
 0x509   : > { %v4735_v34 = vadd.f32 %v7380_v43, %v4734_v15  ;;  %v4672_v46 = vpop.f32.mrf.mxu1 }
 0x50a   : > { %v4642_v47 = vpop.f32.mrf.mxu0  ;;  %v4673_v61 = vadd.f32 %v7380_v43, %v4672_v46 }
 0x50b   : > { %4785 = vst.msk [vmem:[%s7385_s10 + $0x178] sm:$0xff] %vm4737_vm1, %v4735_v34  ;;  %v4643_v49 = vadd.f32 %v7380_v43, %v4642_v47 }
 0x50c   : > { %4760 = vst.msk [vmem:[%s7385_s10 + $0xb0] sm:$0xff] %vm4737_vm1, %v4673_v61 }
 0x50d   : > { %4748 = vst.msk [vmem:[%s7385_s10 + $0x50] sm:$0xff] %vm4737_vm1, %v4643_v49 }
 0x511   : > { %v4674_v54 = vpop.f32.mrf.mxu1 }
 0x512   : > { %v4644_v57 = vpop.f32.mrf.mxu0  ;;  %v4675_v28 = vadd.f32 %v7380_v43, %v4674_v54 }
 0x513   : > { %v4645_v60 = vadd.f32 %v7380_v43, %v4644_v57 }
 0x514   : > { %4761 = vst.msk [vmem:[%s7385_s10 + $0xb8] sm:$0xff] %vm4737_vm1, %v4675_v28 }
 0x515   : > { %4749 = vst.msk [vmem:[%s7385_s10 + $0x58] sm:$0xff] %vm4737_vm1, %v4645_v60 }
 0x516 PF: > { %s13_s12 = sadd.s32 1, %s5041_s12  }
 0x517   : > { %p10_p4 = scmp.ge.s32.totalorder %s13_s12, 4  }
 0x519   :  { %12 = sbr.rel (!%p10_p4) target bundleno = 1 (0x1), region = 62 }

</bundles_post_ra>
